<compile_context>
chip_gen: v5e
topology: v5e:2x2
jax: 0.10.0
libtpu: 0.0.40
codegen_flags: <defaults>
</compile_context>

<pallas_src>
import functools
import math

import jax
import jax.numpy as jnp
from jax.experimental import pallas as pl
from jax.experimental.pallas import tpu as pltpu


# ----------------------------------------------------------------------------
# In-kernel helper: 3x3 same-conv + bias + ReLU as a 9-tap accumulation
# ----------------------------------------------------------------------------
def _conv3x3_relu(xp_ref, act, w_taps_ref, b_row, H, W, Cin, Cout):
    """act: [H, W, Cin] value.  xp_ref: [H+2, W+2, Cin] bf16 VMEM scratch
    (fully rewritten each call, so cross-grid-step reuse is safe).
    w_taps_ref: [9, Cin, Cout] bf16, tap index = dy*3 + dx.  b_row: [1, Cout]
    f32.  Returns [H*W, Cout] f32, rows in (y, x) row-major order."""
    xp_ref[...] = jnp.zeros_like(xp_ref)                      # zero border
    xp_ref[1:H + 1, 1:W + 1, :] = act.astype(xp_ref.dtype)    # interior
    acc = jnp.zeros((H * W, Cout), jnp.float32)
    for dy in range(3):
        for dx in range(3):
            tap = xp_ref[dy:dy + H, dx:dx + W, :].reshape(H * W, Cin)
            acc = acc + jnp.dot(tap, w_taps_ref[dy * 3 + dx],
                                preferred_element_type=jnp.float32)
    return jnp.maximum(acc + b_row, 0.0)


# ----------------------------------------------------------------------------
# The single fused kernel (one grid step == one batch element)
# ----------------------------------------------------------------------------
def vgg_mm_kernel(x_ref,
                  w1_ref, b1_ref, w2_ref, b2_ref, wb_ref, bb_ref,
                  wMc_ref, bM_ref, w1c_ref, b1c_ref,
                  wc2_ref, bc2_ref, wc3_ref, bc3_ref,
                  maj_ref, min_ref,
                  xp1_ref, mp_ref, xp2_ref, xp3_ref):
    # ---- features: conv1 (3 -> 16) + ReLU ---------------------------------
    x = x_ref[0]                                                  # [16,16,3] bf16
    y1 = _conv3x3_relu(xp1_ref, x, w1_ref, b1_ref[...],
                       16, 16, 3, 16)                             # [256,16] f32

    # ---- features: maxpool 2x2 --------------------------------------------
    # rows of y1 are r = 16*y + x, so even/odd x == even/odd row.
    mp_ref[...] = y1
    xe = mp_ref[pl.ds(0, 128, stride=2), :]                       # even-x rows
    xo = mp_ref[pl.ds(1, 128, stride=2), :]                       # odd-x rows
    m = jnp.maximum(xe, xo).reshape(8, 2, 8, 16)                  # (y//2, y%2, x//2, c)
    yp = jnp.maximum(m[:, 0], m[:, 1])                            # [8,8,16] f32

    # ---- features: conv2 (16 -> 32) + ReLU --------------------------------
    y2 = _conv3x3_relu(xp2_ref, yp, w2_ref, b2_ref[...],
                       8, 8, 16, 32)                              # [64,32] f32

    # ---- major||minor branch convs fused as one (32 -> 32||32) + ReLU -----
    yb = _conv3x3_relu(xp3_ref, y2.reshape(8, 8, 32), wb_ref, bb_ref[...],
                       8, 8, 32, 64)                              # [64,64] f32

    # ---- both adaptive avg-pools (2x2 out, 4x4 cells) as per-cell sums ----
    # (1/16 mean factor, NCHW flatten order and `x += x_major` folded into
    #  wMc / w1c host-side)
    yb3 = yb.reshape(8, 8, 64)                                    # (y, x, c)
    top = yb3[0] + yb3[1] + yb3[2] + yb3[3]                       # y in [0,4)
    bot = yb3[4] + yb3[5] + yb3[6] + yb3[7]                       # y in [4,8)
    cells = (jnp.sum(top[0:4], axis=0, keepdims=True),            # cell (0,0) [1,64]
             jnp.sum(top[4:8], axis=0, keepdims=True),            # cell (0,1)
             jnp.sum(bot[0:4], axis=0, keepdims=True),            # cell (1,0)
             jnp.sum(bot[4:8], axis=0, keepdims=True))            # cell (1,1)

    # ---- classifier_major + classifier_minor heads ------------------------
    acc_major = bM_ref[...]                                       # [1,128] f32
    acc_h1 = b1c_ref[...]                                         # [1,256] f32
    for p in range(4):
        s = cells[p].astype(jnp.bfloat16)                         # [1,64]
        acc_major = acc_major + jnp.dot(
            s, wMc_ref[p], preferred_element_type=jnp.float32)
        acc_h1 = acc_h1 + jnp.dot(
            s, w1c_ref[p], preferred_element_type=jnp.float32)
    maj_ref[0] = acc_major                                        # [1,128]

    # classifier_minor: Linear-ReLU-(Dropout)-Linear-ReLU-(Dropout)-Linear.
    # TODO(synk): Dropout is identity in eval mode (training masks omitted).
    h = jnp.maximum(acc_h1, 0.0)
    h = jnp.dot(h.astype(jnp.bfloat16), wc2_ref[...],
                preferred_element_type=jnp.float32) + bc2_ref[...]
    h = jnp.maximum(h, 0.0)
    min_ref[0] = (jnp.dot(h.astype(jnp.bfloat16), wc3_ref[...],
                          preferred_element_type=jnp.float32) + bc3_ref[...])


# ----------------------------------------------------------------------------
# Wrapper
# ----------------------------------------------------------------------------
@functools.partial(jax.jit, static_argnames=("num_major", "num_class"))
def vgg_mm_forward(x_nchw, kp, num_major=5, num_class=10):
    N = x_nchw.shape[0]
    x = jnp.transpose(x_nchw, (0, 2, 3, 1)).astype(jnp.bfloat16)  # NCHW -> NHWC

    const2 = lambda b: (0, 0)
    const3 = lambda b: (0, 0, 0)
    maj, minr = pl.pallas_call(
        vgg_mm_kernel,
        out_shape=(jax.ShapeDtypeStruct((N, 1, 128), jnp.float32),
                   jax.ShapeDtypeStruct((N, 1, 128), jnp.float32)),
        grid=(N,),
        in_specs=[
            pl.BlockSpec((1, 16, 16, 3), lambda b: (b, 0, 0, 0)),  # x
            pl.BlockSpec((9, 3, 16), const3),                      # w1
            pl.BlockSpec((1, 16), const2),                         # b1
            pl.BlockSpec((9, 16, 32), const3),                     # w2
            pl.BlockSpec((1, 32), const2),                         # b2
            pl.BlockSpec((9, 32, 64), const3),                     # wb (major||minor)
            pl.BlockSpec((1, 64), const2),                         # bb
            pl.BlockSpec((4, 64, 128), const3),                    # wMc (per-cell clf_major)
            pl.BlockSpec((1, 128), const2),                        # bM
            pl.BlockSpec((4, 64, 256), const3),                    # w1c (per-cell c1, add folded)
            pl.BlockSpec((1, 256), const2),                        # b1c
            pl.BlockSpec((256, 256), const2),                      # wc2
            pl.BlockSpec((1, 256), const2),                        # bc2
            pl.BlockSpec((256, 128), const2),                      # wc3 (padded)
            pl.BlockSpec((1, 128), const2),                        # bc3 (padded)
        ],
        out_specs=(pl.BlockSpec((1, 1, 128), lambda b: (b, 0, 0)),
                   pl.BlockSpec((1, 1, 128), lambda b: (b, 0, 0))),
        scratch_shapes=[
            pltpu.VMEM((18, 18, 3), jnp.bfloat16),    # padded conv1 input
            pltpu.VMEM((256, 16), jnp.float32),       # maxpool staging
            pltpu.VMEM((10, 10, 16), jnp.bfloat16),   # padded conv2 input
            pltpu.VMEM((10, 10, 32), jnp.bfloat16),   # padded branch-conv input
        ],
        compiler_params=pltpu.CompilerParams(
            dimension_semantics=("parallel",)),
    )(x, kp["w1"], kp["b1"], kp["w2"], kp["b2"], kp["wb"], kp["bb"],
      kp["wMc"], kp["bM"], kp["w1c"], kp["b1c"],
      kp["wc2"], kp["bc2"], kp["wc3"], kp["bc3"])

    return maj[:, 0, :num_major], minr[:, 0, :num_class]


# ----------------------------------------------------------------------------
# Parameter init (deterministic, synthetic) + kernel-ready preparation
# ----------------------------------------------------------------------------
def init_params(key, num_class=10, num_major=5):
    def conv_p(k, cin, cout):
        k1, k2 = jax.random.split(k)
        std = 1.0 / math.sqrt(9 * cin)
        return (jax.random.normal(k1, (3, 3, cin, cout), jnp.float32) * std,
                jax.random.normal(k2, (cout,), jnp.float32) * 0.01)

    def lin_p(k, din, dout):
        k1, k2 = jax.random.split(k)
        std = 1.0 / math.sqrt(din)
        return (jax.random.normal(k1, (din, dout), jnp.float32) * std,
                jax.random.normal(k2, (dout,), jnp.float32) * 0.01)

    ks = jax.random.split(key, 8)
    p = {}
    p["f_conv1_w"], p["f_conv1_b"] = conv_p(ks[0], 3, 16)      # features conv1
    p["f_conv2_w"], p["f_conv2_b"] = conv_p(ks[1], 16, 32)     # features conv2
    p["maj_conv_w"], p["maj_conv_b"] = conv_p(ks[2], 32, 32)   # major_branch
    p["min_conv_w"], p["min_conv_b"] = conv_p(ks[3], 32, 32)   # minor_branch
    flat = 32 * 2 * 2                                          # (scaled 512*7*7)
    p["clf_major_w"], p["clf_major_b"] = lin_p(ks[4], flat, num_major)
    p["c1_w"], p["c1_b"] = lin_p(ks[5], flat, 256)             # (scaled 4096)
    p["c2_w"], p["c2_b"] = lin_p(ks[6], 256, 256)
    p["c3_w"], p["c3_b"] = lin_p(ks[7], 256, num_class)
    return p


def prepare_params(p, num_class=10, num_major=5):
    """One-time conversion to kernel-ready params: bf16 per-tap conv weights,
    fused major||minor branch conv, avgpool(1/16) + NCHW-flatten order +
    `x += x_major` folded into per-pool-cell head weights, lane-dense (128)
    padded small heads."""
    def conv_taps(w):   # HWIO [3,3,cin,cout] -> [9, cin, cout], tap = dy*3+dx
        return w.reshape(9, w.shape[2], w.shape[3]).astype(jnp.bfloat16)

    def brow(b):
        return b.reshape(1, -1).astype(jnp.float32)

    kp = {}
    kp["w1"], kp["b1"] = conv_taps(p["f_conv1_w"]), brow(p["f_conv1_b"])
    kp["w2"], kp["b2"] = conv_taps(p["f_conv2_w"]), brow(p["f_conv2_b"])

    # Fused major||minor branch conv (channels: [major(0:32) | minor(32:64)]).
    wb = jnp.concatenate([p["maj_conv_w"], p["min_conv_w"]], axis=-1)
    bb = jnp.concatenate([p["maj_conv_b"], p["min_conv_b"]], axis=-1)
    kp["wb"], kp["bb"] = conv_taps(wb), brow(bb)

    C, P = 32, 2                     # branch channels, pool output 2x2
    inv = 1.0 / 16.0                 # 4x4 avg-pool cells (8x8 -> 2x2)
    Wmaj, Wc1 = p["clf_major_w"], p["c1_w"]   # rows in NCHW-flatten (c,py,px)

    wMc = jnp.zeros((4, 2 * C, 128), jnp.float32)
    w1c = jnp.zeros((4, 2 * C, 256), jnp.float32)
    for py in range(P):
        for px in range(P):
            cell = py * P + px
            rows = jnp.arange(C) * (P * P) + py * P + px
            wm_cell = Wmaj[rows] * inv                          # [32, num_major]
            wc_cell = Wc1[rows] * inv                           # [32, 256]
            wMc = wMc.at[cell, 0:C, 0:num_major].set(wm_cell)   # major only
            w1c = w1c.at[cell, 0:C, :].set(wc_cell)             # + x_major
            w1c = w1c.at[cell, C:2 * C, :].set(wc_cell)         # x_minor
    kp["wMc"] = wMc.astype(jnp.bfloat16)
    kp["bM"] = jnp.zeros((1, 128), jnp.float32).at[0, :num_major].set(
        p["clf_major_b"])
    kp["w1c"] = w1c.astype(jnp.bfloat16)
    kp["b1c"] = brow(p["c1_b"])
    kp["wc2"] = p["c2_w"].astype(jnp.bfloat16)
    kp["bc2"] = brow(p["c2_b"])
    kp["wc3"] = jnp.pad(p["c3_w"],
                        ((0, 0), (0, 128 - num_class))).astype(jnp.bfloat16)
    kp["bc3"] = jnp.pad(p["c3_b"], (0, 128 - num_class)
                        ).reshape(1, -1).astype(jnp.float32)
    return kp


if __name__ == "__main__":
    key = jax.random.PRNGKey(0)
    kx, kparam = jax.random.split(key)
    x = jax.random.normal(kx, (2, 3, 16, 16), jnp.float32)   # NCHW input
    raw_params = init_params(kparam, num_class=10, num_major=5)
    kparams = prepare_params(raw_params, num_class=10, num_major=5)

    pred_major, pred_minor = vgg_mm_forward(x, kparams, num_major=5, num_class=10)
    jax.block_until_ready((pred_major, pred_minor))

    assert pred_major.shape == (2, 5)
    assert pred_minor.shape == (2, 10)
    assert bool(jnp.all(jnp.isfinite(pred_major)))
    assert bool(jnp.all(jnp.isfinite(pred_minor)))
    print("KERNEL_OK")
</pallas_src>

<mosaic_0001>
module attributes {stable_mosaic.version = 11 : i64} {
  func.func @vgg_mm_kernel(%arg0: i32, %arg1: memref<1x16x16x3xbf16, #tpu.memory_space<vmem>>, %arg2: memref<9x3x16xbf16, #tpu.memory_space<vmem>>, %arg3: memref<1x16xf32, #tpu.memory_space<vmem>>, %arg4: memref<9x16x32xbf16, #tpu.memory_space<vmem>>, %arg5: memref<1x32xf32, #tpu.memory_space<vmem>>, %arg6: memref<9x32x64xbf16, #tpu.memory_space<vmem>>, %arg7: memref<1x64xf32, #tpu.memory_space<vmem>>, %arg8: memref<4x64x128xbf16, #tpu.memory_space<vmem>>, %arg9: memref<1x128xf32, #tpu.memory_space<vmem>>, %arg10: memref<4x64x256xbf16, #tpu.memory_space<vmem>>, %arg11: memref<1x256xf32, #tpu.memory_space<vmem>>, %arg12: memref<256x256xbf16, #tpu.memory_space<vmem>>, %arg13: memref<1x256xf32, #tpu.memory_space<vmem>>, %arg14: memref<256x128xbf16, #tpu.memory_space<vmem>>, %arg15: memref<1x128xf32, #tpu.memory_space<vmem>>, %arg16: memref<1x1x128xf32, #tpu.memory_space<vmem>>, %arg17: memref<1x1x128xf32, #tpu.memory_space<vmem>>, %arg18: memref<18x18x3xbf16, #tpu.memory_space<vmem>>, %arg19: memref<256x16xf32, #tpu.memory_space<vmem>>, %arg20: memref<10x10x16xbf16, #tpu.memory_space<vmem>>, %arg21: memref<10x10x32xbf16, #tpu.memory_space<vmem>>) attributes {dimension_semantics = [#tpu.dimension_semantics<parallel>], iteration_bounds = array<i64: 2>, scalar_prefetch = 0 : i64, scratch_operands = 4 : i64, tpu.core_type = #tpu.core_type<tc>, window_params = [{transform_indices = @transform_0, window_bounds = array<i64: 1, 16, 16, 3>}, {pipeline_mode = #tpu.pipeline_mode<synchronous>, transform_indices = @transform_1, window_bounds = array<i64: 9, 3, 16>}, {pipeline_mode = #tpu.pipeline_mode<synchronous>, transform_indices = @transform_2, window_bounds = array<i64: 1, 16>}, {pipeline_mode = #tpu.pipeline_mode<synchronous>, transform_indices = @transform_3, window_bounds = array<i64: 9, 16, 32>}, {pipeline_mode = #tpu.pipeline_mode<synchronous>, transform_indices = @transform_4, window_bounds = array<i64: 1, 32>}, {pipeline_mode = #tpu.pipeline_mode<synchronous>, transform_indices = @transform_5, window_bounds = array<i64: 9, 32, 64>}, {pipeline_mode = #tpu.pipeline_mode<synchronous>, transform_indices = @transform_6, window_bounds = array<i64: 1, 64>}, {pipeline_mode = #tpu.pipeline_mode<synchronous>, transform_indices = @transform_7, window_bounds = array<i64: 4, 64, 128>}, {pipeline_mode = #tpu.pipeline_mode<synchronous>, transform_indices = @transform_8, window_bounds = array<i64: 1, 128>}, {pipeline_mode = #tpu.pipeline_mode<synchronous>, transform_indices = @transform_9, window_bounds = array<i64: 4, 64, 256>}, {pipeline_mode = #tpu.pipeline_mode<synchronous>, transform_indices = @transform_10, window_bounds = array<i64: 1, 256>}, {pipeline_mode = #tpu.pipeline_mode<synchronous>, transform_indices = @transform_11, window_bounds = array<i64: 256, 256>}, {pipeline_mode = #tpu.pipeline_mode<synchronous>, transform_indices = @transform_12, window_bounds = array<i64: 1, 256>}, {pipeline_mode = #tpu.pipeline_mode<synchronous>, transform_indices = @transform_13, window_bounds = array<i64: 256, 128>}, {pipeline_mode = #tpu.pipeline_mode<synchronous>, transform_indices = @transform_14, window_bounds = array<i64: 1, 128>}, {transform_indices = @transform_15, window_bounds = array<i64: 1, 1, 128>}, {transform_indices = @transform_16, window_bounds = array<i64: 1, 1, 128>}]} {
    %c0 = arith.constant 0 : index
    %c0_0 = arith.constant 0 : index
    %c0_1 = arith.constant 0 : index
    %c0_2 = arith.constant 0 : index
    %0 = vector.load %arg1[%c0, %c0_0, %c0_1, %c0_2] : memref<1x16x16x3xbf16, #tpu.memory_space<vmem>>, vector<1x16x16x3xbf16>
    %1 = vector.shape_cast %0 : vector<1x16x16x3xbf16> to vector<16x16x3xbf16>
    %c0_3 = arith.constant 0 : index
    %c0_4 = arith.constant 0 : index
    %2 = vector.load %arg3[%c0_3, %c0_4] : memref<1x16xf32, #tpu.memory_space<vmem>>, vector<1x16xf32>
    %cst = arith.constant 0.000000e+00 : bf16
    %3 = vector.broadcast %cst : bf16 to vector<18x18x3xbf16>
    %c0_5 = arith.constant 0 : index
    %c0_6 = arith.constant 0 : index
    %c0_7 = arith.constant 0 : index
    %4 = vector.load %arg18[%c0_5, %c0_6, %c0_7] : memref<18x18x3xbf16, #tpu.memory_space<vmem>>, vector<18x18x3xbf16>
    tpu.vector_store %arg18[%c0_5, %c0_6, %c0_7], %3 {strides = array<i32>} : memref<18x18x3xbf16, #tpu.memory_space<vmem>>, vector<18x18x3xbf16>,
    %c1 = arith.constant 1 : index
    %c1_8 = arith.constant 1 : index
    %c0_9 = arith.constant 0 : index
    %5 = vector.load %arg18[%c1, %c1_8, %c0_9] : memref<18x18x3xbf16, #tpu.memory_space<vmem>>, vector<16x16x3xbf16>
    tpu.vector_store %arg18[%c1, %c1_8, %c0_9], %1 {strides = array<i32>} : memref<18x18x3xbf16, #tpu.memory_space<vmem>>, vector<16x16x3xbf16>,
    %cst_10 = arith.constant 0.000000e+00 : f32
    %6 = vector.broadcast %cst_10 : f32 to vector<256x16xf32>
    %c0_11 = arith.constant 0 : index
    %c0_12 = arith.constant 0 : index
    %c0_13 = arith.constant 0 : index
    %7 = vector.load %arg18[%c0_11, %c0_12, %c0_13] : memref<18x18x3xbf16, #tpu.memory_space<vmem>>, vector<16x16x3xbf16>
    %8 = vector.shape_cast %7 : vector<16x16x3xbf16> to vector<256x3xbf16>
    %c0_14 = arith.constant 0 : index
    %c0_15 = arith.constant 0 : index
    %c0_16 = arith.constant 0 : index
    %9 = vector.load %arg2[%c0_14, %c0_15, %c0_16] : memref<9x3x16xbf16, #tpu.memory_space<vmem>>, vector<1x3x16xbf16>
    %10 = vector.shape_cast %9 : vector<1x3x16xbf16> to vector<3x16xbf16>
    %cst_17 = arith.constant dense<0.000000e+00> : vector<256x16xf32>
    %11 = tpu.matmul %8, %10, %cst_17 {dimension_numbers = #tpu.dot_dimension_numbers<[1], [0], [0], [1], [0, 0, 1, 1], [], []>} : vector<256x3xbf16>, vector<3x16xbf16>, vector<256x16xf32> -> vector<256x16xf32>
    %12 = arith.addf %6, %11 : vector<256x16xf32>
    %c0_18 = arith.constant 0 : index
    %c1_19 = arith.constant 1 : index
    %c0_20 = arith.constant 0 : index
    %13 = vector.load %arg18[%c0_18, %c1_19, %c0_20] : memref<18x18x3xbf16, #tpu.memory_space<vmem>>, vector<16x16x3xbf16>
    %14 = vector.shape_cast %13 : vector<16x16x3xbf16> to vector<256x3xbf16>
    %c1_21 = arith.constant 1 : index
    %c0_22 = arith.constant 0 : index
    %c0_23 = arith.constant 0 : index
    %15 = vector.load %arg2[%c1_21, %c0_22, %c0_23] : memref<9x3x16xbf16, #tpu.memory_space<vmem>>, vector<1x3x16xbf16>
    %16 = vector.shape_cast %15 : vector<1x3x16xbf16> to vector<3x16xbf16>
    %cst_24 = arith.constant dense<0.000000e+00> : vector<256x16xf32>
    %17 = tpu.matmul %14, %16, %cst_24 {dimension_numbers = #tpu.dot_dimension_numbers<[1], [0], [0], [1], [0, 0, 1, 1], [], []>} : vector<256x3xbf16>, vector<3x16xbf16>, vector<256x16xf32> -> vector<256x16xf32>
    %18 = arith.addf %12, %17 : vector<256x16xf32>
    %c0_25 = arith.constant 0 : index
    %c2 = arith.constant 2 : index
    %c0_26 = arith.constant 0 : index
    %19 = vector.load %arg18[%c0_25, %c2, %c0_26] : memref<18x18x3xbf16, #tpu.memory_space<vmem>>, vector<16x16x3xbf16>
    %20 = vector.shape_cast %19 : vector<16x16x3xbf16> to vector<256x3xbf16>
    %c2_27 = arith.constant 2 : index
    %c0_28 = arith.constant 0 : index
    %c0_29 = arith.constant 0 : index
    %21 = vector.load %arg2[%c2_27, %c0_28, %c0_29] : memref<9x3x16xbf16, #tpu.memory_space<vmem>>, vector<1x3x16xbf16>
    %22 = vector.shape_cast %21 : vector<1x3x16xbf16> to vector<3x16xbf16>
    %cst_30 = arith.constant dense<0.000000e+00> : vector<256x16xf32>
    %23 = tpu.matmul %20, %22, %cst_30 {dimension_numbers = #tpu.dot_dimension_numbers<[1], [0], [0], [1], [0, 0, 1, 1], [], []>} : vector<256x3xbf16>, vector<3x16xbf16>, vector<256x16xf32> -> vector<256x16xf32>
    %24 = arith.addf %18, %23 : vector<256x16xf32>
    %c1_31 = arith.constant 1 : index
    %c0_32 = arith.constant 0 : index
    %c0_33 = arith.constant 0 : index
    %25 = vector.load %arg18[%c1_31, %c0_32, %c0_33] : memref<18x18x3xbf16, #tpu.memory_space<vmem>>, vector<16x16x3xbf16>
    %26 = vector.shape_cast %25 : vector<16x16x3xbf16> to vector<256x3xbf16>
    %c3 = arith.constant 3 : index
    %c0_34 = arith.constant 0 : index
    %c0_35 = arith.constant 0 : index
    %27 = vector.load %arg2[%c3, %c0_34, %c0_35] : memref<9x3x16xbf16, #tpu.memory_space<vmem>>, vector<1x3x16xbf16>
    %28 = vector.shape_cast %27 : vector<1x3x16xbf16> to vector<3x16xbf16>
    %cst_36 = arith.constant dense<0.000000e+00> : vector<256x16xf32>
    %29 = tpu.matmul %26, %28, %cst_36 {dimension_numbers = #tpu.dot_dimension_numbers<[1], [0], [0], [1], [0, 0, 1, 1], [], []>} : vector<256x3xbf16>, vector<3x16xbf16>, vector<256x16xf32> -> vector<256x16xf32>
    %30 = arith.addf %24, %29 : vector<256x16xf32>
    %c1_37 = arith.constant 1 : index
    %c1_38 = arith.constant 1 : index
    %c0_39 = arith.constant 0 : index
    %31 = vector.load %arg18[%c1_37, %c1_38, %c0_39] : memref<18x18x3xbf16, #tpu.memory_space<vmem>>, vector<16x16x3xbf16>
    %32 = vector.shape_cast %31 : vector<16x16x3xbf16> to vector<256x3xbf16>
    %c4 = arith.constant 4 : index
    %c0_40 = arith.constant 0 : index
    %c0_41 = arith.constant 0 : index
    %33 = vector.load %arg2[%c4, %c0_40, %c0_41] : memref<9x3x16xbf16, #tpu.memory_space<vmem>>, vector<1x3x16xbf16>
    %34 = vector.shape_cast %33 : vector<1x3x16xbf16> to vector<3x16xbf16>
    %cst_42 = arith.constant dense<0.000000e+00> : vector<256x16xf32>
    %35 = tpu.matmul %32, %34, %cst_42 {dimension_numbers = #tpu.dot_dimension_numbers<[1], [0], [0], [1], [0, 0, 1, 1], [], []>} : vector<256x3xbf16>, vector<3x16xbf16>, vector<256x16xf32> -> vector<256x16xf32>
    %36 = arith.addf %30, %35 : vector<256x16xf32>
    %c1_43 = arith.constant 1 : index
    %c2_44 = arith.constant 2 : index
    %c0_45 = arith.constant 0 : index
    %37 = vector.load %arg18[%c1_43, %c2_44, %c0_45] : memref<18x18x3xbf16, #tpu.memory_space<vmem>>, vector<16x16x3xbf16>
    %38 = vector.shape_cast %37 : vector<16x16x3xbf16> to vector<256x3xbf16>
    %c5 = arith.constant 5 : index
    %c0_46 = arith.constant 0 : index
    %c0_47 = arith.constant 0 : index
    %39 = vector.load %arg2[%c5, %c0_46, %c0_47] : memref<9x3x16xbf16, #tpu.memory_space<vmem>>, vector<1x3x16xbf16>
    %40 = vector.shape_cast %39 : vector<1x3x16xbf16> to vector<3x16xbf16>
    %cst_48 = arith.constant dense<0.000000e+00> : vector<256x16xf32>
    %41 = tpu.matmul %38, %40, %cst_48 {dimension_numbers = #tpu.dot_dimension_numbers<[1], [0], [0], [1], [0, 0, 1, 1], [], []>} : vector<256x3xbf16>, vector<3x16xbf16>, vector<256x16xf32> -> vector<256x16xf32>
    %42 = arith.addf %36, %41 : vector<256x16xf32>
    %c2_49 = arith.constant 2 : index
    %c0_50 = arith.constant 0 : index
    %c0_51 = arith.constant 0 : index
    %43 = vector.load %arg18[%c2_49, %c0_50, %c0_51] : memref<18x18x3xbf16, #tpu.memory_space<vmem>>, vector<16x16x3xbf16>
    %44 = vector.shape_cast %43 : vector<16x16x3xbf16> to vector<256x3xbf16>
    %c6 = arith.constant 6 : index
    %c0_52 = arith.constant 0 : index
    %c0_53 = arith.constant 0 : index
    %45 = vector.load %arg2[%c6, %c0_52, %c0_53] : memref<9x3x16xbf16, #tpu.memory_space<vmem>>, vector<1x3x16xbf16>
    %46 = vector.shape_cast %45 : vector<1x3x16xbf16> to vector<3x16xbf16>
    %cst_54 = arith.constant dense<0.000000e+00> : vector<256x16xf32>
    %47 = tpu.matmul %44, %46, %cst_54 {dimension_numbers = #tpu.dot_dimension_numbers<[1], [0], [0], [1], [0, 0, 1, 1], [], []>} : vector<256x3xbf16>, vector<3x16xbf16>, vector<256x16xf32> -> vector<256x16xf32>
    %48 = arith.addf %42, %47 : vector<256x16xf32>
    %c2_55 = arith.constant 2 : index
    %c1_56 = arith.constant 1 : index
    %c0_57 = arith.constant 0 : index
    %49 = vector.load %arg18[%c2_55, %c1_56, %c0_57] : memref<18x18x3xbf16, #tpu.memory_space<vmem>>, vector<16x16x3xbf16>
    %50 = vector.shape_cast %49 : vector<16x16x3xbf16> to vector<256x3xbf16>
    %c7 = arith.constant 7 : index
    %c0_58 = arith.constant 0 : index
    %c0_59 = arith.constant 0 : index
    %51 = vector.load %arg2[%c7, %c0_58, %c0_59] : memref<9x3x16xbf16, #tpu.memory_space<vmem>>, vector<1x3x16xbf16>
    %52 = vector.shape_cast %51 : vector<1x3x16xbf16> to vector<3x16xbf16>
    %cst_60 = arith.constant dense<0.000000e+00> : vector<256x16xf32>
    %53 = tpu.matmul %50, %52, %cst_60 {dimension_numbers = #tpu.dot_dimension_numbers<[1], [0], [0], [1], [0, 0, 1, 1], [], []>} : vector<256x3xbf16>, vector<3x16xbf16>, vector<256x16xf32> -> vector<256x16xf32>
    %54 = arith.addf %48, %53 : vector<256x16xf32>
    %c2_61 = arith.constant 2 : index
    %c2_62 = arith.constant 2 : index
    %c0_63 = arith.constant 0 : index
    %55 = vector.load %arg18[%c2_61, %c2_62, %c0_63] : memref<18x18x3xbf16, #tpu.memory_space<vmem>>, vector<16x16x3xbf16>
    %56 = vector.shape_cast %55 : vector<16x16x3xbf16> to vector<256x3xbf16>
    %c8 = arith.constant 8 : index
    %c0_64 = arith.constant 0 : index
    %c0_65 = arith.constant 0 : index
    %57 = vector.load %arg2[%c8, %c0_64, %c0_65] : memref<9x3x16xbf16, #tpu.memory_space<vmem>>, vector<1x3x16xbf16>
    %58 = vector.shape_cast %57 : vector<1x3x16xbf16> to vector<3x16xbf16>
    %cst_66 = arith.constant dense<0.000000e+00> : vector<256x16xf32>
    %59 = tpu.matmul %56, %58, %cst_66 {dimension_numbers = #tpu.dot_dimension_numbers<[1], [0], [0], [1], [0, 0, 1, 1], [], []>} : vector<256x3xbf16>, vector<3x16xbf16>, vector<256x16xf32> -> vector<256x16xf32>
    %60 = arith.addf %54, %59 : vector<256x16xf32>
    %61 = vector.broadcast %2 : vector<1x16xf32> to vector<256x16xf32>
    %62 = arith.addf %60, %61 : vector<256x16xf32>
    %cst_67 = arith.constant 0.000000e+00 : f32
    %63 = vector.broadcast %cst_67 : f32 to vector<256x16xf32>
    %64 = arith.maximumf %62, %63 : vector<256x16xf32>
    %c0_68 = arith.constant 0 : index
    %c0_69 = arith.constant 0 : index
    %65 = vector.load %arg19[%c0_68, %c0_69] : memref<256x16xf32, #tpu.memory_space<vmem>>, vector<256x16xf32>
    tpu.vector_store %arg19[%c0_68, %c0_69], %64 {strides = array<i32>} : memref<256x16xf32, #tpu.memory_space<vmem>>, vector<256x16xf32>,
    %c0_70 = arith.constant 0 : index
    %c0_71 = arith.constant 0 : index
    %66 = tpu.strided_load %arg19[%c0_70, %c0_71] {strides = array<i32: 2, 1>} : memref<256x16xf32, #tpu.memory_space<vmem>>, vector<128x16xf32>
    %c1_72 = arith.constant 1 : index
    %c0_73 = arith.constant 0 : index
    %67 = tpu.strided_load %arg19[%c1_72, %c0_73] {strides = array<i32: 2, 1>} : memref<256x16xf32, #tpu.memory_space<vmem>>, vector<128x16xf32>
    %68 = arith.maximumf %66, %67 : vector<128x16xf32>
    %69 = vector.shape_cast %68 : vector<128x16xf32> to vector<8x2x8x16xf32>
    %70 = vector.extract_strided_slice %69 {offsets = [0, 0, 0, 0], sizes = [8, 1, 8, 16], strides = [1, 1, 1, 1]} : vector<8x2x8x16xf32> to vector<8x1x8x16xf32>
    %71 = vector.shape_cast %70 : vector<8x1x8x16xf32> to vector<8x8x16xf32>
    %72 = vector.extract_strided_slice %69 {offsets = [0, 1, 0, 0], sizes = [8, 1, 8, 16], strides = [1, 1, 1, 1]} : vector<8x2x8x16xf32> to vector<8x1x8x16xf32>
    %73 = vector.shape_cast %72 : vector<8x1x8x16xf32> to vector<8x8x16xf32>
    %74 = arith.maximumf %71, %73 : vector<8x8x16xf32>
    %c0_74 = arith.constant 0 : index
    %c0_75 = arith.constant 0 : index
    %75 = vector.load %arg5[%c0_74, %c0_75] : memref<1x32xf32, #tpu.memory_space<vmem>>, vector<1x32xf32>
    %cst_76 = arith.constant 0.000000e+00 : bf16
    %76 = vector.broadcast %cst_76 : bf16 to vector<10x10x16xbf16>
    %c0_77 = arith.constant 0 : index
    %c0_78 = arith.constant 0 : index
    %c0_79 = arith.constant 0 : index
    %77 = vector.load %arg20[%c0_77, %c0_78, %c0_79] : memref<10x10x16xbf16, #tpu.memory_space<vmem>>, vector<10x10x16xbf16>
    tpu.vector_store %arg20[%c0_77, %c0_78, %c0_79], %76 {strides = array<i32>} : memref<10x10x16xbf16, #tpu.memory_space<vmem>>, vector<10x10x16xbf16>,
    %78 = arith.truncf %74 : vector<8x8x16xf32> to vector<8x8x16xbf16>
    %c1_80 = arith.constant 1 : index
    %c1_81 = arith.constant 1 : index
    %c0_82 = arith.constant 0 : index
    %79 = vector.load %arg20[%c1_80, %c1_81, %c0_82] : memref<10x10x16xbf16, #tpu.memory_space<vmem>>, vector<8x8x16xbf16>
    tpu.vector_store %arg20[%c1_80, %c1_81, %c0_82], %78 {strides = array<i32>} : memref<10x10x16xbf16, #tpu.memory_space<vmem>>, vector<8x8x16xbf16>,
    %cst_83 = arith.constant 0.000000e+00 : f32
    %80 = vector.broadcast %cst_83 : f32 to vector<64x32xf32>
    %c0_84 = arith.constant 0 : index
    %c0_85 = arith.constant 0 : index
    %c0_86 = arith.constant 0 : index
    %81 = vector.load %arg20[%c0_84, %c0_85, %c0_86] : memref<10x10x16xbf16, #tpu.memory_space<vmem>>, vector<8x8x16xbf16>
    %82 = vector.shape_cast %81 : vector<8x8x16xbf16> to vector<64x16xbf16>
    %c0_87 = arith.constant 0 : index
    %c0_88 = arith.constant 0 : index
    %c0_89 = arith.constant 0 : index
    %83 = vector.load %arg4[%c0_87, %c0_88, %c0_89] : memref<9x16x32xbf16, #tpu.memory_space<vmem>>, vector<1x16x32xbf16>
    %84 = vector.shape_cast %83 : vector<1x16x32xbf16> to vector<16x32xbf16>
    %cst_90 = arith.constant dense<0.000000e+00> : vector<64x32xf32>
    %85 = tpu.matmul %82, %84, %cst_90 {dimension_numbers = #tpu.dot_dimension_numbers<[1], [0], [0], [1], [0, 0, 1, 1], [], []>} : vector<64x16xbf16>, vector<16x32xbf16>, vector<64x32xf32> -> vector<64x32xf32>
    %86 = arith.addf %80, %85 : vector<64x32xf32>
    %c0_91 = arith.constant 0 : index
    %c1_92 = arith.constant 1 : index
    %c0_93 = arith.constant 0 : index
    %87 = vector.load %arg20[%c0_91, %c1_92, %c0_93] : memref<10x10x16xbf16, #tpu.memory_space<vmem>>, vector<8x8x16xbf16>
    %88 = vector.shape_cast %87 : vector<8x8x16xbf16> to vector<64x16xbf16>
    %c1_94 = arith.constant 1 : index
    %c0_95 = arith.constant 0 : index
    %c0_96 = arith.constant 0 : index
    %89 = vector.load %arg4[%c1_94, %c0_95, %c0_96] : memref<9x16x32xbf16, #tpu.memory_space<vmem>>, vector<1x16x32xbf16>
    %90 = vector.shape_cast %89 : vector<1x16x32xbf16> to vector<16x32xbf16>
    %cst_97 = arith.constant dense<0.000000e+00> : vector<64x32xf32>
    %91 = tpu.matmul %88, %90, %cst_97 {dimension_numbers = #tpu.dot_dimension_numbers<[1], [0], [0], [1], [0, 0, 1, 1], [], []>} : vector<64x16xbf16>, vector<16x32xbf16>, vector<64x32xf32> -> vector<64x32xf32>
    %92 = arith.addf %86, %91 : vector<64x32xf32>
    %c0_98 = arith.constant 0 : index
    %c2_99 = arith.constant 2 : index
    %c0_100 = arith.constant 0 : index
    %93 = vector.load %arg20[%c0_98, %c2_99, %c0_100] : memref<10x10x16xbf16, #tpu.memory_space<vmem>>, vector<8x8x16xbf16>
    %94 = vector.shape_cast %93 : vector<8x8x16xbf16> to vector<64x16xbf16>
    %c2_101 = arith.constant 2 : index
    %c0_102 = arith.constant 0 : index
    %c0_103 = arith.constant 0 : index
    %95 = vector.load %arg4[%c2_101, %c0_102, %c0_103] : memref<9x16x32xbf16, #tpu.memory_space<vmem>>, vector<1x16x32xbf16>
    %96 = vector.shape_cast %95 : vector<1x16x32xbf16> to vector<16x32xbf16>
    %cst_104 = arith.constant dense<0.000000e+00> : vector<64x32xf32>
    %97 = tpu.matmul %94, %96, %cst_104 {dimension_numbers = #tpu.dot_dimension_numbers<[1], [0], [0], [1], [0, 0, 1, 1], [], []>} : vector<64x16xbf16>, vector<16x32xbf16>, vector<64x32xf32> -> vector<64x32xf32>
    %98 = arith.addf %92, %97 : vector<64x32xf32>
    %c1_105 = arith.constant 1 : index
    %c0_106 = arith.constant 0 : index
    %c0_107 = arith.constant 0 : index
    %99 = vector.load %arg20[%c1_105, %c0_106, %c0_107] : memref<10x10x16xbf16, #tpu.memory_space<vmem>>, vector<8x8x16xbf16>
    %100 = vector.shape_cast %99 : vector<8x8x16xbf16> to vector<64x16xbf16>
    %c3_108 = arith.constant 3 : index
    %c0_109 = arith.constant 0 : index
    %c0_110 = arith.constant 0 : index
    %101 = vector.load %arg4[%c3_108, %c0_109, %c0_110] : memref<9x16x32xbf16, #tpu.memory_space<vmem>>, vector<1x16x32xbf16>
    %102 = vector.shape_cast %101 : vector<1x16x32xbf16> to vector<16x32xbf16>
    %cst_111 = arith.constant dense<0.000000e+00> : vector<64x32xf32>
    %103 = tpu.matmul %100, %102, %cst_111 {dimension_numbers = #tpu.dot_dimension_numbers<[1], [0], [0], [1], [0, 0, 1, 1], [], []>} : vector<64x16xbf16>, vector<16x32xbf16>, vector<64x32xf32> -> vector<64x32xf32>
    %104 = arith.addf %98, %103 : vector<64x32xf32>
    %c1_112 = arith.constant 1 : index
    %c1_113 = arith.constant 1 : index
    %c0_114 = arith.constant 0 : index
    %105 = vector.load %arg20[%c1_112, %c1_113, %c0_114] : memref<10x10x16xbf16, #tpu.memory_space<vmem>>, vector<8x8x16xbf16>
    %106 = vector.shape_cast %105 : vector<8x8x16xbf16> to vector<64x16xbf16>
    %c4_115 = arith.constant 4 : index
    %c0_116 = arith.constant 0 : index
    %c0_117 = arith.constant 0 : index
    %107 = vector.load %arg4[%c4_115, %c0_116, %c0_117] : memref<9x16x32xbf16, #tpu.memory_space<vmem>>, vector<1x16x32xbf16>
    %108 = vector.shape_cast %107 : vector<1x16x32xbf16> to vector<16x32xbf16>
    %cst_118 = arith.constant dense<0.000000e+00> : vector<64x32xf32>
    %109 = tpu.matmul %106, %108, %cst_118 {dimension_numbers = #tpu.dot_dimension_numbers<[1], [0], [0], [1], [0, 0, 1, 1], [], []>} : vector<64x16xbf16>, vector<16x32xbf16>, vector<64x32xf32> -> vector<64x32xf32>
    %110 = arith.addf %104, %109 : vector<64x32xf32>
    %c1_119 = arith.constant 1 : index
    %c2_120 = arith.constant 2 : index
    %c0_121 = arith.constant 0 : index
    %111 = vector.load %arg20[%c1_119, %c2_120, %c0_121] : memref<10x10x16xbf16, #tpu.memory_space<vmem>>, vector<8x8x16xbf16>
    %112 = vector.shape_cast %111 : vector<8x8x16xbf16> to vector<64x16xbf16>
    %c5_122 = arith.constant 5 : index
    %c0_123 = arith.constant 0 : index
    %c0_124 = arith.constant 0 : index
    %113 = vector.load %arg4[%c5_122, %c0_123, %c0_124] : memref<9x16x32xbf16, #tpu.memory_space<vmem>>, vector<1x16x32xbf16>
    %114 = vector.shape_cast %113 : vector<1x16x32xbf16> to vector<16x32xbf16>
    %cst_125 = arith.constant dense<0.000000e+00> : vector<64x32xf32>
    %115 = tpu.matmul %112, %114, %cst_125 {dimension_numbers = #tpu.dot_dimension_numbers<[1], [0], [0], [1], [0, 0, 1, 1], [], []>} : vector<64x16xbf16>, vector<16x32xbf16>, vector<64x32xf32> -> vector<64x32xf32>
    %116 = arith.addf %110, %115 : vector<64x32xf32>
    %c2_126 = arith.constant 2 : index
    %c0_127 = arith.constant 0 : index
    %c0_128 = arith.constant 0 : index
    %117 = vector.load %arg20[%c2_126, %c0_127, %c0_128] : memref<10x10x16xbf16, #tpu.memory_space<vmem>>, vector<8x8x16xbf16>
    %118 = vector.shape_cast %117 : vector<8x8x16xbf16> to vector<64x16xbf16>
    %c6_129 = arith.constant 6 : index
    %c0_130 = arith.constant 0 : index
    %c0_131 = arith.constant 0 : index
    %119 = vector.load %arg4[%c6_129, %c0_130, %c0_131] : memref<9x16x32xbf16, #tpu.memory_space<vmem>>, vector<1x16x32xbf16>
    %120 = vector.shape_cast %119 : vector<1x16x32xbf16> to vector<16x32xbf16>
    %cst_132 = arith.constant dense<0.000000e+00> : vector<64x32xf32>
    %121 = tpu.matmul %118, %120, %cst_132 {dimension_numbers = #tpu.dot_dimension_numbers<[1], [0], [0], [1], [0, 0, 1, 1], [], []>} : vector<64x16xbf16>, vector<16x32xbf16>, vector<64x32xf32> -> vector<64x32xf32>
    %122 = arith.addf %116, %121 : vector<64x32xf32>
    %c2_133 = arith.constant 2 : index
    %c1_134 = arith.constant 1 : index
    %c0_135 = arith.constant 0 : index
    %123 = vector.load %arg20[%c2_133, %c1_134, %c0_135] : memref<10x10x16xbf16, #tpu.memory_space<vmem>>, vector<8x8x16xbf16>
    %124 = vector.shape_cast %123 : vector<8x8x16xbf16> to vector<64x16xbf16>
    %c7_136 = arith.constant 7 : index
    %c0_137 = arith.constant 0 : index
    %c0_138 = arith.constant 0 : index
    %125 = vector.load %arg4[%c7_136, %c0_137, %c0_138] : memref<9x16x32xbf16, #tpu.memory_space<vmem>>, vector<1x16x32xbf16>
    %126 = vector.shape_cast %125 : vector<1x16x32xbf16> to vector<16x32xbf16>
    %cst_139 = arith.constant dense<0.000000e+00> : vector<64x32xf32>
    %127 = tpu.matmul %124, %126, %cst_139 {dimension_numbers = #tpu.dot_dimension_numbers<[1], [0], [0], [1], [0, 0, 1, 1], [], []>} : vector<64x16xbf16>, vector<16x32xbf16>, vector<64x32xf32> -> vector<64x32xf32>
    %128 = arith.addf %122, %127 : vector<64x32xf32>
    %c2_140 = arith.constant 2 : index
    %c2_141 = arith.constant 2 : index
    %c0_142 = arith.constant 0 : index
    %129 = vector.load %arg20[%c2_140, %c2_141, %c0_142] : memref<10x10x16xbf16, #tpu.memory_space<vmem>>, vector<8x8x16xbf16>
    %130 = vector.shape_cast %129 : vector<8x8x16xbf16> to vector<64x16xbf16>
    %c8_143 = arith.constant 8 : index
    %c0_144 = arith.constant 0 : index
    %c0_145 = arith.constant 0 : index
    %131 = vector.load %arg4[%c8_143, %c0_144, %c0_145] : memref<9x16x32xbf16, #tpu.memory_space<vmem>>, vector<1x16x32xbf16>
    %132 = vector.shape_cast %131 : vector<1x16x32xbf16> to vector<16x32xbf16>
    %cst_146 = arith.constant dense<0.000000e+00> : vector<64x32xf32>
    %133 = tpu.matmul %130, %132, %cst_146 {dimension_numbers = #tpu.dot_dimension_numbers<[1], [0], [0], [1], [0, 0, 1, 1], [], []>} : vector<64x16xbf16>, vector<16x32xbf16>, vector<64x32xf32> -> vector<64x32xf32>
    %134 = arith.addf %128, %133 : vector<64x32xf32>
    %135 = vector.broadcast %75 : vector<1x32xf32> to vector<64x32xf32>
    %136 = arith.addf %134, %135 : vector<64x32xf32>
    %cst_147 = arith.constant 0.000000e+00 : f32
    %137 = vector.broadcast %cst_147 : f32 to vector<64x32xf32>
    %138 = arith.maximumf %136, %137 : vector<64x32xf32>
    %139 = vector.shape_cast %138 : vector<64x32xf32> to vector<8x8x32xf32>
    %c0_148 = arith.constant 0 : index
    %c0_149 = arith.constant 0 : index
    %140 = vector.load %arg7[%c0_148, %c0_149] : memref<1x64xf32, #tpu.memory_space<vmem>>, vector<1x64xf32>
    %cst_150 = arith.constant 0.000000e+00 : bf16
    %141 = vector.broadcast %cst_150 : bf16 to vector<10x10x32xbf16>
    %c0_151 = arith.constant 0 : index
    %c0_152 = arith.constant 0 : index
    %c0_153 = arith.constant 0 : index
    %142 = vector.load %arg21[%c0_151, %c0_152, %c0_153] : memref<10x10x32xbf16, #tpu.memory_space<vmem>>, vector<10x10x32xbf16>
    tpu.vector_store %arg21[%c0_151, %c0_152, %c0_153], %141 {strides = array<i32>} : memref<10x10x32xbf16, #tpu.memory_space<vmem>>, vector<10x10x32xbf16>,
    %143 = arith.truncf %139 : vector<8x8x32xf32> to vector<8x8x32xbf16>
    %c1_154 = arith.constant 1 : index
    %c1_155 = arith.constant 1 : index
    %c0_156 = arith.constant 0 : index
    %144 = vector.load %arg21[%c1_154, %c1_155, %c0_156] : memref<10x10x32xbf16, #tpu.memory_space<vmem>>, vector<8x8x32xbf16>
    tpu.vector_store %arg21[%c1_154, %c1_155, %c0_156], %143 {strides = array<i32>} : memref<10x10x32xbf16, #tpu.memory_space<vmem>>, vector<8x8x32xbf16>,
    %cst_157 = arith.constant 0.000000e+00 : f32
    %145 = vector.broadcast %cst_157 : f32 to vector<64x64xf32>
    %c0_158 = arith.constant 0 : index
    %c0_159 = arith.constant 0 : index
    %c0_160 = arith.constant 0 : index
    %146 = vector.load %arg21[%c0_158, %c0_159, %c0_160] : memref<10x10x32xbf16, #tpu.memory_space<vmem>>, vector<8x8x32xbf16>
    %147 = vector.shape_cast %146 : vector<8x8x32xbf16> to vector<64x32xbf16>
    %c0_161 = arith.constant 0 : index
    %c0_162 = arith.constant 0 : index
    %c0_163 = arith.constant 0 : index
    %148 = vector.load %arg6[%c0_161, %c0_162, %c0_163] : memref<9x32x64xbf16, #tpu.memory_space<vmem>>, vector<1x32x64xbf16>
    %149 = vector.shape_cast %148 : vector<1x32x64xbf16> to vector<32x64xbf16>
    %cst_164 = arith.constant dense<0.000000e+00> : vector<64x64xf32>
    %150 = tpu.matmul %147, %149, %cst_164 {dimension_numbers = #tpu.dot_dimension_numbers<[1], [0], [0], [1], [0, 0, 1, 1], [], []>} : vector<64x32xbf16>, vector<32x64xbf16>, vector<64x64xf32> -> vector<64x64xf32>
    %151 = arith.addf %145, %150 : vector<64x64xf32>
    %c0_165 = arith.constant 0 : index
    %c1_166 = arith.constant 1 : index
    %c0_167 = arith.constant 0 : index
    %152 = vector.load %arg21[%c0_165, %c1_166, %c0_167] : memref<10x10x32xbf16, #tpu.memory_space<vmem>>, vector<8x8x32xbf16>
    %153 = vector.shape_cast %152 : vector<8x8x32xbf16> to vector<64x32xbf16>
    %c1_168 = arith.constant 1 : index
    %c0_169 = arith.constant 0 : index
    %c0_170 = arith.constant 0 : index
    %154 = vector.load %arg6[%c1_168, %c0_169, %c0_170] : memref<9x32x64xbf16, #tpu.memory_space<vmem>>, vector<1x32x64xbf16>
    %155 = vector.shape_cast %154 : vector<1x32x64xbf16> to vector<32x64xbf16>
    %cst_171 = arith.constant dense<0.000000e+00> : vector<64x64xf32>
    %156 = tpu.matmul %153, %155, %cst_171 {dimension_numbers = #tpu.dot_dimension_numbers<[1], [0], [0], [1], [0, 0, 1, 1], [], []>} : vector<64x32xbf16>, vector<32x64xbf16>, vector<64x64xf32> -> vector<64x64xf32>
    %157 = arith.addf %151, %156 : vector<64x64xf32>
    %c0_172 = arith.constant 0 : index
    %c2_173 = arith.constant 2 : index
    %c0_174 = arith.constant 0 : index
    %158 = vector.load %arg21[%c0_172, %c2_173, %c0_174] : memref<10x10x32xbf16, #tpu.memory_space<vmem>>, vector<8x8x32xbf16>
    %159 = vector.shape_cast %158 : vector<8x8x32xbf16> to vector<64x32xbf16>
    %c2_175 = arith.constant 2 : index
    %c0_176 = arith.constant 0 : index
    %c0_177 = arith.constant 0 : index
    %160 = vector.load %arg6[%c2_175, %c0_176, %c0_177] : memref<9x32x64xbf16, #tpu.memory_space<vmem>>, vector<1x32x64xbf16>
    %161 = vector.shape_cast %160 : vector<1x32x64xbf16> to vector<32x64xbf16>
    %cst_178 = arith.constant dense<0.000000e+00> : vector<64x64xf32>
    %162 = tpu.matmul %159, %161, %cst_178 {dimension_numbers = #tpu.dot_dimension_numbers<[1], [0], [0], [1], [0, 0, 1, 1], [], []>} : vector<64x32xbf16>, vector<32x64xbf16>, vector<64x64xf32> -> vector<64x64xf32>
    %163 = arith.addf %157, %162 : vector<64x64xf32>
    %c1_179 = arith.constant 1 : index
    %c0_180 = arith.constant 0 : index
    %c0_181 = arith.constant 0 : index
    %164 = vector.load %arg21[%c1_179, %c0_180, %c0_181] : memref<10x10x32xbf16, #tpu.memory_space<vmem>>, vector<8x8x32xbf16>
    %165 = vector.shape_cast %164 : vector<8x8x32xbf16> to vector<64x32xbf16>
    %c3_182 = arith.constant 3 : index
    %c0_183 = arith.constant 0 : index
    %c0_184 = arith.constant 0 : index
    %166 = vector.load %arg6[%c3_182, %c0_183, %c0_184] : memref<9x32x64xbf16, #tpu.memory_space<vmem>>, vector<1x32x64xbf16>
    %167 = vector.shape_cast %166 : vector<1x32x64xbf16> to vector<32x64xbf16>
    %cst_185 = arith.constant dense<0.000000e+00> : vector<64x64xf32>
    %168 = tpu.matmul %165, %167, %cst_185 {dimension_numbers = #tpu.dot_dimension_numbers<[1], [0], [0], [1], [0, 0, 1, 1], [], []>} : vector<64x32xbf16>, vector<32x64xbf16>, vector<64x64xf32> -> vector<64x64xf32>
    %169 = arith.addf %163, %168 : vector<64x64xf32>
    %c1_186 = arith.constant 1 : index
    %c1_187 = arith.constant 1 : index
    %c0_188 = arith.constant 0 : index
    %170 = vector.load %arg21[%c1_186, %c1_187, %c0_188] : memref<10x10x32xbf16, #tpu.memory_space<vmem>>, vector<8x8x32xbf16>
    %171 = vector.shape_cast %170 : vector<8x8x32xbf16> to vector<64x32xbf16>
    %c4_189 = arith.constant 4 : index
    %c0_190 = arith.constant 0 : index
    %c0_191 = arith.constant 0 : index
    %172 = vector.load %arg6[%c4_189, %c0_190, %c0_191] : memref<9x32x64xbf16, #tpu.memory_space<vmem>>, vector<1x32x64xbf16>
    %173 = vector.shape_cast %172 : vector<1x32x64xbf16> to vector<32x64xbf16>
    %cst_192 = arith.constant dense<0.000000e+00> : vector<64x64xf32>
    %174 = tpu.matmul %171, %173, %cst_192 {dimension_numbers = #tpu.dot_dimension_numbers<[1], [0], [0], [1], [0, 0, 1, 1], [], []>} : vector<64x32xbf16>, vector<32x64xbf16>, vector<64x64xf32> -> vector<64x64xf32>
    %175 = arith.addf %169, %174 : vector<64x64xf32>
    %c1_193 = arith.constant 1 : index
    %c2_194 = arith.constant 2 : index
    %c0_195 = arith.constant 0 : index
    %176 = vector.load %arg21[%c1_193, %c2_194, %c0_195] : memref<10x10x32xbf16, #tpu.memory_space<vmem>>, vector<8x8x32xbf16>
    %177 = vector.shape_cast %176 : vector<8x8x32xbf16> to vector<64x32xbf16>
    %c5_196 = arith.constant 5 : index
    %c0_197 = arith.constant 0 : index
    %c0_198 = arith.constant 0 : index
    %178 = vector.load %arg6[%c5_196, %c0_197, %c0_198] : memref<9x32x64xbf16, #tpu.memory_space<vmem>>, vector<1x32x64xbf16>
    %179 = vector.shape_cast %178 : vector<1x32x64xbf16> to vector<32x64xbf16>
    %cst_199 = arith.constant dense<0.000000e+00> : vector<64x64xf32>
    %180 = tpu.matmul %177, %179, %cst_199 {dimension_numbers = #tpu.dot_dimension_numbers<[1], [0], [0], [1], [0, 0, 1, 1], [], []>} : vector<64x32xbf16>, vector<32x64xbf16>, vector<64x64xf32> -> vector<64x64xf32>
    %181 = arith.addf %175, %180 : vector<64x64xf32>
    %c2_200 = arith.constant 2 : index
    %c0_201 = arith.constant 0 : index
    %c0_202 = arith.constant 0 : index
    %182 = vector.load %arg21[%c2_200, %c0_201, %c0_202] : memref<10x10x32xbf16, #tpu.memory_space<vmem>>, vector<8x8x32xbf16>
    %183 = vector.shape_cast %182 : vector<8x8x32xbf16> to vector<64x32xbf16>
    %c6_203 = arith.constant 6 : index
    %c0_204 = arith.constant 0 : index
    %c0_205 = arith.constant 0 : index
    %184 = vector.load %arg6[%c6_203, %c0_204, %c0_205] : memref<9x32x64xbf16, #tpu.memory_space<vmem>>, vector<1x32x64xbf16>
    %185 = vector.shape_cast %184 : vector<1x32x64xbf16> to vector<32x64xbf16>
    %cst_206 = arith.constant dense<0.000000e+00> : vector<64x64xf32>
    %186 = tpu.matmul %183, %185, %cst_206 {dimension_numbers = #tpu.dot_dimension_numbers<[1], [0], [0], [1], [0, 0, 1, 1], [], []>} : vector<64x32xbf16>, vector<32x64xbf16>, vector<64x64xf32> -> vector<64x64xf32>
    %187 = arith.addf %181, %186 : vector<64x64xf32>
    %c2_207 = arith.constant 2 : index
    %c1_208 = arith.constant 1 : index
    %c0_209 = arith.constant 0 : index
    %188 = vector.load %arg21[%c2_207, %c1_208, %c0_209] : memref<10x10x32xbf16, #tpu.memory_space<vmem>>, vector<8x8x32xbf16>
    %189 = vector.shape_cast %188 : vector<8x8x32xbf16> to vector<64x32xbf16>
    %c7_210 = arith.constant 7 : index
    %c0_211 = arith.constant 0 : index
    %c0_212 = arith.constant 0 : index
    %190 = vector.load %arg6[%c7_210, %c0_211, %c0_212] : memref<9x32x64xbf16, #tpu.memory_space<vmem>>, vector<1x32x64xbf16>
    %191 = vector.shape_cast %190 : vector<1x32x64xbf16> to vector<32x64xbf16>
    %cst_213 = arith.constant dense<0.000000e+00> : vector<64x64xf32>
    %192 = tpu.matmul %189, %191, %cst_213 {dimension_numbers = #tpu.dot_dimension_numbers<[1], [0], [0], [1], [0, 0, 1, 1], [], []>} : vector<64x32xbf16>, vector<32x64xbf16>, vector<64x64xf32> -> vector<64x64xf32>
    %193 = arith.addf %187, %192 : vector<64x64xf32>
    %c2_214 = arith.constant 2 : index
    %c2_215 = arith.constant 2 : index
    %c0_216 = arith.constant 0 : index
    %194 = vector.load %arg21[%c2_214, %c2_215, %c0_216] : memref<10x10x32xbf16, #tpu.memory_space<vmem>>, vector<8x8x32xbf16>
    %195 = vector.shape_cast %194 : vector<8x8x32xbf16> to vector<64x32xbf16>
    %c8_217 = arith.constant 8 : index
    %c0_218 = arith.constant 0 : index
    %c0_219 = arith.constant 0 : index
    %196 = vector.load %arg6[%c8_217, %c0_218, %c0_219] : memref<9x32x64xbf16, #tpu.memory_space<vmem>>, vector<1x32x64xbf16>
    %197 = vector.shape_cast %196 : vector<1x32x64xbf16> to vector<32x64xbf16>
    %cst_220 = arith.constant dense<0.000000e+00> : vector<64x64xf32>
    %198 = tpu.matmul %195, %197, %cst_220 {dimension_numbers = #tpu.dot_dimension_numbers<[1], [0], [0], [1], [0, 0, 1, 1], [], []>} : vector<64x32xbf16>, vector<32x64xbf16>, vector<64x64xf32> -> vector<64x64xf32>
    %199 = arith.addf %193, %198 : vector<64x64xf32>
    %200 = vector.broadcast %140 : vector<1x64xf32> to vector<64x64xf32>
    %201 = arith.addf %199, %200 : vector<64x64xf32>
    %cst_221 = arith.constant 0.000000e+00 : f32
    %202 = vector.broadcast %cst_221 : f32 to vector<64x64xf32>
    %203 = arith.maximumf %201, %202 : vector<64x64xf32>
    %204 = vector.shape_cast %203 : vector<64x64xf32> to vector<8x8x64xf32>
    %205 = vector.extract_strided_slice %204 {offsets = [0, 0, 0], sizes = [1, 8, 64], strides = [1, 1, 1]} : vector<8x8x64xf32> to vector<1x8x64xf32>
    %206 = vector.shape_cast %205 : vector<1x8x64xf32> to vector<8x64xf32>
    %207 = vector.extract_strided_slice %204 {offsets = [1, 0, 0], sizes = [1, 8, 64], strides = [1, 1, 1]} : vector<8x8x64xf32> to vector<1x8x64xf32>
    %208 = vector.shape_cast %207 : vector<1x8x64xf32> to vector<8x64xf32>
    %209 = arith.addf %206, %208 : vector<8x64xf32>
    %210 = vector.extract_strided_slice %204 {offsets = [2, 0, 0], sizes = [1, 8, 64], strides = [1, 1, 1]} : vector<8x8x64xf32> to vector<1x8x64xf32>
    %211 = vector.shape_cast %210 : vector<1x8x64xf32> to vector<8x64xf32>
    %212 = arith.addf %209, %211 : vector<8x64xf32>
    %213 = vector.extract_strided_slice %204 {offsets = [3, 0, 0], sizes = [1, 8, 64], strides = [1, 1, 1]} : vector<8x8x64xf32> to vector<1x8x64xf32>
    %214 = vector.shape_cast %213 : vector<1x8x64xf32> to vector<8x64xf32>
    %215 = arith.addf %212, %214 : vector<8x64xf32>
    %216 = vector.extract_strided_slice %204 {offsets = [4, 0, 0], sizes = [1, 8, 64], strides = [1, 1, 1]} : vector<8x8x64xf32> to vector<1x8x64xf32>
    %217 = vector.shape_cast %216 : vector<1x8x64xf32> to vector<8x64xf32>
    %218 = vector.extract_strided_slice %204 {offsets = [5, 0, 0], sizes = [1, 8, 64], strides = [1, 1, 1]} : vector<8x8x64xf32> to vector<1x8x64xf32>
    %219 = vector.shape_cast %218 : vector<1x8x64xf32> to vector<8x64xf32>
    %220 = arith.addf %217, %219 : vector<8x64xf32>
    %221 = vector.extract_strided_slice %204 {offsets = [6, 0, 0], sizes = [1, 8, 64], strides = [1, 1, 1]} : vector<8x8x64xf32> to vector<1x8x64xf32>
    %222 = vector.shape_cast %221 : vector<1x8x64xf32> to vector<8x64xf32>
    %223 = arith.addf %220, %222 : vector<8x64xf32>
    %224 = vector.extract_strided_slice %204 {offsets = [7, 0, 0], sizes = [1, 8, 64], strides = [1, 1, 1]} : vector<8x8x64xf32> to vector<1x8x64xf32>
    %225 = vector.shape_cast %224 : vector<1x8x64xf32> to vector<8x64xf32>
    %226 = arith.addf %223, %225 : vector<8x64xf32>
    %227 = vector.extract_strided_slice %215 {offsets = [0, 0], sizes = [4, 64], strides = [1, 1]} : vector<8x64xf32> to vector<4x64xf32>
    %cst_222 = arith.constant dense<0.000000e+00> : vector<64xf32>
    %228 = vector.multi_reduction <add>, %227, %cst_222 [0] : vector<4x64xf32> to vector<64xf32>
    %229 = vector.shape_cast %228 : vector<64xf32> to vector<1x64xf32>
    %230 = vector.extract_strided_slice %215 {offsets = [4, 0], sizes = [4, 64], strides = [1, 1]} : vector<8x64xf32> to vector<4x64xf32>
    %cst_223 = arith.constant dense<0.000000e+00> : vector<64xf32>
    %231 = vector.multi_reduction <add>, %230, %cst_223 [0] : vector<4x64xf32> to vector<64xf32>
    %232 = vector.shape_cast %231 : vector<64xf32> to vector<1x64xf32>
    %233 = vector.extract_strided_slice %226 {offsets = [0, 0], sizes = [4, 64], strides = [1, 1]} : vector<8x64xf32> to vector<4x64xf32>
    %cst_224 = arith.constant dense<0.000000e+00> : vector<64xf32>
    %234 = vector.multi_reduction <add>, %233, %cst_224 [0] : vector<4x64xf32> to vector<64xf32>
    %235 = vector.shape_cast %234 : vector<64xf32> to vector<1x64xf32>
    %236 = vector.extract_strided_slice %226 {offsets = [4, 0], sizes = [4, 64], strides = [1, 1]} : vector<8x64xf32> to vector<4x64xf32>
    %cst_225 = arith.constant dense<0.000000e+00> : vector<64xf32>
    %237 = vector.multi_reduction <add>, %236, %cst_225 [0] : vector<4x64xf32> to vector<64xf32>
    %238 = vector.shape_cast %237 : vector<64xf32> to vector<1x64xf32>
    %c0_226 = arith.constant 0 : index
    %c0_227 = arith.constant 0 : index
    %239 = vector.load %arg9[%c0_226, %c0_227] : memref<1x128xf32, #tpu.memory_space<vmem>>, vector<1x128xf32>
    %c0_228 = arith.constant 0 : index
    %c0_229 = arith.constant 0 : index
    %240 = vector.load %arg11[%c0_228, %c0_229] : memref<1x256xf32, #tpu.memory_space<vmem>>, vector<1x256xf32>
    %241 = arith.truncf %229 : vector<1x64xf32> to vector<1x64xbf16>
    %c0_230 = arith.constant 0 : index
    %c0_231 = arith.constant 0 : index
    %c0_232 = arith.constant 0 : index
    %242 = vector.load %arg8[%c0_230, %c0_231, %c0_232] : memref<4x64x128xbf16, #tpu.memory_space<vmem>>, vector<1x64x128xbf16>
    %243 = vector.shape_cast %242 : vector<1x64x128xbf16> to vector<64x128xbf16>
    %cst_233 = arith.constant dense<0.000000e+00> : vector<1x128xf32>
    %244 = tpu.matmul %241, %243, %cst_233 {dimension_numbers = #tpu.dot_dimension_numbers<[1], [0], [0], [1], [0, 0, 1, 1], [], []>} : vector<1x64xbf16>, vector<64x128xbf16>, vector<1x128xf32> -> vector<1x128xf32>
    %245 = arith.addf %239, %244 : vector<1x128xf32>
    %c0_234 = arith.constant 0 : index
    %c0_235 = arith.constant 0 : index
    %c0_236 = arith.constant 0 : index
    %246 = vector.load %arg10[%c0_234, %c0_235, %c0_236] : memref<4x64x256xbf16, #tpu.memory_space<vmem>>, vector<1x64x256xbf16>
    %247 = vector.shape_cast %246 : vector<1x64x256xbf16> to vector<64x256xbf16>
    %cst_237 = arith.constant dense<0.000000e+00> : vector<1x256xf32>
    %248 = tpu.matmul %241, %247, %cst_237 {dimension_numbers = #tpu.dot_dimension_numbers<[1], [0], [0], [1], [0, 0, 1, 1], [], []>} : vector<1x64xbf16>, vector<64x256xbf16>, vector<1x256xf32> -> vector<1x256xf32>
    %249 = arith.addf %240, %248 : vector<1x256xf32>
    %250 = arith.truncf %232 : vector<1x64xf32> to vector<1x64xbf16>
    %c1_238 = arith.constant 1 : index
    %c0_239 = arith.constant 0 : index
    %c0_240 = arith.constant 0 : index
    %251 = vector.load %arg8[%c1_238, %c0_239, %c0_240] : memref<4x64x128xbf16, #tpu.memory_space<vmem>>, vector<1x64x128xbf16>
    %252 = vector.shape_cast %251 : vector<1x64x128xbf16> to vector<64x128xbf16>
    %cst_241 = arith.constant dense<0.000000e+00> : vector<1x128xf32>
    %253 = tpu.matmul %250, %252, %cst_241 {dimension_numbers = #tpu.dot_dimension_numbers<[1], [0], [0], [1], [0, 0, 1, 1], [], []>} : vector<1x64xbf16>, vector<64x128xbf16>, vector<1x128xf32> -> vector<1x128xf32>
    %254 = arith.addf %245, %253 : vector<1x128xf32>
    %c1_242 = arith.constant 1 : index
    %c0_243 = arith.constant 0 : index
    %c0_244 = arith.constant 0 : index
    %255 = vector.load %arg10[%c1_242, %c0_243, %c0_244] : memref<4x64x256xbf16, #tpu.memory_space<vmem>>, vector<1x64x256xbf16>
    %256 = vector.shape_cast %255 : vector<1x64x256xbf16> to vector<64x256xbf16>
    %cst_245 = arith.constant dense<0.000000e+00> : vector<1x256xf32>
    %257 = tpu.matmul %250, %256, %cst_245 {dimension_numbers = #tpu.dot_dimension_numbers<[1], [0], [0], [1], [0, 0, 1, 1], [], []>} : vector<1x64xbf16>, vector<64x256xbf16>, vector<1x256xf32> -> vector<1x256xf32>
    %258 = arith.addf %249, %257 : vector<1x256xf32>
    %259 = arith.truncf %235 : vector<1x64xf32> to vector<1x64xbf16>
    %c2_246 = arith.constant 2 : index
    %c0_247 = arith.constant 0 : index
    %c0_248 = arith.constant 0 : index
    %260 = vector.load %arg8[%c2_246, %c0_247, %c0_248] : memref<4x64x128xbf16, #tpu.memory_space<vmem>>, vector<1x64x128xbf16>
    %261 = vector.shape_cast %260 : vector<1x64x128xbf16> to vector<64x128xbf16>
    %cst_249 = arith.constant dense<0.000000e+00> : vector<1x128xf32>
    %262 = tpu.matmul %259, %261, %cst_249 {dimension_numbers = #tpu.dot_dimension_numbers<[1], [0], [0], [1], [0, 0, 1, 1], [], []>} : vector<1x64xbf16>, vector<64x128xbf16>, vector<1x128xf32> -> vector<1x128xf32>
    %263 = arith.addf %254, %262 : vector<1x128xf32>
    %c2_250 = arith.constant 2 : index
    %c0_251 = arith.constant 0 : index
    %c0_252 = arith.constant 0 : index
    %264 = vector.load %arg10[%c2_250, %c0_251, %c0_252] : memref<4x64x256xbf16, #tpu.memory_space<vmem>>, vector<1x64x256xbf16>
    %265 = vector.shape_cast %264 : vector<1x64x256xbf16> to vector<64x256xbf16>
    %cst_253 = arith.constant dense<0.000000e+00> : vector<1x256xf32>
    %266 = tpu.matmul %259, %265, %cst_253 {dimension_numbers = #tpu.dot_dimension_numbers<[1], [0], [0], [1], [0, 0, 1, 1], [], []>} : vector<1x64xbf16>, vector<64x256xbf16>, vector<1x256xf32> -> vector<1x256xf32>
    %267 = arith.addf %258, %266 : vector<1x256xf32>
    %268 = arith.truncf %238 : vector<1x64xf32> to vector<1x64xbf16>
    %c3_254 = arith.constant 3 : index
    %c0_255 = arith.constant 0 : index
    %c0_256 = arith.constant 0 : index
    %269 = vector.load %arg8[%c3_254, %c0_255, %c0_256] : memref<4x64x128xbf16, #tpu.memory_space<vmem>>, vector<1x64x128xbf16>
    %270 = vector.shape_cast %269 : vector<1x64x128xbf16> to vector<64x128xbf16>
    %cst_257 = arith.constant dense<0.000000e+00> : vector<1x128xf32>
    %271 = tpu.matmul %268, %270, %cst_257 {dimension_numbers = #tpu.dot_dimension_numbers<[1], [0], [0], [1], [0, 0, 1, 1], [], []>} : vector<1x64xbf16>, vector<64x128xbf16>, vector<1x128xf32> -> vector<1x128xf32>
    %272 = arith.addf %263, %271 : vector<1x128xf32>
    %c3_258 = arith.constant 3 : index
    %c0_259 = arith.constant 0 : index
    %c0_260 = arith.constant 0 : index
    %273 = vector.load %arg10[%c3_258, %c0_259, %c0_260] : memref<4x64x256xbf16, #tpu.memory_space<vmem>>, vector<1x64x256xbf16>
    %274 = vector.shape_cast %273 : vector<1x64x256xbf16> to vector<64x256xbf16>
    %cst_261 = arith.constant dense<0.000000e+00> : vector<1x256xf32>
    %275 = tpu.matmul %268, %274, %cst_261 {dimension_numbers = #tpu.dot_dimension_numbers<[1], [0], [0], [1], [0, 0, 1, 1], [], []>} : vector<1x64xbf16>, vector<64x256xbf16>, vector<1x256xf32> -> vector<1x256xf32>
    %276 = arith.addf %267, %275 : vector<1x256xf32>
    %c0_262 = arith.constant 0 : index
    %c0_263 = arith.constant 0 : index
    %c0_264 = arith.constant 0 : index
    %277 = vector.load %arg16[%c0_262, %c0_263, %c0_264] : memref<1x1x128xf32, #tpu.memory_space<vmem>>, vector<1x1x128xf32>
    %278 = vector.shape_cast %277 : vector<1x1x128xf32> to vector<1x128xf32>
    %279 = vector.shape_cast %272 : vector<1x128xf32> to vector<1x1x128xf32>
    tpu.vector_store %arg16[%c0_262, %c0_263, %c0_264], %279 {strides = array<i32>} : memref<1x1x128xf32, #tpu.memory_space<vmem>>, vector<1x1x128xf32>,
    %cst_265 = arith.constant 0.000000e+00 : f32
    %280 = vector.broadcast %cst_265 : f32 to vector<1x256xf32>
    %281 = arith.maximumf %276, %280 : vector<1x256xf32>
    %282 = arith.truncf %281 : vector<1x256xf32> to vector<1x256xbf16>
    %c0_266 = arith.constant 0 : index
    %c0_267 = arith.constant 0 : index
    %283 = vector.load %arg12[%c0_266, %c0_267] : memref<256x256xbf16, #tpu.memory_space<vmem>>, vector<256x256xbf16>
    %cst_268 = arith.constant dense<0.000000e+00> : vector<1x256xf32>
    %284 = tpu.matmul %282, %283, %cst_268 {dimension_numbers = #tpu.dot_dimension_numbers<[1], [0], [0], [1], [0, 0, 1, 1], [], []>} : vector<1x256xbf16>, vector<256x256xbf16>, vector<1x256xf32> -> vector<1x256xf32>
    %c0_269 = arith.constant 0 : index
    %c0_270 = arith.constant 0 : index
    %285 = vector.load %arg13[%c0_269, %c0_270] : memref<1x256xf32, #tpu.memory_space<vmem>>, vector<1x256xf32>
    %286 = arith.addf %284, %285 : vector<1x256xf32>
    %cst_271 = arith.constant 0.000000e+00 : f32
    %287 = vector.broadcast %cst_271 : f32 to vector<1x256xf32>
    %288 = arith.maximumf %286, %287 : vector<1x256xf32>
    %289 = arith.truncf %288 : vector<1x256xf32> to vector<1x256xbf16>
    %c0_272 = arith.constant 0 : index
    %c0_273 = arith.constant 0 : index
    %290 = vector.load %arg14[%c0_272, %c0_273] : memref<256x128xbf16, #tpu.memory_space<vmem>>, vector<256x128xbf16>
    %cst_274 = arith.constant dense<0.000000e+00> : vector<1x128xf32>
    %291 = tpu.matmul %289, %290, %cst_274 {dimension_numbers = #tpu.dot_dimension_numbers<[1], [0], [0], [1], [0, 0, 1, 1], [], []>} : vector<1x256xbf16>, vector<256x128xbf16>, vector<1x128xf32> -> vector<1x128xf32>
    %c0_275 = arith.constant 0 : index
    %c0_276 = arith.constant 0 : index
    %292 = vector.load %arg15[%c0_275, %c0_276] : memref<1x128xf32, #tpu.memory_space<vmem>>, vector<1x128xf32>
    %293 = arith.addf %291, %292 : vector<1x128xf32>
    %c0_277 = arith.constant 0 : index
    %c0_278 = arith.constant 0 : index
    %c0_279 = arith.constant 0 : index
    %294 = vector.load %arg17[%c0_277, %c0_278, %c0_279] : memref<1x1x128xf32, #tpu.memory_space<vmem>>, vector<1x1x128xf32>
    %295 = vector.shape_cast %294 : vector<1x1x128xf32> to vector<1x128xf32>
    %296 = vector.shape_cast %293 : vector<1x128xf32> to vector<1x1x128xf32>
    tpu.vector_store %arg17[%c0_277, %c0_278, %c0_279], %296 {strides = array<i32>} : memref<1x1x128xf32, #tpu.memory_space<vmem>>, vector<1x1x128xf32>,
    return
  }
  func.func @transform_0(%arg0: i32) -> (i32, i32, i32, i32) {
    %c0_i32 = arith.constant 0 : i32
    %c0_i32_0 = arith.constant 0 : i32
    %c0_i32_1 = arith.constant 0 : i32
    %c0_i32_2 = arith.constant 0 : i32
    return %arg0, %c0_i32, %c0_i32_0, %c0_i32_1 : i32, i32, i32, i32
  }
  func.func @transform_1(%arg0: i32) -> (i32, i32, i32) {
    %c0_i32 = arith.constant 0 : i32
    %c0_i32_0 = arith.constant 0 : i32
    %c0_i32_1 = arith.constant 0 : i32
    %c0_i32_2 = arith.constant 0 : i32
    return %c0_i32, %c0_i32_0, %c0_i32_1 : i32, i32, i32
  }
  func.func @transform_2(%arg0: i32) -> (i32, i32) {
    %c0_i32 = arith.constant 0 : i32
    %c0_i32_0 = arith.constant 0 : i32
    %c0_i32_1 = arith.constant 0 : i32
    return %c0_i32, %c0_i32_0 : i32, i32
  }
  func.func @transform_3(%arg0: i32) -> (i32, i32, i32) {
    %c0_i32 = arith.constant 0 : i32
    %c0_i32_0 = arith.constant 0 : i32
    %c0_i32_1 = arith.constant 0 : i32
    %c0_i32_2 = arith.constant 0 : i32
    return %c0_i32, %c0_i32_0, %c0_i32_1 : i32, i32, i32
  }
  func.func @transform_4(%arg0: i32) -> (i32, i32) {
    %c0_i32 = arith.constant 0 : i32
    %c0_i32_0 = arith.constant 0 : i32
    %c0_i32_1 = arith.constant 0 : i32
    return %c0_i32, %c0_i32_0 : i32, i32
  }
  func.func @transform_5(%arg0: i32) -> (i32, i32, i32) {
    %c0_i32 = arith.constant 0 : i32
    %c0_i32_0 = arith.constant 0 : i32
    %c0_i32_1 = arith.constant 0 : i32
    %c0_i32_2 = arith.constant 0 : i32
    return %c0_i32, %c0_i32_0, %c0_i32_1 : i32, i32, i32
  }
  func.func @transform_6(%arg0: i32) -> (i32, i32) {
    %c0_i32 = arith.constant 0 : i32
    %c0_i32_0 = arith.constant 0 : i32
    %c0_i32_1 = arith.constant 0 : i32
    return %c0_i32, %c0_i32_0 : i32, i32
  }
  func.func @transform_7(%arg0: i32) -> (i32, i32, i32) {
    %c0_i32 = arith.constant 0 : i32
    %c0_i32_0 = arith.constant 0 : i32
    %c0_i32_1 = arith.constant 0 : i32
    %c0_i32_2 = arith.constant 0 : i32
    return %c0_i32, %c0_i32_0, %c0_i32_1 : i32, i32, i32
  }
  func.func @transform_8(%arg0: i32) -> (i32, i32) {
    %c0_i32 = arith.constant 0 : i32
    %c0_i32_0 = arith.constant 0 : i32
    %c0_i32_1 = arith.constant 0 : i32
    return %c0_i32, %c0_i32_0 : i32, i32
  }
  func.func @transform_9(%arg0: i32) -> (i32, i32, i32) {
    %c0_i32 = arith.constant 0 : i32
    %c0_i32_0 = arith.constant 0 : i32
    %c0_i32_1 = arith.constant 0 : i32
    %c0_i32_2 = arith.constant 0 : i32
    return %c0_i32, %c0_i32_0, %c0_i32_1 : i32, i32, i32
  }
  func.func @transform_10(%arg0: i32) -> (i32, i32) {
    %c0_i32 = arith.constant 0 : i32
    %c0_i32_0 = arith.constant 0 : i32
    %c0_i32_1 = arith.constant 0 : i32
    return %c0_i32, %c0_i32_0 : i32, i32
  }
  func.func @transform_11(%arg0: i32) -> (i32, i32) {
    %c0_i32 = arith.constant 0 : i32
    %c0_i32_0 = arith.constant 0 : i32
    %c0_i32_1 = arith.constant 0 : i32
    return %c0_i32, %c0_i32_0 : i32, i32
  }
  func.func @transform_12(%arg0: i32) -> (i32, i32) {
    %c0_i32 = arith.constant 0 : i32
    %c0_i32_0 = arith.constant 0 : i32
    %c0_i32_1 = arith.constant 0 : i32
    return %c0_i32, %c0_i32_0 : i32, i32
  }
  func.func @transform_13(%arg0: i32) -> (i32, i32) {
    %c0_i32 = arith.constant 0 : i32
    %c0_i32_0 = arith.constant 0 : i32
    %c0_i32_1 = arith.constant 0 : i32
    return %c0_i32, %c0_i32_0 : i32, i32
  }
  func.func @transform_14(%arg0: i32) -> (i32, i32) {
    %c0_i32 = arith.constant 0 : i32
    %c0_i32_0 = arith.constant 0 : i32
    %c0_i32_1 = arith.constant 0 : i32
    return %c0_i32, %c0_i32_0 : i32, i32
  }
  func.func @transform_15(%arg0: i32) -> (i32, i32, i32) {
    %c0_i32 = arith.constant 0 : i32
    %c0_i32_0 = arith.constant 0 : i32
    %c0_i32_1 = arith.constant 0 : i32
    return %arg0, %c0_i32, %c0_i32_0 : i32, i32, i32
  }
  func.func @transform_16(%arg0: i32) -> (i32, i32, i32) {
    %c0_i32 = arith.constant 0 : i32
    %c0_i32_0 = arith.constant 0 : i32
    %c0_i32_1 = arith.constant 0 : i32
    return %arg0, %c0_i32, %c0_i32_0 : i32, i32, i32
  }
}

</mosaic_0001>

<bundles_post_ra>
// kernel: vgg_mm_forward.1
= control target key start
LH: loop header
LB: loop body
LE: loop exit
PB: predicated region body
PF: predicated region fallthrough
CT: control target
= control target key end

     0   :  { %s14138_s0 = inlined_call_operand.vmem [shape: bf16[2,16,16,3], index: 0, kind: input, shape index: {}]   ;;  %s14139_s1 = inlined_call_operand.vmem [shape: bf16[9,3,16], index: 1, kind: input, shape index: {}]   ;;  %s14140_s2 = inlined_call_operand.vmem [shape: f32[1,16], index: 2, kind: input, shape index: {}]   ;;  %s14141_s3 = inlined_call_operand.hbm [shape: bf16[9,16,32], index: 3, kind: input, shape index: {}]   ;;  %s14142_s4 = inlined_call_operand.vmem [shape: f32[1,32], index: 4, kind: input, shape index: {}]   ;;  %s14143_s5 = inlined_call_operand.vmem [shape: bf16[9,32,64], index: 5, kind: input, shape index: {}]   ;;  %s14144_s6 = inlined_call_operand.vmem [shape: f32[1,64], index: 6, kind: input, shape index: {}]   ;;  %s14145_s7 = inlined_call_operand.hbm [shape: bf16[4,64,128], index: 7, kind: input, shape index: {}]   ;;  %s14146_s8 = inlined_call_operand.vmem [shape: f32[1,128], index: 8, kind: input, shape index: {}]   ;;  %s14147_s9 = inlined_call_operand.vmem [shape: bf16[4,64,256], index: 9, kind: input, shape index: {}]   ;;  %s14148_s10 = inlined_call_operand.vmem [shape: f32[1,256], index: 10, kind: input, shape index: {}]   ;;  %s14149_s11 = inlined_call_operand.hbm [shape: bf16[256,256], index: 11, kind: input, shape index: {}]   ;;  %s14150_s12 = inlined_call_operand.vmem [shape: f32[1,256], index: 12, kind: input, shape index: {}]   ;;  %s14151_s13 = inlined_call_operand.hbm [shape: bf16[256,128], index: 13, kind: input, shape index: {}]   ;;  %s14152_s14 = inlined_call_operand.vmem [shape: f32[1,128], index: 14, kind: input, shape index: {}]   ;;  %s14153_s15 = inlined_call_operand.hbm [shape: f32[2,1,128], index: 15, kind: output, shape index: {0}]   ;;  %s14154_s16 = inlined_call_operand.hbm [shape: f32[2,1,128], index: 16, kind: output, shape index: {1}]  }
   0x1   :  { %14168 = sst [smem:[#allocation55_spill]] %s14138_s0 }
   0x2   :  { %14169 = sst [smem:[#allocation56_spill]] %s14141_s3 }
   0x3   :  { %14170 = sst [smem:[#allocation57_spill]] %s14145_s7 }
   0x4   :  { %14171 = sst [smem:[#allocation58_spill]] %s14152_s14 }
   0x5   :  { %14172 = sst [smem:[#allocation59_spill]] %s14153_s15 }
   0x6   :  { %14173 = sst [smem:[#allocation60_spill]] %s14154_s16 }
   0x7   :  { %22 = vsyncpa [#allocation7], 0 }
   0x8   :  { %23 = vsyncpa [#allocation10], 0 }
   0x9   :  { %24 = vsyncpa [#allocation13], 0 }
   0xa   :  { %25 = vsyncpa [#allocation8], 0 }
   0xb   :  { %27 = vsyncpa [#allocation8 + $0x1], 0 }
   0xc   :  { %28 = vsyncpa [#allocation16], 0 }
   0xd   :  { %30 = vsyncpa [#allocation16 + $0x1], 0  ;;  %s11045_s21 = smov 0   ;;  %s11047_s22 = smov 0  }
   0xe   :  { %s11049_s23 = smov 0   ;;  %s11051_s24 = smov 0  }
   0xf LB: > { %14174 = sst [smem:[#allocation22_spill]] %s10936_s21  ;;  %s11066_s25 = sadd.s32 4294967295, %s10948_s24   ;;  %s10948_s24 = sphi %s11051_s24, %s14285_s24   ;;  %s10944_s23 = sphi %s11049_s23, %s14287_s23   ;;  %s10940_s22 = sphi %s11047_s22, %s14289_s22   ;;  %s10936_s21 = sphi %s11045_s21, %s14288_s21  }
  0x10   : > { %14175 = sst [smem:[#allocation23_spill]] %s10944_s23  ;;  %s9221_s26 = sadd.s32 4294967294, %s10948_s24  }
  0x11   : > { %14176 = sst [smem:[#allocation24_spill]] %s10948_s24  ;;  %s11070_s27 = sadd.s32 1, %s10948_s24  }
  0x12   : > { %14177 = sst [smem:[#allocation25_spill]] %s11070_s27  ;;  %s363_s28 = sadd.s32 1, %s10944_s23 }
  0x13   : > { %s360_s29 = ssub.s32 %s10948_s24, %s11070_s27  ;;  %p373_p0 = scmp.ne.s32.totalorder %s10944_s23, %s10940_s22 }
  0x14   : > { %p361_p1 = scmp.eq.s32.totalorder %s360_s29, 0  ;;  %p374_p2 = scmp.eq.s32.totalorder %s11066_s25, 1 }
  0x15   : > { %p379_p3 = scmp.ne.s32.totalorder %s10940_s22, %s10936_s21  ;;  %p380_p4 = scmp.eq.s32.totalorder %s9221_s26, 1 }
  0x16   : > { %s11081_s30 = scalar_select %p361_p1, %s10944_s23, %s363_s28  }
  0x17   : > { %p11083_p5 = por %p374_p2, %p373_p0  ;;  %p11087_p6 = por %p380_p4, %p379_p3 }
  0x18   : > { %14178 = sst [smem:[#allocation26_spill]] %s11081_s30  ;;  %p9222_p7 = scmp.ge.s32.totalorder %s10948_s24, 1 }
  0x19   : > { %s14179_s0 = scalar_select %p11083_p5, 1, 0 }
  0x1a   : > { %s14181_s17 = scalar_select %p11087_p6, 1, 0 }
  0x1b   : > { %14180 = sst [smem:[#allocation27_spill]] %s14179_s0  ;;  %p413_p8 = scmp.lt.s32.totalorder %s10948_s24, 3 }
  0x1c   : > { %14182 = sst [smem:[#allocation28_spill]] %s14181_s17  ;;  %p10643_p9 = scmp.eq.s32.totalorder %s11066_s25, 0 }
  0x1d   : > { %p11094_p10 = pnand %p9222_p7, %p413_p8  ;;  %s14184_s7 = sld [smem:[#allocation57_spill]] }
  0x1e   : > { %s14185_s3 = sld [smem:[#allocation56_spill]]  ;;  %s10950_s27 = smov [#allocation9]  }
  0x1f   : > { %p10623_p11 = pneg %p11094_p10  ;;  %s455_s17 = sshll.u32 %s10950_s27, 4  ;;  %s456_s17 = int_to_ptr.vmem [resolvable:$true] %s455_s17 }
  0x20   : > { %s10951_s19 = smov 64   ;;  %s10952_s20 = smov 4  }
  0x21   : > { %p11108_p12 = pnand %p10643_p9, %p10623_p11  ;;  %s10954_s24 = smov [#allocation11]  }
  0x22   : > { %s478_s27 = sshll.u32 %s10954_s24, 4  ;;  %s493_s15 = sshll.u32 %s14151_s13, 4  ;;  %s479_s27 = int_to_ptr.vmem [resolvable:$true] %s478_s27  ;;  %s494_s15 = int_to_ptr.hbm [resolvable:$true] %s493_s15 }
  0x23   : > { %s453_s26 = sshll.u32 %s14184_s7, 4  ;;  %s10953_s7 = smov [#allocation6]   ;;  %s454_s26 = int_to_ptr.hbm [resolvable:$true] %s453_s26 }
  0x24   : > { %s430_s30 = sshll.u32 %s14185_s3, 4  ;;  %s432_s21 = sshll.u32 %s10953_s7, 4  ;;  %s431_s30 = int_to_ptr.hbm [resolvable:$true] %s430_s30  ;;  %s433_s21 = int_to_ptr.vmem [resolvable:$true] %s432_s21 }
  0x25   : > { %10629 = dma.hbm_to_vmem [thread:$0]  (!%p11108_p12), %s454_s26, 2048, %s456_s17, [#allocation10], %s10951_s19, %s10951_s19, %s10952_s20  }
  0x26   : > { %s476_s3 = sshll.u32 %s14149_s11, 4  ;;  %s10955_s0 = smov 128   ;;  %s477_s3 = int_to_ptr.hbm [resolvable:$true] %s476_s3 }
  0x27   : > { %10626 = dma.hbm_to_vmem [thread:$0]  (!%p11108_p12), %s431_s30, 1152, %s433_s21, [#allocation7], %s10951_s19, %s10951_s19, %s10952_s20  }
  0x28   : > { %s10956_s17 = smov 8   ;;  %s10957_s7 = smov [#allocation12]  }
  0x29   : > { %10632 = dma.hbm_to_vmem [thread:$0]  (!%p11108_p12), %s477_s3, 4096, %s479_s27, [#allocation10], %s10955_s0, %s10955_s0, %s10956_s17  }
  0x2a   : > { %s495_s26 = sshll.u32 %s10957_s7, 4  ;;  %522 = sbr.rel (%p11094_p10) target bundleno = 2039 (0x7f7), region = 80  ;;  %s496_s26 = int_to_ptr.vmem [resolvable:$true] %s495_s26 }
  0x2b   : > { %10635 = dma.hbm_to_vmem [thread:$0]  (!%p11108_p12), %s494_s15, 2048, %s496_s26, [#allocation13], %s10951_s19, %s10951_s19, %s10952_s20  }
  0x2f   : > { %10915 = dma.done.wait (%p10643_p9), [#allocation7], 1152  }
  0x30   : > { %10917 = vsyncadd (%p10643_p9), [#allocation7], 4294966144 }
  0x31   : > { %10919 = dma.done.wait (%p10643_p9), [#allocation10], 6144  }
  0x32   : > { %10921 = vsyncadd (%p10643_p9), [#allocation10], 4294961152 }
  0x33   : > { %10923 = dma.done.wait (%p10643_p9), [#allocation13], 2048  }
  0x34   : > { %10925 = vsyncadd (%p10643_p9), [#allocation13], 4294965248  ;;  %vm1662_vm0 = vcmask 1040384   ;;  %vm630_vm1 = vcmask 19456   ;;  %vm633_vm2 = vcmask 16384   ;;  %vm1663_vm3 = vcmask 1041408  }
  0x35   : > { %v10958_v0 = vmov 65535   ;;  %v14165_v2 = vmov 0   ;;  %vm1176_vm4 = vsmask.f32 3328  ;;  %vm1177_vm5 = vsmask.f32 7440 }
  0x36   : > { %v1664_v1 = vsel %vm1662_vm0, 4294967295, %v10958_v0  ;;  %631 = vst.msk [vmem:[#allocation2] sm:$0xf] %vm630_vm1, %v14165_v2  ;;  %v9235_v4 = vld [vmem:[%s14139_s1 + $0x2] sm:$0x3]  ;;  %vm11186_vm6 = vmor %vm1176_vm4, %vm1177_vm5  ;;  %vm1613_vm7 = vcmask 23552  }
  0x37   : > { %632 = vst.msk [vmem:[#allocation2 + $0x4] sm:$0xf] %vm630_vm1, %v14165_v2  ;;  %v11147_v3 = vsel %vm1663_vm3, %v1664_v1, 0  ;;  %v1159_v5 = vld [vmem:[%s14139_s1] sm:$0x3]  ;;  %p591_p13 = scmp.lt.s32.totalorder %s11066_s25, 1 }
  0x38   : > { %634 = vst.msk [vmem:[#allocation2 + $0x8] sm:$0x1] %vm633_vm2, %v14165_v2  ;;  %v1667_v6 = vand.u32 %v9235_v4, %v11147_v3  ;;  %v1887_v7 = vand.u32 %v11147_v3, %v1159_v5  ;;  %v9446_v32 = vld [vmem:[%s14139_s1 + $0x8] sm:$0x3]  ;;  %s14189_s19 = sld [smem:[#allocation55_spill]]  ;;  %vm2026_vm12 = vcmask 1042432  }
  0x39   : > { %635 = vst.msk [vmem:[#allocation2 + $0xc] sm:$0xf] %vm630_vm1, %v14165_v2  ;;  %v3180_v33 = vand.u32 %v9446_v32, %v11147_v3  ;;  %s592_s24 = scalar_select %p591_p13, %s11066_s25, 1  ;;  %vm686_vm8 = vsmask.f32 256  ;;  %vm2027_vm13 = vcmask 1046532  }
  0x3a   : > { %636 = vst.msk [vmem:[#allocation2 + $0x10] sm:$0xf] %vm630_vm1, %v14165_v2  ;;  %1676 = vmatpush.bf16.msra.mxu0 %v1667_v6  ;;  %1896 = vmatpush.bf16.msra.mxu1 %v1887_v7  ;;  %vm687_vm9 = vsmask.f32 4368  ;;  %vm1011_vm10 = vsmask.f32 7938  ;;  %vm11322_vm14 = vmor %vm2026_vm12, %vm2027_vm13 }
  0x3b   : > { %637 = vst.msk [vmem:[#allocation2 + $0x14] sm:$0x1] %vm633_vm2, %v14165_v2  ;;  %10601 = vmatpush.bf16.msra.mxu2 %v1667_v6  ;;  %10602 = vmatpush.bf16.msra.mxu3 %v1887_v7  ;;  %s10405_s30 = sshll.u32 %s592_s24, 7  ;;  %v9348_v1 = vld [vmem:[%s14139_s1 + $0x4] sm:$0x3]  ;;  %vm11314_vm11 = vmor %vm686_vm8, %vm687_vm9  ;;  %vm5230_vm4 = vcmask 122880  }
  0x3c   : > { %638 = vst.msk [vmem:[#allocation2 + $0x18] sm:$0xf] %vm630_vm1, %v14165_v2  ;;  %v9365_v4 = vld [vmem:[%s14139_s1 + $0x6] sm:$0x3]  ;;  %v2240_v6 = vand.u32 %v9348_v1, %v11147_v3  ;;  %vm11332_vm15 = vmand %vm630_vm1, %vm1011_vm10  ;;  %s14062_s3 = sand.u32 1, %s10940_s22   ;;  %s14279_s18 = sld [smem:[#allocation59_spill]] }
  0x3d   : > { %v1127_v8 = vld [vmem:[#allocation2] sm:$0xf]  ;;  %639 = vst.msk [vmem:[#allocation2 + $0x1c] sm:$0xf] %vm630_vm1, %v14165_v2  ;;  %v2526_v7 = vand.u32 %v9365_v4, %v11147_v3  ;;  %vm11348_vm3 = vmand %vm633_vm2, %vm686_vm8  ;;  %s584_s14 = scalar_lea.vmem [#allocation14], %s14062_s3  ;;  %s9068_s29 = scalar_lea.sflag [#allocation8], %s14062_s3 }
  0x3e   : > { %v11167_v9 = vld [vmem:[#allocation2 + $0x4] sm:$0xf]  ;;  %v1180_v10 = vshrl.u32 %v1127_v8, 16  ;;  %v1183_v11 = vshll.u32 %v1127_v8, 16  ;;  %640 = vst.msk [vmem:[#allocation2 + $0x20] sm:$0x1] %vm633_vm2, %v14165_v2  ;;  %3189 = vmatpush.bf16.msrb.mxu0 %v3180_v33  ;;  %s11243_s20 = scalar_lea.vmem %s14189_s19, %s10405_s30  ;;  %vm12816_vm9 = vmand %vm5230_vm4, %vm686_vm8 }
  0x3f   : > { %v11171_v12 = vld [vmem:[#allocation2 + $0x8] sm:$0x1]  ;;  %v1189_v13 = vshll.u32 %v11167_v9, 16  ;;  %v1193_v14 = vshrl.u32 %v11167_v9, 16  ;;  %641 = vst.msk [vmem:[#allocation2 + $0x24] sm:$0xf] %vm630_vm1, %v14165_v2  ;;  %2249 = vmatpush.bf16.msrb.mxu2 %v2240_v6  ;;  %2535 = vmatpush.bf16.msrb.mxu3 %v2526_v7 }
  0x40   : > { %v1182_v15 = vrot.slane %v1180_v10, 4  ;;  %v1185_v16 = vrot.slane %v1183_v11, 5  ;;  %v1199_v17 = vshll.u32 %v11171_v12, 16  ;;  %642 = vst.msk [vmem:[#allocation2 + $0x28] sm:$0xf] %vm630_vm1, %v14165_v2  ;;  %v10406_v31 = vld [vmem:[#allocation2] sm:$0xff] }
  0x41   : > { %v1191_v18 = vrot.slane %v1189_v13, 5  ;;  %v1195_v19 = vrot.slane %v1193_v14, 4  ;;  %643 = vst.msk [vmem:[#allocation2 + $0x2c] sm:$0x1] %vm633_vm2, %v14165_v2  ;;  %9316 = vmatmul.msk.bf16.vlgmr.msra.gmra.mxu1 %vm1613_vm7, %v10406_v31  ;;  %v625_v34 = vld [vmem:[%s11243_s20 + $0x70] sm:$0xf] }
  0x42   : > { %v1186_v20 = vor.u32 %v1185_v16, %v1182_v15  ;;  %644 = vst.msk [vmem:[#allocation2 + $0x30] sm:$0xf] %vm630_vm1, %v14165_v2  ;;  %v1201_v23 = vrot.slane %v1199_v17, 5  ;;  %v626_v35 = vld [vmem:[%s11243_s20 + $0x74] sm:$0xf]  ;;  %v928_v38 = vshrl.u32 %v625_v34, 16  ;;  %s9080_s19 = scalar_lea.hbm %s14279_s18, %s11066_s25 }
  0x43   : > { %v1196_v22 = vor.u32 %v1195_v19, %v1191_v18  ;;  %645 = vst.msk [vmem:[#allocation2 + $0x34] sm:$0xf] %vm630_vm1, %v14165_v2  ;;  %v597_v36 = vld [vmem:[%s11243_s20] sm:$0xf]  ;;  %v598_v37 = vld [vmem:[%s11243_s20 + $0x4] sm:$0xf] }
  0x44   : > { %v1187_v24 = vrot.slane %v1186_v20, 4  ;;  %646 = vst.msk [vmem:[#allocation2 + $0x38] sm:$0x1] %vm633_vm2, %v14165_v2  ;;  %v936_v39 = vshrl.u32 %v626_v35, 16  ;;  %v690_v40 = vshrl.u32 %v597_v36, 16  ;;  %v698_v41 = vshrl.u32 %v598_v37, 16 }
  0x45   : > { %v1197_v25 = vrot.slane %v1196_v22, 4  ;;  %647 = vst.msk [vmem:[#allocation2 + $0x3c] sm:$0xf] %vm630_vm1, %v14165_v2  ;;  %v11266_v42 = vld [vmem:[%s11243_s20 + $0x8] sm:$0xf]  ;;  %v2034_v43 = vrot.slane %v11171_v12, 5 }
  0x46   : > { %v1192_v26 = vsel %vm11186_vm6, %v1187_v24, %v1191_v18  ;;  %648 = vst.msk [vmem:[#allocation2 + $0x40] sm:$0xf] %vm630_vm1, %v14165_v2  ;;  %v930_v44 = vrot.slane %v928_v38, 7  ;;  %v931_v45 = vshll.u32 %v625_v34, 16  ;;  %v11273_v46 = vrot.slane %v936_v39, 7  ;;  %s9084_s28 = sshll.u32 %s9080_s19, 4  ;;  %s9085_s28 = int_to_ptr.hbm [resolvable:$true] %s9084_s28 }
  0x47   : > { %v1202_v27 = vsel %vm11186_vm6, %v1197_v25, %v1201_v23  ;;  %v1565_v28 = vunpack.c.l.b16 %v1192_v26  ;;  %649 = vst.msk [vmem:[#allocation2 + $0x44] sm:$0x1] %vm633_vm2, %v14165_v2  ;;  %v11277_v47 = vrot.slane %v690_v40, 7  ;;  %v11280_v48 = vld [vmem:[%s11243_s20 + $0xc] sm:$0xf]  ;;  %v707_v49 = vshrl.u32 %v11266_v42, 16 }
  0x48   : > { %v1566_v29 = vunpack.c.l.b16 %v1202_v27  ;;  %650 = vst.msk [vmem:[#allocation2 + $0x48] sm:$0xf] %vm630_vm1, %v14165_v2  ;;  %v939_v50 = vshll.u32 %v626_v35, 16  ;;  %v693_v51 = vshll.u32 %v597_v36, 16  ;;  %v11285_v52 = vrot.slane %v698_v41, 7  ;;  %s10856_s27 = sshra.s32 %s9085_s28, 4  ;;  %s10857_s27 = int_to_ptr.hbm [resolvable:$true] %s10856_s27 }
  0x49   : > { %651 = vst.msk [vmem:[#allocation2 + $0x4c] sm:$0xf] %vm630_vm1, %v14165_v2  ;;  %v701_v53 = vshll.u32 %v598_v37, 16  ;;  %v934_v54 = vrot.slane %v930_v44, 4  ;;  %v715_v55 = vshrl.u32 %v11280_v48, 16  ;;  %v943_v56 = vrot.slane %v11273_v46, 4  ;;  %p10863_p3 = scmp.lt.s32.totalorder %s10857_s27, %s14279_s18 }
  0x4a   : > { %v1597_v30 = vpack.c.b16 %v1566_v29, %v1565_v28  ;;  %652 = vst.msk [vmem:[#allocation2 + $0x50] sm:$0x1] %vm633_vm2, %v14165_v2  ;;  %v696_v57 = vrot.slane %v11277_v47, 4  ;;  %v11296_v58 = vrot.slane %v707_v49, 7  ;;  %v710_v59 = vshll.u32 %v11266_v42, 16  ;;  %s10858_s17 = scalar_lea.hbm %s10857_s27, 1 }
  0x4b   : > { %653 = vst.msk [vmem:[#allocation2 + $0x54] sm:$0xf] %vm630_vm1, %v14165_v2  ;;  %v933_v60 = vor.u32 %v931_v45, %v930_v44  ;;  %v941_v61 = vor.u32 %v939_v50, %v11273_v46  ;;  %v695_v62 = vor.u32 %v693_v51, %v11277_v47  ;;  %v703_v63 = vor.u32 %v701_v53, %v11285_v52  ;;  %v1013_v0 = vld [vmem:[#allocation2 + $0xc] sm:$0xf]  ;;  %v1978_v8 = vld [vmem:[#allocation2] sm:$0xe]  ;;  %p10859_p0 = scmp.ne.s32.totalorder %s10857_s27, %s10858_s17 }
  0x4c   : > { %9236 = vmatmul.msk.bf16.vlgmr.msra.gmra.mxu0 %vm1613_vm7, %v1597_v30  ;;  %654 = vst.msk [vmem:[#allocation2 + $0x58] sm:$0xf] %vm630_vm1, %v14165_v2  ;;  %v9332_v11 = vrot.slane %v1978_v8, 9  ;;  %v2031_v13 = vrot.slane %v11167_v9, 5  ;;  %v717_v14 = vrot.slane %v715_v55, 7  ;;  %v718_v15 = vshll.u32 %v11280_v48, 16 }
  0x4d   : > { %655 = vst.msk [vmem:[#allocation2 + $0x5c] sm:$0x1] %vm633_vm2, %v14165_v2  ;;  %v601_v17 = vld [vmem:[%s11243_s20 + $0x10] sm:$0xf]  ;;  %v602_v18 = vld [vmem:[%s11243_s20 + $0x14] sm:$0xf]  ;;  %v942_v23 = vsel %vm11314_vm11, %v934_v54, %v941_v61  ;;  %v1014_v27 = vsel %vm11332_vm15, %v695_v62, %v1013_v0  ;;  %v704_v30 = vsel %vm11314_vm11, %v696_v57, %v703_v63  ;;  %v712_v33 = vor.u32 %v710_v59, %v11296_v58  ;;  %p10860_p1 = pnand %p10859_p0, %p11083_p5 }
  0x4e   : > { %656 = vst.msk [vmem:[#allocation2 + $0x60] sm:$0xf] %vm630_vm1, %v14165_v2  ;;  %v2032_v9 = vsel %vm11322_vm14, %v9332_v11, %v2031_v13  ;;  %v2033_v19 = vrot.slane %v2031_v13, 4  ;;  %v724_v20 = vshrl.u32 %v601_v17, 16  ;;  %v732_v22 = vshrl.u32 %v602_v18, 16  ;;  %s10862_s15 = scalar_lea.hbm %s14279_s18, 2 }
  0x4f   : > { %657 = vst.msk [vmem:[#allocation2 + $0x64] sm:$0xf] %vm630_vm1, %v14165_v2  ;;  %v705_v26 = vrot.slane %v11285_v52, 4  ;;  %v2143_v28 = vunpack.c.l.b16 %v2032_v9  ;;  %v1019_v31 = vld [vmem:[#allocation2 + $0x14] sm:$0x1]  ;;  %v713_v37 = vrot.slane %v11296_v58, 4  ;;  %v720_v38 = vor.u32 %v718_v15, %v717_v14  ;;  %p10861_p2 = pneg %p10860_p1  ;;  %p10864_p4 = scmp.lt.s32.totalorder %s10862_s15, %s10858_s17 }
  0x50   : > { %658 = vst.msk [vmem:[#allocation2 + $0x68] sm:$0x1] %vm633_vm2, %v14165_v2  ;;  %v2035_v32 = vsel %vm11322_vm14, %v2033_v19, %v2034_v43  ;;  %v1022_v34 = vld [vmem:[#allocation2 + $0x18] sm:$0xf]  ;;  %v726_v39 = vrot.slane %v724_v20, 7  ;;  %v727_v41 = vshll.u32 %v601_v17, 16 }
  0x51   : > { %659 = vst.msk [vmem:[#allocation2 + $0x6c] sm:$0xf] %vm630_vm1, %v14165_v2  ;;  %v2144_v36 = vunpack.c.l.b16 %v2035_v32  ;;  %v734_v12 = vrot.slane %v732_v22, 7  ;;  %v735_v42 = vshll.u32 %v602_v18, 16  ;;  %v1020_v43 = vsel %vm11348_vm3, %v705_v26, %v1019_v31  ;;  %v1026_v47 = vld [vmem:[#allocation2 + $0x20] sm:$0x1]  ;;  %p10865_p7 = por %p10864_p4, %p10863_p3 }
  0x52   : > { %660 = vst.msk [vmem:[#allocation2 + $0x70] sm:$0xf] %vm630_vm1, %v14165_v2  ;;  %v722_v45 = vrot.slane %v717_v14, 4  ;;  %v1023_v46 = vsel %vm11332_vm15, %v712_v33, %v1022_v34  ;;  %v721_v48 = vsel %vm11314_vm11, %v713_v37, %v720_v38  ;;  %v729_v49 = vor.u32 %v727_v41, %v726_v39  ;;  %v1029_v54 = vld [vmem:[#allocation2 + $0x24] sm:$0xf] }
  0x53   : > { %661 = vst.msk [vmem:[#allocation2 + $0x74] sm:$0x1] %vm633_vm2, %v14165_v2  ;;  %v11372_v44 = vpack.c.b16 %v2144_v36, %v2143_v28  ;;  %v730_v50 = vrot.slane %v726_v39, 4  ;;  %v737_v51 = vor.u32 %v735_v42, %v734_v12  ;;  %v739_v53 = vrot.slane %v734_v12, 4  ;;  %p10866_p8 = pnand %p10865_p7, %p10861_p2 }
  0x54   : > { %662 = vst.msk [vmem:[#allocation2 + $0x78] sm:$0xf] %vm630_vm1, %v14165_v2  ;;  %v1027_v52 = vsel %vm11348_vm3, %v722_v45, %v1026_v47  ;;  %v1030_v1 = vsel %vm11332_vm15, %v729_v49, %v1029_v54 }
  0x55   : > { %663 = vst.msk [vmem:[#allocation2 + $0x7c] sm:$0xf] %vm630_vm1, %v14165_v2  ;;  %v738_v0 = vsel %vm11314_vm11, %v730_v50, %v737_v51 }
  0x56   : > { %664 = vst.msk [vmem:[#allocation2 + $0x80] sm:$0x1] %vm633_vm2, %v14165_v2 }
  0x57   : > { %665 = vst.msk [vmem:[#allocation2 + $0x84] sm:$0xf] %vm630_vm1, %v14165_v2 }
  0x58   : > { %666 = vst.msk [vmem:[#allocation2 + $0x88] sm:$0xf] %vm630_vm1, %v14165_v2 }
  0x59   : > { %667 = vst.msk [vmem:[#allocation2 + $0x8c] sm:$0x1] %vm633_vm2, %v14165_v2 }
  0x5a   : > { %668 = vst.msk [vmem:[#allocation2 + $0x90] sm:$0xf] %vm630_vm1, %v14165_v2 }
  0x5b   : > { %669 = vst.msk [vmem:[#allocation2 + $0x94] sm:$0xf] %vm630_vm1, %v14165_v2 }
  0x5c   : > { %670 = vst.msk [vmem:[#allocation2 + $0x98] sm:$0x1] %vm633_vm2, %v14165_v2 }
  0x5d   : > { %671 = vst.msk [vmem:[#allocation2 + $0x9c] sm:$0xf] %vm630_vm1, %v14165_v2 }
  0x5e   : > { %672 = vst.msk [vmem:[#allocation2 + $0xa0] sm:$0xf] %vm630_vm1, %v14165_v2 }
  0x5f   : > { %673 = vst.msk [vmem:[#allocation2 + $0xa4] sm:$0x1] %vm633_vm2, %v14165_v2 }
  0x60   : > { %674 = vst.msk [vmem:[#allocation2 + $0xa8] sm:$0xf] %vm630_vm1, %v14165_v2 }
  0x61   : > { %675 = vst.msk [vmem:[#allocation2 + $0xac] sm:$0xf] %vm630_vm1, %v14165_v2 }
  0x62   : > { %676 = vst.msk [vmem:[#allocation2 + $0xb0] sm:$0x1] %vm633_vm2, %v14165_v2 }
  0x63   : > { %677 = vst.msk [vmem:[#allocation2 + $0xb4] sm:$0xf] %vm630_vm1, %v14165_v2 }
  0x64   : > { %678 = vst.msk [vmem:[#allocation2 + $0xb8] sm:$0xf] %vm630_vm1, %v14165_v2 }
  0x65   : > { %679 = vst.msk [vmem:[#allocation2 + $0xbc] sm:$0x1] %vm633_vm2, %v14165_v2 }
  0x66   : > { %680 = vst.msk [vmem:[#allocation2 + $0xc0] sm:$0xf] %vm630_vm1, %v14165_v2 }
  0x67   : > { %681 = vst.msk [vmem:[#allocation2 + $0xc4] sm:$0xf] %vm630_vm1, %v14165_v2 }
  0x68   : > { %682 = vst.msk [vmem:[#allocation2 + $0xc8] sm:$0x1] %vm633_vm2, %v14165_v2 }
  0x69   : > { %683 = vst.msk [vmem:[#allocation2 + $0xcc] sm:$0xf] %vm630_vm1, %v14165_v2 }
  0x6a   : > { %684 = vst.msk [vmem:[#allocation2 + $0xd0] sm:$0xf] %vm630_vm1, %v14165_v2  ;;  %v1113_v25 = vld [vmem:[#allocation2 + $0xb4] sm:$0xf] }
  0x6b   : > { %685 = vst.msk [vmem:[#allocation2 + $0xd4] sm:$0x1] %vm633_vm2, %v14165_v2  ;;  %v1114_v29 = vsel %vm11332_vm15, %v933_v60, %v1113_v25  ;;  %vm5228_vm2 = vcmask 125952  }
  0x6c   : > { %1115 = vst [vmem:[#allocation2 + $0xb4] sm:$0xf] %v1114_v29  ;;  %v1117_v35 = vld [vmem:[#allocation2 + $0xbc] sm:$0x1]  ;;  %vm12809_vm5 = vmand %vm5228_vm2, %vm1011_vm10 }
  0x6d   : > { %1116 = vst.msk [vmem:[#allocation2 + $0xb8] sm:$0xf] %vm630_vm1, %v942_v23  ;;  %v1118_v40 = vsel %vm11348_vm3, %v943_v56, %v1117_v35  ;;  %v1033_v56 = vld [vmem:[#allocation2 + $0x2c] sm:$0x1] }
  0x6e   : > { %1119 = vst [vmem:[#allocation2 + $0xbc] sm:$0x1] %v1118_v40  ;;  %v1034_v11 = vsel %vm11348_vm3, %v739_v53, %v1033_v56 }
  0x6f   : > { %1015 = vst [vmem:[#allocation2 + $0xc] sm:$0xf] %v1014_v27 }
  0x70   : > { %1016 = vst.msk [vmem:[#allocation2 + $0x10] sm:$0xf] %vm630_vm1, %v704_v30 }
  0x71   : > { %1021 = vst [vmem:[#allocation2 + $0x14] sm:$0x1] %v1020_v43 }
  0x72   : > { %1024 = vst [vmem:[#allocation2 + $0x18] sm:$0xf] %v1023_v46 }
  0x73   : > { %v1157_v55 = vld [vmem:[#allocation2 + $0xb4] sm:$0xf]  ;;  %1025 = vst.msk [vmem:[#allocation2 + $0x1c] sm:$0xf] %vm630_vm1, %v721_v48 }
  0x74   : > { %v1158_v57 = vld [vmem:[#allocation2 + $0xb8] sm:$0xf]  ;;  %v1540_v58 = vshrl.u32 %v1157_v55, 16  ;;  %v1543_v59 = vshll.u32 %v1157_v55, 16  ;;  %1028 = vst [vmem:[#allocation2 + $0x20] sm:$0x1] %v1027_v52 }
  0x75   : > { %v10421_v60 = vld [vmem:[#allocation2 + $0xb4] sm:$0xff]  ;;  %v1175_v61 = vld [vmem:[#allocation2 + $0xbc] sm:$0x1]  ;;  %v1549_v62 = vshll.u32 %v1158_v57, 16  ;;  %v1553_v63 = vshrl.u32 %v1158_v57, 16 }
  0x76   : > { %v1542_v4 = vrot.slane %v1540_v58, 4  ;;  %v1545_v6 = vrot.slane %v1543_v59, 5  ;;  %v1559_v7 = vshll.u32 %v1175_v61, 16  ;;  %v1129_v8 = vld [vmem:[#allocation2 + $0xc] sm:$0xf]  ;;  %9331 = vmatmul.msk.bf16.vlgmr.msra.gmra.mxu3 %vm1613_vm7, %v10421_v60 }
  0x77   : > { %v1551_v13 = vrot.slane %v1549_v62, 5  ;;  %v1555_v14 = vrot.slane %v1553_v63, 4  ;;  %v11389_v15 = vld [vmem:[#allocation2 + $0x10] sm:$0xf]  ;;  %v1204_v17 = vshrl.u32 %v1129_v8, 16  ;;  %v1207_v18 = vshll.u32 %v1129_v8, 16 }
  0x78   : > { %v1546_v9 = vor.u32 %v1545_v6, %v1542_v4  ;;  %v1561_v19 = vrot.slane %v1559_v7, 5  ;;  %v11391_v20 = vld [vmem:[#allocation2 + $0x14] sm:$0x1]  ;;  %v1213_v22 = vshll.u32 %v11389_v15, 16  ;;  %v1217_v23 = vshrl.u32 %v11389_v15, 16  ;;  %v10407_v25 = vld [vmem:[#allocation2 + $0xc] sm:$0xff] }
  0x79   : > { %v1556_v26 = vor.u32 %v1555_v14, %v1551_v13  ;;  %v1206_v27 = vrot.slane %v1204_v17, 4  ;;  %v1209_v28 = vrot.slane %v1207_v18, 5  ;;  %v1223_v29 = vshll.u32 %v11391_v20, 16  ;;  %v1131_v30 = vld [vmem:[#allocation2 + $0x18] sm:$0xf]  ;;  %9317 = vmatmul.msk.bf16.gmra.mxu1 %vm1613_vm7, %v10407_v25  ;;  %v10422_v62 = vld [vmem:[#allocation2 + $0xc] sm:$0xff] }
  0x7a   : > { %v1547_v31 = vrot.slane %v1546_v9, 4  ;;  %v1215_v32 = vrot.slane %v1213_v22, 5  ;;  %v1219_v33 = vrot.slane %v1217_v23, 4  ;;  %v11397_v34 = vld [vmem:[#allocation2 + $0x1c] sm:$0xf]  ;;  %v1228_v35 = vshrl.u32 %v1131_v30, 16 }
  0x7b   : > { %v1557_v36 = vrot.slane %v1556_v26, 4  ;;  %v1210_v37 = vor.u32 %v1209_v28, %v1206_v27  ;;  %v1225_v38 = vrot.slane %v1223_v29, 5  ;;  %v1231_v39 = vshll.u32 %v1131_v30, 16  ;;  %1031 = vst [vmem:[#allocation2 + $0x24] sm:$0xf] %v1030_v1  ;;  %v10408_v6 = vld [vmem:[#allocation2 + $0x18] sm:$0xff] }
  0x7c   : > { %v1552_v40 = vsel %vm11186_vm6, %v1547_v31, %v1551_v13  ;;  %v1220_v41 = vor.u32 %v1219_v33, %v1215_v32  ;;  %v1230_v12 = vrot.slane %v1228_v35, 4  ;;  %v1237_v42 = vshll.u32 %v11397_v34, 16  ;;  %v11404_v47 = vld [vmem:[#allocation2 + $0x20] sm:$0x1]  ;;  %1032 = vst.msk [vmem:[#allocation2 + $0x28] sm:$0xf] %vm630_vm1, %v738_v0 }
  0x7d   : > { %v1562_v43 = vsel %vm11186_vm6, %v1557_v36, %v1561_v19  ;;  %v1595_v45 = vunpack.c.l.b16 %v1552_v40  ;;  %v1211_v46 = vrot.slane %v1210_v37, 4  ;;  %v1233_v48 = vrot.slane %v1231_v39, 5  ;;  %1035 = vst [vmem:[#allocation2 + $0x2c] sm:$0x1] %v1034_v11  ;;  %v603_v0 = vld [vmem:[%s11243_s20 + $0x18] sm:$0xf] }
  0x7e   : > { %v1596_v49 = vunpack.c.l.b16 %v1562_v43  ;;  %v1221_v50 = vrot.slane %v1220_v41, 4  ;;  %v1239_v51 = vrot.slane %v1237_v42, 5  ;;  %v1241_v52 = vshrl.u32 %v11397_v34, 16  ;;  %v604_v14 = vld [vmem:[%s11243_s20 + $0x1c] sm:$0xf] }
  0x7f   : > { %v1216_v53 = vsel %vm11186_vm6, %v1211_v46, %v1215_v32  ;;  %v1234_v59 = vor.u32 %v1233_v48, %v1230_v12  ;;  %v1247_v60 = vshll.u32 %v11404_v47, 16  ;;  %v741_v13 = vshrl.u32 %v603_v0, 16  ;;  %v1979_v17 = vld [vmem:[#allocation2 + $0xc] sm:$0xe]  ;;  %v605_v29 = vld [vmem:[%s11243_s20 + $0x20] sm:$0xf] }
  0x80   : > { %v1612_v54 = vpack.c.b16 %v1596_v49, %v1595_v45  ;;  %v1226_v55 = vsel %vm11186_vm6, %v1221_v50, %v1225_v38  ;;  %v1567_v56 = vunpack.c.l.b16 %v1216_v53  ;;  %v1243_v57 = vrot.slane %v1241_v52, 4  ;;  %v1036_v38 = vld [vmem:[#allocation2 + $0x30] sm:$0xf]  ;;  %v1040_v39 = vld [vmem:[#allocation2 + $0x38] sm:$0x1] }
  0x81   : > { %v1568_v58 = vunpack.c.l.b16 %v1226_v55  ;;  %v1235_v1 = vrot.slane %v1234_v59, 4  ;;  %v1249_v4 = vrot.slane %v1247_v60, 5  ;;  %v744_v18 = vshll.u32 %v603_v0, 16  ;;  %v606_v42 = vld [vmem:[%s11243_s20 + $0x24] sm:$0xf]  ;;  %v10423_v0 = vld [vmem:[#allocation2 + $0x18] sm:$0xff] }
  0x82   : > { %9251 = vmatmul.msk.bf16.vlgmr.msra.gmra.mxu2 %vm1613_vm7, %v1612_v54  ;;  %v1244_v61 = vor.u32 %v1243_v57, %v1239_v51  ;;  %v1133_v8 = vld [vmem:[#allocation2 + $0x24] sm:$0xf]  ;;  %v743_v27 = vrot.slane %v741_v13, 7  ;;  %v749_v28 = vshrl.u32 %v604_v14, 16  ;;  %v9333_v30 = vrot.slane %v1979_v17, 9 }
  0x83   : > { %v1598_v63 = vpack.c.b16 %v1568_v58, %v1567_v56  ;;  %v11417_v11 = vld [vmem:[#allocation2 + $0x28] sm:$0xf]  ;;  %v1240_v9 = vsel %vm11186_vm6, %v1235_v1, %v1239_v51  ;;  %v1252_v19 = vshrl.u32 %v1133_v8, 16  ;;  %v1255_v22 = vshll.u32 %v1133_v8, 16  ;;  %v1043_v58 = vld [vmem:[#allocation2 + $0x3c] sm:$0xf] }
  0x84   : > { %v1245_v7 = vrot.slane %v1244_v61, 4  ;;  %v1261_v23 = vshll.u32 %v11417_v11, 16  ;;  %v1265_v26 = vshrl.u32 %v11417_v11, 16  ;;  %v2038_v31 = vrot.slane %v11389_v15, 5  ;;  %v11431_v51 = vld [vmem:[#allocation2 + $0x2c] sm:$0x1] }
  0x85   : > { %9237 = vmatmul.msk.bf16.gmra.mxu0 %vm1613_vm7, %v1598_v63  ;;  %v752_v32 = vshll.u32 %v604_v14, 16  ;;  %v1569_v33 = vunpack.c.l.b16 %v1240_v9  ;;  %v746_v35 = vor.u32 %v744_v18, %v743_v27  ;;  %v747_v36 = vrot.slane %v743_v27, 4 }
  0x86   : > { %9430 = vmatmul.msk.bf16.vlgmr.msrb.gmra.mxu3 %vm1613_vm7, %v10422_v62  ;;  %v1250_v25 = vsel %vm11186_vm6, %v1245_v7, %v1249_v4  ;;  %v751_v37 = vrot.slane %v749_v28, 7  ;;  %v1254_v41 = vrot.slane %v1252_v19, 4  ;;  %v1257_v12 = vrot.slane %v1255_v22, 5  ;;  %v1047_v7 = vld [vmem:[#allocation2 + $0x44] sm:$0x1] }
  0x87   : > { %v1570_v40 = vunpack.c.l.b16 %v1250_v25  ;;  %v758_v43 = vshrl.u32 %v605_v29, 16  ;;  %v1263_v45 = vrot.slane %v1261_v23, 5  ;;  %v1267_v46 = vrot.slane %v1265_v26, 4  ;;  %v10409_v19 = vld [vmem:[#allocation2 + $0x24] sm:$0xff] }
  0x88   : > { %v754_v48 = vor.u32 %v752_v32, %v751_v37  ;;  %v756_v49 = vrot.slane %v751_v37, 4  ;;  %v2041_v50 = vrot.slane %v11391_v20, 5  ;;  %v1037_v15 = vsel %vm11332_vm15, %v746_v35, %v1036_v38  ;;  %v608_v37 = vld [vmem:[%s11243_s20 + $0x2c] sm:$0xf] }
  0x89   : > { %9318 = vmatmul.msk.bf16.gmra.mxu1 %vm1613_vm7, %v10408_v6  ;;  %v760_v52 = vrot.slane %v758_v43, 7  ;;  %v761_v53 = vshll.u32 %v605_v29, 16  ;;  %v2040_v54 = vrot.slane %v2038_v31, 4  ;;  %1038 = vst [vmem:[#allocation2 + $0x30] sm:$0xf] %v1037_v15  ;;  %v766_v57 = vshrl.u32 %v606_v42, 16 }
  0x8a   : > { %v755_v55 = vsel %vm11314_vm11, %v747_v36, %v754_v48  ;;  %v1041_v56 = vsel %vm11348_vm3, %v756_v49, %v1040_v39  ;;  %v1599_v59 = vpack.c.b16 %v1570_v40, %v1569_v33  ;;  %v1258_v60 = vor.u32 %v1257_v12, %v1254_v41  ;;  %v607_v36 = vld [vmem:[%s11243_s20 + $0x28] sm:$0xf]  ;;  %v1980_v12 = vld [vmem:[#allocation2 + $0x18] sm:$0xe] }
  0x8b   : > { %1039 = vst.msk [vmem:[#allocation2 + $0x34] sm:$0xf] %vm630_vm1, %v755_v55  ;;  %v763_v20 = vor.u32 %v761_v53, %v760_v52  ;;  %v769_v61 = vshll.u32 %v606_v42, 16  ;;  %v1268_v62 = vor.u32 %v1267_v46, %v1263_v45  ;;  %v1271_v63 = vshll.u32 %v11431_v51, 16 }
  0x8c   : > { %1042 = vst [vmem:[#allocation2 + $0x38] sm:$0x1] %v1041_v56  ;;  %v764_v1 = vrot.slane %v760_v52, 4  ;;  %v768_v4 = vrot.slane %v766_v57, 7  ;;  %v2039_v14 = vsel %vm11322_vm14, %v9333_v30, %v2038_v31  ;;  %v1259_v17 = vrot.slane %v1258_v60, 4 }
  0x8d   : > { %v1044_v6 = vsel %vm11332_vm15, %v763_v20, %v1043_v58  ;;  %v1269_v18 = vrot.slane %v1268_v62, 4  ;;  %v1273_v9 = vrot.slane %v1271_v63, 5  ;;  %v2145_v26 = vunpack.c.l.b16 %v2039_v14  ;;  %v1050_v58 = vld [vmem:[#allocation2 + $0x48] sm:$0xf] }
  0x8e   : > { %v771_v8 = vor.u32 %v769_v61, %v768_v4  ;;  %v773_v13 = vrot.slane %v768_v4, 4  ;;  %1045 = vst [vmem:[#allocation2 + $0x3c] sm:$0xf] %v1044_v6  ;;  %v1264_v29 = vsel %vm11186_vm6, %v1259_v17, %v1263_v45  ;;  %v2045_v40 = vrot.slane %v11397_v34, 5  ;;  %v10424_v61 = vld [vmem:[#allocation2 + $0x24] sm:$0xff] }
  0x8f   : > { %v1274_v32 = vsel %vm11186_vm6, %v1269_v18, %v1273_v9  ;;  %v1571_v39 = vunpack.c.l.b16 %v1264_v29  ;;  %v775_v45 = vshrl.u32 %v607_v36, 16  ;;  %v783_v15 = vshrl.u32 %v608_v37, 16  ;;  %v1054_v6 = vld [vmem:[#allocation2 + $0x50] sm:$0x1] }
  0x90   : > { %v772_v22 = vsel %vm11314_vm11, %v764_v1, %v771_v8  ;;  %v1048_v23 = vsel %vm11348_vm3, %v773_v13, %v1047_v7  ;;  %v1135_v25 = vld [vmem:[#allocation2 + $0x30] sm:$0xf]  ;;  %v1572_v41 = vunpack.c.l.b16 %v1274_v32  ;;  %v786_v52 = vshll.u32 %v608_v37, 16 }
  0x91   : > { %1046 = vst.msk [vmem:[#allocation2 + $0x40] sm:$0xf] %vm630_vm1, %v772_v22  ;;  %v1276_v30 = vshrl.u32 %v1135_v25, 16  ;;  %v1279_v31 = vshll.u32 %v1135_v25, 16  ;;  %v777_v53 = vrot.slane %v775_v45, 7  ;;  %v9334_v56 = vrot.slane %v1980_v12, 9 }
  0x92   : > { %9349 = vmatmul.msk.bf16.vlgmr.msrb.gmra.mxu2 %vm1613_vm7, %v11372_v44  ;;  %v2042_v44 = vsel %vm11322_vm14, %v2040_v54, %v2041_v50  ;;  %v11456_v28 = vld [vmem:[#allocation2 + $0x34] sm:$0xf]  ;;  %1049 = vst [vmem:[#allocation2 + $0x44] sm:$0x1] %v1048_v23  ;;  %v778_v50 = vshll.u32 %v607_v36, 16  ;;  %v785_v54 = vrot.slane %v783_v15, 7  ;;  %v1600_v55 = vpack.c.b16 %v1572_v41, %v1571_v39 }
  0x93   : > { %v2146_v27 = vunpack.c.l.b16 %v2042_v44  ;;  %v1285_v33 = vshll.u32 %v11456_v28, 16  ;;  %v1289_v35 = vshrl.u32 %v11456_v28, 16  ;;  %v1278_v42 = vrot.slane %v1276_v30, 4  ;;  %v11468_v46 = vld [vmem:[#allocation2 + $0x38] sm:$0x1]  ;;  %v10410_v13 = vld [vmem:[#allocation2 + $0x30] sm:$0xff] }
  0x94   : > { %v1281_v43 = vrot.slane %v1279_v31, 5  ;;  %v2048_v57 = vrot.slane %v11404_v47, 5  ;;  %v1295_v34 = vshll.u32 %v11468_v46, 16  ;;  %v780_v63 = vor.u32 %v778_v50, %v777_v53 }
  0x95   : > { %9238 = vmatmul.msk.bf16.gmra.mxu0 %vm1613_vm7, %v1599_v59  ;;  %v2176_v38 = vpack.c.b16 %v2146_v27, %v2145_v26  ;;  %v1287_v48 = vrot.slane %v1285_v33, 5  ;;  %v1291_v49 = vrot.slane %v1289_v35, 4  ;;  %v2047_v59 = vrot.slane %v2045_v40, 4  ;;  %v1137_v62 = vld [vmem:[#allocation2 + $0x3c] sm:$0xf] }
  0x96   : > { %9431 = vmatmul.msk.bf16.gmra.mxu3 %vm1613_vm7, %v10423_v0  ;;  %v1282_v60 = vor.u32 %v1281_v43, %v1278_v42  ;;  %v781_v0 = vrot.slane %v777_v53, 4  ;;  %v788_v1 = vor.u32 %v786_v52, %v785_v54  ;;  %v790_v4 = vrot.slane %v785_v54, 4  ;;  %v609_v26 = vld [vmem:[%s11243_s20 + $0x30] sm:$0xf]  ;;  %v610_v27 = vld [vmem:[%s11243_s20 + $0x34] sm:$0xf] }
  0x97   : > { %v1292_v20 = vor.u32 %v1291_v49, %v1287_v48  ;;  %v1051_v7 = vsel %vm11332_vm15, %v780_v63, %v1050_v58  ;;  %v2046_v47 = vsel %vm11322_vm14, %v9334_v56, %v2045_v40  ;;  %v1297_v8 = vrot.slane %v1295_v34, 5  ;;  %v1057_v53 = vld [vmem:[#allocation2 + $0x54] sm:$0xf]  ;;  %v1981_v34 = vld [vmem:[#allocation2 + $0x24] sm:$0xe] }
  0x98   : > { %v1300_v14 = vshrl.u32 %v1137_v62, 16  ;;  %v789_v44 = vsel %vm11314_vm11, %v781_v0, %v788_v1  ;;  %1052 = vst [vmem:[#allocation2 + $0x48] sm:$0xf] %v1051_v7  ;;  %v2049_v17 = vsel %vm11322_vm14, %v2047_v59, %v2048_v57  ;;  %v1283_v18 = vrot.slane %v1282_v60, 4  ;;  %v1061_v63 = vld [vmem:[#allocation2 + $0x5c] sm:$0x1] }
  0x99   : > { %9319 = vmatmul.msk.bf16.gmra.mxu1 %vm1613_vm7, %v10409_v19  ;;  %v1293_v9 = vrot.slane %v1292_v20, 4  ;;  %v11483_v19 = vld [vmem:[#allocation2 + $0x40] sm:$0xf]  ;;  %1053 = vst.msk [vmem:[#allocation2 + $0x4c] sm:$0xf] %vm630_vm1, %v789_v44  ;;  %v1055_v22 = vsel %vm11348_vm3, %v790_v4, %v1054_v6  ;;  %v1303_v23 = vshll.u32 %v1137_v62, 16  ;;  %v2147_v25 = vunpack.c.l.b16 %v2046_v47 }
  0x9a   : > { %1056 = vst [vmem:[#allocation2 + $0x50] sm:$0x1] %v1055_v22  ;;  %v2148_v29 = vunpack.c.l.b16 %v2049_v17  ;;  %v1302_v30 = vrot.slane %v1300_v14, 4  ;;  %v1309_v31 = vshll.u32 %v11483_v19, 16  ;;  %v792_v32 = vshrl.u32 %v609_v26, 16  ;;  %v10425_v62 = vld [vmem:[#allocation2 + $0x30] sm:$0xff] }
  0x9b   : > { %v1288_v33 = vsel %vm11186_vm6, %v1283_v18, %v1287_v48  ;;  %v1298_v35 = vsel %vm11186_vm6, %v1293_v9, %v1297_v8  ;;  %v1313_v36 = vshrl.u32 %v11483_v19, 16  ;;  %v800_v37 = vshrl.u32 %v610_v27, 16 }
  0x9c   : > { %v794_v39 = vrot.slane %v792_v32, 7  ;;  %v795_v40 = vshll.u32 %v609_v26, 16  ;;  %v803_v41 = vshll.u32 %v610_v27, 16  ;;  %v1573_v42 = vunpack.c.l.b16 %v1288_v33  ;;  %v612_v26 = vld [vmem:[%s11243_s20 + $0x3c] sm:$0xf] }
  0x9d   : > { %v802_v12 = vrot.slane %v800_v37, 7  ;;  %v1574_v43 = vunpack.c.l.b16 %v1298_v35  ;;  %v2177_v50 = vpack.c.b16 %v2148_v29, %v2147_v25  ;;  %v1311_v15 = vrot.slane %v1309_v31, 5  ;;  %v611_v25 = vld [vmem:[%s11243_s20 + $0x38] sm:$0xf]  ;;  %v1982_v37 = vld [vmem:[#allocation2 + $0x30] sm:$0xe] }
  0x9e   : > { %v797_v45 = vor.u32 %v795_v40, %v794_v39  ;;  %v798_v49 = vrot.slane %v794_v39, 4  ;;  %v1315_v48 = vrot.slane %v1313_v36, 4  ;;  %v2052_v54 = vrot.slane %v11417_v11, 5 }
  0x9f   : > { %v805_v52 = vor.u32 %v803_v41, %v802_v12  ;;  %v1601_v59 = vpack.c.b16 %v1574_v43, %v1573_v42  ;;  %v807_v60 = vrot.slane %v802_v12, 4  ;;  %v2055_v20 = vrot.slane %v11431_v51, 5  ;;  %v1139_v7 = vld [vmem:[#allocation2 + $0x48] sm:$0xf] }
  0xa0   : > { %v1058_v57 = vsel %vm11332_vm15, %v797_v45, %v1057_v53  ;;  %v1316_v11 = vor.u32 %v1315_v48, %v1311_v15  ;;  %v9335_v0 = vrot.slane %v1981_v34, 9  ;;  %v2054_v1 = vrot.slane %v2052_v54, 4  ;;  %v11511_v47 = vld [vmem:[#allocation2 + $0x4c] sm:$0xf]  ;;  %v1064_v48 = vld [vmem:[#allocation2 + $0x60] sm:$0xf] }
  0xa1   : > { %v806_v58 = vsel %vm11314_vm11, %v798_v49, %v805_v52  ;;  %1059 = vst [vmem:[#allocation2 + $0x54] sm:$0xf] %v1058_v57  ;;  %v1062_v6 = vsel %vm11348_vm3, %v807_v60, %v1061_v63  ;;  %v1324_v18 = vshrl.u32 %v1139_v7, 16  ;;  %v1327_v9 = vshll.u32 %v1139_v7, 16  ;;  %v11528_v42 = vld [vmem:[#allocation2 + $0x50] sm:$0x1] }
  0xa2   : > { %9350 = vmatmul.msk.bf16.gmra.mxu2 %vm1613_vm7, %v2176_v38  ;;  %v1305_v38 = vrot.slane %v1303_v23, 5  ;;  %1060 = vst.msk [vmem:[#allocation2 + $0x58] sm:$0xf] %vm630_vm1, %v806_v58  ;;  %v1317_v51 = vrot.slane %v1316_v11, 4  ;;  %v2053_v14 = vsel %vm11322_vm14, %v9335_v0, %v2052_v54  ;;  %v2056_v44 = vsel %vm11322_vm14, %v2054_v1, %v2055_v20  ;;  %v10412_v7 = vld [vmem:[#allocation2 + $0x48] sm:$0xff] }
  0xa3   : > { %1063 = vst [vmem:[#allocation2 + $0x5c] sm:$0x1] %v1062_v6  ;;  %v1333_v22 = vshll.u32 %v11511_v47, 16  ;;  %v1337_v23 = vshrl.u32 %v11511_v47, 16  ;;  %v2149_v27 = vunpack.c.l.b16 %v2053_v14  ;;  %v2150_v29 = vunpack.c.l.b16 %v2056_v44 }
  0xa4   : > { %v1306_v56 = vor.u32 %v1305_v38, %v1302_v30  ;;  %v2059_v31 = vrot.slane %v11456_v28, 5  ;;  %v809_v33 = vshrl.u32 %v611_v25, 16  ;;  %v812_v35 = vshll.u32 %v611_v25, 16 }
  0xa5   : > { %9239 = vmatmul.msk.bf16.gmra.mxu0 %vm1613_vm7, %v1600_v55  ;;  %v11498_v55 = vld [vmem:[#allocation2 + $0x44] sm:$0x1]  ;;  %v817_v36 = vshrl.u32 %v612_v26, 16  ;;  %v1326_v38 = vrot.slane %v1324_v18, 4  ;;  %v1329_v39 = vrot.slane %v1327_v9, 5  ;;  %v1335_v40 = vrot.slane %v1333_v22, 5 }
  0xa6   : > { %9432 = vmatmul.msk.bf16.gmra.mxu3 %vm1613_vm7, %v10424_v61  ;;  %v1319_v61 = vshll.u32 %v11498_v55, 16  ;;  %v1307_v4 = vrot.slane %v1306_v56, 4  ;;  %v1339_v41 = vrot.slane %v1337_v23, 4  ;;  %v811_v43 = vrot.slane %v809_v33, 7  ;;  %v613_v18 = vld [vmem:[%s11243_s20 + $0x40] sm:$0xf] }
  0xa7   : > { %v819_v45 = vrot.slane %v817_v36, 7  ;;  %v820_v49 = vshll.u32 %v612_v26, 16  ;;  %v9336_v28 = vrot.slane %v1982_v37, 9  ;;  %v2061_v56 = vrot.slane %v2059_v31, 4  ;;  %v614_v9 = vld [vmem:[%s11243_s20 + $0x44] sm:$0xf] }
  0xa8   : > { %v1321_v8 = vrot.slane %v1319_v61, 5  ;;  %v1312_v17 = vsel %vm11186_vm6, %v1307_v4, %v1311_v15  ;;  %v2062_v15 = vrot.slane %v11468_v46, 5  ;;  %v814_v52 = vor.u32 %v812_v35, %v811_v43  ;;  %v10426_v46 = vld [vmem:[#allocation2 + $0x3c] sm:$0xff]  ;;  %v1068_v61 = vld [vmem:[#allocation2 + $0x68] sm:$0x1] }
  0xa9   : > { %9320 = vmatmul.msk.bf16.gmra.mxu1 %vm1613_vm7, %v10410_v13  ;;  %v10411_v13 = vld [vmem:[#allocation2 + $0x3c] sm:$0xff]  ;;  %v1575_v32 = vunpack.c.l.b16 %v1312_v17  ;;  %v815_v53 = vrot.slane %v811_v43, 4  ;;  %v822_v54 = vor.u32 %v820_v49, %v819_v45  ;;  %v1330_v57 = vor.u32 %v1329_v39, %v1326_v38 }
  0xaa   : > { %v1322_v30 = vsel %vm11186_vm6, %v1317_v51, %v1321_v8  ;;  %v1340_v34 = vor.u32 %v1339_v41, %v1335_v40  ;;  %v1343_v58 = vshll.u32 %v11528_v42, 16  ;;  %v824_v20 = vrot.slane %v819_v45, 4  ;;  %v1141_v51 = vld [vmem:[#allocation2 + $0x54] sm:$0xf]  ;;  %v11546_v8 = vld [vmem:[#allocation2 + $0x58] sm:$0xf] }
  0xab   : > { %v1576_v12 = vunpack.c.l.b16 %v1322_v30  ;;  %v823_v60 = vsel %vm11314_vm11, %v815_v53, %v822_v54  ;;  %v1065_v11 = vsel %vm11332_vm15, %v814_v52, %v1064_v48  ;;  %v1331_v63 = vrot.slane %v1330_v57, 4  ;;  %v1983_v38 = vld [vmem:[#allocation2 + $0x3c] sm:$0xe] }
  0xac   : > { %1066 = vst [vmem:[#allocation2 + $0x60] sm:$0xf] %v1065_v11  ;;  %v1341_v0 = vrot.slane %v1340_v34, 4  ;;  %v1345_v1 = vrot.slane %v1343_v58, 5  ;;  %v2060_v4 = vsel %vm11322_vm14, %v9336_v28, %v2059_v31  ;;  %v2063_v6 = vsel %vm11322_vm14, %v2061_v56, %v2062_v15  ;;  %v1071_v15 = vld [vmem:[#allocation2 + $0x6c] sm:$0xf] }
  0xad   : > { %1067 = vst.msk [vmem:[#allocation2 + $0x64] sm:$0xf] %vm630_vm1, %v823_v60  ;;  %v2152_v14 = vunpack.c.l.b16 %v2063_v6  ;;  %v1336_v44 = vsel %vm11186_vm6, %v1331_v63, %v1335_v40  ;;  %v1348_v22 = vshrl.u32 %v1141_v51, 16  ;;  %v1351_v23 = vshll.u32 %v1141_v51, 16  ;;  %v11560_v28 = vld [vmem:[#allocation2 + $0x5c] sm:$0x1] }
  0xae   : > { %v1346_v17 = vsel %vm11186_vm6, %v1341_v0, %v1345_v1  ;;  %v1357_v25 = vshll.u32 %v11546_v8, 16  ;;  %v834_v31 = vshrl.u32 %v614_v9, 16  ;;  %v1577_v36 = vunpack.c.l.b16 %v1336_v44  ;;  %v1075_v11 = vld [vmem:[#allocation2 + $0x74] sm:$0x1] }
  0xaf   : > { %v1578_v37 = vunpack.c.l.b16 %v1346_v17  ;;  %v1350_v39 = vrot.slane %v1348_v22, 4  ;;  %v1353_v40 = vrot.slane %v1351_v23, 5  ;;  %v2066_v48 = vrot.slane %v11483_v19, 5  ;;  %v616_v22 = vld [vmem:[%s11243_s20 + $0x4c] sm:$0xf] }
  0xb0   : > { %v1359_v41 = vrot.slane %v1357_v25, 5  ;;  %v836_v49 = vrot.slane %v834_v31, 7  ;;  %v9337_v56 = vrot.slane %v1983_v38, 9  ;;  %v1367_v60 = vshll.u32 %v11560_v28, 16 }
  0xb1   : > { %v1603_v54 = vpack.c.b16 %v1578_v37, %v1577_v36  ;;  %v1354_v58 = vor.u32 %v1353_v40, %v1350_v39  ;;  %v851_v36 = vshrl.u32 %v616_v22, 16 }
  0xb2   : > { %9351 = vmatmul.msk.bf16.gmra.mxu2 %vm1613_vm7, %v2177_v50  ;;  %v2178_v50 = vpack.c.b16 %v2150_v29, %v2149_v27  ;;  %v826_v27 = vshrl.u32 %v613_v18, 16  ;;  %v1361_v29 = vshrl.u32 %v11546_v8, 16  ;;  %v841_v57 = vrot.slane %v836_v49, 4 }
  0xb3   : > { %v1143_v63 = vld [vmem:[#allocation2 + $0x60] sm:$0xf]  ;;  %v2067_v1 = vsel %vm11322_vm14, %v9337_v56, %v2066_v48  ;;  %v854_v56 = vshll.u32 %v616_v22, 16 }
  0xb4   : > { %v828_v33 = vrot.slane %v826_v27, 7  ;;  %v1363_v43 = vrot.slane %v1361_v29, 4  ;;  %v11573_v0 = vld [vmem:[#allocation2 + $0x64] sm:$0xf] }
  0xb5   : > { %9240 = vmatmul.msk.bf16.gmra.mxu0 %vm1613_vm7, %v1601_v59  ;;  %v1602_v59 = vpack.c.b16 %v1576_v12, %v1575_v32  ;;  %v829_v12 = vshll.u32 %v613_v18, 16  ;;  %v1381_v44 = vshll.u32 %v11573_v0, 16  ;;  %v1385_v17 = vshrl.u32 %v11573_v0, 16  ;;  %v615_v18 = vld [vmem:[%s11243_s20 + $0x48] sm:$0xf] }
  0xb6   : > { %9433 = vmatmul.msk.bf16.gmra.mxu3 %vm1613_vm7, %v10425_v62  ;;  %v1069_v62 = vsel %vm11348_vm3, %v824_v20, %v1068_v61  ;;  %v832_v45 = vrot.slane %v828_v33, 4  ;;  %v10427_v20 = vld [vmem:[#allocation2 + $0x48] sm:$0xff]  ;;  %v2069_v61 = vrot.slane %v11498_v55, 5  ;;  %v10413_v55 = vld [vmem:[#allocation2 + $0x54] sm:$0xff]  ;;  %v843_v27 = vshrl.u32 %v615_v18, 16 }
  0xb7   : > { %1070 = vst [vmem:[#allocation2 + $0x68] sm:$0x1] %v1069_v62  ;;  %v831_v52 = vor.u32 %v829_v12, %v828_v33  ;;  %v1076_v62 = vsel %vm11348_vm3, %v841_v57, %v1075_v11  ;;  %v1383_v33 = vrot.slane %v1381_v44, 5  ;;  %v846_v12 = vshll.u32 %v615_v18, 16  ;;  %v10428_v57 = vld [vmem:[#allocation2 + $0x54] sm:$0xff] }
  0xb8   : > { %1077 = vst [vmem:[#allocation2 + $0x74] sm:$0x1] %v1076_v62  ;;  %v845_v40 = vrot.slane %v843_v27, 7  ;;  %v618_v44 = vld [vmem:[%s11243_s20 + $0x54] sm:$0xf] }
  0xb9   : > { %9321 = vmatmul.msk.bf16.gmra.mxu1 %vm1613_vm7, %v10411_v13  ;;  %v2151_v13 = vunpack.c.l.b16 %v2060_v4  ;;  %v1072_v34 = vsel %vm11332_vm15, %v831_v52, %v1071_v15  ;;  %v1355_v4 = vrot.slane %v1354_v58, 4  ;;  %v853_v52 = vrot.slane %v851_v36, 7 }
  0xba   : > { %1073 = vst [vmem:[#allocation2 + $0x6c] sm:$0xf] %v1072_v34 }
  0xbb   : > { %v2179_v35 = vpack.c.b16 %v2152_v14, %v2151_v13  ;;  %v1372_v13 = vshrl.u32 %v1143_v63, 16  ;;  %v1375_v14 = vshll.u32 %v1143_v63, 16  ;;  %v1360_v25 = vsel %vm11186_vm6, %v1355_v4, %v1359_v41  ;;  %v10414_v4 = vld [vmem:[#allocation2 + $0x60] sm:$0xff] }
  0xbc   : > { %v1579_v37 = vunpack.c.l.b16 %v1360_v25  ;;  %v858_v34 = vrot.slane %v853_v52, 4 }
  0xbd   : > { %v1374_v29 = vrot.slane %v1372_v13, 4  ;;  %v1377_v31 = vrot.slane %v1375_v14, 5  ;;  %v617_v14 = vld [vmem:[%s11243_s20 + $0x50] sm:$0xf] }
  0xbe   : > { %v1898_v30 = vpop.f32.mrf.mxu1  ;;  %v860_v22 = vshrl.u32 %v617_v14, 16 }
  0xc0   : > { %v862_v27 = vrot.slane %v860_v22, 7 }
  0xc1   : > { %v1145_v63 = vld [vmem:[#allocation2 + $0x6c] sm:$0xf] }
  0xc2   : > { %9352 = vmatmul.msk.bf16.gmra.mxu2 %vm1613_vm7, %v2178_v50  ;;  %v837_v50 = vshll.u32 %v614_v9, 16  ;;  %v2153_v9 = vunpack.c.l.b16 %v2067_v1  ;;  %v1396_v13 = vshrl.u32 %v1145_v63, 16 }
  0xc4   : > { %v839_v53 = vor.u32 %v837_v50, %v836_v49  ;;  %v1984_v49 = vld [vmem:[#allocation2 + $0x48] sm:$0xe]  ;;  %v1378_v50 = vor.u32 %v1377_v31, %v1374_v29  ;;  %v863_v29 = vshll.u32 %v617_v14, 16 }
  0xc5   : > { %9241 = vmatmul.msk.bf16.gmra.mxu0 %vm1613_vm7, %v1602_v59  ;;  %v1364_v59 = vor.u32 %v1363_v43, %v1359_v41  ;;  %v2073_v41 = vrot.slane %v11511_v47, 5  ;;  %v9338_v47 = vrot.slane %v1984_v49, 9  ;;  %v2080_v49 = vrot.slane %v11546_v8, 5 }
  0xc6   : > { %9434 = vmatmul.msk.bf16.gmra.mxu3 %vm1613_vm7, %v10426_v46  ;;  %v840_v19 = vsel %vm11314_vm11, %v832_v45, %v839_v53  ;;  %v2068_v46 = vrot.slane %v2066_v48, 4  ;;  %v1078_v45 = vld [vmem:[#allocation2 + $0x78] sm:$0xf]  ;;  %v848_v48 = vor.u32 %v846_v12, %v845_v40  ;;  %v1379_v11 = vrot.slane %v1378_v50, 4  ;;  %v11619_v36 = vpop.f32.mrf.mxu1 }
  0xc7   : > { %1074 = vst.msk [vmem:[#allocation2 + $0x70] sm:$0xf] %vm630_vm1, %v840_v19  ;;  %v1365_v6 = vrot.slane %v1364_v59, 4  ;;  %v1082_v59 = vld [vmem:[#allocation2 + $0x80] sm:$0x1]  ;;  %v856_v19 = vor.u32 %v854_v56, %v853_v52  ;;  %v865_v12 = vor.u32 %v863_v29, %v862_v27  ;;  %v866_v52 = vrot.slane %v862_v27, 4 }
  0xc8   : > { %v2070_v51 = vsel %vm11322_vm14, %v2068_v46, %v2069_v61  ;;  %v1079_v58 = vsel %vm11332_vm15, %v848_v48, %v1078_v45  ;;  %v1083_v62 = vsel %vm11348_vm3, %v858_v34, %v1082_v59  ;;  %v1085_v45 = vld [vmem:[#allocation2 + $0x84] sm:$0xf]  ;;  %v2082_v8 = vrot.slane %v2080_v49, 4 }
  0xc9   : > { %v1678_v26 = vpop.f32.mrf.mxu0  ;;  %9322 = vmatmul.msk.bf16.gmra.mxu1 %vm1613_vm7, %v10412_v7  ;;  %v1369_v7 = vrot.slane %v1367_v60, 5  ;;  %v2154_v23 = vunpack.c.l.b16 %v2070_v51  ;;  %v2075_v60 = vrot.slane %v2073_v41, 4  ;;  %1080 = vst [vmem:[#allocation2 + $0x78] sm:$0xf] %v1079_v58  ;;  %v1086_v34 = vsel %vm11332_vm15, %v865_v12, %v1085_v45  ;;  %v10429_v58 = vld [vmem:[#allocation2 + $0x60] sm:$0xff] }
  0xca   : > { %v11557_v32 = vadd.f32 %v1898_v30, %v1678_v26  ;;  %v11589_v30 = vld [vmem:[#allocation2 + $0x68] sm:$0x1]  ;;  %1084 = vst [vmem:[#allocation2 + $0x80] sm:$0x1] %v1083_v62  ;;  %v2087_v45 = vrot.slane %v11573_v0, 5 }
  0xcb   : > { %v1370_v26 = vsel %vm11186_vm6, %v1365_v6, %v1369_v7  ;;  %v2180_v39 = vpack.c.b16 %v2154_v23, %v2153_v9  ;;  %v1391_v43 = vshll.u32 %v11589_v30, 16  ;;  %v2074_v6 = vsel %vm11322_vm14, %v9338_v47, %v2073_v41  ;;  %1087 = vst [vmem:[#allocation2 + $0x84] sm:$0xf] %v1086_v34  ;;  %v1089_v47 = vld [vmem:[#allocation2 + $0x8c] sm:$0x1] }
  0xcc   : > { %v1580_v38 = vunpack.c.l.b16 %v1370_v26  ;;  %v2155_v23 = vunpack.c.l.b16 %v2074_v6  ;;  %v868_v26 = vshrl.u32 %v618_v44, 16 }
  0xcd   : > { %v1393_v61 = vrot.slane %v1391_v43, 5 }
  0xce   : > { %v1604_v53 = vpack.c.b16 %v1580_v38, %v1579_v37  ;;  %v11621_v37 = vld [vmem:[#allocation2 + $0x74] sm:$0x1]  ;;  %v870_v43 = vrot.slane %v868_v26, 7 }
  0xcf   : > { %v1415_v48 = vshll.u32 %v11621_v37, 16 }
  0xd2   : > { %9353 = vmatmul.msk.bf16.gmra.mxu2 %vm1613_vm7, %v2179_v35  ;;  %v1387_v35 = vrot.slane %v1385_v17, 4  ;;  %v1399_v17 = vshll.u32 %v1145_v63, 16 }
  0xd4   : > { %v1388_v15 = vor.u32 %v1387_v35, %v1383_v33  ;;  %v1398_v35 = vrot.slane %v1396_v13, 4  ;;  %v1401_v38 = vrot.slane %v1399_v17, 5  ;;  %v619_v17 = vld [vmem:[%s11243_s20 + $0x58] sm:$0xf] }
  0xd5   : > { %9242 = vmatmul.msk.bf16.gmra.mxu0 %vm1613_vm7, %v1603_v54  ;;  %v849_v54 = vrot.slane %v845_v40, 4 }
  0xd6   : > { %9435 = vmatmul.msk.bf16.gmra.mxu3 %vm1613_vm7, %v10427_v20  ;;  %v2076_v20 = vrot.slane %v11528_v42, 5  ;;  %v1389_v46 = vrot.slane %v1388_v15, 4  ;;  %v11603_v42 = vld [vmem:[#allocation2 + $0x70] sm:$0xf]  ;;  %v1985_v15 = vld [vmem:[#allocation2 + $0x54] sm:$0xe] }
  0xd7   : > { %v857_v1 = vsel %vm11314_vm11, %v849_v54, %v856_v19  ;;  %v1405_v18 = vshll.u32 %v11603_v42, 16  ;;  %v1409_v9 = vshrl.u32 %v11603_v42, 16  ;;  %v1402_v54 = vor.u32 %v1401_v38, %v1398_v35  ;;  %v1147_v19 = vld [vmem:[#allocation2 + $0x78] sm:$0xf] }
  0xd8   : > { %1081 = vst.msk [vmem:[#allocation2 + $0x7c] sm:$0xf] %vm630_vm1, %v857_v1  ;;  %v2077_v7 = vsel %vm11322_vm14, %v2075_v60, %v2076_v20  ;;  %v1394_v51 = vsel %vm11186_vm6, %v1389_v46, %v1393_v61  ;;  %v9339_v60 = vrot.slane %v1985_v15, 9  ;;  %v2083_v20 = vrot.slane %v11560_v28, 5  ;;  %v10415_v28 = vld [vmem:[#allocation2 + $0x6c] sm:$0xff] }
  0xd9   : > { %9323 = vmatmul.msk.bf16.gmra.mxu1 %vm1613_vm7, %v10413_v55  ;;  %v1384_v55 = vsel %vm11186_vm6, %v1379_v11, %v1383_v33  ;;  %v2156_v25 = vunpack.c.l.b16 %v2077_v7  ;;  %v1582_v33 = vunpack.c.l.b16 %v1394_v51  ;;  %v1411_v40 = vrot.slane %v1409_v9, 4 }
  0xda   : > { %v1581_v31 = vunpack.c.l.b16 %v1384_v55  ;;  %v1403_v62 = vrot.slane %v1402_v54, 4  ;;  %v1417_v1 = vrot.slane %v1415_v48, 5  ;;  %v1423_v6 = vshll.u32 %v1147_v19, 16  ;;  %v1092_v48 = vld [vmem:[#allocation2 + $0x90] sm:$0xf] }
  0xdb   : > { %v2181_v41 = vpack.c.b16 %v2156_v25, %v2155_v23  ;;  %v2081_v55 = vsel %vm11322_vm14, %v9339_v60, %v2080_v49  ;;  %v2084_v51 = vsel %vm11322_vm14, %v2082_v8, %v2083_v20  ;;  %v620_v23 = vld [vmem:[%s11243_s20 + $0x5c] sm:$0xf]  ;;  %v877_v25 = vshrl.u32 %v619_v17, 16 }
  0xdc   : > { %v1605_v50 = vpack.c.b16 %v1582_v33, %v1581_v31  ;;  %v2157_v26 = vunpack.c.l.b16 %v2081_v55  ;;  %v2158_v27 = vunpack.c.l.b16 %v2084_v51  ;;  %v1425_v31 = vrot.slane %v1423_v6, 5 }
  0xdd   : > { %v879_v38 = vrot.slane %v877_v25, 7  ;;  %v2089_v8 = vrot.slane %v2087_v45, 4  ;;  %v2090_v20 = vrot.slane %v11589_v30, 5 }
  0xde   : > { %v2182_v49 = vpack.c.b16 %v2158_v27, %v2157_v26 }
  0xdf   : > { %v11631_v46 = vld [vmem:[#allocation2 + $0x7c] sm:$0xf]  ;;  %v883_v34 = vrot.slane %v879_v38, 4 }
  0xe0   : > { %v1429_v13 = vshll.u32 %v11631_v46, 16  ;;  %v1433_v14 = vshrl.u32 %v11631_v46, 16 }
  0xe2   : > { %9354 = vmatmul.msk.bf16.gmra.mxu2 %vm1613_vm7, %v2180_v39  ;;  %v1407_v39 = vrot.slane %v1405_v18, 5  ;;  %v11653_v33 = vrot.slane %v1429_v13, 5  ;;  %v1435_v35 = vrot.slane %v1433_v14, 4  ;;  %v1149_v13 = vld [vmem:[#allocation2 + $0x84] sm:$0xf] }
  0xe3   : > { %v1444_v26 = vshrl.u32 %v1149_v13, 16  ;;  %v1447_v27 = vshll.u32 %v1149_v13, 16 }
  0xe4   : > { %v1412_v56 = vor.u32 %v1411_v40, %v1407_v39  ;;  %v1408_v18 = vsel %vm11186_vm6, %v1403_v62, %v1407_v39  ;;  %v880_v40 = vshll.u32 %v619_v17, 16  ;;  %v11655_v39 = vld [vmem:[#allocation2 + $0x80] sm:$0x1]  ;;  %v1436_v54 = vor.u32 %v1435_v35, %v11653_v33  ;;  %v10416_v17 = vld [vmem:[#allocation2 + $0x78] sm:$0xff] }
  0xe5   : > { %9243 = vmatmul.msk.bf16.gmra.mxu0 %vm1613_vm7, %v1604_v53  ;;  %v871_v53 = vshll.u32 %v618_v44, 16  ;;  %v11644_v44 = vpop.f32.mrf.mxu0  ;;  %v1583_v12 = vunpack.c.l.b16 %v1408_v18 }
  0xe6   : > { %9436 = vmatmul.msk.bf16.gmra.mxu3 %vm1613_vm7, %v10428_v57  ;;  %v875_v57 = vrot.slane %v870_v43, 4  ;;  %v1413_v63 = vrot.slane %v1412_v56, 4  ;;  %v882_v15 = vor.u32 %v880_v40, %v879_v38  ;;  %v1439_v56 = vshll.u32 %v11655_v39, 16 }
  0xe7   : > { %v873_v59 = vor.u32 %v871_v53, %v870_v43  ;;  %v885_v43 = vshrl.u32 %v620_v23, 16 }
  0xe8   : > { %v1090_v11 = vsel %vm11348_vm3, %v875_v57, %v1089_v47  ;;  %v1418_v9 = vsel %vm11186_vm6, %v1413_v63, %v1417_v1  ;;  %v1093_v0 = vsel %vm11332_vm15, %v882_v15, %v1092_v48  ;;  %v1096_v63 = vld [vmem:[#allocation2 + $0x98] sm:$0x1]  ;;  %v1441_v6 = vrot.slane %v1439_v56, 5  ;;  %v1987_v56 = vld [vmem:[#allocation2 + $0x6c] sm:$0xe] }
  0xe9   : > { %9324 = vmatmul.msk.bf16.gmra.mxu1 %vm1613_vm7, %v10414_v4  ;;  %v874_v61 = vsel %vm11314_vm11, %v866_v52, %v873_v59  ;;  %1091 = vst [vmem:[#allocation2 + $0x8c] sm:$0x1] %v1090_v11  ;;  %v1420_v4 = vshrl.u32 %v1147_v19, 16  ;;  %v888_v59 = vshll.u32 %v620_v23, 16  ;;  %v10430_v11 = vld [vmem:[#allocation2 + $0x6c] sm:$0xff]  ;;  %v2091_v23 = vsel %vm11322_vm14, %v2089_v8, %v2090_v20 }
  0xea   : > { %1088 = vst.msk [vmem:[#allocation2 + $0x88] sm:$0xf] %vm630_vm1, %v874_v61  ;;  %v2094_v48 = vrot.slane %v11603_v42, 5  ;;  %v9341_v42 = vrot.slane %v1987_v56, 9  ;;  %v623_v56 = vld [vmem:[%s11243_s20 + $0x68] sm:$0xf] }
  0xeb   : > { %v1422_v29 = vrot.slane %v1420_v4, 4  ;;  %1094 = vst [vmem:[#allocation2 + $0x90] sm:$0xf] %v1093_v0  ;;  %v1437_v4 = vrot.slane %v1436_v54, 4 }
  0xed   : > { %v1426_v53 = vor.u32 %v1425_v31, %v1422_v29  ;;  %v621_v29 = vld [vmem:[%s11243_s20 + $0x60] sm:$0xf]  ;;  %v622_v31 = vld [vmem:[%s11243_s20 + $0x64] sm:$0xf] }
  0xee   : > { %v897_v54 = vshll.u32 %v621_v29, 16 }
  0xf1   : > { %v11677_v18 = vld [vmem:[#allocation2 + $0x88] sm:$0xf] }
  0xf2   : > { %9355 = vmatmul.msk.bf16.gmra.mxu2 %vm1613_vm7, %v2181_v41  ;;  %v1584_v41 = vunpack.c.l.b16 %v1418_v9  ;;  %v1453_v40 = vshll.u32 %v11677_v18, 16 }
  0xf4   : > { %v1606_v57 = vpack.c.b16 %v1584_v41, %v1583_v12  ;;  %v1457_v12 = vshrl.u32 %v11677_v18, 16  ;;  %v894_v41 = vshrl.u32 %v621_v29, 16 }
  0xf5   : > { %9244 = vmatmul.msk.bf16.gmra.mxu0 %vm1613_vm7, %v1605_v50  ;;  %v1986_v50 = vld [vmem:[#allocation2 + $0x60] sm:$0xe] }
  0xf6   : > { %9437 = vmatmul.msk.bf16.gmra.mxu3 %vm1613_vm7, %v10429_v58  ;;  %v1903_v7 = vpop.f32.mrf.mxu1  ;;  %v887_v58 = vrot.slane %v885_v43, 7  ;;  %v9340_v60 = vrot.slane %v1986_v50, 9 }
  0xf8   : > { %v890_v61 = vor.u32 %v888_v59, %v887_v58  ;;  %v892_v62 = vrot.slane %v887_v58, 4  ;;  %v11696_v59 = vrot.slane %v1453_v40, 5 }
  0xf9   : > { %v1973_v22 = vpop.f32.mrf.mxu3  ;;  %9325 = vmatmul.msk.bf16.gmra.mxu1 %vm1613_vm7, %v10415_v28  ;;  %v1427_v28 = vrot.slane %v1426_v53, 4  ;;  %v896_v53 = vrot.slane %v894_v41, 7 }
  0xfa   : > { %v891_v55 = vsel %vm11314_vm11, %v883_v34, %v890_v61  ;;  %v1097_v30 = vsel %vm11348_vm3, %v892_v62, %v1096_v63  ;;  %v1449_v34 = vrot.slane %v1447_v27, 5  ;;  %v2096_v63 = vrot.slane %v2094_v48, 4 }
  0xfb   : > { %1095 = vst.msk [vmem:[#allocation2 + $0x94] sm:$0xf] %vm630_vm1, %v891_v55  ;;  %v1432_v25 = vsel %vm11186_vm6, %v1427_v28, %v11653_v33  ;;  %v902_v33 = vshrl.u32 %v622_v31, 16  ;;  %v899_v8 = vor.u32 %v897_v54, %v896_v53  ;;  %v2097_v28 = vrot.slane %v11621_v37, 5  ;;  %v1103_v37 = vld [vmem:[#allocation2 + $0xa4] sm:$0x1] }
  0xfc   : > { %1098 = vst [vmem:[#allocation2 + $0x98] sm:$0x1] %v1097_v30  ;;  %v905_v55 = vshll.u32 %v622_v31, 16 }
  0xfd   : > { %v2098_v40 = vsel %vm11322_vm14, %v2096_v63, %v2097_v28 }
  0xfe   : > { %v1905_v52 = vpop.f32.mrf.mxu1 }
 0x101   : > { %v1975_v47 = vpop.f32.mrf.mxu3 }
 0x102   : > { %v1683_v19 = vpop.f32.mrf.mxu0  ;;  %9356 = vmatmul.msk.bf16.gmra.mxu2 %vm1613_vm7, %v2182_v49  ;;  %v1585_v49 = vunpack.c.l.b16 %v1432_v25 }
 0x103   : > { %v11664_v1 = vadd.f32 %v1903_v7, %v1683_v19  ;;  %v2088_v7 = vsel %vm11322_vm14, %v9340_v60, %v2087_v45  ;;  %v2160_v45 = vunpack.c.l.b16 %v2091_v23  ;;  %v1459_v60 = vrot.slane %v1457_v12, 4  ;;  %v11700_v19 = vld [vmem:[#allocation2 + $0x8c] sm:$0x1]  ;;  %v10431_v23 = vld [vmem:[#allocation2 + $0x78] sm:$0xff] }
 0x104   : > { %v2159_v35 = vunpack.c.l.b16 %v2088_v7 }
 0x105   : > { %9245 = vmatmul.msk.bf16.gmra.mxu0 %vm1613_vm7, %v1606_v57  ;;  %v1753_v51 = vpop.f32.mrf.mxu2  ;;  %v1446_v57 = vrot.slane %v1444_v26, 4 }
 0x106   : > { %v11672_v14 = vadd.f32 %v1973_v22, %v1753_v51  ;;  %9438 = vmatmul.msk.bf16.gmra.mxu3 %vm1613_vm7, %v10430_v11  ;;  %v1908_v9 = vpop.f32.mrf.mxu1  ;;  %v1442_v22 = vsel %vm11186_vm6, %v1437_v4, %v1441_v6  ;;  %v2183_v0 = vpack.c.b16 %v2160_v45, %v2159_v35  ;;  %v904_v11 = vrot.slane %v902_v33, 7  ;;  %v1151_v45 = vld [vmem:[#allocation2 + $0x90] sm:$0xf] }
 0x107   : > { %v1586_v50 = vunpack.c.l.b16 %v1442_v22  ;;  %v1450_v4 = vor.u32 %v1449_v34, %v1446_v57  ;;  %v900_v6 = vrot.slane %v896_v53, 4  ;;  %v1460_v51 = vor.u32 %v1459_v60, %v11696_v59 }
 0x108   : > { %v909_v13 = vrot.slane %v904_v11, 4  ;;  %v907_v25 = vor.u32 %v905_v55, %v904_v11  ;;  %v2095_v35 = vsel %vm11322_vm14, %v9341_v42, %v2094_v48  ;;  %v2162_v53 = vunpack.c.l.b16 %v2098_v40  ;;  %v624_v11 = vld [vmem:[%s11243_s20 + $0x6c] sm:$0xf] }
 0x109   : > { %v11688_v38 = vpop.f32.mrf.mxu3  ;;  %9326 = vmatmul.msk.bf16.gmra.mxu1 %vm1613_vm7, %v10416_v17  ;;  %v1607_v61 = vpack.c.b16 %v1586_v50, %v1585_v49  ;;  %v1451_v27 = vrot.slane %v1450_v4, 4  ;;  %v11724_v50 = vld [vmem:[#allocation2 + $0x94] sm:$0xf]  ;;  %v2161_v48 = vunpack.c.l.b16 %v2095_v35  ;;  %v1468_v34 = vshrl.u32 %v1151_v45, 16 }
 0x10a   : > { %v1685_v43 = vpop.f32.mrf.mxu0  ;;  %v1104_v26 = vsel %vm11348_vm3, %v909_v13, %v1103_v37  ;;  %v908_v29 = vsel %vm11314_vm11, %v900_v6, %v907_v25  ;;  %v911_v60 = vshrl.u32 %v623_v56, 16  ;;  %v1901_v42 = vadd.f32 %v11619_v36, %v11644_v44  ;;  %v1988_v37 = vld [vmem:[#allocation2 + $0x78] sm:$0xe] }
 0x10b   : > { %v11693_v15 = vadd.f32 %v1905_v52, %v1685_v43  ;;  %v1099_v52 = vld [vmem:[#allocation2 + $0x9c] sm:$0xf]  ;;  %1105 = vst [vmem:[#allocation2 + $0xa4] sm:$0x1] %v1104_v26  ;;  %v10417_v43 = vld [vmem:[#allocation2 + $0x84] sm:$0xff]  ;;  %v1456_v54 = vsel %vm11186_vm6, %v1451_v27, %v11696_v59  ;;  %v2184_v6 = vpack.c.b16 %v2162_v53, %v2161_v48  ;;  %v1470_v55 = vrot.slane %v1468_v34, 4 }
 0x10c   : > { %v1100_v7 = vsel %vm11332_vm15, %v899_v8, %v1099_v52  ;;  %1102 = vst.msk [vmem:[#allocation2 + $0xa0] sm:$0xf] %vm630_vm1, %v908_v29  ;;  %v913_v59 = vrot.slane %v911_v60, 7  ;;  %v1587_v63 = vunpack.c.l.b16 %v1456_v54  ;;  %v2101_v26 = vrot.slane %v11631_v46, 5  ;;  %v1106_v27 = vld [vmem:[#allocation2 + $0xa8] sm:$0xf] }
 0x10d   : > { %v1755_v58 = vpop.f32.mrf.mxu2  ;;  %1101 = vst [vmem:[#allocation2 + $0x9c] sm:$0xf] %v1100_v7  ;;  %v11745_v7 = vld [vmem:[#allocation2 + $0x98] sm:$0x1]  ;;  %v10432_v48 = vld [vmem:[#allocation2 + $0x84] sm:$0xff]  ;;  %v2104_v54 = vrot.slane %v11655_v39, 5 }
 0x10e   : > { %v11698_v20 = vadd.f32 %v1975_v47, %v1755_v58  ;;  %v1910_v62 = vpop.f32.mrf.mxu1  ;;  %v1463_v47 = vshll.u32 %v11700_v19, 16  ;;  %v1471_v58 = vshll.u32 %v1151_v45, 16  ;;  %v917_v35 = vrot.slane %v913_v59, 4 }
 0x10f   : > { %v2103_v53 = vrot.slane %v2101_v26, 4 }
 0x110   : > { %v1465_v12 = vrot.slane %v1463_v47, 5  ;;  %v919_v47 = vshrl.u32 %v624_v11, 16 }
 0x111   : > { %v11703_v30 = vpop.f32.mrf.mxu3 }
 0x112   : > { %v1688_v17 = vpop.f32.mrf.mxu0  ;;  %9357 = vmatmul.msk.bf16.gmra.mxu2 %vm1613_vm7, %v2183_v0  ;;  %v1481_v0 = vshrl.u32 %v11724_v50, 16  ;;  %v921_v40 = vrot.slane %v919_v47, 7 }
 0x113   : > { %v11710_v22 = vadd.f32 %v1908_v9, %v1688_v17  ;;  %v1461_v9 = vrot.slane %v1460_v51, 4  ;;  %v1473_v51 = vrot.slane %v1471_v58, 5 }
 0x114   : > { %v1153_v34 = vld [vmem:[#allocation2 + $0x9c] sm:$0xf]  ;;  %v926_v58 = vrot.slane %v921_v40, 4 }
 0x115   : > { %9246 = vmatmul.msk.bf16.gmra.mxu0 %vm1613_vm7, %v1607_v61  ;;  %v2251_v31 = vpop.f32.mrf.mxu2  ;;  %v914_v61 = vshll.u32 %v623_v56, 16 }
 0x116   : > { %v2331_v41 = vadd.f32 %v2251_v31, %v11557_v32  ;;  %9439 = vmatmul.msk.bf16.gmra.mxu3 %vm1613_vm7, %v10431_v23  ;;  %v1913_v49 = vpop.f32.mrf.mxu1  ;;  %v1466_v32 = vsel %vm11186_vm6, %v1461_v9, %v1465_v12  ;;  %v1483_v23 = vrot.slane %v1481_v0, 4  ;;  %v1487_v31 = vshll.u32 %v11745_v7, 16 }
 0x117   : > { %v1588_v28 = vunpack.c.l.b16 %v1466_v32  ;;  %v922_v9 = vshll.u32 %v624_v11, 16  ;;  %v1110_v32 = vld [vmem:[#allocation2 + $0xb0] sm:$0x1] }
 0x118   : > { %v11727_v33 = vadd.f32 %v11688_v38, %v2331_v41  ;;  %v1477_v38 = vshll.u32 %v11724_v50, 16  ;;  %v9342_v41 = vrot.slane %v1988_v37, 9  ;;  %v1111_v39 = vsel %vm11348_vm3, %v926_v58, %v1110_v32 }
 0x119   : > { %v11735_v57 = vpop.f32.mrf.mxu3  ;;  %9327 = vmatmul.msk.bf16.gmra.mxu1 %vm1613_vm7, %v10417_v43  ;;  %v1608_v44 = vpack.c.b16 %v1588_v28, %v1587_v63  ;;  %v1474_v43 = vor.u32 %v1473_v51, %v1470_v55  ;;  %v924_v56 = vor.u32 %v922_v9, %v921_v40  ;;  %v2105_v28 = vsel %vm11322_vm14, %v2103_v53, %v2104_v54  ;;  %v1989_v53 = vld [vmem:[#allocation2 + $0x84] sm:$0xe] }
 0x11a   : > { %v1690_v8 = vpop.f32.mrf.mxu0  ;;  %v11747_v17 = vrot.slane %v1477_v38, 5  ;;  %v11762_v38 = vld [vmem:[#allocation2 + $0xa0] sm:$0xf]  ;;  %v2102_v63 = vsel %vm11322_vm14, %v9342_v41, %v2101_v26  ;;  %1112 = vst [vmem:[#allocation2 + $0xb0] sm:$0x1] %v1111_v39 }
 0x11b   : > { %v11741_v52 = vadd.f32 %v1910_v62, %v1690_v8  ;;  %v916_v62 = vor.u32 %v914_v61, %v913_v59  ;;  %v1489_v8 = vrot.slane %v1487_v31, 5  ;;  %v925_v0 = vsel %vm11314_vm11, %v917_v35, %v924_v56  ;;  %v10418_v61 = vld [vmem:[#allocation2 + $0x90] sm:$0xff]  ;;  %v11788_v41 = vld [vmem:[#allocation2 + $0xa4] sm:$0x1]  ;;  %v10419_v39 = vld [vmem:[#allocation2 + $0x9c] sm:$0xff] }
 0x11c   : > { %v1484_v45 = vor.u32 %v1483_v23, %v11747_v17  ;;  %v1475_v11 = vrot.slane %v1474_v43, 4  ;;  %1109 = vst.msk [vmem:[#allocation2 + $0xac] sm:$0xf] %vm630_vm1, %v925_v0  ;;  %v1501_v55 = vshll.u32 %v11762_v38, 16  ;;  %v1505_v51 = vshrl.u32 %v11762_v38, 16 }
 0x11d   : > { %v2253_v4 = vpop.f32.mrf.mxu2  ;;  %v1107_v46 = vsel %vm11332_vm15, %v916_v62, %v1106_v27  ;;  %v2163_v23 = vunpack.c.l.b16 %v2102_v63  ;;  %v2164_v62 = vunpack.c.l.b16 %v2105_v28  ;;  %v1511_v56 = vshll.u32 %v11788_v41, 16 }
 0x11e   : > { %v2332_v13 = vadd.f32 %v2253_v4, %v1901_v42  ;;  %v1915_v25 = vpop.f32.mrf.mxu1  ;;  %1108 = vst [vmem:[#allocation2 + $0xa8] sm:$0xf] %v1107_v46  ;;  %v1485_v59 = vrot.slane %v1484_v45, 4  ;;  %v1492_v4 = vshrl.u32 %v1153_v34, 16  ;;  %v1480_v37 = vsel %vm11186_vm6, %v1475_v11, %v11747_v17 }
 0x11f   : > { %v1503_v31 = vrot.slane %v1501_v55, 5  ;;  %v1507_v35 = vrot.slane %v1505_v51, 4  ;;  %v1589_v9 = vunpack.c.l.b16 %v1480_v37  ;;  %v2185_v45 = vpack.c.b16 %v2164_v62, %v2163_v23 }
 0x120   : > { %v11751_v36 = vadd.f32 %v11703_v30, %v2332_v13  ;;  %v1490_v26 = vsel %vm11186_vm6, %v1485_v59, %v1489_v8  ;;  %v1494_v27 = vrot.slane %v1492_v4, 4  ;;  %v2111_v8 = vrot.slane %v11700_v19, 5 }
 0x121   : > { %v2544_v29 = vpop.f32.mrf.mxu3  ;;  %v1508_v54 = vor.u32 %v1507_v35, %v1503_v31  ;;  %v9343_v0 = vrot.slane %v1989_v53, 9  ;;  %v1513_v11 = vrot.slane %v1511_v56, 5  ;;  %v1990_v53 = vld [vmem:[#allocation2 + $0x90] sm:$0xe] }
 0x122   : > { %v1693_v12 = vpop.f32.mrf.mxu0  ;;  %9358 = vmatmul.msk.bf16.gmra.mxu2 %vm1613_vm7, %v2184_v6  ;;  %v1495_v6 = vshll.u32 %v1153_v34, 16 }
 0x123   : > { %v11758_v30 = vadd.f32 %v1913_v49, %v1693_v12  ;;  %v1590_v12 = vunpack.c.l.b16 %v1490_v26  ;;  %v11802_v28 = vld [vmem:[#allocation2 + $0xac] sm:$0xf] }
 0x124   : > { %v1525_v62 = vshll.u32 %v11802_v28, 16  ;;  %v1529_v37 = vshrl.u32 %v11802_v28, 16 }
 0x125   : > { %9247 = vmatmul.msk.bf16.gmra.mxu0 %vm1613_vm7, %v1608_v44  ;;  %v2256_v60 = vpop.f32.mrf.mxu2  ;;  %v1497_v44 = vrot.slane %v1495_v6, 5  ;;  %v1609_v32 = vpack.c.b16 %v1590_v12, %v1589_v9  ;;  %v1155_v63 = vld [vmem:[#allocation2 + $0xa8] sm:$0xf]  ;;  %v2115_v12 = vrot.slane %v11724_v50, 5 }
 0x126   : > { %v2333_v49 = vadd.f32 %v2256_v60, %v11664_v1  ;;  %9440 = vmatmul.msk.bf16.gmra.mxu3 %vm1613_vm7, %v10432_v48  ;;  %v1918_v42 = vpop.f32.mrf.mxu1  ;;  %v2108_v48 = vrot.slane %v11677_v18, 5  ;;  %v10433_v60 = vld [vmem:[#allocation2 + $0x90] sm:$0xff]  ;;  %v1519_v23 = vshll.u32 %v1155_v63, 16  ;;  %v1531_v56 = vrot.slane %v1529_v37, 4 }
 0x128   : > { %v11776_v1 = vadd.f32 %v11735_v57, %v2333_v49  ;;  %v2110_v49 = vrot.slane %v2108_v48, 4  ;;  %v2109_v19 = vsel %vm11322_vm14, %v9343_v0, %v2108_v48 }
 0x129   : > { %v2547_v47 = vpop.f32.mrf.mxu3  ;;  %9328 = vmatmul.msk.bf16.gmra.mxu1 %vm1613_vm7, %v10418_v61 }
 0x12a   : > { %v1695_v13 = vpop.f32.mrf.mxu0 }
 0x12b   : > { %v11786_v57 = vadd.f32 %v1915_v25, %v1695_v13  ;;  %v1498_v25 = vor.u32 %v1497_v44, %v1494_v27  ;;  %v1516_v13 = vshrl.u32 %v1155_v63, 16  ;;  %v2165_v27 = vunpack.c.l.b16 %v2109_v19 }
 0x12d   : > { %v2258_v40 = vpop.f32.mrf.mxu2  ;;  %v1499_v18 = vrot.slane %v1498_v25, 4  ;;  %v1521_v25 = vrot.slane %v1519_v23, 5 }
 0x12e   : > { %v2334_v43 = vadd.f32 %v2258_v40, %v11693_v15  ;;  %v1920_v17 = vpop.f32.mrf.mxu1  ;;  %v9577_v40 = vld [vmem:[%s14139_s1 + $0xe] sm:$0x3] }
 0x12f   : > { %v1504_v55 = vsel %vm11186_vm6, %v1499_v18, %v1503_v31  ;;  %v9496_v31 = vld [vmem:[%s14139_s1 + $0xc] sm:$0x3]  ;;  %v2117_v18 = vrot.slane %v2115_v12, 4 }
 0x130   : > { %v11792_v46 = vadd.f32 %v2544_v29, %v2334_v43  ;;  %v1509_v29 = vrot.slane %v1508_v54, 4  ;;  %v1591_v35 = vunpack.c.l.b16 %v1504_v55  ;;  %v3865_v43 = vand.u32 %v9496_v31, %v11147_v3  ;;  %v2649_v55 = vld [vmem:[#allocation2 + $0xc] sm:$0xf] }
 0x131   : > { %v2549_v34 = vpop.f32.mrf.mxu3  ;;  %v11830_v54 = vrot.slane %v1525_v62, 5  ;;  %v2701_v31 = vshll.u32 %v2649_v55, 16 }
 0x132   : > { %v1698_v58 = vpop.f32.mrf.mxu0  ;;  %9359 = vmatmul.msk.bf16.gmra.mxu2 %vm1613_vm7, %v2185_v45  ;;  %v4519_v45 = vand.u32 %v9577_v40, %v11147_v3 }
 0x133   : > { %v11797_v15 = vadd.f32 %v1918_v42, %v1698_v58  ;;  %v2112_v42 = vsel %vm11322_vm14, %v2110_v49, %v2111_v8  ;;  %3874 = vmatpush.bf16.msra.mxu2 %v3865_v43  ;;  %v9344_v49 = vrot.slane %v1990_v53, 9  ;;  %v3303_v53 = vld [vmem:[#allocation2 + $0xc] sm:$0xe] }
 0x134   : > { %v2166_v44 = vunpack.c.l.b16 %v2112_v42  ;;  %4528 = vmatpush.bf16.msra.mxu3 %v4519_v45 }
 0x135   : > { %9248 = vmatmul.msk.bf16.gmra.mxu0 %vm1613_vm7, %v1609_v32  ;;  %v2261_v59 = vpop.f32.mrf.mxu2 }
 0x136   : > { %v2335_v61 = vadd.f32 %v2261_v59, %v11710_v22  ;;  %9441 = vmatmul.msk.bf16.gmra.mxu3 %vm1613_vm7, %v10433_v60  ;;  %v1923_v4 = vpop.f32.mrf.mxu1  ;;  %v1514_v22 = vsel %vm11186_vm6, %v1509_v29, %v1513_v11  ;;  %v2186_v58 = vpack.c.b16 %v2166_v44, %v2165_v27  ;;  %v11833_v60 = vld [vmem:[#allocation2 + $0xb0] sm:$0x1]  ;;  %v2118_v11 = vrot.slane %v11745_v7, 5  ;;  %v10420_v27 = vld [vmem:[#allocation2 + $0xa8] sm:$0xff] }
 0x137   : > { %v1592_v9 = vunpack.c.l.b16 %v1514_v22  ;;  %v2116_v7 = vsel %vm11322_vm14, %v9344_v49, %v2115_v12  ;;  %v2650_v44 = vld [vmem:[#allocation2 + $0x10] sm:$0xf] }
 0x138   : > { %v11808_v6 = vadd.f32 %v2547_v47, %v2335_v61  ;;  %v1532_v61 = vor.u32 %v1531_v56, %v11830_v54  ;;  %v3369_v12 = vrot.slane %v2650_v44, 5  ;;  %v2167_v45 = vunpack.c.l.b16 %v2116_v7 }
 0x139   : > { %v11814_v51 = vpop.f32.mrf.mxu3  ;;  %9329 = vmatmul.msk.bf16.gmra.mxu1 %vm1613_vm7, %v10419_v39  ;;  %v1610_v0 = vpack.c.b16 %v1592_v9, %v1591_v35  ;;  %v9479_v39 = vld [vmem:[%s14139_s1 + $0xa] sm:$0x3]  ;;  %v2698_v35 = vshrl.u32 %v2649_v55, 16  ;;  %v2707_v56 = vshll.u32 %v2650_v44, 16  ;;  %v2125_v55 = vrot.slane %v11788_v41, 5 }
 0x13a   : > { %v1700_v26 = vpop.f32.mrf.mxu0  ;;  %v3578_v19 = vand.u32 %v9479_v39, %v11147_v3  ;;  %v1533_v62 = vrot.slane %v1532_v61, 4 }
 0x13b   : > { %v11819_v47 = vadd.f32 %v1920_v17, %v1700_v26  ;;  %v1518_v17 = vrot.slane %v1516_v13, 4  ;;  %v2119_v13 = vsel %vm11322_vm14, %v2117_v18, %v2118_v11  ;;  %v9610_v26 = vld [vmem:[%s14139_s1 + $0x10] sm:$0x3]  ;;  %v2700_v49 = vrot.slane %v2698_v35, 4 }
 0x13c   : > { %3587 = vmatpush.bf16.msrb.mxu1 %v3578_v19  ;;  %v4917_v40 = vand.u32 %v9610_v26, %v11147_v3  ;;  %v2703_v18 = vrot.slane %v2701_v31, 5  ;;  %v10435_v31 = vld [vmem:[#allocation2 + $0xa8] sm:$0xff] }
 0x13d   : > { %v2263_v48 = vpop.f32.mrf.mxu2  ;;  %v1522_v59 = vor.u32 %v1521_v25, %v1518_v17  ;;  %v2122_v25 = vrot.slane %v11762_v38, 5 }
 0x13e   : > { %v2336_v32 = vadd.f32 %v2263_v48, %v11741_v52  ;;  %v1925_v8 = vpop.f32.mrf.mxu1  ;;  %v1535_v52 = vshll.u32 %v11833_v60, 16  ;;  %v2168_v48 = vunpack.c.l.b16 %v2119_v13  ;;  %4926 = vmatpush.bf16.msra.mxu0 %v4917_v40  ;;  %v11876_v13 = vrot.slane %v2707_v56, 5 }
 0x13f   : > { %v1523_v23 = vrot.slane %v1522_v59, 4  ;;  %v9463_v59 = vrot.slane %v3303_v53, 9  ;;  %v2124_v19 = vrot.slane %v2122_v25, 4 }
 0x140   : > { %v11835_v50 = vadd.f32 %v2549_v34, %v2336_v32  ;;  %v10434_v34 = vld [vmem:[#allocation2 + $0x9c] sm:$0xff]  ;;  %v1537_v37 = vrot.slane %v1535_v52, 5  ;;  %v2711_v32 = vshrl.u32 %v2650_v44, 16  ;;  %v2187_v52 = vpack.c.b16 %v2168_v48, %v2167_v45 }
 0x141   : > { %v11837_v29 = vpop.f32.mrf.mxu3 }
 0x142   : > { %v1703_v63 = vpop.f32.mrf.mxu0  ;;  %9360 = vmatmul.msk.bf16.gmra.mxu2 %vm1613_vm7, %v2186_v58  ;;  %v1538_v58 = vsel %vm11186_vm6, %v1533_v62, %v1537_v37 }
 0x143   : > { %v11847_v42 = vadd.f32 %v1923_v4, %v1703_v63  ;;  %v1594_v63 = vunpack.c.l.b16 %v1538_v58  ;;  %v2652_v58 = vld [vmem:[#allocation2 + $0x18] sm:$0xf] }
 0x145   : > { %9249 = vmatmul.msk.bf16.gmra.mxu0 %vm1613_vm7, %v1610_v0  ;;  %v2266_v22 = vpop.f32.mrf.mxu2  ;;  %v2651_v0 = vld [vmem:[#allocation2 + $0x14] sm:$0x1] }
 0x146   : > { %v2337_v4 = vadd.f32 %v2266_v22, %v11758_v30  ;;  %9442 = vmatmul.msk.bf16.gmra.mxu3 %vm1613_vm7, %v10434_v34  ;;  %v1928_v9 = vpop.f32.mrf.mxu1  ;;  %v1528_v30 = vsel %vm11186_vm6, %v1523_v23, %v11830_v54  ;;  %v3371_v54 = vrot.slane %v3369_v12, 4  ;;  %v3372_v61 = vrot.slane %v2651_v0, 5 }
 0x147   : > { %v1593_v39 = vunpack.c.l.b16 %v1528_v30  ;;  %v2704_v22 = vor.u32 %v2703_v18, %v2700_v49  ;;  %v2713_v23 = vrot.slane %v2711_v32, 4  ;;  %v2717_v44 = vshll.u32 %v2651_v0, 16  ;;  %v627_v30 = vld [vmem:[%s11243_s20 + $0x78] sm:$0xf] }
 0x148   : > { %v11861_v43 = vadd.f32 %v11814_v51, %v2337_v4  ;;  %v1991_v51 = vld [vmem:[#allocation2 + $0x9c] sm:$0xe]  ;;  %v3373_v37 = vsel %vm11322_vm14, %v3371_v54, %v3372_v61 }
 0x149   : > { %v11866_v17 = vpop.f32.mrf.mxu3  ;;  %9330 = vmatmul.msk.bf16.gmra.mxu1 %vm1613_vm7, %v10420_v27  ;;  %v9345_v34 = vrot.slane %v1991_v51, 9  ;;  %v1611_v4 = vpack.c.b16 %v1594_v63, %v1593_v39  ;;  %v11893_v27 = vsel %vm11322_vm14, %v2124_v19, %v2125_v55  ;;  %v2705_v40 = vrot.slane %v2704_v22, 4  ;;  %v2653_v54 = vld [vmem:[#allocation2 + $0x1c] sm:$0xf] }
 0x14a   : > { %v1705_v3 = vpop.f32.mrf.mxu0  ;;  %v3482_v45 = vunpack.c.l.b16 %v3373_v37  ;;  %v2170_v32 = vunpack.c.l.b16 %v11893_v27  ;;  %v945_v51 = vshrl.u32 %v627_v30, 16  ;;  %v3376_v39 = vrot.slane %v2653_v54, 5 }
 0x14b   : > { %v11872_v11 = vadd.f32 %v1925_v8, %v1705_v3  ;;  %v3370_v8 = vsel %vm11322_vm14, %v9463_v59, %v3369_v12  ;;  %v2719_v3 = vrot.slane %v2717_v44, 5  ;;  %v948_v63 = vshll.u32 %v627_v30, 16  ;;  %v2654_v44 = vld [vmem:[#allocation2 + $0x20] sm:$0x1]  ;;  %v1992_v30 = vld [vmem:[#allocation2 + $0xa8] sm:$0xe] }
 0x14c   : > { %v3481_v12 = vunpack.c.l.b16 %v3370_v8  ;;  %v2725_v55 = vshll.u32 %v2652_v58, 16  ;;  %v2129_v27 = vrot.slane %v11802_v28, 5 }
 0x14d   : > { %v2268_v38 = vpop.f32.mrf.mxu2 }
 0x14e   : > { %v2338_v7 = vadd.f32 %v2268_v38, %v11786_v57  ;;  %v1930_v62 = vpop.f32.mrf.mxu1  ;;  %v11889_v57 = vsel %vm11322_vm14, %v9345_v34, %v2122_v25  ;;  %v628_v25 = vld [vmem:[%s11243_s20 + $0x7c] sm:$0xf]  ;;  %v3513_v59 = vpack.c.b16 %v3482_v45, %v3481_v12  ;;  %v947_v38 = vrot.slane %v945_v51, 7  ;;  %s9082_s20 = sshll.u32 %s584_s14, 4  ;;  %s9083_s20 = int_to_ptr.vmem [resolvable:$true] %s9082_s20 }
 0x14f   : > { %v2169_v53 = vunpack.c.l.b16 %v11889_v57  ;;  %v953_v0 = vshrl.u32 %v628_v25, 16  ;;  %v3379_v12 = vrot.slane %v2654_v44, 5 }
 0x150   : > { %v11883_v26 = vadd.f32 %v11837_v29, %v2338_v7  ;;  %v2714_v29 = vor.u32 %v2713_v23, %v11876_v13  ;;  %v956_v7 = vshll.u32 %v628_v25, 16  ;;  %v2731_v23 = vshll.u32 %v2653_v54, 16 }
 0x151   : > { %v11885_v41 = vpop.f32.mrf.mxu3  ;;  %v11909_v34 = vrot.slane %v953_v0, 7  ;;  %v950_v8 = vor.u32 %v948_v63, %v947_v38  ;;  %v951_v37 = vrot.slane %v947_v38, 4  ;;  %v2132_v38 = vrot.slane %v11833_v60, 5 }
 0x152   : > { %v1708_v35 = vpop.f32.mrf.mxu0  ;;  %9361 = vmatmul.msk.bf16.gmra.mxu2 %vm1613_vm7, %v2187_v52  ;;  %v2715_v18 = vrot.slane %v2714_v29, 4  ;;  %v3304_v52 = vld [vmem:[#allocation2 + $0x18] sm:$0xe]  ;;  %v3378_v29 = vrot.slane %v3376_v39, 4  ;;  %v11927_v0 = vrot.slane %v2731_v23, 5 }
 0x153   : > { %v11897_v48 = vadd.f32 %v1928_v9, %v1708_v35  ;;  %v2710_v9 = vsel %vm11186_vm6, %v2705_v40, %v11876_v13  ;;  %v2735_v13 = vshrl.u32 %v2653_v54, 16  ;;  %v958_v35 = vor.u32 %v956_v7, %v11909_v34 }
 0x154   : > { %v2720_v57 = vsel %vm11186_vm6, %v2715_v18, %v2719_v3  ;;  %v2188_v18 = vpack.c.b16 %v2170_v32, %v2169_v53  ;;  %v3380_v5 = vsel %vm11322_vm14, %v3378_v29, %v3379_v12  ;;  %v2741_v53 = vshll.u32 %v2654_v44, 16 }
 0x155   : > { %9250 = vmatmul.msk.bf16.gmra.mxu0 %vm1613_vm7, %v1611_v4  ;;  %v2271_v56 = vpop.f32.mrf.mxu2  ;;  %v959_v3 = vsel %vm11314_vm11, %v951_v37, %v958_v35  ;;  %v3084_v51 = vunpack.c.l.b16 %v2720_v57  ;;  %v3484_v23 = vunpack.c.l.b16 %v3380_v5  ;;  %vm6619_vm11 = vcmask 253952  }
 0x156   : > { %v2339_v49 = vadd.f32 %v2271_v56, %v11797_v15  ;;  %9443 = vmatmul.msk.bf16.gmra.mxu3 %vm1613_vm7, %v10435_v31  ;;  %v1933_v61 = vpop.f32.mrf.mxu1  ;;  %v2722_v15 = vshrl.u32 %v2652_v58, 16  ;;  %v1120_v31 = vld [vmem:[#allocation2 + $0xc0] sm:$0xf]  ;;  %v2727_v56 = vrot.slane %v2725_v55, 5  ;;  %v3083_v58 = vunpack.c.l.b16 %v2710_v9  ;;  %1123 = vst.msk [vmem:[#allocation2 + $0xc4] sm:$0xf] %vm630_vm1, %v959_v3  ;;  %vm13424_vm13 = vmand %vm6619_vm11, %vm686_vm8 }
 0x157   : > { %v1121_v45 = vsel %vm11332_vm15, %v950_v8, %v1120_v31  ;;  %v2131_v9 = vrot.slane %v2129_v27, 4  ;;  %v2743_v44 = vrot.slane %v2741_v53, 5  ;;  %vm5107_vm1 = vcmask 130048  }
 0x158   : > { %v11912_v19 = vadd.f32 %v11866_v17, %v2339_v49  ;;  %v9464_v17 = vrot.slane %v3304_v52, 9  ;;  %v2724_v25 = vrot.slane %v2722_v15, 4  ;;  %1122 = vst [vmem:[#allocation2 + $0xc0] sm:$0xf] %v1121_v45  ;;  %v2737_v49 = vrot.slane %v2735_v13, 4 }
 0x159   : > { %v11914_v22 = vpop.f32.mrf.mxu3  ;;  %9480 = vmatmul.msk.bf16.vlgmr.msrb.gmra.mxu1 %vm1613_vm7, %v3513_v59  ;;  %v9346_v59 = vrot.slane %v1992_v30, 9  ;;  %v3115_v15 = vpack.c.b16 %v3084_v51, %v3083_v58  ;;  %v2655_v13 = vld [vmem:[#allocation2 + $0x24] sm:$0xf]  ;;  %v2133_v60 = vsel %vm11322_vm14, %v2131_v9, %v2132_v38  ;;  %v3989_v51 = vld [vmem:[#allocation2 + $0x1c] sm:$0xf]  ;;  %vm6941_vm8 = vcmask 261120  }
 0x15a   : > { %v1710_v4 = vpop.f32.mrf.mxu0  ;;  %v3377_v54 = vsel %vm11322_vm14, %v9464_v17, %v3376_v39  ;;  %v2728_v63 = vor.u32 %v2727_v56, %v2724_v25  ;;  %v10436_v39 = vld [vmem:[#allocation2 + $0xb4] sm:$0xff]  ;;  %v2656_v17 = vld [vmem:[#allocation2 + $0x28] sm:$0xf]  ;;  %v2746_v35 = vshrl.u32 %v2655_v13, 16  ;;  %v2749_v31 = vshll.u32 %v2655_v13, 16 }
 0x15b   : > { %v11921_v40 = vadd.f32 %v1930_v62, %v1710_v4  ;;  %v3483_v7 = vunpack.c.l.b16 %v3377_v54  ;;  %v3383_v30 = vrot.slane %v2656_v17, 5  ;;  %v3988_v25 = vld [vmem:[#allocation2 + $0x18] sm:$0xf]  ;;  %v2172_v3 = vunpack.c.l.b16 %v2133_v60 }
 0x15c   : > { %v2729_v37 = vrot.slane %v2728_v63, 4  ;;  %v2759_v58 = vshrl.u32 %v2656_v17, 16  ;;  %v2751_v54 = vrot.slane %v2749_v31, 5  ;;  %v4037_v63 = vshrl.u32 %v3988_v25, 16 }
 0x15d   : > { %v2273_v28 = vpop.f32.mrf.mxu2  ;;  %v3385_v53 = vrot.slane %v3383_v30, 4 }
 0x15e   : > { %v2340_v62 = vadd.f32 %v2273_v28, %v11819_v47  ;;  %v1935_v16 = vpop.f32.mrf.mxu1  ;;  %v2738_v47 = vor.u32 %v2737_v49, %v11927_v0  ;;  %v2755_v28 = vshll.u32 %v2656_v17, 16  ;;  %v2734_v49 = vsel %vm11186_vm6, %v2729_v37, %v11927_v0 }
 0x15f   : > { %v4046_v0 = vshll.u32 %v3989_v51, 16  ;;  %v2761_v60 = vrot.slane %v2759_v58, 4 }
 0x160   : > { %v11936_v52 = vadd.f32 %v11885_v41, %v2340_v62  ;;  %v2130_v41 = vsel %vm11322_vm14, %v9346_v59, %v2129_v27  ;;  %v2739_v57 = vrot.slane %v2738_v47, 4  ;;  %v3305_v27 = vld [vmem:[#allocation2 + $0x24] sm:$0xe]  ;;  %v2748_v59 = vrot.slane %v2746_v35, 4 }
 0x161   : > { %v11939_v55 = vpop.f32.mrf.mxu3  ;;  %v2171_v45 = vunpack.c.l.b16 %v2130_v41  ;;  %v9465_v9 = vrot.slane %v3305_v27, 9  ;;  %v11965_v41 = vrot.slane %v2755_v28, 5  ;;  %v11972_v28 = vrot.slane %v4046_v0, 5 }
 0x162   : > { %v1713_v32 = vpop.f32.mrf.mxu0  ;;  %9362 = vmatmul.msk.bf16.gmra.mxu2 %vm1613_vm7, %v2188_v18  ;;  %v2657_v18 = vld [vmem:[#allocation2 + $0x2c] sm:$0x1]  ;;  %v2752_v31 = vor.u32 %v2751_v54, %v2748_v59 }
 0x163   : > { %v11943_v8 = vadd.f32 %v1933_v61, %v1713_v32  ;;  %v3514_v61 = vpack.c.b16 %v3484_v23, %v3483_v7  ;;  %v3386_v38 = vrot.slane %v2657_v18, 5  ;;  %v4050_v32 = vshrl.u32 %v3989_v51, 16  ;;  %v10698_v23 = vld [vmem:[#allocation2 + $0xb8] sm:$0xf] }
 0x164   : > { %v2136_v13 = vrot.slane %v10698_v23, 5  ;;  %v3384_v27 = vsel %vm11322_vm14, %v9465_v9, %v3383_v30  ;;  %v2762_v51 = vor.u32 %v2761_v60, %v11965_v41  ;;  %v2659_v23 = vld [vmem:[#allocation2 + $0x34] sm:$0xf] }
 0x165   : > { %9447 = vmatmul.msk.bf16.vlgmr.msrb.gmra.mxu0 %vm1613_vm7, %v3115_v15  ;;  %v2276_v4 = vpop.f32.mrf.mxu2  ;;  %v4040_v15 = vshll.u32 %v3988_v25, 16  ;;  %v3387_v25 = vsel %vm11322_vm14, %v3385_v53, %v3386_v38  ;;  %v4052_v58 = vrot.slane %v4050_v32, 4  ;;  %v2658_v38 = vld [vmem:[#allocation2 + $0x30] sm:$0xf] }
 0x166   : > { %v2341_v29 = vadd.f32 %v2276_v4, %v11847_v42  ;;  %9444 = vmatmul.msk.bf16.gmra.mxu3 %vm1613_vm7, %v10436_v39  ;;  %v1938_v12 = vpop.f32.mrf.mxu1  ;;  %v2744_v42 = vsel %vm11186_vm6, %v2739_v57, %v2743_v44  ;;  %v10697_v39 = vld [vmem:[#allocation2 + $0xbc] sm:$0x1]  ;;  %v2189_v4 = vpack.c.b16 %v2172_v3, %v2171_v45  ;;  %v3085_v57 = vunpack.c.l.b16 %v2734_v49  ;;  %v3990_v49 = vld [vmem:[#allocation2 + $0x20] sm:$0x1] }
 0x167   : > { %v2139_v7 = vrot.slane %v10697_v39, 5  ;;  %v3086_v44 = vunpack.c.l.b16 %v2744_v42  ;;  %v2138_v3 = vrot.slane %v2136_v13, 4  ;;  %v3486_v9 = vunpack.c.l.b16 %v3387_v25  ;;  %v3991_v25 = vld [vmem:[#allocation2 + $0x24] sm:$0xf] }
 0x168   : > { %v11953_v56 = vadd.f32 %v11914_v22, %v2341_v29  ;;  %v1993_v22 = vld [vmem:[#allocation2 + $0xb4] sm:$0xe]  ;;  %v4042_v29 = vrot.slane %v4040_v15, 5  ;;  %v2753_v15 = vrot.slane %v2752_v31, 4  ;;  %v4056_v53 = vshll.u32 %v3990_v49, 16 }
 0x169   : > { %v11960_v62 = vpop.f32.mrf.mxu3  ;;  %9481 = vmatmul.msk.bf16.gmra.mxu1 %vm1613_vm7, %v3514_v61  ;;  %v9347_v17 = vrot.slane %v1993_v22, 9  ;;  %v3116_v42 = vpack.c.b16 %v3086_v44, %v3085_v57  ;;  %v3485_v22 = vunpack.c.l.b16 %v3384_v27  ;;  %v2140_v0 = vsel %vm11322_vm14, %v2138_v3, %v2139_v7 }
 0x16a   : > { %v1715_v5 = vpop.f32.mrf.mxu0  ;;  %v2763_v32 = vrot.slane %v2762_v51, 4  ;;  %v2770_v60 = vshrl.u32 %v2658_v38, 16  ;;  %v2758_v7 = vsel %vm11186_vm6, %v2753_v15, %v11965_v41  ;;  %v4058_v27 = vrot.slane %v4056_v53, 5 }
 0x16b   : > { %v11963_v47 = vadd.f32 %v1935_v16, %v1715_v5  ;;  %v4039_v16 = vrot.slane %v4037_v63, 4  ;;  %v2137_v30 = vsel %vm11322_vm14, %v9347_v17, %v2136_v13  ;;  %v10437_v5 = vld [vmem:[#allocation2 + $0xc0] sm:$0xff]  ;;  %v3515_v44 = vpack.c.b16 %v3486_v9, %v3485_v22 }
 0x16c   : > { %v2779_v3 = vshll.u32 %v2659_v23, 16  ;;  %v2783_v51 = vshrl.u32 %v2659_v23, 16 }
 0x16d   : > { %v2278_v37 = vpop.f32.mrf.mxu2 }
 0x16e   : > { %v2342_v35 = vadd.f32 %v2278_v37, %v11872_v11  ;;  %v1940_v61 = vpop.f32.mrf.mxu1  ;;  %v2765_v11 = vshll.u32 %v2657_v18, 16  ;;  %v4053_v18 = vor.u32 %v4052_v58, %v11972_v28  ;;  %v2773_v37 = vshll.u32 %v2658_v38, 16 }
 0x16f   : > { %v4061_v38 = vshrl.u32 %v3991_v25, 16 }
 0x170   : > { %v11975_v45 = vadd.f32 %v11939_v55, %v2342_v35  ;;  %v4043_v55 = vor.u32 %v4042_v29, %v4039_v16  ;;  %v2767_v39 = vrot.slane %v2765_v11, 5  ;;  %v3306_v35 = vld [vmem:[#allocation2 + $0x30] sm:$0xe]  ;;  %v2174_v16 = vunpack.c.l.b16 %v2140_v0  ;;  %v3992_v11 = vld [vmem:[#allocation2 + $0x28] sm:$0xf] }
 0x171   : > { %v11978_v59 = vpop.f32.mrf.mxu3  ;;  %v4054_v29 = vrot.slane %v4053_v18, 4  ;;  %v4070_v53 = vshll.u32 %v3992_v11, 16  ;;  %v4074_v0 = vshrl.u32 %v3992_v11, 16 }
 0x172   : > { %v1718_v54 = vpop.f32.mrf.mxu0  ;;  %9363 = vmatmul.msk.bf16.gmra.mxu2 %vm1613_vm7, %v2189_v4  ;;  %v3390_v4 = vrot.slane %v2659_v23, 5  ;;  %v4044_v17 = vrot.slane %v4043_v55, 4  ;;  %v4064_v55 = vshll.u32 %v3991_v25, 16  ;;  %v2785_v23 = vrot.slane %v2783_v51, 4 }
 0x173   : > { %v11983_v63 = vadd.f32 %v1938_v12, %v1718_v54  ;;  %v2173_v12 = vunpack.c.l.b16 %v2137_v30  ;;  %v2772_v54 = vrot.slane %v2770_v60, 4  ;;  %v2775_v30 = vrot.slane %v2773_v37, 5 }
 0x174   : > { %v3392_v22 = vrot.slane %v3390_v4, 4  ;;  %v4059_v18 = vsel %vm11186_vm6, %v4054_v29, %v4058_v27  ;;  %v3087_v60 = vunpack.c.l.b16 %v2758_v7  ;;  %v4076_v27 = vrot.slane %v4074_v0, 4 }
 0x175   : > { %9448 = vmatmul.msk.bf16.gmra.mxu0 %vm1613_vm7, %v3116_v42  ;;  %v2281_v13 = vpop.f32.mrf.mxu2  ;;  %v2660_v42 = vld [vmem:[#allocation2 + $0x38] sm:$0x1] }
 0x176   : > { %v2343_v57 = vadd.f32 %v2281_v13, %v11897_v48  ;;  %9445 = vmatmul.msk.bf16.gmra.mxu3 %vm1613_vm7, %v10437_v5  ;;  %v1943_v31 = vpop.f32.mrf.mxu1  ;;  %v2768_v48 = vsel %vm11186_vm6, %v2763_v32, %v2767_v39  ;;  %v9466_v5 = vrot.slane %v3306_v35, 9  ;;  %v3393_v9 = vrot.slane %v2660_v42, 5 }
 0x177   : > { %v2190_v32 = vpack.c.b16 %v2174_v16, %v2173_v12  ;;  %v12009_v39 = vrot.slane %v2779_v3, 5  ;;  %v3088_v37 = vunpack.c.l.b16 %v2768_v48  ;;  %v4063_v35 = vrot.slane %v4061_v38, 4 }
 0x178   : > { %v11995_v58 = vadd.f32 %v11960_v62, %v2343_v57  ;;  %v4049_v62 = vsel %vm11186_vm6, %v4044_v17, %v11972_v28  ;;  %v2776_v57 = vor.u32 %v2775_v30, %v2772_v54  ;;  %v4423_v17 = vunpack.c.l.b16 %v4059_v18  ;;  %v2662_v18 = vld [vmem:[#allocation2 + $0x40] sm:$0xf] }
 0x179   : > { %v11999_v49 = vpop.f32.mrf.mxu3  ;;  %9482 = vmatmul.msk.bf16.gmra.mxu1 %vm1613_vm7, %v3515_v44  ;;  %v4422_v44 = vunpack.c.l.b16 %v4049_v62  ;;  %v3391_v29 = vsel %vm11322_vm14, %v9466_v5, %v3390_v4  ;;  %v3394_v12 = vsel %vm11322_vm14, %v3392_v22, %v3393_v9  ;;  %v12016_v16 = vrot.slane %v4070_v53, 5  ;;  %v2661_v22 = vld [vmem:[#allocation2 + $0x3c] sm:$0xf] }
 0x17a   : > { %v1720_v41 = vpop.f32.mrf.mxu0  ;;  %v2786_v48 = vor.u32 %v2785_v23, %v12009_v39  ;;  %v2789_v3 = vshll.u32 %v2660_v42, 16  ;;  %v3117_v51 = vpack.c.b16 %v3088_v37, %v3087_v60  ;;  %v3487_v30 = vunpack.c.l.b16 %v3391_v29  ;;  %v3307_v37 = vld [vmem:[#allocation2 + $0x3c] sm:$0xe] }
 0x17b   : > { %v12005_v15 = vadd.f32 %v1940_v61, %v1720_v41  ;;  %v4066_v61 = vrot.slane %v4064_v55, 5  ;;  %v4454_v4 = vpack.c.b16 %v4423_v17, %v4422_v44  ;;  %v3488_v5 = vunpack.c.l.b16 %v3394_v12 }
 0x17c   : > { %v2777_v9 = vrot.slane %v2776_v57, 4  ;;  %v2787_v55 = vrot.slane %v2786_v48, 4  ;;  %v2791_v42 = vrot.slane %v2789_v3, 5  ;;  %v2794_v0 = vshrl.u32 %v2661_v22, 16  ;;  %v2663_v3 = vld [vmem:[#allocation2 + $0x44] sm:$0x1] }
 0x17d   : > { %v2283_v13 = vpop.f32.mrf.mxu2  ;;  %v4067_v41 = vor.u32 %v4066_v61, %v4063_v35  ;;  %v2797_v23 = vshll.u32 %v2661_v22, 16  ;;  %v3516_v60 = vpack.c.b16 %v3488_v5, %v3487_v30  ;;  %v3994_v35 = vld [vmem:[#allocation2 + $0x30] sm:$0xf]  ;;  %v2807_v12 = vshrl.u32 %v2662_v18, 16 }
 0x17e   : > { %v2344_v28 = vadd.f32 %v2283_v13, %v11921_v40  ;;  %v1945_v25 = vpop.f32.mrf.mxu1  ;;  %v3993_v40 = vld [vmem:[#allocation2 + $0x2c] sm:$0x1]  ;;  %v2782_v44 = vsel %vm11186_vm6, %v2777_v9, %v12009_v39  ;;  %v2792_v29 = vsel %vm11186_vm6, %v2787_v55, %v2791_v42  ;;  %v3400_v30 = vrot.slane %v2663_v3, 5 }
 0x17f   : > { %v4080_v38 = vshll.u32 %v3993_v40, 16  ;;  %v2796_v40 = vrot.slane %v2794_v0, 4  ;;  %v4085_v5 = vshrl.u32 %v3994_v35, 16  ;;  %v4088_v22 = vshll.u32 %v3994_v35, 16 }
 0x180   : > { %v12019_v7 = vadd.f32 %v11978_v59, %v2344_v28  ;;  %v4077_v59 = vor.u32 %v4076_v27, %v12016_v16  ;;  %v3995_v27 = vld [vmem:[#allocation2 + $0x34] sm:$0xf]  ;;  %v2809_v42 = vrot.slane %v2807_v12, 4  ;;  %v3090_v0 = vunpack.c.l.b16 %v2792_v29 }
 0x181   : > { %v12022_v11 = vpop.f32.mrf.mxu3  ;;  %v4082_v17 = vrot.slane %v4080_v38, 5  ;;  %v4098_v38 = vshrl.u32 %v3995_v27, 16 }
 0x182   : > { %v1723_v54 = vpop.f32.mrf.mxu0  ;;  %9364 = vmatmul.msk.bf16.gmra.mxu2 %vm1613_vm7, %v2190_v32  ;;  %v3397_v32 = vrot.slane %v2662_v18, 5  ;;  %v4078_v28 = vrot.slane %v4077_v59, 4  ;;  %v4094_v59 = vshll.u32 %v3995_v27, 16  ;;  %v3996_v27 = vld [vmem:[#allocation2 + $0x38] sm:$0x1] }
 0x183   : > { %v12025_v62 = vadd.f32 %v1943_v31, %v1723_v54  ;;  %v4068_v31 = vrot.slane %v4067_v41, 4  ;;  %v9467_v54 = vrot.slane %v3307_v37, 9  ;;  %v4087_v37 = vrot.slane %v4085_v5, 4 }
 0x184   : > { %v4083_v9 = vsel %vm11186_vm6, %v4078_v28, %v4082_v17  ;;  %v4100_v12 = vrot.slane %v4098_v38, 4  ;;  %v2665_v38 = vld [vmem:[#allocation2 + $0x4c] sm:$0xf] }
 0x185   : > { %9449 = vmatmul.msk.bf16.gmra.mxu0 %vm1613_vm7, %v3117_v51  ;;  %v2286_v53 = vpop.f32.mrf.mxu2  ;;  %v2799_v51 = vrot.slane %v2797_v23, 5  ;;  %v3398_v28 = vsel %vm11322_vm14, %v9467_v54, %v3397_v32 }
 0x186   : > { %v2345_v13 = vadd.f32 %v2286_v53, %v11943_v8  ;;  %9578 = vmatmul.msk.bf16.vlgmr.msra.gmra.mxu3 %vm1613_vm7, %v4454_v4  ;;  %v1948_v57 = vpop.f32.mrf.mxu1  ;;  %v2803_v8 = vshll.u32 %v2662_v18, 16  ;;  %v3399_v4 = vrot.slane %v3397_v32, 4  ;;  %v3089_v53 = vunpack.c.l.b16 %v2782_v44 }
 0x187   : > { %v2800_v23 = vor.u32 %v2799_v51, %v2796_v40  ;;  %v3489_v54 = vunpack.c.l.b16 %v3398_v28  ;;  %v3997_v28 = vld [vmem:[#allocation2 + $0x3c] sm:$0xf] }
 0x188   : > { %v12035_v61 = vadd.f32 %v11999_v49, %v2345_v13  ;;  %v4073_v49 = vsel %vm11186_vm6, %v4068_v31, %v12016_v16  ;;  %v12049_v55 = vrot.slane %v2803_v8, 5  ;;  %v4425_v31 = vunpack.c.l.b16 %v4083_v9 }
 0x189   : > { %v12039_v48 = vpop.f32.mrf.mxu3  ;;  %9483 = vmatmul.msk.bf16.gmra.mxu1 %vm1613_vm7, %v3516_v60  ;;  %v4424_v13 = vunpack.c.l.b16 %v4073_v49  ;;  %v10438_v60 = vld [vmem:[#allocation2 + $0x18] sm:$0xff]  ;;  %v3401_v17 = vsel %vm11322_vm14, %v3399_v4, %v3400_v30  ;;  %v12056_v8 = vrot.slane %v4094_v59, 5  ;;  %v3118_v40 = vpack.c.b16 %v3090_v0, %v3089_v53  ;;  %v2664_v4 = vld [vmem:[#allocation2 + $0x48] sm:$0xf] }
 0x18a   : > { %v1725_v39 = vpop.f32.mrf.mxu0  ;;  %v2810_v29 = vor.u32 %v2809_v42, %v12049_v55  ;;  %v3490_v49 = vunpack.c.l.b16 %v3401_v17  ;;  %v4104_v9 = vshll.u32 %v3996_v27, 16  ;;  %v2821_v53 = vshll.u32 %v2664_v4, 16 }
 0x18b   : > { %v12045_v41 = vadd.f32 %v1945_v25, %v1725_v39  ;;  %v4090_v25 = vrot.slane %v4088_v22, 5  ;;  %v4455_v32 = vpack.c.b16 %v4425_v31, %v4424_v13  ;;  %v2801_v22 = vrot.slane %v2800_v23, 4 }
 0x18c   : > { %v2811_v59 = vrot.slane %v2810_v29, 4  ;;  %v3404_v0 = vrot.slane %v2665_v38, 5  ;;  %v2831_v29 = vshrl.u32 %v2665_v38, 16 }
 0x18d   : > { %v2288_v18 = vpop.f32.mrf.mxu2  ;;  %v4091_v30 = vor.u32 %v4090_v25, %v4087_v37  ;;  %v2806_v31 = vsel %vm11186_vm6, %v2801_v22, %v12049_v55  ;;  %v4106_v25 = vrot.slane %v4104_v9, 5  ;;  %v4112_v22 = vshll.u32 %v3997_v28, 16 }
 0x18e   : > { %v2346_v16 = vadd.f32 %v2288_v18, %v11963_v47  ;;  %v1950_v35 = vpop.f32.mrf.mxu1  ;;  %v2813_v47 = vshll.u32 %v2663_v3, 16  ;;  %v2818_v18 = vshrl.u32 %v2664_v4, 16 }
 0x190   : > { %v12059_v44 = vadd.f32 %v12022_v11, %v2346_v16  ;;  %v4101_v11 = vor.u32 %v4100_v12, %v12056_v8  ;;  %v2815_v3 = vrot.slane %v2813_v47, 5  ;;  %v3517_v16 = vpack.c.b16 %v3490_v49, %v3489_v54  ;;  %v3998_v47 = vld [vmem:[#allocation2 + $0x40] sm:$0xf] }
 0x191   : > { %v12062_v51 = vpop.f32.mrf.mxu3  ;;  %v3406_v49 = vrot.slane %v3404_v0, 4 }
 0x192   : > { %v1728_v39 = vpop.f32.mrf.mxu0  ;;  %9561 = vmatmul.msk.bf16.vlgmr.msra.gmra.mxu2 %vm1613_vm7, %v10438_v60  ;;  %v3308_v60 = vld [vmem:[#allocation2 + $0x48] sm:$0xe]  ;;  %v4102_v37 = vrot.slane %v4101_v11, 4  ;;  %v2816_v12 = vsel %vm11186_vm6, %v2811_v59, %v2815_v3  ;;  %v4118_v59 = vshll.u32 %v3998_v47, 16  ;;  %v4122_v3 = vshrl.u32 %v3998_v47, 16 }
 0x193   : > { %v12065_v5 = vadd.f32 %v1948_v57, %v1728_v39  ;;  %v4092_v57 = vrot.slane %v4091_v30, 4  ;;  %v2820_v39 = vrot.slane %v2818_v18, 4  ;;  %v9468_v54 = vrot.slane %v3308_v60, 9  ;;  %v3999_v47 = vld [vmem:[#allocation2 + $0x44] sm:$0x1] }
 0x194   : > { %v4109_v30 = vshrl.u32 %v3997_v28, 16  ;;  %v4107_v9 = vsel %vm11186_vm6, %v4102_v37, %v4106_v25 }
 0x195   : > { %9450 = vmatmul.msk.bf16.gmra.mxu0 %vm1613_vm7, %v3118_v40  ;;  %v2291_v42 = vpop.f32.mrf.mxu2  ;;  %v2666_v40 = vld [vmem:[#allocation2 + $0x50] sm:$0x1]  ;;  %v4427_v2 = vunpack.c.l.b16 %v4107_v9  ;;  %v3405_v37 = vsel %vm11322_vm14, %v9468_v54, %v3404_v0 }
 0x196   : > { %v2347_v13 = vadd.f32 %v2291_v42, %v11983_v63  ;;  %9579 = vmatmul.msk.bf16.gmra.mxu3 %vm1613_vm7, %v4455_v32  ;;  %v1953_v23 = vpop.f32.mrf.mxu1  ;;  %v2827_v63 = vshll.u32 %v2665_v38, 16  ;;  %v2823_v32 = vrot.slane %v2821_v53, 5  ;;  %v3407_v4 = vrot.slane %v2666_v40, 5 }
 0x197   : > { %v2833_v42 = vrot.slane %v2831_v29, 4  ;;  %v3091_v53 = vunpack.c.l.b16 %v2806_v31  ;;  %v4111_v28 = vrot.slane %v4109_v30, 4  ;;  %v4124_v29 = vrot.slane %v4122_v3, 4 }
 0x198   : > { %v12075_v17 = vadd.f32 %v12039_v48, %v2347_v13  ;;  %v4097_v48 = vsel %vm11186_vm6, %v4092_v57, %v12056_v8  ;;  %v12089_v38 = vrot.slane %v2827_v63, 5  ;;  %v3092_v13 = vunpack.c.l.b16 %v2816_v12  ;;  %v10439_v57 = vld [vmem:[#allocation2 + $0x24] sm:$0xff] }
 0x199   : > { %v12079_v27 = vpop.f32.mrf.mxu3  ;;  %9484 = vmatmul.msk.bf16.gmra.mxu1 %vm1613_vm7, %v3517_v16  ;;  %v2824_v16 = vor.u32 %v2823_v32, %v2820_v39  ;;  %v4426_v60 = vunpack.c.l.b16 %v4097_v48  ;;  %v3408_v25 = vsel %vm11322_vm14, %v3406_v49, %v3407_v4  ;;  %v12096_v63 = vrot.slane %v4118_v59, 5  ;;  %v2667_v49 = vld [vmem:[#allocation2 + $0x54] sm:$0xf] }
 0x19a   : > { %v1730_v55 = vpop.f32.mrf.mxu0  ;;  %v2834_v12 = vor.u32 %v2833_v42, %v12089_v38  ;;  %v3119_v39 = vpack.c.b16 %v3092_v13, %v3091_v53  ;;  %v3491_v54 = vunpack.c.l.b16 %v3405_v37  ;;  %v3492_v30 = vunpack.c.l.b16 %v3408_v25  ;;  %v2668_v42 = vld [vmem:[#allocation2 + $0x58] sm:$0xf]  ;;  %v4000_v25 = vld [vmem:[#allocation2 + $0x48] sm:$0xf] }
 0x19b   : > { %v12085_v11 = vadd.f32 %v1950_v35, %v1730_v55  ;;  %v4114_v35 = vrot.slane %v4112_v22, 5  ;;  %v4456_v0 = vpack.c.b16 %v4427_v2, %v4426_v60  ;;  %v2825_v9 = vrot.slane %v2824_v16, 4 }
 0x19c   : > { %v4128_v59 = vshll.u32 %v3999_v47, 16  ;;  %v2835_v3 = vrot.slane %v2834_v12, 4  ;;  %v2842_v53 = vshrl.u32 %v2667_v49, 16  ;;  %v2845_v13 = vshll.u32 %v2667_v49, 16  ;;  %v4001_v47 = vld [vmem:[#allocation2 + $0x4c] sm:$0xf] }
 0x19d   : > { %v2293_v18 = vpop.f32.mrf.mxu2  ;;  %v4115_v4 = vor.u32 %v4114_v35, %v4111_v28  ;;  %v3518_v60 = vpack.c.b16 %v3492_v30, %v3491_v54  ;;  %v2830_v28 = vsel %vm11186_vm6, %v2825_v9, %v12089_v38  ;;  %v4133_v9 = vshrl.u32 %v4000_v25, 16 }
 0x19e   : > { %v2348_v8 = vadd.f32 %v2293_v18, %v12005_v15  ;;  %v1955_v55 = vpop.f32.mrf.mxu1  ;;  %v2837_v15 = vshll.u32 %v2666_v40, 16  ;;  %v4130_v37 = vrot.slane %v4128_v59, 5  ;;  %v2847_v54 = vrot.slane %v2845_v13, 5 }
 0x1a0   : > { %v12099_v31 = vadd.f32 %v12062_v51, %v2348_v8  ;;  %v4125_v51 = vor.u32 %v4124_v29, %v12096_v63  ;;  %v2839_v40 = vrot.slane %v2837_v15, 5  ;;  %v3411_v8 = vrot.slane %v2668_v42, 5 }
 0x1a1   : > { %v12102_v32 = vpop.f32.mrf.mxu3  ;;  %v2855_v15 = vshrl.u32 %v2668_v42, 16 }
 0x1a2   : > { %14198 = vst [vmem:[#allocation29_spill] sm:$0xff] %v12099_v31  ;;  %v1733_v48 = vpop.f32.mrf.mxu0  ;;  %9562 = vmatmul.msk.bf16.gmra.mxu2 %vm1613_vm7, %v10439_v57  ;;  %v3309_v57 = vld [vmem:[#allocation2 + $0x54] sm:$0xe]  ;;  %v4126_v35 = vrot.slane %v4125_v51, 4  ;;  %v2840_v12 = vsel %vm11186_vm6, %v2835_v3, %v2839_v40  ;;  %v3413_v49 = vrot.slane %v3411_v8, 4  ;;  %v4136_v51 = vshll.u32 %v4000_v25, 16 }
 0x1a3   : > { %v12105_v22 = vadd.f32 %v1953_v23, %v1733_v48  ;;  %v4116_v23 = vrot.slane %v4115_v4, 4  ;;  %v2669_v48 = vld [vmem:[#allocation2 + $0x5c] sm:$0x1]  ;;  %v9469_v30 = vrot.slane %v3309_v57, 9  ;;  %v4142_v40 = vshll.u32 %v4001_v47, 16 }
 0x1a4   : > { %v3414_v4 = vrot.slane %v2669_v48, 5  ;;  %v4131_v3 = vsel %vm11186_vm6, %v4126_v35, %v4130_v37  ;;  %v4135_v25 = vrot.slane %v4133_v9, 4 }
 0x1a5   : > { %9451 = vmatmul.msk.bf16.gmra.mxu0 %vm1613_vm7, %v3119_v39  ;;  %v2296_v18 = vpop.f32.mrf.mxu2  ;;  %v4429_v31 = vunpack.c.l.b16 %v4131_v3  ;;  %v3412_v35 = vsel %vm11322_vm14, %v9469_v30, %v3411_v8 }
 0x1a6   : > { %v2349_v2 = vadd.f32 %v2296_v18, %v12025_v62  ;;  %9580 = vmatmul.msk.bf16.gmra.mxu3 %vm1613_vm7, %v4456_v0  ;;  %v1958_v16 = vpop.f32.mrf.mxu1  ;;  %v2851_v62 = vshll.u32 %v2668_v42, 16  ;;  %v2844_v0 = vrot.slane %v2842_v53, 4  ;;  %v4146_v42 = vshrl.u32 %v4001_v47, 16  ;;  %v4002_v47 = vld [vmem:[#allocation2 + $0x50] sm:$0x1] }
 0x1a7   : > { %v2857_v53 = vrot.slane %v2855_v15, 4  ;;  %v3415_v37 = vsel %vm11322_vm14, %v3413_v49, %v3414_v4  ;;  %v3493_v30 = vunpack.c.l.b16 %v3412_v35  ;;  %v2670_v49 = vld [vmem:[#allocation2 + $0x60] sm:$0xf] }
 0x1a8   : > { %v12115_v29 = vadd.f32 %v12079_v27, %v2349_v2  ;;  %v4121_v27 = vsel %vm11186_vm6, %v4116_v23, %v12096_v63  ;;  %v12129_v18 = vrot.slane %v2851_v62, 5  ;;  %v3093_v2 = vunpack.c.l.b16 %v2830_v28  ;;  %v10440_v23 = vld [vmem:[#allocation2 + $0x30] sm:$0xff] }
 0x1a9   : > { %v12119_v39 = vpop.f32.mrf.mxu3  ;;  %9485 = vmatmul.msk.bf16.gmra.mxu1 %vm1613_vm7, %v3518_v60  ;;  %v3094_v60 = vunpack.c.l.b16 %v2840_v12  ;;  %v2848_v57 = vor.u32 %v2847_v54, %v2844_v0  ;;  %v12136_v62 = vrot.slane %v4142_v40, 5  ;;  %v4148_v15 = vrot.slane %v4146_v42, 4 }
 0x1aa   : > { %14199 = vst [vmem:[#allocation30_spill] sm:$0xff] %v12115_v29  ;;  %v1735_v38 = vpop.f32.mrf.mxu0  ;;  %v4428_v29 = vunpack.c.l.b16 %v4121_v27  ;;  %v2858_v12 = vor.u32 %v2857_v53, %v12129_v18  ;;  %v3494_v9 = vunpack.c.l.b16 %v3415_v37  ;;  %v4152_v40 = vshll.u32 %v4002_v47, 16  ;;  %v2671_v53 = vld [vmem:[#allocation2 + $0x64] sm:$0xf]  ;;  %v4003_v37 = vld [vmem:[#allocation2 + $0x54] sm:$0xf] }
 0x1ab   : > { %v12125_v59 = vadd.f32 %v1955_v55, %v1735_v38  ;;  %v4138_v55 = vrot.slane %v4136_v51, 5  ;;  %v3120_v0 = vpack.c.b16 %v3094_v60, %v3093_v2  ;;  %v2849_v3 = vrot.slane %v2848_v57, 4  ;;  %v4004_v47 = vld [vmem:[#allocation2 + $0x58] sm:$0xf] }
 0x1ac   : > { %v4457_v8 = vpack.c.b16 %v4429_v31, %v4428_v29  ;;  %v2859_v42 = vrot.slane %v2858_v12, 4  ;;  %v2866_v2 = vshrl.u32 %v2670_v49, 16  ;;  %v2869_v60 = vshll.u32 %v2670_v49, 16 }
 0x1ad   : > { %v2298_v13 = vpop.f32.mrf.mxu2  ;;  %v4139_v4 = vor.u32 %v4138_v55, %v4135_v25  ;;  %v3519_v29 = vpack.c.b16 %v3494_v9, %v3493_v30  ;;  %v2854_v25 = vsel %vm11186_vm6, %v2849_v3, %v12129_v18  ;;  %v4154_v35 = vrot.slane %v4152_v40, 5 }
 0x1ae   : > { %v2350_v63 = vadd.f32 %v2298_v13, %v12045_v41  ;;  %v1960_v38 = vpop.f32.mrf.mxu1  ;;  %v2861_v41 = vshll.u32 %v2669_v48, 16  ;;  %v2871_v30 = vrot.slane %v2869_v60, 5  ;;  %v4157_v3 = vshrl.u32 %v4003_v37, 16 }
 0x1b0   : > { %v12139_v28 = vadd.f32 %v12102_v32, %v2350_v63  ;;  %v4149_v32 = vor.u32 %v4148_v15, %v12136_v62  ;;  %v2863_v48 = vrot.slane %v2861_v41, 5  ;;  %v3418_v63 = vrot.slane %v2671_v53, 5 }
 0x1b1   : > { %v12142_v54 = vpop.f32.mrf.mxu3  ;;  %v2879_v41 = vshrl.u32 %v2671_v53, 16 }
 0x1b2   : > { %14200 = vst [vmem:[#allocation31_spill] sm:$0xff] %v12139_v28  ;;  %v1738_v27 = vpop.f32.mrf.mxu0  ;;  %9563 = vmatmul.msk.bf16.gmra.mxu2 %vm1613_vm7, %v10440_v23  ;;  %v3310_v23 = vld [vmem:[#allocation2 + $0x60] sm:$0xe]  ;;  %v4150_v55 = vrot.slane %v4149_v32, 4  ;;  %v2864_v12 = vsel %vm11186_vm6, %v2859_v42, %v2863_v48  ;;  %v3420_v49 = vrot.slane %v3418_v63, 4  ;;  %v4160_v32 = vshll.u32 %v4003_v37, 16 }
 0x1b3   : > { %v12145_v51 = vadd.f32 %v1958_v16, %v1738_v27  ;;  %v4140_v16 = vrot.slane %v4139_v4, 4  ;;  %v2672_v27 = vld [vmem:[#allocation2 + $0x68] sm:$0x1]  ;;  %v9470_v9 = vrot.slane %v3310_v23, 9  ;;  %v4166_v48 = vshll.u32 %v4004_v47, 16 }
 0x1b4   : > { %v3421_v4 = vrot.slane %v2672_v27, 5  ;;  %v4155_v42 = vsel %vm11186_vm6, %v4150_v55, %v4154_v35  ;;  %v4159_v37 = vrot.slane %v4157_v3, 4 }
 0x1b5   : > { %9452 = vmatmul.msk.bf16.gmra.mxu0 %vm1613_vm7, %v3120_v0  ;;  %v2301_v13 = vpop.f32.mrf.mxu2  ;;  %v4431_v28 = vunpack.c.l.b16 %v4155_v42  ;;  %v3419_v55 = vsel %vm11322_vm14, %v9470_v9, %v3418_v63 }
 0x1b6   : > { %v2351_v31 = vadd.f32 %v2301_v13, %v12065_v5  ;;  %9581 = vmatmul.msk.bf16.gmra.mxu3 %vm1613_vm7, %v4457_v8  ;;  %v1963_v57 = vpop.f32.mrf.mxu1  ;;  %v2875_v5 = vshll.u32 %v2671_v53, 16  ;;  %v2868_v8 = vrot.slane %v2866_v2, 4  ;;  %v4170_v53 = vshrl.u32 %v4004_v47, 16  ;;  %v4005_v47 = vld [vmem:[#allocation2 + $0x5c] sm:$0x1] }
 0x1b7   : > { %v2881_v2 = vrot.slane %v2879_v41, 4  ;;  %v3422_v35 = vsel %vm11322_vm14, %v3420_v49, %v3421_v4  ;;  %v3495_v9 = vunpack.c.l.b16 %v3419_v55  ;;  %v2673_v49 = vld [vmem:[#allocation2 + $0x6c] sm:$0xf] }
 0x1b8   : > { %v12155_v15 = vadd.f32 %v12119_v39, %v2351_v31  ;;  %v4145_v39 = vsel %vm11186_vm6, %v4140_v16, %v12136_v62  ;;  %v12169_v13 = vrot.slane %v2875_v5, 5  ;;  %v3095_v31 = vunpack.c.l.b16 %v2854_v25  ;;  %v10441_v16 = vld [vmem:[#allocation2 + $0x3c] sm:$0xff] }
 0x1b9   : > { %v12159_v0 = vpop.f32.mrf.mxu3  ;;  %9486 = vmatmul.msk.bf16.gmra.mxu1 %vm1613_vm7, %v3519_v29  ;;  %v3096_v29 = vunpack.c.l.b16 %v2864_v12  ;;  %v2872_v23 = vor.u32 %v2871_v30, %v2868_v8  ;;  %v12176_v5 = vrot.slane %v4166_v48, 5  ;;  %v4172_v41 = vrot.slane %v4170_v53, 4 }
 0x1ba   : > { %14201 = vst [vmem:[#allocation32_spill] sm:$0xff] %v12155_v15  ;;  %v1740_v18 = vpop.f32.mrf.mxu0  ;;  %v4430_v15 = vunpack.c.l.b16 %v4145_v39  ;;  %v2882_v12 = vor.u32 %v2881_v2, %v12169_v13  ;;  %v3496_v3 = vunpack.c.l.b16 %v3422_v35  ;;  %v4176_v48 = vshll.u32 %v4005_v47, 16  ;;  %v2674_v2 = vld [vmem:[#allocation2 + $0x70] sm:$0xf]  ;;  %v4006_v35 = vld [vmem:[#allocation2 + $0x60] sm:$0xf] }
 0x1bb   : > { %v12165_v40 = vadd.f32 %v1960_v38, %v1740_v18  ;;  %v4162_v38 = vrot.slane %v4160_v32, 5  ;;  %v3121_v8 = vpack.c.b16 %v3096_v29, %v3095_v31  ;;  %v2873_v42 = vrot.slane %v2872_v23, 4  ;;  %v4007_v47 = vld [vmem:[#allocation2 + $0x64] sm:$0xf] }
 0x1bc   : > { %v4458_v63 = vpack.c.b16 %v4431_v28, %v4430_v15  ;;  %v2883_v53 = vrot.slane %v2882_v12, 4  ;;  %v2890_v31 = vshrl.u32 %v2673_v49, 16  ;;  %v2893_v29 = vshll.u32 %v2673_v49, 16 }
 0x1bd   : > { %v2303_v60 = vpop.f32.mrf.mxu2  ;;  %v4163_v4 = vor.u32 %v4162_v38, %v4159_v37  ;;  %v3520_v15 = vpack.c.b16 %v3496_v3, %v3495_v9  ;;  %v2878_v37 = vsel %vm11186_vm6, %v2873_v42, %v12169_v13  ;;  %v4178_v55 = vrot.slane %v4176_v48, 5 }
 0x1be   : > { %v2352_v62 = vadd.f32 %v2303_v60, %v12085_v11  ;;  %v1965_v18 = vpop.f32.mrf.mxu1  ;;  %v2885_v11 = vshll.u32 %v2672_v27, 16  ;;  %v2895_v9 = vrot.slane %v2893_v29, 5  ;;  %v4181_v42 = vshrl.u32 %v4006_v35, 16 }
 0x1c0   : > { %v12179_v25 = vadd.f32 %v12142_v54, %v2352_v62  ;;  %v4173_v54 = vor.u32 %v4172_v41, %v12176_v5  ;;  %v2887_v27 = vrot.slane %v2885_v11, 5  ;;  %v3425_v62 = vrot.slane %v2674_v2, 5 }
 0x1c1   : > { %v12182_v30 = vpop.f32.mrf.mxu3  ;;  %v2903_v11 = vshrl.u32 %v2674_v2, 16 }
 0x1c2   : > { %14202 = vst [vmem:[#allocation33_spill] sm:$0xff] %v12179_v25  ;;  %v1743_v39 = vpop.f32.mrf.mxu0  ;;  %9564 = vmatmul.msk.bf16.gmra.mxu2 %vm1613_vm7, %v10441_v16  ;;  %v3311_v16 = vld [vmem:[#allocation2 + $0x6c] sm:$0xe]  ;;  %v4174_v38 = vrot.slane %v4173_v54, 4  ;;  %v2888_v12 = vsel %vm11186_vm6, %v2883_v53, %v2887_v27  ;;  %v3427_v49 = vrot.slane %v3425_v62, 4  ;;  %v4184_v54 = vshll.u32 %v4006_v35, 16 }
 0x1c3   : > { %v12185_v32 = vadd.f32 %v1963_v57, %v1743_v39  ;;  %v4164_v57 = vrot.slane %v4163_v4, 4  ;;  %v2675_v39 = vld [vmem:[#allocation2 + $0x74] sm:$0x1]  ;;  %v9471_v3 = vrot.slane %v3311_v16, 9  ;;  %v4190_v27 = vshll.u32 %v4007_v47, 16 }
 0x1c4   : > { %v3428_v4 = vrot.slane %v2675_v39, 5  ;;  %v4179_v53 = vsel %vm11186_vm6, %v4174_v38, %v4178_v55  ;;  %v4183_v35 = vrot.slane %v4181_v42, 4 }
 0x1c5   : > { %9453 = vmatmul.msk.bf16.gmra.mxu0 %vm1613_vm7, %v3121_v8  ;;  %v2306_v60 = vpop.f32.mrf.mxu2  ;;  %v4433_v25 = vunpack.c.l.b16 %v4179_v53  ;;  %v3426_v38 = vsel %vm11322_vm14, %v9471_v3, %v3425_v62 }
 0x1c6   : > { %v2353_v28 = vadd.f32 %v2306_v60, %v12105_v22  ;;  %9582 = vmatmul.msk.bf16.gmra.mxu3 %vm1613_vm7, %v4458_v63  ;;  %v1968_v23 = vpop.f32.mrf.mxu1  ;;  %v2899_v22 = vshll.u32 %v2674_v2, 16  ;;  %v2892_v63 = vrot.slane %v2890_v31, 4  ;;  %v4194_v2 = vshrl.u32 %v4007_v47, 16  ;;  %v4008_v47 = vld [vmem:[#allocation2 + $0x68] sm:$0x1] }
 0x1c7   : > { %v2905_v31 = vrot.slane %v2903_v11, 4  ;;  %v3429_v55 = vsel %vm11322_vm14, %v3427_v49, %v3428_v4  ;;  %v3497_v3 = vunpack.c.l.b16 %v3426_v38  ;;  %v2676_v49 = vld [vmem:[#allocation2 + $0x78] sm:$0xf] }
 0x1c8   : > { %v12195_v41 = vadd.f32 %v12159_v0, %v2353_v28  ;;  %v4169_v0 = vsel %vm11186_vm6, %v4164_v57, %v12176_v5  ;;  %v12209_v60 = vrot.slane %v2899_v22, 5  ;;  %v3097_v28 = vunpack.c.l.b16 %v2878_v37  ;;  %v10442_v57 = vld [vmem:[#allocation2 + $0x48] sm:$0xff] }
 0x1c9   : > { %v12199_v8 = vpop.f32.mrf.mxu3  ;;  %9487 = vmatmul.msk.bf16.gmra.mxu1 %vm1613_vm7, %v3520_v15  ;;  %v3098_v15 = vunpack.c.l.b16 %v2888_v12  ;;  %v2896_v16 = vor.u32 %v2895_v9, %v2892_v63  ;;  %v12216_v22 = vrot.slane %v4190_v27, 5  ;;  %v4196_v11 = vrot.slane %v4194_v2, 4 }
 0x1ca   : > { %14203 = vst [vmem:[#allocation34_spill] sm:$0xff] %v12195_v41  ;;  %v1745_v13 = vpop.f32.mrf.mxu0  ;;  %v4432_v41 = vunpack.c.l.b16 %v4169_v0  ;;  %v2906_v12 = vor.u32 %v2905_v31, %v12209_v60  ;;  %v3498_v42 = vunpack.c.l.b16 %v3429_v55  ;;  %v4200_v27 = vshll.u32 %v4008_v47, 16  ;;  %v2677_v31 = vld [vmem:[#allocation2 + $0x7c] sm:$0xf]  ;;  %v4009_v55 = vld [vmem:[#allocation2 + $0x6c] sm:$0xf] }
 0x1cb   : > { %v12205_v48 = vadd.f32 %v1965_v18, %v1745_v13  ;;  %v4186_v18 = vrot.slane %v4184_v54, 5  ;;  %v3122_v63 = vpack.c.b16 %v3098_v15, %v3097_v28  ;;  %v2897_v53 = vrot.slane %v2896_v16, 4  ;;  %v4010_v47 = vld [vmem:[#allocation2 + $0x70] sm:$0xf] }
 0x1cc   : > { %v4459_v62 = vpack.c.b16 %v4433_v25, %v4432_v41  ;;  %v2907_v2 = vrot.slane %v2906_v12, 4  ;;  %v2914_v28 = vshrl.u32 %v2676_v49, 16  ;;  %v2917_v15 = vshll.u32 %v2676_v49, 16 }
 0x1cd   : > { %v2308_v29 = vpop.f32.mrf.mxu2  ;;  %v4187_v4 = vor.u32 %v4186_v18, %v4183_v35  ;;  %v3521_v41 = vpack.c.b16 %v3498_v42, %v3497_v3  ;;  %v2902_v35 = vsel %vm11186_vm6, %v2897_v53, %v12209_v60  ;;  %v4202_v38 = vrot.slane %v4200_v27, 5 }
 0x1ce   : > { %v2354_v5 = vadd.f32 %v2308_v29, %v12125_v59  ;;  %v1970_v13 = vpop.f32.mrf.mxu1  ;;  %v2909_v59 = vshll.u32 %v2675_v39, 16  ;;  %v2923_v12 = vshll.u32 %v2677_v31, 16  ;;  %v2919_v3 = vrot.slane %v2917_v15, 5 }
 0x1cf   : > { %v4205_v53 = vshrl.u32 %v4009_v55, 16 }
 0x1d0   : > { %v12219_v37 = vadd.f32 %v12182_v30, %v2354_v5  ;;  %v4197_v30 = vor.u32 %v4196_v11, %v12216_v22  ;;  %v2911_v39 = vrot.slane %v2909_v59, 5  ;;  %v3432_v5 = vrot.slane %v2677_v31, 5 }
 0x1d1   : > { %v12222_v9 = vpop.f32.mrf.mxu3  ;;  %v2927_v59 = vshrl.u32 %v2677_v31, 16  ;;  %v4218_v31 = vshrl.u32 %v4010_v47, 16 }
 0x1d2   : > { %14204 = vst [vmem:[#allocation35_spill] sm:$0xff] %v12219_v37  ;;  %v1748_v0 = vpop.f32.mrf.mxu0  ;;  %9565 = vmatmul.msk.bf16.gmra.mxu2 %vm1613_vm7, %v10442_v57  ;;  %v3312_v57 = vld [vmem:[#allocation2 + $0x78] sm:$0xe]  ;;  %v4198_v18 = vrot.slane %v4197_v30, 4  ;;  %v3434_v49 = vrot.slane %v3432_v5, 4  ;;  %v4208_v30 = vshll.u32 %v4009_v55, 16 }
 0x1d3   : > { %v12225_v54 = vadd.f32 %v1968_v23, %v1748_v0  ;;  %v4188_v23 = vrot.slane %v4187_v4, 4  ;;  %v2678_v0 = vld [vmem:[#allocation2 + $0x80] sm:$0x1]  ;;  %v9472_v42 = vrot.slane %v3312_v57, 9  ;;  %v4207_v55 = vrot.slane %v4205_v53, 4 }
 0x1d4   : > { %v3435_v4 = vrot.slane %v2678_v0, 5 }
 0x1d5   : > { %9454 = vmatmul.msk.bf16.gmra.mxu0 %vm1613_vm7, %v3122_v63  ;;  %v2311_v29 = vpop.f32.mrf.mxu2 }
 0x1d6   : > { %v2355_v25 = vadd.f32 %v2311_v29, %v12145_v51  ;;  %9583 = vmatmul.msk.bf16.gmra.mxu3 %vm1613_vm7, %v4459_v62  ;;  %v12231_v16 = vpop.f32.mrf.mxu1  ;;  %v2912_v51 = vsel %vm11186_vm6, %v2907_v2, %v2911_v39  ;;  %v2916_v62 = vrot.slane %v2914_v28, 4  ;;  %v4203_v2 = vsel %vm11186_vm6, %v4198_v18, %v4202_v38 }
 0x1d7   : > { %v4214_v39 = vshll.u32 %v4010_v47, 16  ;;  %v12251_v29 = vrot.slane %v2923_v12, 5  ;;  %v2929_v28 = vrot.slane %v2927_v59, 4  ;;  %v4435_v37 = vunpack.c.l.b16 %v4203_v2  ;;  %v4011_v47 = vld [vmem:[#allocation2 + $0x74] sm:$0x1] }
 0x1d8   : > { %v12237_v11 = vadd.f32 %v12199_v8, %v2355_v25  ;;  %v4193_v8 = vsel %vm11186_vm6, %v4188_v23, %v12216_v22  ;;  %v3099_v25 = vunpack.c.l.b16 %v2902_v35  ;;  %v2920_v57 = vor.u32 %v2919_v3, %v2916_v62  ;;  %v10443_v23 = vld [vmem:[#allocation2 + $0x54] sm:$0xff] }
 0x1d9   : > { %v12241_v63 = vpop.f32.mrf.mxu3  ;;  %9488 = vmatmul.msk.bf16.gmra.mxu1 %vm1613_vm7, %v3521_v41  ;;  %v3100_v41 = vunpack.c.l.b16 %v2912_v51  ;;  %v3433_v18 = vsel %vm11322_vm14, %v9472_v42, %v3432_v5  ;;  %v3436_v38 = vsel %vm11322_vm14, %v3434_v49, %v3435_v4  ;;  %v12260_v12 = vrot.slane %v4214_v39, 5  ;;  %v2679_v49 = vld [vmem:[#allocation2 + $0x84] sm:$0xf] }
 0x1da   : > { %14205 = vst [vmem:[#allocation36_spill] sm:$0xff] %v12237_v11  ;;  %v1750_v60 = vpop.f32.mrf.mxu0  ;;  %v4434_v11 = vunpack.c.l.b16 %v4193_v8  ;;  %v4220_v35 = vrot.slane %v4218_v31, 4  ;;  %v2933_v59 = vshll.u32 %v2678_v0, 16  ;;  %v3499_v42 = vunpack.c.l.b16 %v3433_v18  ;;  %v4012_v18 = vld [vmem:[#allocation2 + $0x78] sm:$0xf] }
 0x1db   : > { %v12247_v27 = vadd.f32 %v1970_v13, %v1750_v60  ;;  %v4210_v13 = vrot.slane %v4208_v30, 5  ;;  %v3123_v62 = vpack.c.b16 %v3100_v41, %v3099_v25  ;;  %v3500_v53 = vunpack.c.l.b16 %v3436_v38 }
 0x1dc   : > { %v4460_v5 = vpack.c.b16 %v4435_v37, %v4434_v11  ;;  %v2921_v2 = vrot.slane %v2920_v57, 4  ;;  %v4224_v39 = vshll.u32 %v4011_v47, 16  ;;  %v2935_v0 = vrot.slane %v2933_v59, 5  ;;  %v4013_v47 = vld [vmem:[#allocation2 + $0x7c] sm:$0xf] }
 0x1dd   : > { %v2313_v15 = vpop.f32.mrf.mxu2  ;;  %v4211_v4 = vor.u32 %v4210_v13, %v4207_v55  ;;  %v2938_v37 = vshrl.u32 %v2679_v49, 16  ;;  %v2941_v11 = vshll.u32 %v2679_v49, 16 }
 0x1de   : > { %v2356_v22 = vadd.f32 %v2313_v15, %v12165_v40  ;;  %v12254_v60 = vpop.f32.mrf.mxu1  ;;  %v2930_v40 = vor.u32 %v2929_v28, %v12251_v29  ;;  %v2680_v28 = vld [vmem:[#allocation2 + $0x88] sm:$0xf]  ;;  %v2926_v55 = vsel %vm11186_vm6, %v2921_v2, %v12251_v29  ;;  %v4232_v2 = vshll.u32 %v4012_v18, 16 }
 0x1df   : > { %v3439_v41 = vrot.slane %v2680_v28, 5  ;;  %v4212_v57 = vrot.slane %v4211_v4, 4  ;;  %v2951_v59 = vshrl.u32 %v2680_v28, 16 }
 0x1e0   : > { %v12263_v51 = vadd.f32 %v12222_v9, %v2356_v22  ;;  %v4221_v9 = vor.u32 %v4220_v35, %v12260_v12  ;;  %v2931_v31 = vrot.slane %v2930_v40, 4 }
 0x1e1   : > { %v12266_v3 = vpop.f32.mrf.mxu3  ;;  %v3441_v29 = vrot.slane %v3439_v41, 4 }
 0x1e2   : > { %v3191_v8 = vpop.f32.mrf.mxu0  ;;  %9566 = vmatmul.msk.bf16.gmra.mxu2 %vm1613_vm7, %v10443_v23  ;;  %v3313_v23 = vld [vmem:[#allocation2 + $0x84] sm:$0xe]  ;;  %v4222_v13 = vrot.slane %v4221_v9, 4  ;;  %v2936_v40 = vsel %vm11186_vm6, %v2931_v31, %v2935_v0  ;;  %v4238_v31 = vshll.u32 %v4013_v47, 16  ;;  %v4242_v0 = vshrl.u32 %v4013_v47, 16 }
 0x1e3   : > { %v3271_v30 = vadd.f32 %v3191_v8, %v11727_v33  ;;  %v3522_v33 = vpack.c.b16 %v3500_v53, %v3499_v42  ;;  %v2681_v8 = vld [vmem:[#allocation2 + $0x8c] sm:$0x1]  ;;  %v2943_v42 = vrot.slane %v2941_v11, 5  ;;  %v9473_v53 = vrot.slane %v3313_v23, 9 }
 0x1e4   : > { %v3442_v4 = vrot.slane %v2681_v8, 5 }
 0x1e5   : > { %v12272_v15 = vadd.f32 %v12231_v16, %v3271_v30  ;;  %9455 = vmatmul.msk.bf16.gmra.mxu0 %vm1613_vm7, %v3123_v62  ;;  %v2316_v25 = vpop.f32.mrf.mxu2  ;;  %v4226_v16 = vrot.slane %v4224_v39, 5  ;;  %v4229_v30 = vshrl.u32 %v4012_v18, 16  ;;  %v10444_v18 = vld [vmem:[#allocation2 + $0x60] sm:$0xff] }
 0x1e6   : > { %v2357_v22 = vadd.f32 %v2316_v25, %v12185_v32  ;;  %9584 = vmatmul.msk.bf16.gmra.mxu3 %vm1613_vm7, %v4460_v5  ;;  %v3594_v35 = vpop.f32.mrf.mxu1  ;;  %v2947_v32 = vshll.u32 %v2680_v28, 16  ;;  %v2940_v5 = vrot.slane %v2938_v37, 4  ;;  %v3101_v28 = vunpack.c.l.b16 %v2926_v55 }
 0x1e7   : > { %v4227_v39 = vsel %vm11186_vm6, %v4222_v13, %v4226_v16  ;;  %v2953_v37 = vrot.slane %v2951_v59, 4  ;;  %v3440_v13 = vsel %vm11322_vm14, %v9473_v53, %v3439_v41  ;;  %v3443_v55 = vsel %vm11322_vm14, %v3441_v29, %v3442_v4  ;;  %v2682_v4 = vld [vmem:[#allocation2 + $0x90] sm:$0xf] }
 0x1e8   : > { %v12281_v38 = vadd.f32 %v12241_v63, %v2357_v22  ;;  %v4217_v63 = vsel %vm11186_vm6, %v4212_v57, %v12260_v12  ;;  %v12294_v25 = vrot.slane %v2947_v32, 5  ;;  %v2944_v12 = vor.u32 %v2943_v42, %v2940_v5 }
 0x1e9   : > { %v12285_v62 = vpop.f32.mrf.mxu3  ;;  %9489 = vmatmul.msk.bf16.gmra.mxu1 %vm1613_vm7, %v3522_v33  ;;  %v3102_v33 = vunpack.c.l.b16 %v2936_v40  ;;  %v4436_v57 = vunpack.c.l.b16 %v4217_v63  ;;  %v12304_v16 = vrot.slane %v4238_v31, 5  ;;  %v2957_v59 = vshll.u32 %v2681_v8, 16 }
 0x1ea   : > { %14206 = vst [vmem:[#allocation37_spill] sm:$0xff] %v12281_v38  ;;  %v3193_v49 = vpop.f32.mrf.mxu0  ;;  %v4234_v38 = vrot.slane %v4232_v2, 5  ;;  %v2954_v40 = vor.u32 %v2953_v37, %v12294_v25  ;;  %v3501_v63 = vunpack.c.l.b16 %v3440_v13  ;;  %v3502_v29 = vunpack.c.l.b16 %v3443_v55 }
 0x1eb   : > { %v3272_v9 = vadd.f32 %v3193_v49, %v11751_v36  ;;  %v4437_v36 = vunpack.c.l.b16 %v4227_v39  ;;  %v4231_v49 = vrot.slane %v4229_v30, 4  ;;  %v3124_v47 = vpack.c.b16 %v3102_v33, %v3101_v28 }
 0x1ec   : > { %v2955_v8 = vrot.slane %v2954_v40, 4  ;;  %v2959_v31 = vrot.slane %v2957_v59, 5  ;;  %v2965_v33 = vshll.u32 %v2682_v4, 16  ;;  %v4016_v40 = vld [vmem:[#allocation2 + $0x88] sm:$0xf] }
 0x1ed   : > { %v12297_v11 = vadd.f32 %v12254_v60, %v3272_v9  ;;  %v2318_v22 = vpop.f32.mrf.mxu2  ;;  %v4244_v60 = vrot.slane %v4242_v0, 4  ;;  %v4461_v53 = vpack.c.b16 %v4437_v36, %v4436_v57  ;;  %v4235_v30 = vor.u32 %v4234_v38, %v4231_v49  ;;  %v2683_v0 = vld [vmem:[#allocation2 + $0x94] sm:$0xf]  ;;  %v4015_v49 = vld [vmem:[#allocation2 + $0x84] sm:$0xf] }
 0x1ee   : > { %v2358_v23 = vadd.f32 %v2318_v22, %v12205_v48  ;;  %v4014_v48 = vld [vmem:[#allocation2 + $0x80] sm:$0x1]  ;;  %v3596_v41 = vpop.f32.mrf.mxu1  ;;  %v2962_v22 = vshrl.u32 %v2682_v4, 16  ;;  %v3446_v57 = vrot.slane %v2683_v0, 5  ;;  %v2960_v55 = vsel %vm11186_vm6, %v2955_v8, %v2959_v31 }
 0x1ef   : > { %v4245_v9 = vor.u32 %v4244_v60, %v12304_v16  ;;  %v4248_v39 = vshll.u32 %v4014_v48, 16  ;;  %v4236_v38 = vrot.slane %v4235_v30, 4  ;;  %v2971_v60 = vshll.u32 %v2683_v0, 16  ;;  %v2684_v48 = vld [vmem:[#allocation2 + $0x98] sm:$0x1] }
 0x1f0   : > { %v12307_v32 = vadd.f32 %v12266_v3, %v2358_v23  ;;  %v2945_v3 = vrot.slane %v2944_v12, 4  ;;  %v3314_v12 = vld [vmem:[#allocation2 + $0x90] sm:$0xe]  ;;  %v4253_v4 = vshrl.u32 %v4015_v49, 16  ;;  %v4256_v30 = vshll.u32 %v4015_v49, 16 }
 0x1f1   : > { %v12310_v5 = vpop.f32.mrf.mxu3  ;;  %v4246_v36 = vrot.slane %v4245_v9, 4  ;;  %v4262_v9 = vshll.u32 %v4016_v40, 16 }
 0x1f2   : > { %v3196_v42 = vpop.f32.mrf.mxu0  ;;  %9567 = vmatmul.msk.bf16.gmra.mxu2 %vm1613_vm7, %v10444_v18  ;;  %v2950_v18 = vsel %vm11186_vm6, %v2945_v3, %v12294_v25  ;;  %v4255_v49 = vrot.slane %v4253_v4, 4 }
 0x1f3   : > { %v3273_v2 = vadd.f32 %v3196_v42, %v11776_v1  ;;  %v3523_v1 = vpack.c.b16 %v3502_v29, %v3501_v63  ;;  %v2967_v42 = vrot.slane %v2965_v33, 5  ;;  %v3448_v63 = vrot.slane %v3446_v57, 4 }
 0x1f4   : > { %v3449_v29 = vrot.slane %v2684_v48, 5  ;;  %v3103_v31 = vunpack.c.l.b16 %v2950_v18 }
 0x1f5   : > { %v12315_v28 = vadd.f32 %v3594_v35, %v3273_v2  ;;  %9456 = vmatmul.msk.bf16.gmra.mxu0 %vm1613_vm7, %v3124_v47  ;;  %v2321_v37 = vpop.f32.mrf.mxu2  ;;  %v4250_v35 = vrot.slane %v4248_v39, 5  ;;  %v2964_v47 = vrot.slane %v2962_v22, 4  ;;  %v4266_v39 = vshrl.u32 %v4016_v40, 16 }
 0x1f6   : > { %v2359_v23 = vadd.f32 %v2321_v37, %v12225_v54  ;;  %9585 = vmatmul.msk.bf16.gmra.mxu3 %vm1613_vm7, %v4461_v53  ;;  %v2975_v54 = vshrl.u32 %v2683_v0, 16  ;;  %v9474_v53 = vrot.slane %v3314_v12, 9  ;;  %v3599_v8 = vpop.f32.mrf.mxu1  ;;  %v12337_v0 = vrot.slane %v2971_v60, 5  ;;  %v10445_v12 = vld [vmem:[#allocation2 + $0x6c] sm:$0xff] }
 0x1f7   : > { %v4251_v3 = vsel %vm11186_vm6, %v4246_v36, %v4250_v35  ;;  %v3450_v18 = vsel %vm11322_vm14, %v3448_v63, %v3449_v29  ;;  %v12346_v35 = vrot.slane %v4262_v9, 5  ;;  %v2686_v29 = vld [vmem:[#allocation2 + $0xa0] sm:$0xf] }
 0x1f8   : > { %v12324_v13 = vadd.f32 %v12285_v62, %v2359_v23  ;;  %v4241_v62 = vsel %vm11186_vm6, %v4236_v38, %v12304_v16  ;;  %v2977_v37 = vrot.slane %v2975_v54, 4  ;;  %v3104_v23 = vunpack.c.l.b16 %v2960_v55 }
 0x1f9   : > { %v12328_v59 = vpop.f32.mrf.mxu3  ;;  %9490 = vmatmul.msk.bf16.gmra.mxu1 %vm1613_vm7, %v3523_v1  ;;  %v2968_v16 = vor.u32 %v2967_v42, %v2964_v47  ;;  %v4438_v1 = vunpack.c.l.b16 %v4241_v62  ;;  %v3447_v36 = vsel %vm11322_vm14, %v9474_v53, %v3446_v57  ;;  %v2981_v54 = vshll.u32 %v2684_v48, 16  ;;  %v2685_v42 = vld [vmem:[#allocation2 + $0x9c] sm:$0xf] }
 0x1fa   : > { %v3198_v25 = vpop.f32.mrf.mxu0  ;;  %v2978_v55 = vor.u32 %v2977_v37, %v12337_v0  ;;  %v3125_v40 = vpack.c.b16 %v3104_v23, %v3103_v31  ;;  %v3503_v53 = vunpack.c.l.b16 %v3447_v36  ;;  %v3504_v63 = vunpack.c.l.b16 %v3450_v18  ;;  %v4018_v18 = vld [vmem:[#allocation2 + $0x90] sm:$0xf] }
 0x1fb   : > { %v3274_v2 = vadd.f32 %v3198_v25, %v11792_v46  ;;  %v4439_v46 = vunpack.c.l.b16 %v4251_v3  ;;  %v4258_v25 = vrot.slane %v4256_v30, 5  ;;  %v2983_v9 = vrot.slane %v2981_v54, 5 }
 0x1fc   : > { %v2979_v48 = vrot.slane %v2978_v55, 4  ;;  %v2989_v31 = vshll.u32 %v2685_v42, 16  ;;  %v2995_v23 = vshll.u32 %v2686_v29, 16 }
 0x1fd   : > { %v12339_v22 = vadd.f32 %v3596_v41, %v3274_v2  ;;  %v2323_v33 = vpop.f32.mrf.mxu2  ;;  %v4268_v41 = vrot.slane %v4266_v39, 4  ;;  %v4462_v57 = vpack.c.b16 %v4439_v46, %v4438_v1  ;;  %v4259_v4 = vor.u32 %v4258_v25, %v4255_v49  ;;  %v3315_v49 = vld [vmem:[#allocation2 + $0x9c] sm:$0xe] }
 0x1fe   : > { %v2360_v38 = vadd.f32 %v2323_v33, %v12247_v27  ;;  %v4017_v27 = vld [vmem:[#allocation2 + $0x8c] sm:$0x1]  ;;  %v2986_v39 = vshrl.u32 %v2685_v42, 16  ;;  %v2999_v1 = vshrl.u32 %v2686_v29, 16  ;;  %v3601_v46 = vpop.f32.mrf.mxu1  ;;  %v2984_v55 = vsel %vm11186_vm6, %v2979_v48, %v2983_v9  ;;  %v2687_v42 = vld [vmem:[#allocation2 + $0xa4] sm:$0x1] }
 0x1ff   : > { %v4269_v2 = vor.u32 %v4268_v41, %v12346_v35  ;;  %v4272_v3 = vshll.u32 %v4017_v27, 16  ;;  %v2991_v54 = vrot.slane %v2989_v31, 5  ;;  %v4019_v27 = vld [vmem:[#allocation2 + $0x94] sm:$0xf] }
 0x200   : > { %v12349_v60 = vadd.f32 %v12310_v5, %v2360_v38  ;;  %v2969_v5 = vrot.slane %v2968_v16, 4  ;;  %v3453_v38 = vrot.slane %v2686_v29, 5  ;;  %v4260_v16 = vrot.slane %v4259_v4, 4 }
 0x201   : > { %v12352_v47 = vpop.f32.mrf.mxu3  ;;  %v4274_v36 = vrot.slane %v4272_v3, 5  ;;  %v3456_v29 = vrot.slane %v2687_v42, 5  ;;  %v4277_v4 = vshrl.u32 %v4018_v18, 16  ;;  %v4286_v3 = vshll.u32 %v4019_v27, 16 }
 0x202   : > { %v3201_v62 = vpop.f32.mrf.mxu0  ;;  %9568 = vmatmul.msk.bf16.gmra.mxu2 %vm1613_vm7, %v10445_v12  ;;  %v2974_v25 = vsel %vm11186_vm6, %v2969_v5, %v12337_v0  ;;  %v3455_v0 = vrot.slane %v3453_v38, 4  ;;  %v4290_v48 = vshrl.u32 %v4019_v27, 16 }
 0x203   : > { %v3275_v30 = vadd.f32 %v3201_v62, %v11808_v6  ;;  %v3524_v6 = vpack.c.b16 %v3504_v63, %v3503_v53  ;;  %v12372_v62 = vrot.slane %v2995_v23, 5  ;;  %v9475_v53 = vrot.slane %v3315_v49, 9 }
 0x204   : > { %v3105_v9 = vunpack.c.l.b16 %v2974_v25  ;;  %v3457_v25 = vsel %vm11322_vm14, %v3455_v0, %v3456_v29  ;;  %v2688_v0 = vld [vmem:[#allocation2 + $0xa8] sm:$0xf] }
 0x205   : > { %v12357_v37 = vadd.f32 %v3599_v8, %v3275_v30  ;;  %9457 = vmatmul.msk.bf16.gmra.mxu0 %vm1613_vm7, %v3125_v40  ;;  %v2326_v33 = vpop.f32.mrf.mxu2  ;;  %v4270_v8 = vrot.slane %v4269_v2, 4  ;;  %v4280_v30 = vshll.u32 %v4018_v18, 16 }
 0x206   : > { %v2361_v12 = vadd.f32 %v2326_v33, %v11672_v14  ;;  %9586 = vmatmul.msk.bf16.gmra.mxu3 %vm1613_vm7, %v4462_v57  ;;  %v2988_v14 = vrot.slane %v2986_v39, 4  ;;  %v3001_v57 = vrot.slane %v2999_v1, 4  ;;  %v3106_v39 = vunpack.c.l.b16 %v2984_v55 }
 0x207   : > { %v4275_v2 = vsel %vm11186_vm6, %v4270_v8, %v4274_v36  ;;  %v4282_v18 = vrot.slane %v4280_v30, 5  ;;  %v3454_v8 = vsel %vm11322_vm14, %v9475_v53, %v3453_v38  ;;  %v12389_v36 = vrot.slane %v4286_v3, 5 }
 0x208   : > { %v12366_v41 = vadd.f32 %v12328_v59, %v2361_v12  ;;  %v4265_v59 = vsel %vm11186_vm6, %v4260_v16, %v12346_v35  ;;  %v2992_v31 = vor.u32 %v2991_v54, %v2988_v14  ;;  %v3002_v1 = vor.u32 %v3001_v57, %v12372_v62  ;;  %v10446_v16 = vld [vmem:[#allocation2 + $0x78] sm:$0xff]  ;;  %v3604_v14 = vpop.f32.mrf.mxu1 }
 0x209   : > { %v12370_v40 = vpop.f32.mrf.mxu3  ;;  %9491 = vmatmul.msk.bf16.gmra.mxu1 %vm1613_vm7, %v3524_v6  ;;  %v3005_v12 = vshll.u32 %v2687_v42, 16  ;;  %v4440_v35 = vunpack.c.l.b16 %v4265_v59  ;;  %v4441_v49 = vunpack.c.l.b16 %v4275_v2  ;;  %v4020_v54 = vld [vmem:[#allocation2 + $0x98] sm:$0x1]  ;;  %v3126_v27 = vpack.c.b16 %v3106_v39, %v3105_v9  ;;  %v2689_v9 = vld [vmem:[#allocation2 + $0xac] sm:$0xf] }
 0x20a   : > { %v3203_v63 = vpop.f32.mrf.mxu0  ;;  %v2993_v42 = vrot.slane %v2992_v31, 4  ;;  %v3505_v53 = vunpack.c.l.b16 %v3454_v8  ;;  %v3506_v59 = vunpack.c.l.b16 %v3457_v25  ;;  %v3003_v30 = vrot.slane %v3002_v1, 4  ;;  %v3316_v31 = vld [vmem:[#allocation2 + $0xa8] sm:$0xe] }
 0x20b   : > { %v3276_v5 = vadd.f32 %v3203_v63, %v11835_v50  ;;  %v4279_v50 = vrot.slane %v4277_v4, 4  ;;  %v3007_v57 = vrot.slane %v3005_v12, 5  ;;  %v4463_v38 = vpack.c.b16 %v4441_v49, %v4440_v35 }
 0x20c   : > { %v3010_v39 = vshrl.u32 %v2688_v0, 16  ;;  %v3013_v1 = vshll.u32 %v2688_v0, 16  ;;  %v3460_v49 = vrot.slane %v2689_v9, 5  ;;  %v3023_v8 = vshrl.u32 %v2689_v9, 16 }
 0x20d   : > { %v12381_v33 = vadd.f32 %v3601_v46, %v3276_v5  ;;  %v2328_v23 = vpop.f32.mrf.mxu2  ;;  %v4292_v46 = vrot.slane %v4290_v48, 4  ;;  %v4283_v29 = vor.u32 %v4282_v18, %v4279_v50  ;;  %v4296_v5 = vshll.u32 %v4020_v54, 16  ;;  %v4021_v50 = vld [vmem:[#allocation2 + $0x9c] sm:$0xf] }
 0x20e   : > { %v2362_v6 = vadd.f32 %v2328_v23, %v11698_v20  ;;  %v2998_v48 = vsel %vm11186_vm6, %v2993_v42, %v12372_v62  ;;  %v3008_v35 = vsel %vm11186_vm6, %v3003_v30, %v3007_v57  ;;  %v3019_v62 = vshll.u32 %v2689_v9, 16  ;;  %v2690_v57 = vld [vmem:[#allocation2 + $0xb0] sm:$0x1] }
 0x20f   : > { %v4284_v12 = vrot.slane %v4283_v29, 4  ;;  %v9476_v25 = vrot.slane %v3316_v31, 9  ;;  %v4301_v54 = vshrl.u32 %v4021_v50, 16  ;;  %v3462_v30 = vrot.slane %v3460_v49, 4 }
 0x210   : > { %v12392_v55 = vadd.f32 %v12352_v47, %v2362_v6  ;;  %v4293_v47 = vor.u32 %v4292_v46, %v12389_v36  ;;  %v12412_v46 = vld [vmem:[#allocation2 + $0xa0] sm:$0xf] }
 0x211   : > { %v12394_v20 = vpop.f32.mrf.mxu3  ;;  %v3461_v9 = vsel %vm11322_vm14, %v9476_v25, %v3460_v49  ;;  %v960_v49 = vrot.slane %v11909_v34, 4  ;;  %v1124_v34 = vld [vmem:[#allocation2 + $0xc8] sm:$0x1] }
 0x212   : > { %v3206_v63 = vpop.f32.mrf.mxu0  ;;  %9569 = vmatmul.msk.bf16.gmra.mxu2 %vm1613_vm7, %v10446_v16  ;;  %v4294_v6 = vrot.slane %v4293_v47, 4  ;;  %v4298_v16 = vrot.slane %v4296_v5, 5  ;;  %v3463_v47 = vrot.slane %v2690_v57, 5  ;;  %v3108_v5 = vunpack.c.l.b16 %v3008_v35 }
 0x213   : > { %v3277_v4 = vadd.f32 %v3206_v63, %v11861_v43  ;;  %v3525_v43 = vpack.c.b16 %v3506_v59, %v3505_v53  ;;  %v3606_v63 = vpop.f32.mrf.mxu1  ;;  %v4310_v53 = vshll.u32 %v12412_v46, 16  ;;  %v4314_v59 = vshrl.u32 %v12412_v46, 16 }
 0x215   : > { %v12399_v2 = vadd.f32 %v3604_v14, %v3277_v4  ;;  %9458 = vmatmul.msk.bf16.gmra.mxu0 %vm1613_vm7, %v3126_v27  ;;  %v3876_v3 = vpop.f32.mrf.mxu2  ;;  %v3012_v14 = vrot.slane %v3010_v39, 4  ;;  %v4304_v27 = vshll.u32 %v4021_v50, 16  ;;  %v4299_v4 = vsel %vm11186_vm6, %v4294_v6, %v4298_v16 }
 0x216   : > { %v3956_v23 = vadd.f32 %v3876_v3, %v12272_v15  ;;  %9587 = vmatmul.msk.bf16.gmra.mxu3 %vm1613_vm7, %v4463_v38  ;;  %v3107_v15 = vunpack.c.l.b16 %v2998_v48  ;;  %v3015_v38 = vrot.slane %v3013_v1, 5  ;;  %v12423_v3 = vrot.slane %v3019_v62, 5  ;;  %v10447_v1 = vld [vmem:[#allocation2 + $0x84] sm:$0xff] }
 0x217   : > { %v3025_v48 = vrot.slane %v3023_v8, 4  ;;  %v12430_v6 = vrot.slane %v4310_v53, 5  ;;  %v4316_v16 = vrot.slane %v4314_v59, 4  ;;  %v3029_v50 = vshll.u32 %v2690_v57, 16  ;;  %v12434_v8 = vld [vmem:[#allocation2 + $0xa4] sm:$0x1] }
 0x218   : > { %v12410_v18 = vadd.f32 %v12370_v40, %v3956_v23  ;;  %v4289_v40 = vsel %vm11186_vm6, %v4284_v12, %v12389_v36  ;;  %v4303_v23 = vrot.slane %v4301_v54, 4  ;;  %v4443_v12 = vunpack.c.l.b16 %v4299_v4 }
 0x219   : > { %9492 = vmatmul.msk.bf16.gmra.mxu1 %vm1613_vm7, %v3525_v43  ;;  %v4535_v29 = vpop.f32.mrf.mxu3  ;;  %v4442_v31 = vunpack.c.l.b16 %v4289_v40  ;;  %v4306_v43 = vrot.slane %v4304_v27, 5  ;;  %v3016_v35 = vor.u32 %v3015_v38, %v3012_v14  ;;  %v3464_v62 = vsel %vm11322_vm14, %v3462_v30, %v3463_v47  ;;  %v2692_v38 = vld [vmem:[#allocation2 + $0xb8] sm:$0xf] }
 0x21a   : > { %v3208_v42 = vpop.f32.mrf.mxu0  ;;  %v3026_v54 = vor.u32 %v3025_v48, %v12423_v3  ;;  %v3507_v27 = vunpack.c.l.b16 %v3461_v9  ;;  %v3508_v57 = vunpack.c.l.b16 %v3464_v62  ;;  %v4317_v53 = vor.u32 %v4316_v16, %v12430_v6 }
 0x21b   : > { %v3278_v0 = vadd.f32 %v3208_v42, %v11883_v26  ;;  %v2691_v42 = vld [vmem:[#allocation2 + $0xb4] sm:$0xf]  ;;  %v4464_v14 = vpack.c.b16 %v4443_v12, %v4442_v31  ;;  %v4320_v59 = vshll.u32 %v12434_v8, 16  ;;  %v3031_v4 = vrot.slane %v3029_v50, 5 }
 0x21c   : > { %v3034_v30 = vshrl.u32 %v2691_v42, 16  ;;  %v3037_v47 = vshll.u32 %v2691_v42, 16  ;;  %v3317_v12 = vld [vmem:[#allocation2 + $0xb4] sm:$0xe]  ;;  %v3047_v16 = vshrl.u32 %v2692_v38, 16 }
 0x21d   : > { %v12427_v36 = vadd.f32 %v3606_v63, %v3278_v0  ;;  %v3878_v39 = vpop.f32.mrf.mxu2  ;;  %v4307_v63 = vor.u32 %v4306_v43, %v4303_v23  ;;  %v3017_v0 = vrot.slane %v3016_v35, 4  ;;  %v3467_v23 = vrot.slane %v2692_v38, 5  ;;  %v4024_v35 = vld [vmem:[#allocation2 + $0xa8] sm:$0xf] }
 0x21e   : > { %v3957_v26 = vadd.f32 %v3878_v39, %v12297_v11  ;;  %v3127_v11 = vpack.c.b16 %v3108_v5, %v3107_v15  ;;  %v3027_v15 = vrot.slane %v3026_v54, 4  ;;  %v1125_v5 = vsel %vm11348_vm3, %v960_v49, %v1124_v34 }
 0x21f   : > { %v3043_v39 = vshll.u32 %v2692_v38, 16  ;;  %v4308_v31 = vrot.slane %v4307_v63, 4  ;;  %1126 = vst [vmem:[#allocation2 + $0xc8] sm:$0x1] %v1125_v5  ;;  %v3022_v24 = vsel %vm11186_vm6, %v3017_v0, %v12423_v3  ;;  %v3036_v49 = vrot.slane %v3034_v30, 4 }
 0x220   : > { %v12438_v25 = vadd.f32 %v12394_v20, %v3957_v26  ;;  %v4318_v26 = vrot.slane %v4317_v53, 4  ;;  %v3032_v62 = vsel %vm11186_vm6, %v3027_v15, %v3031_v4  ;;  %v3039_v54 = vrot.slane %v3037_v47, 5 }
 0x221   : > { %v4537_v9 = vpop.f32.mrf.mxu3  ;;  %v4313_v42 = vsel %vm11186_vm6, %v4308_v31, %v12430_v6  ;;  %v9477_v63 = vrot.slane %v3317_v12, 9  ;;  %v3469_v3 = vrot.slane %v3467_v23, 4  ;;  %v4328_v38 = vshll.u32 %v4024_v35, 16  ;;  %v10448_v31 = vld [vmem:[#allocation2 + $0x90] sm:$0xff] }
 0x222   : > { %v3211_v40 = vpop.f32.mrf.mxu0  ;;  %9570 = vmatmul.msk.bf16.gmra.mxu2 %vm1613_vm7, %v10447_v1  ;;  %v4322_v1 = vrot.slane %v4320_v59, 5  ;;  %v3049_v59 = vrot.slane %v3047_v16, 4  ;;  %v3109_v6 = vunpack.c.l.b16 %v3022_v24  ;;  %v3110_v4 = vunpack.c.l.b16 %v3032_v62  ;;  %v12480_v24 = vld [vmem:[#allocation2 + $0xb0] sm:$0x1] }
 0x223   : > { %v12445_v20 = vadd.f32 %v3211_v40, %v11912_v19  ;;  %v3526_v19 = vpack.c.b16 %v3508_v57, %v3507_v27  ;;  %v12461_v27 = vrot.slane %v3043_v39, 5  ;;  %v4325_v57 = vshrl.u32 %v4024_v35, 16 }
 0x224   : > { %v3040_v30 = vor.u32 %v3039_v54, %v3036_v49  ;;  %v4444_v47 = vunpack.c.l.b16 %v4313_v42  ;;  %v3128_v49 = vpack.c.b16 %v3110_v4, %v3109_v6 }
 0x225   : > { %9459 = vmatmul.msk.bf16.gmra.mxu0 %vm1613_vm7, %v3127_v11  ;;  %v3881_v48 = vpop.f32.mrf.mxu2  ;;  %v2693_v11 = vld [vmem:[#allocation2 + $0xbc] sm:$0x1] }
 0x226   : > { %v3958_v43 = vadd.f32 %v3881_v48, %v12315_v28  ;;  %9588 = vmatmul.msk.bf16.gmra.mxu3 %vm1613_vm7, %v4464_v14  ;;  %v12459_v28 = vld [vmem:[#allocation2 + $0xac] sm:$0xf]  ;;  %v3470_v14 = vrot.slane %v2693_v11, 5  ;;  %v3468_v48 = vsel %vm11322_vm14, %v9477_v63, %v3467_v23  ;;  %v3053_v12 = vshll.u32 %v2693_v11, 16 }
 0x227   : > { %v4334_v34 = vshll.u32 %v12459_v28, 16  ;;  %v4338_v0 = vshrl.u32 %v12459_v28, 16  ;;  %v3041_v23 = vrot.slane %v3040_v30, 4  ;;  %v3509_v54 = vunpack.c.l.b16 %v3468_v48  ;;  %v3318_v30 = vld [vmem:[#allocation2 + $0xc0] sm:$0xe] }
 0x228   : > { %v12455_v50 = vadd.f32 %v4535_v29, %v3958_v43  ;;  %v4323_v29 = vsel %vm11186_vm6, %v4318_v26, %v4322_v1  ;;  %v4327_v43 = vrot.slane %v4325_v57, 4  ;;  %v3050_v1 = vor.u32 %v3049_v59, %v12461_v27  ;;  %v2694_v57 = vld [vmem:[#allocation2 + $0xc0] sm:$0xf] }
 0x229   : > { %9493 = vmatmul.msk.bf16.gmra.mxu1 %vm1613_vm7, %v3526_v19  ;;  %v4445_v5 = vunpack.c.l.b16 %v4323_v29  ;;  %v4330_v19 = vrot.slane %v4328_v38, 5  ;;  %v4540_v26 = vpop.f32.mrf.mxu3  ;;  %v4336_v16 = vrot.slane %v4334_v34, 5  ;;  %v4340_v35 = vrot.slane %v4338_v0, 4  ;;  %v2695_v0 = vld [vmem:[#allocation2 + $0xc4] sm:$0xf] }
 0x22a   : > { %v3213_v40 = vpop.f32.mrf.mxu0  ;;  %v3051_v11 = vrot.slane %v3050_v1, 4  ;;  %v3046_v59 = vsel %vm11186_vm6, %v3041_v23, %v12461_v27  ;;  %v3058_v4 = vshrl.u32 %v2694_v57, 16  ;;  %v3474_v48 = vrot.slane %v2695_v0, 5 }
 0x22b   : > { %v12470_v53 = vadd.f32 %v3213_v40, %v11936_v52  ;;  %v3471_v52 = vsel %vm11322_vm14, %v3469_v3, %v3470_v14  ;;  %v4465_v63 = vpack.c.b16 %v4445_v5, %v4444_v47  ;;  %v4331_v3 = vor.u32 %v4330_v19, %v4327_v43 }
 0x22c   : > { %v4344_v40 = vshll.u32 %v12480_v24, 16  ;;  %v3055_v14 = vrot.slane %v3053_v12, 5  ;;  %v4341_v38 = vor.u32 %v4340_v35, %v4336_v16  ;;  %v3061_v27 = vshll.u32 %v2694_v57, 16 }
 0x22d   : > { %v3883_v15 = vpop.f32.mrf.mxu2  ;;  %v3067_v43 = vshll.u32 %v2695_v0, 16  ;;  %v3071_v19 = vshrl.u32 %v2695_v0, 16  ;;  %v3111_v1 = vunpack.c.l.b16 %v3046_v59  ;;  %v9478_v12 = vrot.slane %v3318_v30, 9 }
 0x22e   : > { %v3959_v39 = vadd.f32 %v3883_v15, %v12339_v22  ;;  %v3510_v22 = vunpack.c.l.b16 %v3471_v52  ;;  %v4346_v15 = vrot.slane %v4344_v40, 5  ;;  %v3056_v47 = vsel %vm11186_vm6, %v3051_v11, %v3055_v14 }
 0x22f   : > { %v4342_v5 = vrot.slane %v4341_v38, 4  ;;  %v3476_v11 = vrot.slane %v3474_v48, 4  ;;  %v3060_v57 = vrot.slane %v3058_v4, 4  ;;  %v3063_v38 = vrot.slane %v3061_v27, 5  ;;  %v12516_v4 = vld [vmem:[#allocation2 + $0xbc] sm:$0x1] }
 0x230   : > { %v12482_v62 = vadd.f32 %v4537_v9, %v3959_v39  ;;  %v3527_v34 = vpack.c.b16 %v3510_v22, %v3509_v54  ;;  %v4027_v39 = vld [vmem:[#allocation2 + $0xb4] sm:$0xf]  ;;  %v3112_v54 = vunpack.c.l.b16 %v3056_v47  ;;  %v2696_v22 = vld [vmem:[#allocation2 + $0xc8] sm:$0x1]  ;;  %v3073_v59 = vrot.slane %v3071_v19, 4 }
 0x231   : > { %v4349_v35 = vshrl.u32 %v4027_v39, 16  ;;  %v4347_v40 = vsel %vm11186_vm6, %v4342_v5, %v4346_v15  ;;  %v3477_v14 = vrot.slane %v2696_v22, 5 }
 0x232   : > { %v3216_v42 = vpop.f32.mrf.mxu0  ;;  %9571 = vmatmul.msk.bf16.gmra.mxu2 %vm1613_vm7, %v10448_v31  ;;  %v12497_v31 = vld [vmem:[#allocation2 + $0xb8] sm:$0xf]  ;;  %v4447_v47 = vunpack.c.l.b16 %v4347_v40  ;;  %v3129_v27 = vpack.c.b16 %v3112_v54, %v3111_v1 }
 0x233   : > { %v12487_v29 = vadd.f32 %v3216_v42, %v11953_v56  ;;  %v4332_v56 = vrot.slane %v4331_v3, 4  ;;  %v3478_v15 = vsel %vm11322_vm14, %v3476_v11, %v3477_v14 }
 0x235   : > { %9460 = vmatmul.msk.bf16.gmra.mxu0 %vm1613_vm7, %v3128_v49  ;;  %v3886_v9 = vpop.f32.mrf.mxu2  ;;  %v4352_v49 = vshll.u32 %v4027_v39, 16  ;;  %v4337_v42 = vsel %vm11186_vm6, %v4332_v56, %v4336_v16  ;;  %v3475_v16 = vsel %vm11322_vm14, %v9478_v12, %v3474_v48 }
 0x236   : > { %v3960_v6 = vadd.f32 %v3886_v9, %v12357_v37  ;;  %9589 = vmatmul.msk.bf16.gmra.mxu3 %vm1613_vm7, %v4465_v63  ;;  %v4542_v37 = vpop.f32.mrf.mxu3  ;;  %v4358_v63 = vshll.u32 %v12497_v31, 16  ;;  %v3069_v9 = vrot.slane %v3067_v43, 5  ;;  %v4446_v0 = vunpack.c.l.b16 %v4337_v42 }
 0x237   : > { %v4354_v56 = vrot.slane %v4352_v49, 5  ;;  %v3064_v43 = vor.u32 %v3063_v38, %v3060_v57  ;;  %v3077_v42 = vshll.u32 %v2696_v22, 16  ;;  %v3511_v48 = vunpack.c.l.b16 %v3475_v16  ;;  %v12528_v16 = vld [vmem:[#allocation2 + $0xc4] sm:$0xf] }
 0x238   : > { %v12499_v52 = vadd.f32 %v4540_v26, %v3960_v6  ;;  %v4362_v26 = vshrl.u32 %v12497_v31, 16  ;;  %v4351_v6 = vrot.slane %v4349_v35, 4  ;;  %v4360_v39 = vrot.slane %v4358_v63, 5 }
 0x239   : > { %9494 = vmatmul.msk.bf16.gmra.mxu1 %vm1613_vm7, %v3527_v34  ;;  %v3074_v19 = vor.u32 %v3073_v59, %v3069_v9  ;;  %v3512_v49 = vunpack.c.l.b16 %v3478_v15  ;;  %v3065_v1 = vrot.slane %v3064_v43, 4  ;;  %v3079_v22 = vrot.slane %v3077_v42, 5 }
 0x23a   : > { %v3218_v23 = vpop.f32.mrf.mxu0  ;;  %v4355_v12 = vor.u32 %v4354_v56, %v4351_v6  ;;  %v4382_v15 = vshll.u32 %v12528_v16, 16 }
 0x23b   : > { %v12507_v3 = vadd.f32 %v3218_v23, %v11975_v45  ;;  %v10449_v45 = vld [vmem:[#allocation2 + $0x9c] sm:$0xff]  ;;  %v4364_v23 = vrot.slane %v4362_v26, 4  ;;  %v4368_v26 = vshll.u32 %v12516_v4, 16  ;;  %v3075_v54 = vrot.slane %v3074_v19, 4 }
 0x23c   : > { %v4356_v14 = vrot.slane %v4355_v12, 4  ;;  %v3528_v38 = vpack.c.b16 %v3512_v49, %v3511_v48  ;;  %v3070_v6 = vsel %vm11186_vm6, %v3065_v1, %v3069_v9  ;;  %v10450_v49 = vld [vmem:[#allocation2 + $0xa8] sm:$0xff] }
 0x23d   : > { %v3888_v34 = vpop.f32.mrf.mxu2  ;;  %v4365_v63 = vor.u32 %v4364_v23, %v4360_v39  ;;  %v3080_v56 = vsel %vm11186_vm6, %v3075_v54, %v3079_v22  ;;  %v3113_v43 = vunpack.c.l.b16 %v3070_v6 }
 0x23e   : > { %v3961_v30 = vadd.f32 %v3888_v34, %v12381_v33  ;;  %v4466_v33 = vpack.c.b16 %v4447_v47, %v4446_v0  ;;  %v4545_v11 = vpop.f32.mrf.mxu3  ;;  %v4370_v34 = vrot.slane %v4368_v26, 5  ;;  %v4030_v0 = vld [vmem:[#allocation2 + $0xc0] sm:$0xf]  ;;  %v3114_v48 = vunpack.c.l.b16 %v3080_v56 }
 0x23f   : > { %v4366_v59 = vrot.slane %v4365_v63, 4  ;;  %v4376_v23 = vshll.u32 %v4030_v0, 16  ;;  %v4384_v26 = vrot.slane %v4382_v15, 5  ;;  %v4033_v15 = vld [vmem:[#allocation2 + $0xcc] sm:$0xf] }
 0x240   : > { %v12518_v5 = vadd.f32 %v4542_v37, %v3961_v30  ;;  %v4361_v30 = vsel %vm11186_vm6, %v4356_v14, %v4360_v39  ;;  %v3130_v54 = vpack.c.b16 %v3114_v48, %v3113_v43 }
 0x241   : > { %v4371_v47 = vsel %vm11186_vm6, %v4366_v59, %v4370_v34  ;;  %v4448_v39 = vunpack.c.l.b16 %v4361_v30  ;;  %v4378_v63 = vrot.slane %v4376_v23, 5  ;;  %v10700_v30 = vld [vmem:[#allocation2 + $0x20] sm:$0x1] }
 0x242   : > { %v3221_v35 = vpop.f32.mrf.mxu0  ;;  %9572 = vmatmul.msk.bf16.gmra.mxu2 %vm1613_vm7, %v10449_v45  ;;  %v4449_v12 = vunpack.c.l.b16 %v4371_v47 }
 0x243   : > { %v12523_v40 = vadd.f32 %v3221_v35, %v11995_v58 }
 0x245   : > { %9461 = vmatmul.msk.bf16.gmra.mxu0 %vm1613_vm7, %v3129_v27  ;;  %v3891_v37 = vpop.f32.mrf.mxu2  ;;  %v4386_v27 = vshrl.u32 %v12528_v16, 16 }
 0x246   : > { %v3962_v57 = vadd.f32 %v3891_v37, %v12399_v2  ;;  %9590 = vmatmul.msk.bf16.gmra.mxu3 %vm1613_vm7, %v4466_v33  ;;  %v4373_v2 = vshrl.u32 %v4030_v0, 16  ;;  %v4547_v42 = vpop.f32.mrf.mxu3  ;;  %v12547_v37 = vld [vmem:[#allocation2 + $0xc8] sm:$0x1] }
 0x248   : > { %v12530_v58 = vadd.f32 %v4545_v11, %v3962_v57  ;;  %v4375_v35 = vrot.slane %v4373_v2, 4  ;;  %v4388_v11 = vrot.slane %v4386_v27, 4  ;;  %v4467_v57 = vpack.c.b16 %v4449_v12, %v4448_v39  ;;  %v12558_v27 = vld [vmem:[#allocation2 + $0xd0] sm:$0xf] }
 0x249   : > { %9495 = vmatmul.msk.bf16.gmra.mxu1 %vm1613_vm7, %v3528_v38  ;;  %v4642_v38 = vld [vmem:[#allocation2 + $0x18] sm:$0xe]  ;;  %v4711_v2 = vrot.slane %v10700_v30, 5  ;;  %v4397_v39 = vshrl.u32 %v4033_v15, 16 }
 0x24a   : > { %v3223_v45 = vpop.f32.mrf.mxu0  ;;  %v4379_v59 = vor.u32 %v4378_v63, %v4375_v35  ;;  %v4389_v34 = vor.u32 %v4388_v11, %v4384_v26  ;;  %v9594_v6 = vrot.slane %v4642_v38, 9  ;;  %v4400_v35 = vshll.u32 %v4033_v15, 16 }
 0x24b   : > { %v12544_v9 = vadd.f32 %v3223_v45, %v12019_v7  ;;  %v10699_v7 = vld [vmem:[#allocation2 + $0x1c] sm:$0xf] }
 0x24c   : > { %v4708_v22 = vrot.slane %v10699_v7, 5  ;;  %v4380_v45 = vrot.slane %v4379_v59, 4  ;;  %v4390_v47 = vrot.slane %v4389_v34, 4  ;;  %v12573_v59 = vld [vmem:[#allocation2 + $0xd4] sm:$0x1] }
 0x24d   : > { %v3893_v19 = vpop.f32.mrf.mxu2 }
 0x24e   : > { %v3963_v33 = vadd.f32 %v3893_v19, %v12427_v36  ;;  %v4392_v36 = vshll.u32 %v12547_v37, 16  ;;  %v4710_v56 = vrot.slane %v4708_v22, 4  ;;  %v4709_v43 = vsel %vm11322_vm14, %v9594_v6, %v4708_v22  ;;  %v10701_v6 = vld [vmem:[#allocation2 + $0x28] sm:$0xf] }
 0x24f   : > { %v4820_v63 = vunpack.c.l.b16 %v4709_v43 }
 0x250   : > { %v12549_v1 = vadd.f32 %v4547_v42, %v3963_v33  ;;  %v4394_v23 = vrot.slane %v4392_v36, 5  ;;  %v4385_v42 = vsel %vm11186_vm6, %v4380_v45, %v4384_v26  ;;  %v4406_v33 = vshll.u32 %v12558_v27, 16 }
 0x251   : > { %v4450_v7 = vunpack.c.l.b16 %v4385_v42 }
 0x252   : > { %v3226_v14 = vpop.f32.mrf.mxu0  ;;  %9573 = vmatmul.msk.bf16.gmra.mxu2 %vm1613_vm7, %v10450_v49  ;;  %v4395_v48 = vsel %vm11186_vm6, %v4390_v47, %v4394_v23  ;;  %v4410_v49 = vshrl.u32 %v12558_v27, 16  ;;  %v4408_v26 = vrot.slane %v4406_v33, 5  ;;  %v4416_v23 = vshll.u32 %v12573_v59, 16 }
 0x253   : > { %v12554_v0 = vadd.f32 %v3226_v14, %v12035_v61  ;;  %v4712_v61 = vsel %vm11322_vm14, %v4710_v56, %v4711_v2  ;;  %v4451_v22 = vunpack.c.l.b16 %v4395_v48  ;;  %v4399_v14 = vrot.slane %v4397_v39, 4  ;;  %v4643_v2 = vld [vmem:[#allocation2 + $0x24] sm:$0xe] }
 0x254   : > { %v4821_v11 = vunpack.c.l.b16 %v4712_v61  ;;  %v4412_v38 = vrot.slane %v4410_v49, 4  ;;  %v4715_v56 = vrot.slane %v10701_v6, 5  ;;  %v9595_v15 = vrot.slane %v4643_v2, 9  ;;  %v14209_v49 = vld [vmem:[#allocation29_spill] sm:$0xff]  ;;  %v10703_v6 = vld [vmem:[#allocation2 + $0x34] sm:$0xf] }
 0x255   : > { %9462 = vmatmul.msk.bf16.gmra.mxu0 %vm1613_vm7, %v3130_v54  ;;  %v10451_v54 = vld [vmem:[#allocation2 + $0xb4] sm:$0xff]  ;;  %v4418_v39 = vrot.slane %v4416_v23, 5  ;;  %v14211_v2 = vld [vmem:[#allocation30_spill] sm:$0xff] }
 0x256   : > { %9591 = vmatmul.msk.bf16.gmra.mxu3 %vm1613_vm7, %v4467_v57  ;;  %v4402_v57 = vrot.slane %v4400_v35, 5  ;;  %v4852_v34 = vpack.c.b16 %v4821_v11, %v4820_v63  ;;  %v4413_v47 = vor.u32 %v4412_v38, %v4408_v26  ;;  %v4717_v43 = vrot.slane %v4715_v56, 4 }
 0x258   : > { %v4403_v45 = vor.u32 %v4402_v57, %v4399_v14  ;;  %v4414_v48 = vrot.slane %v4413_v47, 4  ;;  %v10452_v14 = vld [vmem:[#allocation2 + $0xc0] sm:$0xff]  ;;  %v4644_v47 = vld [vmem:[#allocation2 + $0x30] sm:$0xe] }
 0x25a   : > { %v3228_v19 = vpop.f32.mrf.mxu0  ;;  %v4404_v42 = vrot.slane %v4403_v45, 4 }
 0x25b   : > { %v12569_v12 = vadd.f32 %v3228_v19, %v12059_v44  ;;  %v4468_v44 = vpack.c.b16 %v4451_v22, %v4450_v7  ;;  %v10702_v19 = vld [vmem:[#allocation2 + $0x2c] sm:$0x1] }
 0x25c   : > { %v4718_v61 = vrot.slane %v10702_v19, 5  ;;  %v4409_v11 = vsel %vm11186_vm6, %v4404_v42, %v4408_v26  ;;  %v9596_v26 = vrot.slane %v4644_v47, 9  ;;  %v14217_v47 = vld [vmem:[#allocation33_spill] sm:$0xff] }
 0x25d   : > { %14207 = vst [vmem:[#allocation38_spill] sm:$0xff] %v12569_v12  ;;  %v4452_v57 = vunpack.c.l.b16 %v4409_v11 }
 0x25e   : > { %v4719_v33 = vsel %vm11322_vm14, %v4717_v43, %v4718_v61 }
 0x25f   : > { %v4823_v22 = vunpack.c.l.b16 %v4719_v33  ;;  %v10453_v33 = vld [vmem:[#allocation2 + $0xcc] sm:$0xff] }
 0x262   : > { %v3231_v36 = vpop.f32.mrf.mxu0  ;;  %9574 = vmatmul.msk.bf16.gmra.mxu2 %vm1613_vm7, %v10451_v54  ;;  %v4419_v54 = vsel %vm11186_vm6, %v4414_v48, %v4418_v39  ;;  %v14213_v48 = vld [vmem:[#allocation31_spill] sm:$0xff] }
 0x263   : > { %v12577_v30 = vadd.f32 %v3231_v36, %v12075_v17  ;;  %v4716_v17 = vsel %vm11322_vm14, %v9595_v15, %v4715_v56  ;;  %v4453_v38 = vunpack.c.l.b16 %v4419_v54  ;;  %v4722_v56 = vrot.slane %v10703_v6, 5  ;;  %v10704_v15 = vld [vmem:[#allocation2 + $0x38] sm:$0x1]  ;;  %v10705_v54 = vld [vmem:[#allocation2 + $0x40] sm:$0xf] }
 0x264   : > { %v4822_v7 = vunpack.c.l.b16 %v4716_v17  ;;  %v4725_v43 = vrot.slane %v10704_v15, 5 }
 0x265   : > { %14208 = vst [vmem:[#allocation39_spill] sm:$0xff] %v12577_v30  ;;  %9611 = vmatmul.msk.bf16.vlgmr.msra.gmra.mxu0 %vm1613_vm7, %v4852_v34  ;;  %v4724_v23 = vrot.slane %v4722_v56, 4  ;;  %v4723_v61 = vsel %vm11322_vm14, %v9596_v26, %v4722_v56 }
 0x266   : > { %9592 = vmatmul.msk.bf16.gmra.mxu3 %vm1613_vm7, %v4468_v44  ;;  %v4853_v34 = vpack.c.b16 %v4823_v22, %v4822_v7  ;;  %v4469_v44 = vpack.c.b16 %v4453_v38, %v4452_v57  ;;  %v4729_v7 = vrot.slane %v10705_v54, 5  ;;  %v14215_v22 = vld [vmem:[#allocation32_spill] sm:$0xff] }
 0x267   : > { %v4726_v42 = vsel %vm11322_vm14, %v4724_v23, %v4725_v43  ;;  %v4645_v57 = vld [vmem:[#allocation2 + $0x3c] sm:$0xe] }
 0x268   : > { %v4825_v17 = vunpack.c.l.b16 %v4726_v42  ;;  %v9597_v38 = vrot.slane %v4645_v57, 9 }
 0x26a   : > { %v3233_v35 = vpop.f32.mrf.mxu0  ;;  %v4730_v56 = vsel %vm11322_vm14, %v9597_v38, %v4729_v7 }
 0x26b   : > { %v12587_v63 = vadd.f32 %v3233_v35, %v14209_v49  ;;  %v4824_v35 = vunpack.c.l.b16 %v4723_v61  ;;  %v4826_v23 = vunpack.c.l.b16 %v4730_v56  ;;  %v10707_v61 = vld [vmem:[#allocation2 + $0x4c] sm:$0xf] }
 0x26c   : > { %v4736_v42 = vrot.slane %v10707_v61, 5 }
 0x26d   : > { %14210 = vst [vmem:[#allocation29_spill] sm:$0xff] %v12587_v63  ;;  %v4854_v49 = vpack.c.b16 %v4825_v17, %v4824_v35  ;;  %v4646_v17 = vld [vmem:[#allocation2 + $0x48] sm:$0xe] }
 0x272   : > { %v3236_v36 = vpop.f32.mrf.mxu0  ;;  %9575 = vmatmul.msk.bf16.gmra.mxu2 %vm1613_vm7, %v10452_v14 }
 0x273   : > { %v12595_v45 = vadd.f32 %v3236_v36, %v14211_v2  ;;  %v10706_v36 = vld [vmem:[#allocation2 + $0x44] sm:$0x1] }
 0x275   : > { %14212 = vst [vmem:[#allocation30_spill] sm:$0xff] %v12595_v45  ;;  %9612 = vmatmul.msk.bf16.gmra.mxu0 %vm1613_vm7, %v4853_v34  ;;  %v4731_v34 = vrot.slane %v4729_v7, 4  ;;  %v10458_v7 = vld [vmem:[#allocation6] sm:$0xff] }
 0x276   : > { %9593 = vmatmul.msk.bf16.gmra.mxu3 %vm1613_vm7, %v4469_v44  ;;  %v4732_v44 = vrot.slane %v10706_v36, 5  ;;  %5628 = vmatpush.bf16.msrb.mxu2 %v10458_v7  ;;  %v14221_v36 = vld [vmem:[#allocation35_spill] sm:$0xff] }
 0x278   : > { %v4733_v2 = vsel %vm11322_vm14, %v4731_v34, %v4732_v44 }
 0x279   : > { %v4827_v15 = vunpack.c.l.b16 %v4733_v2 }
 0x27a   : > { %v3238_v19 = vpop.f32.mrf.mxu0 }
 0x27b   : > { %v12604_v39 = vadd.f32 %v3238_v19, %v14213_v48  ;;  %v4855_v43 = vpack.c.b16 %v4827_v15, %v4826_v23  ;;  %v14219_v48 = vld [vmem:[#allocation34_spill] sm:$0xff]  ;;  %v10709_v15 = vld [vmem:[#allocation2 + $0x58] sm:$0xf] }
 0x27d   : > { %14214 = vst [vmem:[#allocation31_spill] sm:$0xff] %v12604_v39 }
 0x282   : > { %v3241_v11 = vpop.f32.mrf.mxu0  ;;  %9576 = vmatmul.msk.bf16.gmra.mxu2 %vm1613_vm7, %v10453_v33  ;;  %v9598_v33 = vrot.slane %v4646_v17, 9 }
 0x283   : > { %v12608_v14 = vadd.f32 %v3241_v11, %v14215_v22  ;;  %v10708_v11 = vld [vmem:[#allocation2 + $0x50] sm:$0x1]  ;;  %v10460_v22 = vld [vmem:[#allocation6 + $0x10] sm:$0xff] }
 0x284   : > { %v4739_v54 = vrot.slane %v10708_v11, 5  ;;  %v4737_v38 = vsel %vm11322_vm14, %v9598_v33, %v4736_v42  ;;  %5746 = vmatpush.bf16.msrb.mxu3 %v10460_v22  ;;  %v10710_v33 = vld [vmem:[#allocation2 + $0x5c] sm:$0x1] }
 0x285   : > { %14216 = vst [vmem:[#allocation32_spill] sm:$0xff] %v12608_v14  ;;  %9613 = vmatmul.msk.bf16.gmra.mxu0 %vm1613_vm7, %v4854_v49  ;;  %v4738_v49 = vrot.slane %v4736_v42, 4  ;;  %v4828_v56 = vunpack.c.l.b16 %v4737_v38 }
 0x287   : > { %v4740_v34 = vsel %vm11322_vm14, %v4738_v49, %v4739_v54  ;;  %v4746_v49 = vrot.slane %v10710_v33, 5 }
 0x288   : > { %v4829_v2 = vunpack.c.l.b16 %v4740_v34 }
 0x28a   : > { %v3243_v6 = vpop.f32.mrf.mxu0 }
 0x28b   : > { %v12616_v26 = vadd.f32 %v3243_v6, %v14217_v47  ;;  %v10459_v6 = vld [vmem:[#allocation6 + $0x8] sm:$0xff]  ;;  %v4856_v47 = vpack.c.b16 %v4829_v2, %v4828_v56 }
 0x28c   : > { %5561 = vmatpush.bf16.msra.mxu1 %v10459_v6  ;;  %v10711_v6 = vld [vmem:[#allocation2 + $0x64] sm:$0xf] }
 0x28d   : > { %14218 = vst [vmem:[#allocation33_spill] sm:$0xff] %v12616_v26  ;;  %v4750_v56 = vrot.slane %v10711_v6, 5  ;;  %v14226_v2 = vld [vmem:[#allocation37_spill] sm:$0xff] }
 0x292   : > { %v3246_v19 = vpop.f32.mrf.mxu0 }
 0x293   : > { %v12619_v35 = vadd.f32 %v3246_v19, %v14219_v48  ;;  %v14223_v19 = vld [vmem:[#allocation36_spill] sm:$0xff]  ;;  %v4647_v48 = vld [vmem:[#allocation2 + $0x54] sm:$0xe] }
 0x294   : > { %v9599_v42 = vrot.slane %v4647_v48, 9 }
 0x295   : > { %14220 = vst [vmem:[#allocation34_spill] sm:$0xff] %v12619_v35  ;;  %9614 = vmatmul.msk.bf16.gmra.mxu0 %vm1613_vm7, %v4855_v43  ;;  %v4743_v43 = vrot.slane %v10709_v15, 5 }
 0x297   : > { %v4745_v17 = vrot.slane %v4743_v43, 4  ;;  %v4744_v54 = vsel %vm11322_vm14, %v9599_v42, %v4743_v43  ;;  %v4752_v43 = vrot.slane %v4750_v56, 4  ;;  %v12644_v42 = vpop.f32.mrf.mxu1 }
 0x299   : > { %v4747_v7 = vsel %vm11322_vm14, %v4745_v17, %v4746_v49 }
 0x29a   : > { %v3248_v57 = vpop.f32.mrf.mxu0  ;;  %v4831_v38 = vunpack.c.l.b16 %v4747_v7 }
 0x29b   : > { %v12627_v44 = vadd.f32 %v3248_v57, %v14221_v36  ;;  %v4830_v57 = vunpack.c.l.b16 %v4744_v54  ;;  %v12655_v54 = vpop.f32.mrf.mxu3 }
 0x29d   : > { %14222 = vst [vmem:[#allocation35_spill] sm:$0xff] %v12627_v44  ;;  %v4857_v34 = vpack.c.b16 %v4831_v38, %v4830_v57 }
 0x2a2   : > { %v3251_v23 = vpop.f32.mrf.mxu0 }
 0x2a3   : > { %v12630_v61 = vadd.f32 %v3251_v23, %v14223_v19  ;;  %v4648_v23 = vld [vmem:[#allocation2 + $0x60] sm:$0xe]  ;;  %v10712_v19 = vld [vmem:[#allocation2 + $0x68] sm:$0x1] }
 0x2a4   : > { %v9600_v15 = vrot.slane %v4648_v23, 9  ;;  %v4753_v48 = vrot.slane %v10712_v19, 5 }
 0x2a5   : > { %14224 = vst [vmem:[#allocation36_spill] sm:$0xff] %v12630_v61  ;;  %9615 = vmatmul.msk.bf16.gmra.mxu0 %vm1613_vm7, %v4856_v47 }
 0x2a6   : > { %v4751_v33 = vsel %vm11322_vm14, %v9600_v15, %v4750_v56  ;;  %v4754_v49 = vsel %vm11322_vm14, %v4752_v43, %v4753_v48  ;;  %v4649_v56 = vld [vmem:[#allocation2 + $0x6c] sm:$0xe]  ;;  %v10714_v48 = vld [vmem:[#allocation2 + $0x74] sm:$0x1] }
 0x2a7   : > { %v4832_v7 = vunpack.c.l.b16 %v4751_v33  ;;  %v4833_v57 = vunpack.c.l.b16 %v4754_v49  ;;  %v9601_v43 = vrot.slane %v4649_v56, 9 }
 0x2a9   : > { %v4858_v38 = vpack.c.b16 %v4833_v57, %v4832_v7 }
 0x2aa   : > { %v3253_v11 = vpop.f32.mrf.mxu0 }
 0x2ab   : > { %v12638_v22 = vadd.f32 %v3253_v11, %v12263_v51  ;;  %v12646_v51 = vpop.f32.mrf.mxu2 }
 0x2ad   : > { %14225 = vst [vmem:[#allocation40_spill] sm:$0xff] %v12638_v22 }
 0x2b2   : > { %v3256_v36 = vpop.f32.mrf.mxu0 }
 0x2b3   : > { %v12641_v47 = vadd.f32 %v3256_v36, %v14226_v2  ;;  %v10713_v36 = vld [vmem:[#allocation2 + $0x70] sm:$0xf]  ;;  %v12657_v2 = vpop.f32.mrf.mxu1  ;;  %v12662_v15 = vpop.f32.mrf.mxu2 }
 0x2b4   : > { %v4757_v6 = vrot.slane %v10713_v36, 5 }
 0x2b5   : > { %14227 = vst [vmem:[#allocation37_spill] sm:$0xff] %v12641_v47  ;;  %9616 = vmatmul.msk.bf16.gmra.mxu0 %vm1613_vm7, %v4857_v34 }
 0x2b6   : > { %v4759_v19 = vrot.slane %v4757_v6, 4  ;;  %v4758_v49 = vsel %vm11322_vm14, %v9601_v43, %v4757_v6  ;;  %v4650_v43 = vld [vmem:[#allocation2 + $0x78] sm:$0xe] }
 0x2ba   : > { %v3258_v17 = vpop.f32.mrf.mxu0 }
 0x2bb   : > { %v12653_v11 = vadd.f32 %v3258_v17, %v12307_v32  ;;  %v12665_v32 = vpop.f32.mrf.mxu3  ;;  %v4760_v17 = vrot.slane %v10714_v48, 5  ;;  %v12674_v57 = vpop.f32.mrf.mxu1 }
 0x2bc   : > { %v12676_v36 = vpop.f32.mrf.mxu2 }
 0x2bd   : > { %14228 = vst [vmem:[#allocation41_spill] sm:$0xff] %v12653_v11  ;;  %v4761_v7 = vsel %vm11322_vm14, %v4759_v19, %v4760_v17  ;;  %v10715_v11 = vld [vmem:[#allocation2 + $0x7c] sm:$0xf]  ;;  %v10716_v17 = vld [vmem:[#allocation2 + $0x80] sm:$0x1] }
 0x2be   : > { %v4764_v47 = vrot.slane %v10715_v11, 5 }
 0x2c0   : > { %v4766_v19 = vrot.slane %v4764_v47, 4 }
 0x2c2   : > { %v3261_v34 = vpop.f32.mrf.mxu0 }
 0x2c3   : > { %v12660_v23 = vadd.f32 %v3261_v34, %v12324_v13  ;;  %v4834_v34 = vunpack.c.l.b16 %v4758_v49  ;;  %v12678_v56 = vpop.f32.mrf.mxu3  ;;  %v12684_v49 = vpop.f32.mrf.mxu1 }
 0x2c5   : > { %14229 = vst [vmem:[#allocation42_spill] sm:$0xff] %v12660_v23  ;;  %9617 = vmatmul.msk.bf16.gmra.mxu0 %vm1613_vm7, %v4858_v38  ;;  %v4835_v38 = vunpack.c.l.b16 %v4761_v7  ;;  %v12686_v7 = vpop.f32.mrf.mxu2 }
 0x2c7   : > { %v4859_v23 = vpack.c.b16 %v4835_v38, %v4834_v34 }
 0x2ca   : > { %v3263_v33 = vpop.f32.mrf.mxu0 }
 0x2cb   : > { %v12672_v13 = vadd.f32 %v3263_v33, %v12349_v60  ;;  %v9602_v60 = vrot.slane %v4650_v43, 9  ;;  %v4767_v33 = vrot.slane %v10716_v17, 5  ;;  %v12697_v43 = vpop.f32.mrf.mxu1  ;;  %v12702_v17 = vld [vmem:[%s14140_s2] ss:$0 sm:$0xff] }
 0x2cd   : > { %14230 = vst [vmem:[#allocation43_spill] sm:$0xff] %v12672_v13  ;;  %v12688_v13 = vpop.f32.mrf.mxu3  ;;  %v4765_v11 = vsel %vm11322_vm14, %v9602_v60, %v4764_v47  ;;  %v12704_v22 = vpop.f32.mrf.mxu2  ;;  %v10717_v47 = vld [vmem:[#allocation2 + $0x88] sm:$0xf] }
 0x2ce   : > { %v4771_v60 = vrot.slane %v10717_v47, 5 }
 0x2d2   : > { %v3266_v48 = vpop.f32.mrf.mxu0 }
 0x2d3   : > { %v12681_v6 = vadd.f32 %v3266_v48, %v12366_v41  ;;  %v4768_v41 = vsel %vm11322_vm14, %v4766_v19, %v4767_v33  ;;  %v4651_v33 = vld [vmem:[#allocation2 + $0x84] sm:$0xe] }
 0x2d4   : > { %v4837_v48 = vunpack.c.l.b16 %v4768_v41  ;;  %v4773_v41 = vrot.slane %v4771_v60, 4 }
 0x2d5   : > { %14231 = vst [vmem:[#allocation44_spill] sm:$0xff] %v12681_v6  ;;  %9618 = vmatmul.msk.bf16.gmra.mxu0 %vm1613_vm7, %v4859_v23  ;;  %v4836_v23 = vunpack.c.l.b16 %v4765_v11  ;;  %v9603_v11 = vrot.slane %v4651_v33, 9  ;;  %v14233_v33 = vmov 0  }
 0x2d6   : > { %5232 = vst.msk [vmem:[#allocation4 + $0x8] sm:$0xf] %vm5228_vm2, %v14233_v33 }
 0x2d7   : > { %v4860_v6 = vpack.c.b16 %v4837_v48, %v4836_v23  ;;  %v4772_v47 = vsel %vm11322_vm14, %v9603_v11, %v4771_v60  ;;  %5233 = vst.msk [vmem:[#allocation4 + $0xc] sm:$0x1] %vm5230_vm4, %v14233_v33 }
 0x2d8   : > { %5229 = vst.msk [vmem:[#allocation4] sm:$0xf] %vm5228_vm2, %v14233_v33 }
 0x2d9   : > { %5231 = vst.msk [vmem:[#allocation4 + $0x4] sm:$0x1] %vm5230_vm4, %v14233_v33 }
 0x2da   : > { %v3268_v34 = vpop.f32.mrf.mxu0  ;;  %5234 = vst.msk [vmem:[#allocation4 + $0x10] sm:$0xf] %vm5228_vm2, %v14233_v33 }
 0x2db   : > { %v12695_v38 = vadd.f32 %v3268_v34, %v12392_v55  ;;  %v12707_v55 = vpop.f32.mrf.mxu3  ;;  %5235 = vst.msk [vmem:[#allocation4 + $0x14] sm:$0x1] %vm5230_vm4, %v14233_v33 }
 0x2dc   : > { %5236 = vst.msk [vmem:[#allocation4 + $0x18] sm:$0xf] %vm5228_vm2, %v14233_v33 }
 0x2dd   : > { %14232 = vst [vmem:[#allocation45_spill] sm:$0xff] %v12695_v38  ;;  %v10718_v38 = vld [vmem:[#allocation2 + $0x8c] sm:$0x1] }
 0x2de   : > { %v4774_v44 = vrot.slane %v10718_v38, 5  ;;  %5237 = vst.msk [vmem:[#allocation4 + $0x1c] sm:$0x1] %vm5230_vm4, %v14233_v33 }
 0x2df   : > { %5238 = vst.msk [vmem:[#allocation4 + $0x20] sm:$0xf] %vm5228_vm2, %v14233_v33 }
 0x2e0   : > { %5239 = vst.msk [vmem:[#allocation4 + $0x24] sm:$0x1] %vm5230_vm4, %v14233_v33 }
 0x2e1   : > { %5240 = vst.msk [vmem:[#allocation4 + $0x28] sm:$0xf] %vm5228_vm2, %v14233_v33 }
 0x2e2   : > { %v4928_v61 = vpop.f32.mrf.mxu0  ;;  %5241 = vst.msk [vmem:[#allocation4 + $0x2c] sm:$0x1] %vm5230_vm4, %v14233_v33 }
 0x2e3   : > { %v5008_v19 = vadd.f32 %v4928_v61, %v12410_v18  ;;  %v4775_v18 = vsel %vm11322_vm14, %v4773_v41, %v4774_v44  ;;  %v12716_v61 = vpop.f32.mrf.mxu1  ;;  %v12726_v60 = vpop.f32.mrf.mxu3  ;;  %v10719_v41 = vld [vmem:[#allocation2 + $0x94] sm:$0xf]  ;;  %5242 = vst.msk [vmem:[#allocation4 + $0x30] sm:$0xf] %vm5228_vm2, %v14233_v33 }
 0x2e4   : > { %5243 = vst.msk [vmem:[#allocation4 + $0x34] sm:$0x1] %vm5230_vm4, %v14233_v33 }
 0x2e5   : > { %v5043_v34 = vadd.f32 %v12702_v17, %v5008_v19  ;;  %9619 = vmatmul.msk.bf16.gmra.mxu0 %vm1613_vm7, %v4860_v6  ;;  %v12719_v6 = vpop.f32.mrf.mxu2  ;;  %5244 = vst.msk [vmem:[#allocation4 + $0x38] sm:$0xf] %vm5228_vm2, %v14233_v33 }
 0x2e6   : > { %5245 = vst.msk [vmem:[#allocation4 + $0x3c] sm:$0x1] %vm5230_vm4, %v14233_v33 }
 0x2e7   : > { %v5075_v23 = vmax.f32 %v5043_v34, 0.0  ;;  %v4838_v34 = vunpack.c.l.b16 %v4772_v47  ;;  %5246 = vst.msk [vmem:[#allocation4 + $0x40] sm:$0xf] %vm5228_vm2, %v14233_v33 }
 0x2e8   : > { %5247 = vst.msk [vmem:[#allocation4 + $0x44] sm:$0x1] %vm5230_vm4, %v14233_v33 }
 0x2e9   : > { %5108 = vst.msk [vmem:[#allocation3] sm:$0xff] %vm5107_vm1, %v5075_v23  ;;  %v4839_v23 = vunpack.c.l.b16 %v4775_v18  ;;  %v4652_v18 = vld [vmem:[#allocation2 + $0x90] sm:$0xe] }
 0x2ea   : > { %v4930_v48 = vpop.f32.mrf.mxu0  ;;  %5248 = vst.msk [vmem:[#allocation4 + $0x48] sm:$0xf] %vm5228_vm2, %v14233_v33 }
 0x2eb   : > { %v5009_v19 = vadd.f32 %v4930_v48, %v12438_v25  ;;  %v4861_v44 = vpack.c.b16 %v4839_v23, %v4838_v34  ;;  %v4778_v48 = vrot.slane %v10719_v41, 5  ;;  %v12754_v35 = vpop.f32.mrf.mxu3  ;;  %5249 = vst.msk [vmem:[#allocation4 + $0x4c] sm:$0x1] %vm5230_vm4, %v14233_v33 }
 0x2ed   : > { %v5044_v38 = vadd.f32 %v12702_v17, %v5009_v19  ;;  %v12742_v19 = vpop.f32.mrf.mxu1  ;;  %v12748_v34 = vpop.f32.mrf.mxu2  ;;  %v4780_v23 = vrot.slane %v4778_v48, 4 }
 0x2ef   : > { %v5076_v25 = vmax.f32 %v5044_v38, 0.0 }
 0x2f1   : > { %5109 = vst.msk [vmem:[#allocation3 + $0x8] sm:$0xff] %vm5107_vm1, %v5076_v25  ;;  %v10720_v25 = vld [vmem:[#allocation2 + $0x98] sm:$0x1] }
 0x2f2   : > { %v4933_v11 = vpop.f32.mrf.mxu0 }
 0x2f3   : > { %v5010_v47 = vadd.f32 %v4933_v11, %v12455_v50  ;;  %v9604_v50 = vrot.slane %v4652_v18, 9  ;;  %v4781_v11 = vrot.slane %v10720_v25, 5 }
 0x2f5   : > { %v5045_v38 = vadd.f32 %v12702_v17, %v5010_v47  ;;  %9620 = vmatmul.msk.bf16.gmra.mxu0 %vm1613_vm7, %v4861_v44  ;;  %v4779_v47 = vsel %vm11322_vm14, %v9604_v50, %v4778_v48  ;;  %v4782_v18 = vsel %vm11322_vm14, %v4780_v23, %v4781_v11  ;;  %v12775_v48 = vpop.f32.mrf.mxu1  ;;  %v12784_v11 = vpop.f32.mrf.mxu3 }
 0x2f6   : > { %v4841_v26 = vunpack.c.l.b16 %v4782_v18  ;;  %14234 = vst [vmem:[#allocation46_spill] sm:$0xff] %v12775_v48  ;;  %v4785_v18 = vrot.slane %v12412_v46, 5 }
 0x2f7   : > { %v5077_v41 = vmax.f32 %v5045_v38, 0.0  ;;  %14236 = vst [vmem:[#allocation48_spill] sm:$0xff] %v12784_v11 }
 0x2f8   : > { %v5140_v39 = vld [vmem:[#allocation3] ss:$2 sm:$0xff]  ;;  %v5172_v45 = vld [vmem:[#allocation3 + $0x1] ss:$2 sm:$0xff] }
 0x2f9   : > { %5110 = vst.msk [vmem:[#allocation3 + $0x10] sm:$0xff] %vm5107_vm1, %v5077_v41  ;;  %v4840_v41 = vunpack.c.l.b16 %v4779_v47  ;;  %v4653_v47 = vld [vmem:[#allocation2 + $0x9c] sm:$0xe]  ;;  %v5203_v11 = vmax.f32 %v5140_v39, %v5172_v45  ;;  %v5391_v39 = vld [vmem:[#allocation4] sm:$0xf] }
 0x2fa   : > { %v4935_v44 = vpop.f32.mrf.mxu0  ;;  %v9605_v14 = vrot.slane %v4653_v47, 9  ;;  %v5410_v48 = vshrl.u32 %v5391_v39, 16 }
 0x2fb   : > { %v5011_v38 = vadd.f32 %v4935_v44, %v12482_v62  ;;  %v12779_v62 = vpop.f32.mrf.mxu2  ;;  %v4862_v23 = vpack.c.b16 %v4841_v26, %v4840_v41  ;;  %v4788_v26 = vrot.slane %v12434_v8, 5 }
 0x2fc   : > { %14235 = vst [vmem:[#allocation47_spill] sm:$0xff] %v12779_v62 }
 0x2fd   : > { %v5046_v25 = vadd.f32 %v12702_v17, %v5011_v38  ;;  %v12793_v33 = vpop.f32.mrf.mxu1 }
 0x2fe   : > { %14237 = vst [vmem:[#allocation49_spill] sm:$0xff] %v12793_v33  ;;  %v4792_v33 = vrot.slane %v12459_v28, 5  ;;  %v5346_v28 = vld [vmem:[#allocation4 + $0xc] sm:$0x1] }
 0x2ff   : > { %v5078_v50 = vmax.f32 %v5046_v25, 0.0 }
 0x301   : > { %5111 = vst.msk [vmem:[#allocation3 + $0x18] sm:$0xff] %vm5107_vm1, %v5078_v50  ;;  %v4787_v50 = vrot.slane %v4785_v18, 4 }
 0x302   : > { %v4938_v44 = vpop.f32.mrf.mxu0 }
 0x303   : > { %v5012_v38 = vadd.f32 %v4938_v44, %v12499_v52  ;;  %v12796_v46 = vpop.f32.mrf.mxu2  ;;  %v4789_v44 = vsel %vm11322_vm14, %v4787_v50, %v4788_v26  ;;  %v5341_v50 = vld [vmem:[#allocation4 + $0x8] sm:$0xf] }
 0x304   : > { %14238 = vst [vmem:[#allocation50_spill] sm:$0xff] %v12796_v46 }
 0x305   : > { %v5047_v25 = vadd.f32 %v12702_v17, %v5012_v38  ;;  %9621 = vmatmul.msk.bf16.gmra.mxu0 %vm1613_vm7, %v4862_v23  ;;  %v4786_v23 = vsel %vm11322_vm14, %v9605_v14, %v4785_v18  ;;  %v12803_v38 = vpop.f32.mrf.mxu3  ;;  %v5413_v14 = vshll.u32 %v5391_v39, 16 }
 0x306   : > { %14239 = vst [vmem:[#allocation51_spill] sm:$0xff] %v12803_v38 }
 0x307   : > { %v5079_v41 = vmax.f32 %v5047_v25, 0.0 }
 0x308   : > { %v5142_v63 = vld [vmem:[#allocation3 + $0x10] ss:$2 sm:$0xff]  ;;  %v5174_v30 = vld [vmem:[#allocation3 + $0x11] ss:$2 sm:$0xff] }
 0x309   : > { %v5204_v62 = vmax.f32 %v5142_v63, %v5174_v30  ;;  %5112 = vst.msk [vmem:[#allocation3 + $0x20] sm:$0xff] %vm5107_vm1, %v5079_v41  ;;  %v4842_v30 = vunpack.c.l.b16 %v4786_v23  ;;  %v4843_v63 = vunpack.c.l.b16 %v4789_v44  ;;  %v12820_v23 = vpop.f32.mrf.mxu1 }
 0x30a   : > { %v4940_v52 = vpop.f32.mrf.mxu0 }
 0x30b   : > { %v5219_v47 = vmax.f32 %v5203_v11, %v5204_v62  ;;  %v5013_v8 = vadd.f32 %v4940_v52, %v12518_v5  ;;  %v4863_v62 = vpack.c.b16 %v4843_v63, %v4842_v30  ;;  %v4654_v11 = vld [vmem:[#allocation2 + $0xa8] sm:$0xe]  ;;  %v5412_v30 = vrot.slane %v5410_v48, 4 }
 0x30c   : > { %v5415_v63 = vrot.slane %v5413_v14, 5 }
 0x30d   : > { %v5250_v25 = vpack.c.bf16 %v5219_v47, %v5219_v47  ;;  %v5048_v45 = vadd.f32 %v12702_v17, %v5013_v8 }
 0x30e   : > { %v5416_v14 = vor.u32 %v5415_v63, %v5412_v30 }
 0x30f   : > { %v5259_v41 = vshrl.u32 %v5250_v25, 16  ;;  %v5080_v46 = vmax.f32 %v5048_v45, 0.0  ;;  %v5262_v12 = vshll.u32 %v5250_v25, 16  ;;  %v12823_v25 = vpop.f32.mrf.mxu2  ;;  %v4794_v45 = vrot.slane %v4792_v33, 4 }
 0x310   : > { %v5417_v30 = vrot.slane %v5416_v14, 4 }
 0x311   : > { %v5261_v18 = vrot.slane %v5259_v41, 7  ;;  %5113 = vst.msk [vmem:[#allocation3 + $0x28] sm:$0xff] %vm5107_vm1, %v5080_v46  ;;  %v9606_v46 = vrot.slane %v4654_v11, 9  ;;  %v5650_v11 = vld [vmem:[#allocation4] sm:$0xe] }
 0x312   : > { %v4943_v52 = vpop.f32.mrf.mxu0 }
 0x313   : > { %v5264_v44 = vor.u32 %v5262_v12, %v5261_v18  ;;  %v5265_v47 = vrot.slane %v5261_v18, 4  ;;  %v5014_v8 = vadd.f32 %v4943_v52, %v12530_v58  ;;  %v4795_v12 = vrot.slane %v12480_v24, 5  ;;  %v12832_v18 = vpop.f32.mrf.mxu3  ;;  %v5401_v58 = vld [vmem:[#allocation4 + $0x4] sm:$0x1] }
 0x314   : > { %14244 = vst [vmem:[#allocation52_spill] sm:$0xff] %v12832_v18  ;;  %v5419_v52 = vshll.u32 %v5401_v58, 16  ;;  %v4793_v24 = vsel %vm11322_vm14, %v9606_v46, %v4792_v33 }
 0x315   : > { %v5342_v39 = vsel %vm12809_vm5, %v5264_v44, %v5341_v50  ;;  %v5347_v41 = vsel %vm12816_vm9, %v5265_v47, %v5346_v28  ;;  %v5049_v38 = vadd.f32 %v12702_v17, %v5014_v8  ;;  %9622 = vmatmul.msk.bf16.gmra.mxu0 %vm1613_vm7, %v4863_v62  ;;  %v9659_v50 = vrot.slane %v5650_v11, 9 }
 0x316   : > { %5343 = vst [vmem:[#allocation4 + $0x8] sm:$0xf] %v5342_v39  ;;  %v5676_v44 = vrot.slane %v5401_v58, 5  ;;  %v3677_v28 = vadd.f32 %v12644_v42, %v12445_v20  ;;  %v4796_v62 = vsel %vm11322_vm14, %v4794_v45, %v4795_v12  ;;  %v9637_v39 = vld [vmem:[#allocation4] sm:$0xf]  ;;  %v5421_v63 = vrot.slane %v5419_v52, 5 }
 0x317   : > { %5348 = vst [vmem:[#allocation4 + $0xc] sm:$0x1] %v5347_v41  ;;  %v5081_v48 = vmax.f32 %v5049_v38, 0.0  ;;  %v12843_v41 = vpop.f32.mrf.mxu1  ;;  %v4844_v20 = vunpack.c.l.b16 %v4793_v24  ;;  %v4845_v42 = vunpack.c.l.b16 %v4796_v62  ;;  %v12848_v45 = vpop.f32.mrf.mxu2 }
 0x318   : > { %v3964_v38 = vadd.f32 %v12646_v51, %v3677_v28  ;;  %14245 = vst [vmem:[#allocation53_spill] sm:$0xff] %v12843_v41  ;;  %v5677_v33 = vsel %vm11322_vm14, %v9659_v50, %v5676_v44 }
 0x319   : > { %5114 = vst.msk [vmem:[#allocation3 + $0x30] sm:$0xff] %vm5107_vm1, %v5081_v48  ;;  %v5709_v24 = vunpack.c.l.b16 %v5677_v33  ;;  %v4864_v44 = vpack.c.b16 %v4845_v42, %v4844_v20  ;;  %v4799_v33 = vrot.slane %v12497_v31, 5 }
 0x31a   : > { %v4945_v47 = vpop.f32.mrf.mxu0  ;;  %v4618_v50 = vadd.f32 %v12655_v54, %v3964_v38 }
 0x31b   : > { %v5015_v8 = vadd.f32 %v4945_v47, %v12549_v1  ;;  %v12850_v41 = vpop.f32.mrf.mxu3 }
 0x31c   : > { %14246 = vst [vmem:[#allocation54_spill] sm:$0xff] %v12850_v41  ;;  %v4655_v41 = vld [vmem:[#allocation2 + $0xb4] sm:$0xe] }
 0x31d   : > { %v5050_v58 = vadd.f32 %v12702_v17, %v5015_v8  ;;  %v10454_v11 = vld [vmem:[#allocation4 + $0x4] sm:$0xf0] }
 0x31e   : > { %v5651_v48 = vld [vmem:[#allocation4 + $0x8] sm:$0xe]  ;;  %v9638_v1 = vor.u32 %v10454_v11, %v9637_v39  ;;  %v5402_v12 = vld [vmem:[#allocation4 + $0xc] sm:$0x1] }
 0x31f   : > { %v5392_v46 = vld [vmem:[#allocation4 + $0x8] sm:$0xf]  ;;  %v9660_v47 = vrot.slane %v5651_v48, 9  ;;  %v5082_v52 = vmax.f32 %v5050_v58, 0.0  ;;  %v5680_v28 = vrot.slane %v5402_v12, 5  ;;  %v5433_v18 = vshll.u32 %v5402_v12, 16 }
 0x320   : > { %v5424_v51 = vshrl.u32 %v5392_v46, 16  ;;  %v5427_v14 = vshll.u32 %v5392_v46, 16  ;;  %9655 = vmatmul.msk.bf16.vlgmr.msrb.gmra.mxu2 %vm5107_vm1, %v9638_v1  ;;  %v5422_v58 = vsel %vm11186_vm6, %v5417_v30, %v5421_v63  ;;  %v3678_v1 = vadd.f32 %v12657_v2, %v12470_v53  ;;  %v5144_v30 = vld [vmem:[#allocation3 + $0x20] ss:$2 sm:$0xff]  ;;  %v5176_v63 = vld [vmem:[#allocation3 + $0x21] ss:$2 sm:$0xff] }
 0x321   : > { %5115 = vst.msk [vmem:[#allocation3 + $0x38] sm:$0xff] %vm5107_vm1, %v5082_v52  ;;  %v5681_v39 = vsel %vm11322_vm14, %v9660_v47, %v5680_v28  ;;  %v5524_v47 = vunpack.c.l.b16 %v5422_v58  ;;  %v4801_v53 = vrot.slane %v4799_v33, 4  ;;  %v4802_v2 = vrot.slane %v12516_v4, 5  ;;  %v12869_v52 = vpop.f32.mrf.mxu1  ;;  %v12871_v28 = vpop.f32.mrf.mxu2  ;;  %v9677_v5 = vld [vmem:[#allocation4 + $0x8] sm:$0xf] }
 0x322   : > { %v5426_v62 = vrot.slane %v5424_v51, 4  ;;  %v5429_v8 = vrot.slane %v5427_v14, 5  ;;  %v4948_v11 = vpop.f32.mrf.mxu0  ;;  %v5710_v48 = vunpack.c.l.b16 %v5681_v39  ;;  %v5435_v51 = vrot.slane %v5433_v18, 5 }
 0x323   : > { %v5016_v12 = vadd.f32 %v4948_v11, %v4618_v50  ;;  %v3965_v20 = vadd.f32 %v12662_v15, %v3678_v1  ;;  %v9607_v14 = vrot.slane %v4655_v41, 9  ;;  %v3679_v39 = vadd.f32 %v12674_v57, %v12487_v29  ;;  %v12877_v11 = vpop.f32.mrf.mxu3 }
 0x324   : > { %v5430_v46 = vor.u32 %v5429_v8, %v5426_v62  ;;  %v5717_v54 = vpack.c.b16 %v5710_v48, %v5709_v24  ;;  %v5205_v8 = vmax.f32 %v5144_v30, %v5176_v63  ;;  %v4803_v58 = vsel %vm11322_vm14, %v4801_v53, %v4802_v2  ;;  %v5352_v53 = vld [vmem:[#allocation4 + $0x14] sm:$0x1] }
 0x325   : > { %v5051_v42 = vadd.f32 %v12702_v17, %v5016_v12  ;;  %9623 = vmatmul.msk.bf16.gmra.mxu0 %vm1613_vm7, %v4864_v44  ;;  %v4619_v41 = vadd.f32 %v12665_v32, %v3965_v20  ;;  %v4800_v48 = vsel %vm11322_vm14, %v9607_v14, %v4799_v33  ;;  %v3966_v32 = vadd.f32 %v12676_v36, %v3679_v39 }
 0x326   : > { %v5431_v38 = vrot.slane %v5430_v46, 4  ;;  %9671 = vmatmul.msk.bf16.vlgmr.msrb.gmra.mxu3 %vm5107_vm1, %v5717_v54  ;;  %v4847_v29 = vunpack.c.l.b16 %v4803_v58  ;;  %v4806_v36 = vrot.slane %v12528_v16, 5  ;;  %v3680_v2 = vadd.f32 %v12684_v49, %v12507_v3 }
 0x327   : > { %v5083_v18 = vmax.f32 %v5051_v42, 0.0  ;;  %v4620_v20 = vadd.f32 %v12678_v56, %v3966_v32  ;;  %v4809_v49 = vrot.slane %v12547_v37, 5 }
 0x328   : > { %v5436_v31 = vsel %vm11186_vm6, %v5431_v38, %v5435_v51  ;;  %v5146_v24 = vld [vmem:[#allocation3 + $0x30] ss:$2 sm:$0xff]  ;;  %v5178_v62 = vld [vmem:[#allocation3 + $0x31] ss:$2 sm:$0xff]  ;;  %v4846_v38 = vunpack.c.l.b16 %v4800_v48  ;;  %v4808_v3 = vrot.slane %v4806_v36, 4 }
 0x329   : > { %v5525_v15 = vunpack.c.l.b16 %v5436_v31  ;;  %v5206_v50 = vmax.f32 %v5146_v24, %v5178_v62  ;;  %5116 = vst.msk [vmem:[#allocation3 + $0x40] sm:$0xff] %vm5107_vm1, %v5083_v18  ;;  %v12887_v42 = vpop.f32.mrf.mxu1  ;;  %v12890_v30 = vpop.f32.mrf.mxu2  ;;  %v5349_v31 = vld [vmem:[#allocation4 + $0x10] sm:$0xf]  ;;  %v4656_v24 = vld [vmem:[#allocation2 + $0xc0] sm:$0xe] }
 0x32a   : > { %v4950_v4 = vpop.f32.mrf.mxu0  ;;  %v4865_v14 = vpack.c.b16 %v4847_v29, %v4846_v38  ;;  %v4810_v58 = vsel %vm11322_vm14, %v4808_v3, %v4809_v49 }
 0x32b   : > { %v5532_v44 = vpack.c.b16 %v5525_v15, %v5524_v47  ;;  %v5220_v46 = vmax.f32 %v5205_v8, %v5206_v50  ;;  %v5017_v1 = vadd.f32 %v4950_v4, %v4619_v41  ;;  %v12895_v62 = vpop.f32.mrf.mxu3  ;;  %v3967_v41 = vadd.f32 %v12686_v7, %v3680_v2 }
 0x32c   : > { %v4849_v38 = vunpack.c.l.b16 %v4810_v58 }
 0x32d   : > { %9631 = vmatmul.msk.bf16.vlgmr.msra.gmra.mxu1 %vm5107_vm1, %v5532_v44  ;;  %v5251_v12 = vpack.c.bf16 %v5220_v46, %v5220_v46  ;;  %v5052_v54 = vadd.f32 %v12702_v17, %v5017_v1  ;;  %v9608_v44 = vrot.slane %v4656_v24, 9  ;;  %v4621_v4 = vadd.f32 %v12688_v13, %v3967_v41 }
 0x32e   : > { %v3681_v46 = vadd.f32 %v12697_v43, %v12523_v40  ;;  %v4657_v43 = vld [vmem:[#allocation2 + $0xcc] sm:$0xe] }
 0x32f   : > { %v5267_v57 = vshrl.u32 %v5251_v12, 16  ;;  %v5084_v51 = vmax.f32 %v5052_v54, 0.0  ;;  %v5270_v47 = vshll.u32 %v5251_v12, 16  ;;  %v4807_v48 = vsel %vm11322_vm14, %v9608_v44, %v4806_v36 }
 0x330   : > { %v3968_v12 = vadd.f32 %v12704_v22, %v3681_v46  ;;  %v4848_v54 = vunpack.c.l.b16 %v4807_v48 }
 0x331   : > { %v5269_v33 = vrot.slane %v5267_v57, 7  ;;  %5117 = vst.msk [vmem:[#allocation3 + $0x48] sm:$0xff] %vm5107_vm1, %v5084_v51  ;;  %v12913_v1 = vpop.f32.mrf.mxu1  ;;  %v12915_v32 = vpop.f32.mrf.mxu2 }
 0x332   : > { %v4953_v63 = vpop.f32.mrf.mxu0  ;;  %v4622_v51 = vadd.f32 %v12707_v55, %v3968_v12  ;;  %v9609_v55 = vrot.slane %v4657_v43, 9 }
 0x333   : > { %v5272_v18 = vor.u32 %v5270_v47, %v5269_v33  ;;  %v5273_v15 = vrot.slane %v5269_v33, 4  ;;  %v5018_v56 = vadd.f32 %v4953_v63, %v4620_v20  ;;  %v12919_v29 = vpop.f32.mrf.mxu3  ;;  %v4866_v20 = vpack.c.b16 %v4849_v38, %v4848_v54 }
 0x334   : > { %v4813_v33 = vrot.slane %v12558_v27, 5  ;;  %v3682_v47 = vadd.f32 %v12716_v61, %v12544_v9  ;;  %v4816_v27 = vrot.slane %v12573_v59, 5 }
 0x335   : > { %v5053_v8 = vadd.f32 %v12702_v17, %v5018_v56  ;;  %9624 = vmatmul.msk.bf16.gmra.mxu0 %vm1613_vm7, %v4865_v14  ;;  %v5350_v16 = vsel %vm12809_vm5, %v5272_v18, %v5349_v31  ;;  %v5353_v50 = vsel %vm12816_vm9, %v5273_v15, %v5352_v53 }
 0x336   : > { %5351 = vst [vmem:[#allocation4 + $0x10] sm:$0xf] %v5350_v16  ;;  %v3969_v14 = vadd.f32 %v12719_v6, %v3682_v47  ;;  %v4815_v18 = vrot.slane %v4813_v33, 4 }
 0x337   : > { %v5085_v39 = vmax.f32 %v5053_v8, 0.0  ;;  %5354 = vst [vmem:[#allocation4 + $0x14] sm:$0x1] %v5353_v50  ;;  %v3683_v8 = vadd.f32 %v12742_v19, %v12554_v0  ;;  %v4814_v50 = vsel %vm11322_vm14, %v9609_v55, %v4813_v33 }
 0x338   : > { %v5148_v53 = vld [vmem:[#allocation3 + $0x40] ss:$2 sm:$0xff]  ;;  %v5180_v2 = vld [vmem:[#allocation3 + $0x41] ss:$2 sm:$0xff]  ;;  %v4623_v6 = vadd.f32 %v12726_v60, %v3969_v14  ;;  %v4817_v59 = vsel %vm11322_vm14, %v4815_v18, %v4816_v27 }
 0x339   : > { %5118 = vst.msk [vmem:[#allocation3 + $0x50] sm:$0xff] %vm5107_vm1, %v5085_v39  ;;  %v12927_v63 = vpop.f32.mrf.mxu1  ;;  %v12931_v31 = vpop.f32.mrf.mxu2  ;;  %v5207_v24 = vmax.f32 %v5148_v53, %v5180_v2  ;;  %v3970_v49 = vadd.f32 %v12748_v34, %v3683_v8 }
 0x33a   : > { %v4955_v7 = vpop.f32.mrf.mxu0 }
 0x33b   : > { %v5019_v37 = vadd.f32 %v4955_v7, %v4621_v4  ;;  %v12934_v56 = vpop.f32.mrf.mxu3  ;;  %v4850_v4 = vunpack.c.l.b16 %v4814_v50  ;;  %v4851_v7 = vunpack.c.l.b16 %v4817_v59  ;;  %v4624_v46 = vadd.f32 %v12754_v35, %v3970_v49  ;;  %v14249_v35 = vld [vmem:[#allocation47_spill] sm:$0xff] }
 0x33c   : > { %v14251_v59 = vld [vmem:[#allocation39_spill] sm:$0xff] }
 0x33d   : > { %v5054_v13 = vadd.f32 %v12702_v17, %v5019_v37  ;;  %v5393_v54 = vld [vmem:[#allocation4 + $0x10] sm:$0xf] }
 0x33e   : > { %v5438_v14 = vshrl.u32 %v5393_v54, 16 }
 0x33f   : > { %v5086_v57 = vmax.f32 %v5054_v13, 0.0  ;;  %v4867_v13 = vpack.c.b16 %v4851_v7, %v4850_v4  ;;  %v9641_v7 = vld [vmem:[#allocation4 + $0x10] sm:$0xf] }
 0x341   : > { %5119 = vst.msk [vmem:[#allocation3 + $0x58] sm:$0xff] %vm5107_vm1, %v5086_v57  ;;  %v12946_v48 = vpop.f32.mrf.mxu1  ;;  %v12948_v19 = vpop.f32.mrf.mxu2  ;;  %v5355_v57 = vld [vmem:[#allocation4 + $0x18] sm:$0xf] }
 0x342   : > { %v4958_v40 = vpop.f32.mrf.mxu0 }
 0x343   : > { %v5020_v22 = vadd.f32 %v4958_v40, %v4622_v51  ;;  %v12952_v34 = vpop.f32.mrf.mxu3  ;;  %v5358_v51 = vld [vmem:[#allocation4 + $0x1c] sm:$0x1]  ;;  %v14248_v40 = vld [vmem:[#allocation46_spill] sm:$0xff] }
 0x345   : > { %v5055_v36 = vadd.f32 %v12702_v17, %v5020_v22  ;;  %9625 = vmatmul.msk.bf16.gmra.mxu0 %vm1613_vm7, %v4866_v20  ;;  %v14247_v20 = vld [vmem:[#allocation38_spill] sm:$0xff] }
 0x346   : > { %v3684_v43 = vadd.f32 %v14248_v40, %v14247_v20 }
 0x347   : > { %v5087_v15 = vmax.f32 %v5055_v36, 0.0  ;;  %v5441_v36 = vshll.u32 %v5393_v54, 16 }
 0x348   : > { %v5150_v9 = vld [vmem:[#allocation3 + $0x50] ss:$2 sm:$0xff]  ;;  %v5182_v61 = vld [vmem:[#allocation3 + $0x51] ss:$2 sm:$0xff]  ;;  %v3971_v55 = vadd.f32 %v14249_v35, %v3684_v43 }
 0x349   : > { %v5208_v41 = vmax.f32 %v5150_v9, %v5182_v61  ;;  %5120 = vst.msk [vmem:[#allocation3 + $0x60] sm:$0xff] %vm5107_vm1, %v5087_v15  ;;  %v5403_v15 = vld [vmem:[#allocation4 + $0x14] sm:$0x1]  ;;  %v5652_v9 = vld [vmem:[#allocation4 + $0x10] sm:$0xe]  ;;  %v5440_v61 = vrot.slane %v5438_v14, 4  ;;  %v12964_v8 = vpop.f32.mrf.mxu1 }
 0x34a   : > { %v4960_v16 = vpop.f32.mrf.mxu0 }
 0x34b   : > { %v5221_v44 = vmax.f32 %v5207_v24, %v5208_v41  ;;  %v5021_v3 = vadd.f32 %v4960_v16, %v4623_v6  ;;  %v5443_v6 = vrot.slane %v5441_v36, 5  ;;  %v14250_v24 = vld [vmem:[#allocation48_spill] sm:$0xff]  ;;  %v12967_v16 = vpop.f32.mrf.mxu2  ;;  %v12971_v4 = vpop.f32.mrf.mxu3 }
 0x34c   : > { %v4625_v41 = vadd.f32 %v14250_v24, %v3971_v55  ;;  %v14255_v24 = vld [vmem:[#allocation29_spill] sm:$0xff] }
 0x34d   : > { %v5252_v39 = vpack.c.bf16 %v5221_v44, %v5221_v44  ;;  %v5056_v60 = vadd.f32 %v12702_v17, %v5021_v3  ;;  %v14252_v44 = vld [vmem:[#allocation49_spill] sm:$0xff] }
 0x34e   : > { %v3685_v3 = vadd.f32 %v14252_v44, %v14251_v59 }
 0x34f   : > { %v5275_v58 = vshrl.u32 %v5252_v39, 16  ;;  %v5088_v0 = vmax.f32 %v5056_v60, 0.0  ;;  %v5278_v12 = vshll.u32 %v5252_v39, 16  ;;  %v9661_v39 = vrot.slane %v5652_v9, 9 }
 0x350   : > { %v5684_v60 = vrot.slane %v5403_v15, 5 }
 0x351   : > { %v5277_v37 = vrot.slane %v5275_v58, 7  ;;  %5121 = vst.msk [vmem:[#allocation3 + $0x68] sm:$0xff] %vm5107_vm1, %v5088_v0  ;;  %v5444_v58 = vor.u32 %v5443_v6, %v5440_v61  ;;  %v5447_v0 = vshll.u32 %v5403_v15, 16 }
 0x352   : > { %v4963_v38 = vpop.f32.mrf.mxu0 }
 0x353   : > { %v5280_v33 = vor.u32 %v5278_v12, %v5277_v37  ;;  %v5281_v47 = vrot.slane %v5277_v37, 4  ;;  %v5022_v22 = vadd.f32 %v4963_v38, %v4624_v46  ;;  %v14253_v46 = vld [vmem:[#allocation50_spill] sm:$0xff]  ;;  %v5445_v14 = vrot.slane %v5444_v58, 4  ;;  %v12986_v44 = vpop.f32.mrf.mxu2 }
 0x354   : > { %v3972_v37 = vadd.f32 %v14253_v46, %v3685_v3  ;;  %v5449_v61 = vrot.slane %v5447_v0, 5  ;;  %v12992_v0 = vpop.f32.mrf.mxu3 }
 0x355   : > { %v5057_v53 = vadd.f32 %v12702_v17, %v5022_v22  ;;  %9626 = vmatmul.msk.bf16.gmra.mxu0 %vm1613_vm7, %v4867_v13  ;;  %v5356_v2 = vsel %vm12809_vm5, %v5280_v33, %v5355_v57  ;;  %v5359_v18 = vsel %vm12816_vm9, %v5281_v47, %v5358_v51  ;;  %v5685_v47 = vsel %vm11322_vm14, %v9661_v39, %v5684_v60 }
 0x356   : > { %5357 = vst [vmem:[#allocation4 + $0x18] sm:$0xf] %v5356_v2  ;;  %v5711_v15 = vunpack.c.l.b16 %v5685_v47  ;;  %v14257_v47 = vld [vmem:[#allocation30_spill] sm:$0xff]  ;;  %vm6617_vm7 = vcmask 257024  }
 0x357   : > { %v5089_v27 = vmax.f32 %v5057_v53, 0.0  ;;  %5360 = vst [vmem:[#allocation4 + $0x1c] sm:$0x1] %v5359_v18  ;;  %v14254_v53 = vld [vmem:[#allocation51_spill] sm:$0xff]  ;;  %vm13417_vm12 = vmand %vm6617_vm7, %vm1011_vm10  ;;  %vm8154_vm10 = vcmask 523264  }
 0x358   : > { %v4626_v2 = vadd.f32 %v14254_v53, %v3972_v37  ;;  %v5152_v46 = vld [vmem:[#allocation3 + $0x60] ss:$2 sm:$0xff]  ;;  %v5184_v37 = vld [vmem:[#allocation3 + $0x61] ss:$2 sm:$0xff] }
 0x359   : > { %5122 = vst.msk [vmem:[#allocation3 + $0x70] sm:$0xff] %vm5107_vm1, %v5089_v27 }
 0x35a   : > { %v4965_v50 = vpop.f32.mrf.mxu0 }
 0x35b   : > { %v5023_v49 = vadd.f32 %v4965_v50, %v4625_v41  ;;  %v3686_v41 = vadd.f32 %v12820_v23, %v14255_v24  ;;  %v12984_v50 = vpop.f32.mrf.mxu1 }
 0x35d   : > { %v5058_v12 = vadd.f32 %v12702_v17, %v5023_v49  ;;  %v10455_v13 = vld [vmem:[#allocation4 + $0x14] sm:$0xf0]  ;;  %v5450_v49 = vsel %vm11186_vm6, %v5445_v14, %v5449_v61  ;;  %v13008_v61 = vpop.f32.mrf.mxu3 }
 0x35e   : > { %v5653_v54 = vld [vmem:[#allocation4 + $0x18] sm:$0xe]  ;;  %v9642_v57 = vor.u32 %v10455_v13, %v9641_v7  ;;  %v5404_v51 = vld [vmem:[#allocation4 + $0x1c] sm:$0x1]  ;;  %v3973_v7 = vadd.f32 %v12823_v25, %v3686_v41  ;;  %v5526_v13 = vunpack.c.l.b16 %v5450_v49  ;;  %v5361_v49 = vld [vmem:[#allocation4 + $0x20] sm:$0xf] }
 0x35f   : > { %v5394_v38 = vld [vmem:[#allocation4 + $0x18] sm:$0xf]  ;;  %v9662_v20 = vrot.slane %v5653_v54, 9  ;;  %v5090_v33 = vmax.f32 %v5058_v12, 0.0  ;;  %v5688_v22 = vrot.slane %v5404_v51, 5  ;;  %v5461_v55 = vshll.u32 %v5404_v51, 16 }
 0x360   : > { %v5452_v40 = vshrl.u32 %v5394_v38, 16  ;;  %v5455_v43 = vshll.u32 %v5394_v38, 16  ;;  %9656 = vmatmul.msk.bf16.gmra.mxu2 %vm5107_vm1, %v9642_v57  ;;  %v14256_v51 = vld [vmem:[#allocation52_spill] sm:$0xff] }
 0x361   : > { %5123 = vst.msk [vmem:[#allocation3 + $0x78] sm:$0xff] %vm5107_vm1, %v5090_v33  ;;  %v5689_v18 = vsel %vm11322_vm14, %v9662_v20, %v5688_v22  ;;  %v5463_v60 = vrot.slane %v5461_v55, 5  ;;  %v4627_v20 = vadd.f32 %v14256_v51, %v3973_v7  ;;  %v14258_v22 = vld [vmem:[#allocation53_spill] sm:$0xff] }
 0x362   : > { %v5454_v36 = vrot.slane %v5452_v40, 4  ;;  %v5457_v35 = vrot.slane %v5455_v43, 5  ;;  %v4968_v27 = vpop.f32.mrf.mxu0  ;;  %v5712_v9 = vunpack.c.l.b16 %v5689_v18  ;;  %v5209_v40 = vmax.f32 %v5152_v46, %v5184_v37 }
 0x363   : > { %v5024_v59 = vadd.f32 %v4968_v27, %v4626_v2  ;;  %v3687_v14 = vadd.f32 %v14258_v22, %v14257_v47  ;;  %v13003_v53 = vpop.f32.mrf.mxu1  ;;  %v13006_v27 = vpop.f32.mrf.mxu2 }
 0x364   : > { %v5458_v6 = vor.u32 %v5457_v35, %v5454_v36  ;;  %v5718_v3 = vpack.c.b16 %v5712_v9, %v5711_v15 }
 0x365   : > { %v5059_v58 = vadd.f32 %v12702_v17, %v5024_v59  ;;  %v3974_v55 = vadd.f32 %v12848_v45, %v3687_v14  ;;  %v5364_v45 = vld [vmem:[#allocation4 + $0x24] sm:$0x1] }
 0x366   : > { %v5459_v39 = vrot.slane %v5458_v6, 4  ;;  %9672 = vmatmul.msk.bf16.gmra.mxu3 %vm5107_vm1, %v5718_v3  ;;  %v14259_v6 = vld [vmem:[#allocation54_spill] sm:$0xff] }
 0x367   : > { %v5091_v12 = vmax.f32 %v5059_v58, 0.0  ;;  %v4628_v24 = vadd.f32 %v14259_v6, %v3974_v55 }
 0x368   : > { %v5464_v23 = vsel %vm11186_vm6, %v5459_v39, %v5463_v60  ;;  %v5154_v38 = vld [vmem:[#allocation3 + $0x70] ss:$2 sm:$0xff]  ;;  %v5186_v57 = vld [vmem:[#allocation3 + $0x71] ss:$2 sm:$0xff] }
 0x369   : > { %v5527_v54 = vunpack.c.l.b16 %v5464_v23  ;;  %v5210_v25 = vmax.f32 %v5154_v38, %v5186_v57  ;;  %5124 = vst.msk [vmem:[#allocation3 + $0x80] sm:$0xff] %vm5107_vm1, %v5091_v12  ;;  %v14260_v39 = vld [vmem:[#allocation31_spill] sm:$0xff] }
 0x36a   : > { %v4970_v33 = vpop.f32.mrf.mxu0  ;;  %v3688_v60 = vadd.f32 %v12869_v52, %v14260_v39 }
 0x36b   : > { %v5533_v43 = vpack.c.b16 %v5527_v54, %v5526_v13  ;;  %v5222_v36 = vmax.f32 %v5209_v40, %v5210_v25  ;;  %v5025_v35 = vadd.f32 %v4970_v33, %v4627_v20  ;;  %v13020_v54 = vpop.f32.mrf.mxu1  ;;  %v13022_v57 = vpop.f32.mrf.mxu2  ;;  %v14261_v20 = vld [vmem:[#allocation32_spill] sm:$0xff] }
 0x36c   : > { %v3975_v37 = vadd.f32 %v12871_v28, %v3688_v60  ;;  %v13026_v28 = vpop.f32.mrf.mxu3  ;;  %v3689_v40 = vadd.f32 %v12887_v42, %v14261_v20  ;;  %v5367_v20 = vld [vmem:[#allocation4 + $0x28] sm:$0xf] }
 0x36d   : > { %9632 = vmatmul.msk.bf16.gmra.mxu1 %vm5107_vm1, %v5533_v43  ;;  %v5253_v2 = vpack.c.bf16 %v5222_v36, %v5222_v36  ;;  %v5060_v18 = vadd.f32 %v12702_v17, %v5025_v35  ;;  %v14262_v35 = vld [vmem:[#allocation33_spill] sm:$0xff] }
 0x36e   : > { %v4629_v52 = vadd.f32 %v12877_v11, %v3975_v37  ;;  %v3976_v43 = vadd.f32 %v12890_v30, %v3689_v40  ;;  %v3690_v55 = vadd.f32 %v12913_v1, %v14262_v35  ;;  %v14263_v1 = vld [vmem:[#allocation34_spill] sm:$0xff]  ;;  %v5370_v40 = vld [vmem:[#allocation4 + $0x2c] sm:$0x1] }
 0x36f   : > { %v5283_v15 = vshrl.u32 %v5253_v2, 16  ;;  %v5092_v9 = vmax.f32 %v5060_v18, 0.0  ;;  %v5286_v59 = vshll.u32 %v5253_v2, 16 }
 0x370   : > { %v4630_v22 = vadd.f32 %v12895_v62, %v3976_v43  ;;  %v3977_v30 = vadd.f32 %v12915_v32, %v3690_v55 }
 0x371   : > { %v5285_v41 = vrot.slane %v5283_v15, 7  ;;  %5125 = vst.msk [vmem:[#allocation3 + $0x88] sm:$0xff] %vm5107_vm1, %v5092_v9 }
 0x372   : > { %v4973_v3 = vpop.f32.mrf.mxu0 }
 0x373   : > { %v5288_v7 = vor.u32 %v5286_v59, %v5285_v41  ;;  %v5289_v58 = vrot.slane %v5285_v41, 4  ;;  %v5026_v46 = vadd.f32 %v4973_v3, %v4628_v24  ;;  %v13033_v14 = vpop.f32.mrf.mxu1  ;;  %v13036_v11 = vpop.f32.mrf.mxu2  ;;  %v4631_v41 = vadd.f32 %v12919_v29, %v3977_v30 }
 0x374   : > { %v13040_v42 = vpop.f32.mrf.mxu3 }
 0x375   : > { %v5061_v23 = vadd.f32 %v12702_v17, %v5026_v46  ;;  %v5362_v12 = vsel %vm12809_vm5, %v5288_v7, %v5361_v49  ;;  %v5365_v13 = vsel %vm12816_vm9, %v5289_v58, %v5364_v45  ;;  %v3691_v45 = vadd.f32 %v12927_v63, %v14263_v1 }
 0x376   : > { %5363 = vst [vmem:[#allocation4 + $0x20] sm:$0xf] %v5362_v12 }
 0x377   : > { %v5093_v38 = vmax.f32 %v5061_v23, 0.0  ;;  %5366 = vst [vmem:[#allocation4 + $0x24] sm:$0x1] %v5365_v13  ;;  %v3978_v58 = vadd.f32 %v12931_v31, %v3691_v45 }
 0x378   : > { %v5156_v15 = vld [vmem:[#allocation3 + $0x80] ss:$2 sm:$0xff]  ;;  %v5188_v9 = vld [vmem:[#allocation3 + $0x81] ss:$2 sm:$0xff] }
 0x379   : > { %5126 = vst.msk [vmem:[#allocation3 + $0x90] sm:$0xff] %vm5107_vm1, %v5093_v38  ;;  %v5211_v59 = vmax.f32 %v5156_v15, %v5188_v9  ;;  %v4632_v13 = vadd.f32 %v12934_v56, %v3978_v58 }
 0x37a   : > { %v4975_v51 = vpop.f32.mrf.mxu0 }
 0x37b   : > { %v5027_v25 = vadd.f32 %v4975_v51, %v4629_v52  ;;  %v13048_v32 = vpop.f32.mrf.mxu1  ;;  %v13050_v7 = vpop.f32.mrf.mxu2 }
 0x37c   : > { %v13054_v29 = vpop.f32.mrf.mxu3 }
 0x37d   : > { %v5062_v33 = vadd.f32 %v12702_v17, %v5027_v25  ;;  %v5395_v63 = vld [vmem:[#allocation4 + $0x20] sm:$0xf] }
 0x37e   : > { %v14264_v25 = vld [vmem:[#allocation35_spill] sm:$0xff]  ;;  %v5405_v9 = vld [vmem:[#allocation4 + $0x24] sm:$0x1] }
 0x37f   : > { %v5094_v47 = vmax.f32 %v5062_v33, 0.0  ;;  %v3692_v31 = vadd.f32 %v12946_v48, %v14264_v25 }
 0x381   : > { %5127 = vst.msk [vmem:[#allocation3 + $0x98] sm:$0xff] %vm5107_vm1, %v5094_v47  ;;  %v3979_v35 = vadd.f32 %v12948_v19, %v3692_v31 }
 0x382   : > { %v4978_v36 = vpop.f32.mrf.mxu0 }
 0x383   : > { %v5028_v2 = vadd.f32 %v4978_v36, %v4630_v22  ;;  %v5466_v22 = vshrl.u32 %v5395_v63, 16  ;;  %v5469_v36 = vshll.u32 %v5395_v63, 16  ;;  %v13066_v30 = vpop.f32.mrf.mxu1 }
 0x384   : > { %v13070_v15 = vpop.f32.mrf.mxu3 }
 0x385   : > { %v5063_v18 = vadd.f32 %v12702_v17, %v5028_v2  ;;  %v5468_v19 = vrot.slane %v5466_v22, 4 }
 0x387   : > { %v5095_v62 = vmax.f32 %v5063_v18, 0.0  ;;  %v13068_v18 = vpop.f32.mrf.mxu2 }
 0x388   : > { %v5158_v6 = vld [vmem:[#allocation3 + $0x90] ss:$2 sm:$0xff]  ;;  %v5190_v24 = vld [vmem:[#allocation3 + $0x91] ss:$2 sm:$0xff] }
 0x389   : > { %v5212_v3 = vmax.f32 %v5158_v6, %v5190_v24  ;;  %5128 = vst.msk [vmem:[#allocation3 + $0xa0] sm:$0xff] %vm5107_vm1, %v5095_v62  ;;  %v5654_v62 = vld [vmem:[#allocation4 + $0x20] sm:$0xe]  ;;  %v5471_v6 = vrot.slane %v5469_v36, 5 }
 0x38a   : > { %v4980_v49 = vpop.f32.mrf.mxu0  ;;  %v10466_v24 = vld [vmem:[#allocation6 + $0x20] sm:$0xff]  ;;  %v9663_v45 = vrot.slane %v5654_v62, 9 }
 0x38b   : > { %v5223_v39 = vmax.f32 %v5211_v59, %v5212_v3  ;;  %v5029_v60 = vadd.f32 %v4980_v49, %v4631_v41  ;;  %v10467_v41 = vld [vmem:[#allocation6 + $0x28] sm:$0xff]  ;;  %6030 = vmatpush.bf16.msra.mxu2 %v10466_v24  ;;  %v5472_v58 = vor.u32 %v5471_v6, %v5468_v19  ;;  %v13085_v31 = vpop.f32.mrf.mxu1 }
 0x38c   : > { %v14265_v3 = vld [vmem:[#allocation36_spill] sm:$0xff]  ;;  %6156 = vmatpush.bf16.msra.mxu3 %v10467_v41 }
 0x38d   : > { %v5254_v46 = vpack.c.bf16 %v5223_v39, %v5223_v39  ;;  %v5064_v37 = vadd.f32 %v12702_v17, %v5029_v60  ;;  %v3693_v49 = vadd.f32 %v12964_v8, %v14265_v3  ;;  %v5692_v39 = vrot.slane %v5405_v9, 5  ;;  %v9645_v60 = vld [vmem:[#allocation4 + $0x20] sm:$0xf] }
 0x38f   : > { %v5291_v23 = vshrl.u32 %v5254_v46, 16  ;;  %v5096_v12 = vmax.f32 %v5064_v37, 0.0  ;;  %v5294_v52 = vshll.u32 %v5254_v46, 16  ;;  %v5475_v46 = vshll.u32 %v5405_v9, 16 }
 0x390   : > { %v3980_v37 = vadd.f32 %v12967_v16, %v3693_v49  ;;  %v5693_v25 = vsel %vm11322_vm14, %v9663_v45, %v5692_v39 }
 0x391   : > { %v5293_v38 = vrot.slane %v5291_v23, 7  ;;  %5129 = vst.msk [vmem:[#allocation3 + $0xa8] sm:$0xff] %vm5107_vm1, %v5096_v12  ;;  %v5713_v62 = vunpack.c.l.b16 %v5693_v25  ;;  %v5477_v6 = vrot.slane %v5475_v46, 5 }
 0x392   : > { %v4983_v51 = vpop.f32.mrf.mxu0 }
 0x393   : > { %v5296_v43 = vor.u32 %v5294_v52, %v5293_v38  ;;  %v5297_v33 = vrot.slane %v5293_v38, 4  ;;  %v5030_v47 = vadd.f32 %v4983_v51, %v4632_v13 }
 0x395   : > { %v5065_v56 = vadd.f32 %v12702_v17, %v5030_v47  ;;  %v5368_v55 = vsel %vm12809_vm5, %v5296_v43, %v5367_v20  ;;  %v5371_v2 = vsel %vm12816_vm9, %v5297_v33, %v5370_v40  ;;  %v4633_v17 = vadd.f32 %v12952_v34, %v3979_v35  ;;  %v13080_v34 = vld [vmem:[%s14140_s2] ss:$0 sm:$0xff]  ;;  %v13087_v43 = vpop.f32.mrf.mxu2 }
 0x396   : > { %5369 = vst [vmem:[#allocation4 + $0x28] sm:$0xf] %v5368_v55  ;;  %v5473_v33 = vrot.slane %v5472_v58, 4  ;;  %v14266_v35 = vld [vmem:[#allocation40_spill] sm:$0xff]  ;;  %v4634_v55 = vadd.f32 %v12971_v4, %v3980_v37 }
 0x397   : > { %v5097_v48 = vmax.f32 %v5065_v56, 0.0  ;;  %5372 = vst [vmem:[#allocation4 + $0x2c] sm:$0x1] %v5371_v2  ;;  %v3694_v56 = vadd.f32 %v12984_v50, %v14266_v35 }
 0x398   : > { %v5478_v50 = vsel %vm11186_vm6, %v5473_v33, %v5477_v6  ;;  %v5192_v45 = vld [vmem:[#allocation3 + $0xa1] ss:$2 sm:$0xff] }
 0x399   : > { %5130 = vst.msk [vmem:[#allocation3 + $0xb0] sm:$0xff] %vm5107_vm1, %v5097_v48  ;;  %v13096_v48 = vpop.f32.mrf.mxu3  ;;  %v3981_v24 = vadd.f32 %v12986_v44, %v3694_v56  ;;  %v5528_v58 = vunpack.c.l.b16 %v5478_v50  ;;  %v14268_v6 = vld [vmem:[#allocation41_spill] sm:$0xff] }
 0x39a   : > { %v4985_v59 = vpop.f32.mrf.mxu0 }
 0x39b   : > { %v5031_v1 = vadd.f32 %v4985_v59, %v4633_v17  ;;  %v4635_v44 = vadd.f32 %v12992_v0, %v3981_v24 }
 0x39d   : > { %v5066_v23 = vadd.f32 %v13080_v34, %v5031_v1  ;;  %v10456_v12 = vld [vmem:[#allocation4 + $0x24] sm:$0xf0] }
 0x39e   : > { %v5655_v13 = vld [vmem:[#allocation4 + $0x28] sm:$0xe]  ;;  %v9646_v38 = vor.u32 %v10456_v12, %v9645_v60  ;;  %v5406_v52 = vld [vmem:[#allocation4 + $0x2c] sm:$0x1] }
 0x39f   : > { %v5396_v8 = vld [vmem:[#allocation4 + $0x28] sm:$0xf]  ;;  %v9664_v63 = vrot.slane %v5655_v13, 9  ;;  %v5098_v40 = vmax.f32 %v5066_v23, 0.0  ;;  %v5696_v16 = vrot.slane %v5406_v52, 5  ;;  %v5489_v36 = vshll.u32 %v5406_v52, 16 }
 0x3a0   : > { %v5480_v51 = vshrl.u32 %v5396_v8, 16  ;;  %v5483_v20 = vshll.u32 %v5396_v8, 16  ;;  %9657 = vmatmul.msk.bf16.gmra.mxu2 %vm5107_vm1, %v9646_v38  ;;  %v5160_v1 = vld [vmem:[#allocation3 + $0xa0] ss:$2 sm:$0xff] }
 0x3a1   : > { %5131 = vst.msk [vmem:[#allocation3 + $0xb8] sm:$0xff] %vm5107_vm1, %v5098_v40  ;;  %v5697_v2 = vsel %vm11322_vm14, %v9664_v63, %v5696_v16  ;;  %v5491_v3 = vrot.slane %v5489_v36, 5  ;;  %v5213_v8 = vmax.f32 %v5160_v1, %v5192_v45  ;;  %v14267_v40 = vld [vmem:[#allocation37_spill] sm:$0xff]  ;;  %v14269_v45 = vld [vmem:[#allocation42_spill] sm:$0xff] }
 0x3a2   : > { %v5482_v47 = vrot.slane %v5480_v51, 4  ;;  %v5485_v22 = vrot.slane %v5483_v20, 5  ;;  %v4988_v9 = vpop.f32.mrf.mxu0  ;;  %v5714_v19 = vunpack.c.l.b16 %v5697_v2  ;;  %v3695_v25 = vadd.f32 %v13003_v53, %v14267_v40 }
 0x3a3   : > { %v5032_v41 = vadd.f32 %v4988_v9, %v4634_v55  ;;  %v5630_v12 = vpop.f32.mrf.mxu2 }
 0x3a4   : > { %v5486_v17 = vor.u32 %v5485_v22, %v5482_v47  ;;  %v5719_v59 = vpack.c.b16 %v5714_v19, %v5713_v62  ;;  %v3982_v0 = vadd.f32 %v13006_v27, %v3695_v25  ;;  %v5373_v62 = vld [vmem:[#allocation4 + $0x30] sm:$0xf]  ;;  %v5376_v19 = vld [vmem:[#allocation4 + $0x34] sm:$0x1]  ;;  %v14271_v25 = vld [vmem:[#allocation44_spill] sm:$0xff] }
 0x3a5   : > { %v5067_v49 = vadd.f32 %v13080_v34, %v5032_v41 }
 0x3a6   : > { %v5487_v4 = vrot.slane %v5486_v17, 4  ;;  %9673 = vmatmul.msk.bf16.gmra.mxu3 %vm5107_vm1, %v5719_v59  ;;  %v4636_v55 = vadd.f32 %v13008_v61, %v3982_v0  ;;  %v3696_v17 = vadd.f32 %v13020_v54, %v14268_v6  ;;  %v10465_v59 = vld [vmem:[#allocation6 + $0x18] sm:$0xff] }
 0x3a7   : > { %v5099_v60 = vmax.f32 %v5067_v49, 0.0  ;;  %5832 = vmatpush.bf16.msrb.mxu1 %v10465_v59  ;;  %v5379_v6 = vld [vmem:[#allocation4 + $0x38] sm:$0xf] }
 0x3a8   : > { %v5492_v39 = vsel %vm11186_vm6, %v5487_v4, %v5491_v3  ;;  %v5162_v37 = vld [vmem:[#allocation3 + $0xb0] ss:$2 sm:$0xff]  ;;  %v5194_v23 = vld [vmem:[#allocation3 + $0xb1] ss:$2 sm:$0xff]  ;;  %v3983_v50 = vadd.f32 %v13022_v57, %v3696_v17  ;;  %v3697_v57 = vadd.f32 %v13033_v14, %v14269_v45 }
 0x3a9   : > { %v5529_v46 = vunpack.c.l.b16 %v5492_v39  ;;  %v5214_v38 = vmax.f32 %v5162_v37, %v5194_v23  ;;  %5132 = vst.msk [vmem:[#allocation3 + $0xc0] sm:$0xff] %vm5107_vm1, %v5099_v60  ;;  %v5748_v51 = vpop.f32.mrf.mxu3  ;;  %v14270_v23 = vld [vmem:[#allocation43_spill] sm:$0xff] }
 0x3aa   : > { %v5563_v13 = vpop.f32.mrf.mxu1  ;;  %v4990_v20 = vpop.f32.mrf.mxu0  ;;  %v4637_v54 = vadd.f32 %v13026_v28, %v3983_v50  ;;  %v3984_v60 = vadd.f32 %v13036_v11, %v3697_v57  ;;  %v3698_v28 = vadd.f32 %v13048_v32, %v14270_v23  ;;  %v3699_v32 = vadd.f32 %v13066_v30, %v14271_v25  ;;  %v5382_v17 = vld [vmem:[#allocation4 + $0x3c] sm:$0x1] }
 0x3ab   : > { %v5631_v52 = vadd.f32 %v5630_v12, %v5563_v13  ;;  %v5534_v63 = vpack.c.b16 %v5529_v46, %v5528_v58  ;;  %v5224_v16 = vmax.f32 %v5213_v8, %v5214_v38  ;;  %v5033_v47 = vadd.f32 %v4990_v20, %v4635_v44 }
 0x3ac   : > { %v4638_v44 = vadd.f32 %v13040_v42, %v3984_v60  ;;  %v3985_v13 = vadd.f32 %v13050_v7, %v3698_v28  ;;  %v3986_v7 = vadd.f32 %v13068_v18, %v3699_v32 }
 0x3ad   : > { %v13109_v33 = vadd.f32 %v5748_v51, %v5631_v52  ;;  %9633 = vmatmul.msk.bf16.gmra.mxu1 %vm5107_vm1, %v5534_v63  ;;  %v5255_v22 = vpack.c.bf16 %v5224_v16, %v5224_v16  ;;  %v5068_v36 = vadd.f32 %v13080_v34, %v5033_v47 }
 0x3ae   : > { %v4639_v51 = vadd.f32 %v13054_v29, %v3985_v13 }
 0x3af   : > { %v5299_v35 = vshrl.u32 %v5255_v22, 16  ;;  %v5100_v56 = vmax.f32 %v5068_v36, 0.0  ;;  %v5302_v9 = vshll.u32 %v5255_v22, 16 }
 0x3b1   : > { %v5301_v2 = vrot.slane %v5299_v35, 7  ;;  %5133 = vst.msk [vmem:[#allocation3 + $0xc8] sm:$0xff] %vm5107_vm1, %v5100_v56  ;;  %v14272_v56 = vld [vmem:[#allocation45_spill] sm:$0xff] }
 0x3b2   : > { %v4993_v53 = vpop.f32.mrf.mxu0  ;;  %v3700_v29 = vadd.f32 %v13085_v31, %v14272_v56 }
 0x3b3   : > { %v5304_v24 = vor.u32 %v5302_v9, %v5301_v2  ;;  %v5305_v41 = vrot.slane %v5301_v2, 4  ;;  %v5034_v27 = vadd.f32 %v4993_v53, %v4636_v55  ;;  %v5862_v55 = vld [vmem:[#allocation4 + $0x8] sm:$0xf]  ;;  %v5864_v2 = vld [vmem:[#allocation4 + $0x10] sm:$0xf]  ;;  %v4640_v9 = vadd.f32 %v13070_v15, %v3986_v7 }
 0x3b4   : > { %v5879_v59 = vshrl.u32 %v5862_v55, 16 }
 0x3b5   : > { %v5069_v4 = vadd.f32 %v13080_v34, %v5034_v27  ;;  %v5374_v61 = vsel %vm12809_vm5, %v5304_v24, %v5373_v62  ;;  %v5377_v3 = vsel %vm12816_vm9, %v5305_v41, %v5376_v19  ;;  %v3987_v19 = vadd.f32 %v13087_v43, %v3700_v29 }
 0x3b6   : > { %5375 = vst [vmem:[#allocation4 + $0x30] sm:$0xf] %v5374_v61  ;;  %v5893_v61 = vshrl.u32 %v5864_v2, 16  ;;  %v5896_v43 = vshll.u32 %v5864_v2, 16  ;;  %v13162_v2 = vpop.f32.mrf.mxu2 }
 0x3b7   : > { %v5101_v49 = vmax.f32 %v5069_v4, 0.0  ;;  %5378 = vst [vmem:[#allocation4 + $0x34] sm:$0x1] %v5377_v3  ;;  %v5882_v4 = vshll.u32 %v5862_v55, 16  ;;  %v4641_v57 = vadd.f32 %v13096_v48, %v3987_v19 }
 0x3b8   : > { %v5164_v14 = vld [vmem:[#allocation3 + $0xc0] ss:$2 sm:$0xff]  ;;  %v5196_v38 = vld [vmem:[#allocation3 + $0xc1] ss:$2 sm:$0xff]  ;;  %v5895_v23 = vrot.slane %v5893_v61, 4  ;;  %v5898_v28 = vrot.slane %v5896_v43, 5 }
 0x3b9   : > { %5134 = vst.msk [vmem:[#allocation3 + $0xd0] sm:$0xff] %vm5107_vm1, %v5101_v49  ;;  %v5215_v20 = vmax.f32 %v5164_v14, %v5196_v38  ;;  %v10472_v38 = vld [vmem:[#allocation6 + $0x30] sm:$0xff]  ;;  %v5868_v43 = vld [vmem:[#allocation4 + $0x20] sm:$0xf] }
 0x3ba   : > { %v4995_v1 = vpop.f32.mrf.mxu0  ;;  %6243 = vmatpush.bf16.msra.mxu1 %v10472_v38 }
 0x3bb   : > { %v5035_v39 = vadd.f32 %v4995_v1, %v4637_v54  ;;  %v10473_v54 = vld [vmem:[#allocation6 + $0x38] sm:$0xff]  ;;  %v10474_v1 = vld [vmem:[#allocation6 + $0x40] sm:$0xff] }
 0x3bc   : > { %6441 = vmatpush.bf16.msrb.mxu2 %v10473_v54  ;;  %6567 = vmatpush.bf16.msrb.mxu3 %v10474_v1  ;;  %v5866_v1 = vld [vmem:[#allocation4 + $0x18] sm:$0xf] }
 0x3bd   : > { %v5070_v58 = vadd.f32 %v13080_v34, %v5035_v39  ;;  %v5397_v30 = vld [vmem:[#allocation4 + $0x30] sm:$0xf] }
 0x3be   : > { %v5494_v50 = vshrl.u32 %v5397_v30, 16  ;;  %v5497_v31 = vshll.u32 %v5397_v30, 16  ;;  %v5407_v39 = vld [vmem:[#allocation4 + $0x34] sm:$0x1]  ;;  %v5656_v60 = vld [vmem:[#allocation4 + $0x30] sm:$0xe] }
 0x3bf   : > { %v5102_v46 = vmax.f32 %v5070_v58, 0.0  ;;  %v5700_v14 = vrot.slane %v5407_v39, 5  ;;  %v5503_v48 = vshll.u32 %v5407_v39, 16 }
 0x3c0   : > { %v5496_v58 = vrot.slane %v5494_v50, 4 }
 0x3c1   : > { %5135 = vst.msk [vmem:[#allocation3 + $0xd8] sm:$0xff] %vm5107_vm1, %v5102_v46  ;;  %v5499_v46 = vrot.slane %v5497_v31, 5 }
 0x3c2   : > { %v4998_v37 = vpop.f32.mrf.mxu0 }
 0x3c3   : > { %v5036_v12 = vadd.f32 %v4998_v37, %v4638_v44  ;;  %v5881_v44 = vrot.slane %v5879_v59, 4  ;;  %v5884_v37 = vrot.slane %v5882_v4, 5  ;;  %v6061_v4 = vld [vmem:[#allocation4 + $0x10] sm:$0xe] }
 0x3c5   : > { %v5071_v8 = vadd.f32 %v13080_v34, %v5036_v12  ;;  %v5885_v32 = vor.u32 %v5884_v37, %v5881_v44 }
 0x3c7   : > { %v5103_v52 = vmax.f32 %v5071_v8, 0.0  ;;  %v9665_v8 = vrot.slane %v5656_v60, 9  ;;  %v5886_v50 = vrot.slane %v5885_v32, 4 }
 0x3c8   : > { %v5166_v11 = vld [vmem:[#allocation3 + $0xd0] ss:$2 sm:$0xff]  ;;  %v5198_v63 = vld [vmem:[#allocation3 + $0xd1] ss:$2 sm:$0xff] }
 0x3c9   : > { %v5216_v42 = vmax.f32 %v5166_v11, %v5198_v63  ;;  %5136 = vst.msk [vmem:[#allocation3 + $0xe0] sm:$0xff] %vm5107_vm1, %v5103_v52  ;;  %v9649_v52 = vld [vmem:[#allocation4 + $0x30] sm:$0xf]  ;;  %v5500_v11 = vor.u32 %v5499_v46, %v5496_v58  ;;  %v13154_v63 = vld [vmem:[#allocation4 + $0xc] sm:$0x1]  ;;  %v5701_v56 = vsel %vm11322_vm14, %v9665_v8, %v5700_v14  ;;  %v9708_v58 = vrot.slane %v6061_v4, 9 }
 0x3ca   : > { %v5000_v40 = vpop.f32.mrf.mxu0  ;;  %v5388_v4 = vld [vmem:[#allocation4 + $0x44] sm:$0x1] }
 0x3cb   : > { %v5225_v16 = vmax.f32 %v5215_v20, %v5216_v42  ;;  %v5037_v47 = vadd.f32 %v5000_v40, %v4639_v51  ;;  %v13156_v51 = vld [vmem:[#allocation4 + $0x14] sm:$0x1] }
 0x3cc   : > { %v5902_v55 = vshll.u32 %v13156_v51, 16  ;;  %v6090_v46 = vrot.slane %v13156_v51, 5 }
 0x3cd   : > { %v5256_v0 = vpack.c.bf16 %v5225_v16, %v5225_v16  ;;  %v5072_v22 = vadd.f32 %v13080_v34, %v5037_v47  ;;  %v5899_v16 = vor.u32 %v5898_v28, %v5895_v23  ;;  %v6060_v23 = vld [vmem:[#allocation4 + $0x8] sm:$0xe]  ;;  %v5921_v28 = vshrl.u32 %v5868_v43, 16 }
 0x3ce   : > { %v5904_v31 = vrot.slane %v5902_v55, 5 }
 0x3cf   : > { %v5307_v36 = vshrl.u32 %v5256_v0, 16  ;;  %v5104_v35 = vmax.f32 %v5072_v22, 0.0  ;;  %v5310_v62 = vshll.u32 %v5256_v0, 16 }
 0x3d1   : > { %v5309_v53 = vrot.slane %v5307_v36, 7  ;;  %5137 = vst.msk [vmem:[#allocation3 + $0xe8] sm:$0xff] %vm5107_vm1, %v5104_v35 }
 0x3d2   : > { %v5003_v18 = vpop.f32.mrf.mxu0 }
 0x3d3   : > { %v5312_v24 = vor.u32 %v5310_v62, %v5309_v53  ;;  %v5313_v41 = vrot.slane %v5309_v53, 4  ;;  %v5038_v27 = vadd.f32 %v5003_v18, %v4640_v9  ;;  %v5501_v9 = vrot.slane %v5500_v11, 4 }
 0x3d4   : > { %v5888_v18 = vshll.u32 %v13154_v63, 16  ;;  %v5907_v11 = vshrl.u32 %v5866_v1, 16 }
 0x3d5   : > { %v5073_v15 = vadd.f32 %v13080_v34, %v5038_v27  ;;  %v5380_v3 = vsel %vm12809_vm5, %v5312_v24, %v5379_v6  ;;  %v5383_v49 = vsel %vm12816_vm9, %v5313_v41, %v5382_v17  ;;  %v5900_v6 = vrot.slane %v5899_v16, 4  ;;  %v13171_v17 = vpop.f32.mrf.mxu3 }
 0x3d6   : > { %5381 = vst [vmem:[#allocation4 + $0x38] sm:$0xf] %v5380_v3  ;;  %v5715_v24 = vunpack.c.l.b16 %v5701_v56  ;;  %v5505_v27 = vrot.slane %v5503_v48, 5  ;;  %v5890_v54 = vrot.slane %v5888_v18, 5  ;;  %v5910_v48 = vshll.u32 %v5866_v1, 16 }
 0x3d7   : > { %v5105_v45 = vmax.f32 %v5073_v15, 0.0  ;;  %5384 = vst [vmem:[#allocation4 + $0x3c] sm:$0x1] %v5383_v49  ;;  %v5905_v60 = vsel %vm11186_vm6, %v5900_v6, %v5904_v31  ;;  %v9707_v16 = vrot.slane %v6060_v23, 9  ;;  %v5909_v55 = vrot.slane %v5907_v11, 4 }
 0x3d8   : > { %v5506_v15 = vsel %vm11186_vm6, %v5501_v9, %v5505_v27  ;;  %v5994_v51 = vunpack.c.l.b16 %v5905_v60  ;;  %v5912_v9 = vrot.slane %v5910_v48, 5  ;;  %v5867_v6 = vld [vmem:[#allocation4 + $0x1c] sm:$0x1] }
 0x3d9   : > { %5138 = vst.msk [vmem:[#allocation3 + $0xf0] sm:$0xff] %vm5107_vm1, %v5105_v45  ;;  %v5168_v45 = vld [vmem:[#allocation3 + $0xe0] ss:$2 sm:$0xff]  ;;  %v5530_v44 = vunpack.c.l.b16 %v5506_v15 }
 0x3da   : > { %v5005_v12 = vpop.f32.mrf.mxu0  ;;  %v5913_v27 = vor.u32 %v5912_v9, %v5909_v55 }
 0x3db   : > { %v5039_v13 = vadd.f32 %v5005_v12, %v4641_v57  ;;  %v5200_v57 = vld [vmem:[#allocation3 + $0xe1] ss:$2 sm:$0xff]  ;;  %v5924_v12 = vshll.u32 %v5868_v43, 16 }
 0x3dd   : > { %v5074_v20 = vadd.f32 %v13080_v34, %v5039_v13  ;;  %v10457_v42 = vld [vmem:[#allocation4 + $0x34] sm:$0xf0]  ;;  %v13164_v34 = vpop.f32.mrf.mxu1 }
 0x3de   : > { %v5657_v40 = vld [vmem:[#allocation4 + $0x38] sm:$0xe]  ;;  %v9650_v47 = vor.u32 %v10457_v42, %v9649_v52  ;;  %v5408_v7 = vld [vmem:[#allocation4 + $0x3c] sm:$0x1]  ;;  %v5891_v52 = vsel %vm11186_vm6, %v5886_v50, %v5890_v54  ;;  %v5385_v50 = vld [vmem:[#allocation4 + $0x40] sm:$0xf] }
 0x3df   : > { %v5398_v25 = vld [vmem:[#allocation4 + $0x38] sm:$0xf]  ;;  %v9666_v0 = vrot.slane %v5657_v40, 9  ;;  %v5106_v35 = vmax.f32 %v5074_v20, 0.0  ;;  %v5704_v29 = vrot.slane %v5408_v7, 5  ;;  %v5517_v30 = vshll.u32 %v5408_v7, 16 }
 0x3e0   : > { %v5508_v22 = vshrl.u32 %v5398_v25, 16  ;;  %v5511_v36 = vshll.u32 %v5398_v25, 16  ;;  %9658 = vmatmul.msk.bf16.gmra.mxu2 %vm5107_vm1, %v9650_v47  ;;  %v5217_v20 = vmax.f32 %v5168_v45, %v5200_v57  ;;  %v6086_v47 = vrot.slane %v13154_v63, 5  ;;  %v5872_v54 = vld [vmem:[#allocation4 + $0x30] sm:$0xf] }
 0x3e1   : > { %5139 = vst.msk [vmem:[#allocation3 + $0xf8] sm:$0xff] %vm5107_vm1, %v5106_v35  ;;  %v5705_v19 = vsel %vm11322_vm14, %v9666_v0, %v5704_v29  ;;  %v5519_v49 = vrot.slane %v5517_v30, 5  ;;  %v5993_v35 = vunpack.c.l.b16 %v5891_v52  ;;  %v6091_v29 = vsel %vm11322_vm14, %v9708_v58, %v6090_v46  ;;  %v10461_v58 = vld [vmem:[#allocation4 + $0xc] sm:$0xf0]  ;;  %v6063_v46 = vld [vmem:[#allocation4 + $0x20] sm:$0xe] }
 0x3e2   : > { %v5510_v53 = vrot.slane %v5508_v22, 4  ;;  %v5513_v62 = vrot.slane %v5511_v36, 5  ;;  %v5716_v41 = vunpack.c.l.b16 %v5705_v19  ;;  %v5923_v22 = vrot.slane %v5921_v28, 4 }
 0x3e3   : > { %v5635_v14 = vpop.f32.mrf.mxu2  ;;  %v5926_v36 = vrot.slane %v5924_v12, 5  ;;  %v6087_v63 = vsel %vm11322_vm14, %v9707_v16, %v6086_v47  ;;  %v6120_v18 = vunpack.c.l.b16 %v6091_v29  ;;  %v5914_v45 = vrot.slane %v5913_v27, 4  ;;  %v6062_v12 = vld [vmem:[#allocation4 + $0x18] sm:$0xe]  ;;  %v6065_v27 = vld [vmem:[#allocation4 + $0x30] sm:$0xe] }
 0x3e4   : > { %v5514_v59 = vor.u32 %v5513_v62, %v5510_v53  ;;  %v5720_v61 = vpack.c.b16 %v5716_v41, %v5715_v24  ;;  %v6001_v53 = vpack.c.b16 %v5994_v51, %v5993_v35  ;;  %v5869_v62 = vld [vmem:[#allocation4 + $0x24] sm:$0x1]  ;;  %v6119_v31 = vunpack.c.l.b16 %v6087_v63  ;;  %v5871_v35 = vld [vmem:[#allocation4 + $0x2c] sm:$0x1] }
 0x3e5   : > { %v5927_v19 = vor.u32 %v5926_v36, %v5923_v22  ;;  %v5949_v23 = vshrl.u32 %v5872_v54, 16  ;;  %v5952_v28 = vshll.u32 %v5872_v54, 16  ;;  %v6098_v52 = vrot.slane %v5869_v62, 5  ;;  %v5873_v22 = vld [vmem:[#allocation4 + $0x34] sm:$0x1] }
 0x3e6   : > { %v5515_v3 = vrot.slane %v5514_v59, 4  ;;  %9674 = vmatmul.msk.bf16.gmra.mxu3 %vm5107_vm1, %v5720_v61  ;;  %v5930_v59 = vshll.u32 %v5869_v62, 16  ;;  %v6127_v43 = vpack.c.b16 %v6120_v18, %v6119_v31  ;;  %v9709_v48 = vrot.slane %v6062_v12, 9 }
 0x3e7   : > { %v5958_v9 = vshll.u32 %v5873_v22, 16  ;;  %v5944_v62 = vshll.u32 %v5871_v35, 16  ;;  %v6106_v54 = vrot.slane %v5873_v22, 5 }
 0x3e8   : > { %v5520_v39 = vsel %vm11186_vm6, %v5515_v3, %v5519_v49  ;;  %v5170_v13 = vld [vmem:[#allocation3 + $0xf0] ss:$2 sm:$0xff]  ;;  %v5202_v8 = vld [vmem:[#allocation3 + $0xf1] ss:$2 sm:$0xff]  ;;  %v5916_v3 = vshll.u32 %v5867_v6, 16  ;;  %v5928_v49 = vrot.slane %v5927_v19, 4 }
 0x3e9   : > { %v5531_v37 = vunpack.c.l.b16 %v5520_v39  ;;  %v5218_v42 = vmax.f32 %v5170_v13, %v5202_v8  ;;  %v5753_v32 = vpop.f32.mrf.mxu3  ;;  %v5932_v57 = vrot.slane %v5930_v59, 5  ;;  %v5870_v39 = vld [vmem:[#allocation4 + $0x28] sm:$0xf]  ;;  %v5874_v59 = vld [vmem:[#allocation4 + $0x38] sm:$0xf] }
 0x3ea   : > { %v5568_v38 = vpop.f32.mrf.mxu1  ;;  %v5935_v13 = vshrl.u32 %v5870_v39, 16  ;;  %v5938_v8 = vshll.u32 %v5870_v39, 16 }
 0x3eb   : > { %v5636_v40 = vadd.f32 %v5635_v14, %v5568_v38  ;;  %v5535_v25 = vpack.c.b16 %v5531_v37, %v5530_v44  ;;  %v5226_v7 = vmax.f32 %v5217_v20, %v5218_v42  ;;  %v5918_v44 = vrot.slane %v5916_v3, 5 }
 0x3ec   : > { %v5933_v37 = vsel %vm11186_vm6, %v5928_v49, %v5932_v57  ;;  %v9678_v14 = vor.u32 %v10461_v58, %v9677_v5  ;;  %v9710_v38 = vrot.slane %v6063_v46, 9  ;;  %v6094_v20 = vrot.slane %v5867_v6, 5  ;;  %v10462_v6 = vld [vmem:[#allocation4 + $0x1c] sm:$0xf0]  ;;  %v6064_v49 = vld [vmem:[#allocation4 + $0x28] sm:$0xe] }
 0x3ed   : > { %v13184_v0 = vadd.f32 %v5753_v32, %v5636_v40  ;;  %9634 = vmatmul.msk.bf16.gmra.mxu1 %vm5107_vm1, %v5535_v25  ;;  %v5257_v56 = vpack.c.bf16 %v5226_v7, %v5226_v7  ;;  %v5919_v26 = vsel %vm11186_vm6, %v5914_v45, %v5918_v44  ;;  %v5996_v11 = vunpack.c.l.b16 %v5933_v37  ;;  %v10490_v25 = vld [vmem:[%s14143_s5 + $0x38] sm:$0xff] }
 0x3ee   : > { %v5951_v42 = vrot.slane %v5949_v23, 4  ;;  %v5954_v40 = vrot.slane %v5952_v28, 5  ;;  %v5995_v32 = vunpack.c.l.b16 %v5919_v26  ;;  %v5937_v51 = vrot.slane %v5935_v13, 4  ;;  %7253 = vmatpush.bf16.msrb.mxu0 %v10490_v25  ;;  %v5875_v26 = vld [vmem:[#allocation4 + $0x3c] sm:$0x1] }
 0x3ef   : > { %v5315_v30 = vshrl.u32 %v5257_v56, 16  ;;  %v5318_v41 = vshll.u32 %v5257_v56, 16  ;;  %v5940_v16 = vrot.slane %v5938_v8, 5  ;;  %v6099_v47 = vsel %vm11322_vm14, %v9710_v38, %v6098_v52 }
 0x3f0   : > { %9703 = vmatmul.msk.bf16.vlgmr.msra.gmra.mxu2 %vm5107_vm1, %v6001_v53  ;;  %v6002_v7 = vpack.c.b16 %v5996_v11, %v5995_v32  ;;  %v6095_v36 = vsel %vm11322_vm14, %v9709_v48, %v6094_v20  ;;  %v5955_v56 = vor.u32 %v5954_v40, %v5951_v42  ;;  %v6122_v29 = vunpack.c.l.b16 %v6099_v47  ;;  %v6275_v40 = vld [vmem:[#allocation4 + $0x18] sm:$0xf] }
 0x3f1   : > { %v5317_v24 = vrot.slane %v5315_v30, 7  ;;  %v5941_v55 = vor.u32 %v5940_v16, %v5937_v51  ;;  %v6121_v53 = vunpack.c.l.b16 %v6095_v36  ;;  %v5966_v45 = vshll.u32 %v5874_v59, 16  ;;  %v6273_v51 = vld [vmem:[#allocation4 + $0x10] sm:$0xf] }
 0x3f2   : > { %v5956_v30 = vrot.slane %v5955_v56, 4  ;;  %v9711_v39 = vrot.slane %v6064_v49, 9  ;;  %v5972_v48 = vshll.u32 %v5875_v26, 16  ;;  %v10463_v16 = vld [vmem:[#allocation4 + $0x2c] sm:$0xf0]  ;;  %v6304_v36 = vshrl.u32 %v6275_v40, 16 }
 0x3f3   : > { %v5320_v61 = vor.u32 %v5318_v41, %v5317_v24  ;;  %v5321_v15 = vrot.slane %v5317_v24, 4  ;;  %v6128_v63 = vpack.c.b16 %v6122_v29, %v6121_v53  ;;  %v5942_v19 = vrot.slane %v5941_v55, 4  ;;  %v9685_v56 = vld [vmem:[#allocation4 + $0x28] sm:$0xf]  ;;  %v6066_v29 = vld [vmem:[#allocation4 + $0x38] sm:$0xe] }
 0x3f4   : > { %v5960_v24 = vrot.slane %v5958_v9, 5  ;;  %v5946_v41 = vrot.slane %v5944_v62, 5  ;;  %v5968_v28 = vrot.slane %v5966_v45, 5  ;;  %v6290_v55 = vshrl.u32 %v6273_v51, 16 }
 0x3f5   : > { %v5386_v1 = vsel %vm12809_vm5, %v5320_v61, %v5385_v50  ;;  %v5389_v60 = vsel %vm12816_vm9, %v5321_v15, %v5388_v4  ;;  %v9681_v50 = vld [vmem:[#allocation4 + $0x18] sm:$0xf]  ;;  %v6293_v9 = vshll.u32 %v6273_v51, 16  ;;  %v9686_v53 = vor.u32 %v10463_v16, %v9685_v56 }
 0x3f6   : > { %5387 = vst [vmem:[#allocation4 + $0x40] sm:$0xf] %v5386_v1  ;;  %9719 = vmatmul.msk.bf16.vlgmr.msra.gmra.mxu3 %vm5107_vm1, %v6127_v43  ;;  %v5961_v31 = vsel %vm11186_vm6, %v5956_v30, %v5960_v24  ;;  %v9682_v15 = vor.u32 %v10462_v6, %v9681_v50  ;;  %v5947_v3 = vsel %vm11186_vm6, %v5942_v19, %v5946_v41  ;;  %v9712_v43 = vrot.slane %v6065_v27, 9 }
 0x3f7   : > { %5390 = vst [vmem:[#allocation4 + $0x44] sm:$0x1] %v5389_v60  ;;  %v5963_v1 = vshrl.u32 %v5874_v59, 16  ;;  %v5998_v57 = vunpack.c.l.b16 %v5961_v31  ;;  %v6102_v60 = vrot.slane %v5871_v35, 5  ;;  %v5997_v44 = vunpack.c.l.b16 %v5947_v3  ;;  %v6274_v3 = vld [vmem:[#allocation4 + $0x14] sm:$0x1] }
 0x3f8   : > { %v6107_v37 = vsel %vm11322_vm14, %v9712_v43, %v6106_v54  ;;  %v6307_v35 = vshll.u32 %v6275_v40, 16  ;;  %v6110_v6 = vrot.slane %v5875_v26, 5  ;;  %v6306_v24 = vrot.slane %v6304_v36, 4  ;;  %v13231_v43 = vpop.f32.mrf.mxu2  ;;  %v13233_v54 = vpop.f32.mrf.mxu1  ;;  %v6471_v26 = vld [vmem:[#allocation4 + $0x10] sm:$0xe] }
 0x3f9   : > { %v5965_v23 = vrot.slane %v5963_v1, 4  ;;  %v6003_v5 = vpack.c.b16 %v5998_v57, %v5997_v44  ;;  %v6103_v13 = vsel %vm11322_vm14, %v9711_v39, %v6102_v60  ;;  %v6292_v59 = vrot.slane %v6290_v55, 4  ;;  %v13236_v39 = vpop.f32.mrf.mxu3 }
 0x3fa   : > { %v6123_v11 = vunpack.c.l.b16 %v6103_v13  ;;  %v6309_v41 = vrot.slane %v6307_v35, 5  ;;  %v6295_v50 = vrot.slane %v6293_v9, 5  ;;  %v9755_v36 = vrot.slane %v6471_v26, 9 }
 0x3fb   : > { %v5969_v38 = vor.u32 %v5968_v28, %v5965_v23  ;;  %v6279_v23 = vld [vmem:[#allocation4 + $0x28] sm:$0xf]  ;;  %v6497_v56 = vrot.slane %v6274_v3, 5 }
 0x3fc   : > { %v6310_v49 = vor.u32 %v6309_v41, %v6306_v24  ;;  %v6296_v45 = vor.u32 %v6295_v50, %v6292_v59 }
 0x3fd   : > { %9695 = vmatmul.msk.bf16.vlgmr.msrb.gmra.mxu1 %vm5107_vm1, %v9678_v14  ;;  %v5876_v18 = vld [vmem:[#allocation4 + $0x40] sm:$0xf]  ;;  %v6124_v14 = vunpack.c.l.b16 %v6107_v37  ;;  %v5970_v25 = vrot.slane %v5969_v38, 4  ;;  %v6332_v38 = vshrl.u32 %v6279_v23, 16 }
 0x3fe   : > { %v5977_v4 = vshrl.u32 %v5876_v18, 16  ;;  %v5980_v61 = vshll.u32 %v5876_v18, 16  ;;  %v5877_v12 = vld [vmem:[#allocation4 + $0x44] sm:$0x1]  ;;  %v6067_v47 = vld [vmem:[#allocation4 + $0x40] sm:$0xe] }
 0x3ff   : > { %v5986_v52 = vshll.u32 %v5877_v12, 16  ;;  %v6129_v42 = vpack.c.b16 %v6124_v14, %v6123_v11  ;;  %v9714_v30 = vrot.slane %v6067_v47, 9  ;;  %v9713_v18 = vrot.slane %v6066_v29, 9 }
 0x400   : > { %9704 = vmatmul.msk.bf16.gmra.mxu2 %vm5107_vm1, %v6002_v7  ;;  %v5979_v58 = vrot.slane %v5977_v4, 4  ;;  %v5982_v46 = vrot.slane %v5980_v61, 5  ;;  %v5974_v7 = vrot.slane %v5972_v48, 5  ;;  %v6276_v61 = vld [vmem:[#allocation4 + $0x1c] sm:$0x1]  ;;  %v6297_v37 = vrot.slane %v6296_v45, 4 }
 0x401   : > { %v5988_v32 = vrot.slane %v5986_v52, 5  ;;  %v6313_v57 = vshll.u32 %v6276_v61, 16  ;;  %v6335_v52 = vshll.u32 %v6279_v23, 16  ;;  %v6501_v47 = vrot.slane %v6276_v61, 5 }
 0x402   : > { %v5983_v8 = vor.u32 %v5982_v46, %v5979_v58  ;;  %v5975_v62 = vsel %vm11186_vm6, %v5970_v25, %v5974_v7  ;;  %v6299_v58 = vshll.u32 %v6274_v3, 16  ;;  %v6311_v46 = vrot.slane %v6310_v49, 4  ;;  %v6283_v3 = vld [vmem:[#allocation4 + $0x38] sm:$0xf] }
 0x403   : > { %v5999_v27 = vunpack.c.l.b16 %v5975_v62  ;;  %v6315_v28 = vrot.slane %v6313_v57, 5  ;;  %v6334_v29 = vrot.slane %v6332_v38, 4  ;;  %v6337_v55 = vrot.slane %v6335_v52, 5  ;;  %v10468_v49 = vld [vmem:[#allocation4 + $0x14] sm:$0xf0] }
 0x404   : > { %v5984_v20 = vrot.slane %v5983_v8, 4  ;;  %v6301_v13 = vrot.slane %v6299_v58, 5  ;;  %v6472_v8 = vld [vmem:[#allocation4 + $0x18] sm:$0xe]  ;;  %v6474_v57 = vld [vmem:[#allocation4 + $0x28] sm:$0xe] }
 0x405   : > { %v6316_v14 = vsel %vm11186_vm6, %v6311_v46, %v6315_v28  ;;  %v9756_v16 = vrot.slane %v6472_v8, 9  ;;  %v6338_v24 = vor.u32 %v6337_v55, %v6334_v29  ;;  %v9725_v58 = vld [vmem:[#allocation4 + $0x10] sm:$0xf] }
 0x406   : > { %9720 = vmatmul.msk.bf16.gmra.mxu3 %vm5107_vm1, %v6128_v63  ;;  %v5989_v22 = vsel %vm11186_vm6, %v5984_v20, %v5988_v32  ;;  %v6114_v63 = vrot.slane %v5877_v12, 5  ;;  %v10464_v12 = vld [vmem:[#allocation4 + $0x3c] sm:$0xf0]  ;;  %v9689_v20 = vld [vmem:[#allocation4 + $0x38] sm:$0xf]  ;;  %v9726_v23 = vor.u32 %v10468_v49, %v9725_v58 }
 0x407   : > { %v6000_v19 = vunpack.c.l.b16 %v5989_v22  ;;  %v9690_v51 = vor.u32 %v10464_v12, %v9689_v20  ;;  %v6405_v22 = vunpack.c.l.b16 %v6316_v14  ;;  %v9758_v12 = vrot.slane %v6474_v57, 9 }
 0x408   : > { %v6115_v31 = vsel %vm11322_vm14, %v9714_v30, %v6114_v63  ;;  %v6502_v30 = vsel %vm11322_vm14, %v9756_v16, %v6501_v47  ;;  %v6282_v47 = vld [vmem:[#allocation4 + $0x34] sm:$0x1] }
 0x409   : > { %v6004_v4 = vpack.c.b16 %v6000_v19, %v5999_v27  ;;  %v6126_v1 = vunpack.c.l.b16 %v6115_v31  ;;  %v6280_v19 = vld [vmem:[#allocation4 + $0x2c] sm:$0x1]  ;;  %v6531_v41 = vunpack.c.l.b16 %v6502_v30  ;;  %v6355_v55 = vshll.u32 %v6282_v47, 16  ;;  %v6285_v30 = vld [vmem:[#allocation4 + $0x40] sm:$0xf] }
 0x40a   : > { %v6341_v59 = vshll.u32 %v6280_v19, 16 }
 0x40d   : > { %9696 = vmatmul.msk.bf16.gmra.mxu1 %vm5107_vm1, %v9682_v15  ;;  %v6111_v15 = vsel %vm11322_vm14, %v9713_v18, %v6110_v6  ;;  %v6498_v18 = vsel %vm11322_vm14, %v9755_v36, %v6497_v56  ;;  %v6278_v6 = vld [vmem:[#allocation4 + $0x24] sm:$0x1] }
 0x40e   : > { %v6125_v60 = vunpack.c.l.b16 %v6111_v15  ;;  %v6530_v50 = vunpack.c.l.b16 %v6498_v18  ;;  %v6327_v31 = vshll.u32 %v6278_v6, 16  ;;  %v6505_v52 = vrot.slane %v6278_v6, 5  ;;  %v10469_v18 = vld [vmem:[#allocation4 + $0x24] sm:$0xf0] }
 0x40f   : > { %v6357_v6 = vrot.slane %v6355_v55, 5 }
 0x410   : > { %9705 = vmatmul.msk.bf16.gmra.mxu2 %vm5107_vm1, %v6003_v5  ;;  %v6130_v44 = vpack.c.b16 %v6126_v1, %v6125_v60  ;;  %v6277_v5 = vld [vmem:[#allocation4 + $0x20] sm:$0xf]  ;;  %v6538_v61 = vpack.c.b16 %v6531_v41, %v6530_v50  ;;  %v6343_v1 = vrot.slane %v6341_v59, 5  ;;  %v6329_v45 = vrot.slane %v6327_v31, 5  ;;  %v6281_v60 = vld [vmem:[#allocation4 + $0x30] sm:$0xf] }
 0x411   : > { %v6318_v40 = vshrl.u32 %v6277_v5, 16  ;;  %v6321_v25 = vshll.u32 %v6277_v5, 16  ;;  %v6473_v5 = vld [vmem:[#allocation4 + $0x20] sm:$0xe]  ;;  %v6346_v8 = vshrl.u32 %v6281_v60, 16  ;;  %v6349_v14 = vshll.u32 %v6281_v60, 16 }
 0x412   : > { %v9757_v38 = vrot.slane %v6473_v5, 9  ;;  %v6475_v59 = vld [vmem:[#allocation4 + $0x30] sm:$0xe]  ;;  %v6374_v50 = vshrl.u32 %v6285_v30, 16  ;;  %v6377_v31 = vshll.u32 %v6285_v30, 16  ;;  %v6513_v60 = vrot.slane %v6282_v47, 5 }
 0x413   : > { %v6323_v62 = vrot.slane %v6321_v25, 5  ;;  %v6351_v25 = vrot.slane %v6349_v14, 5  ;;  %v9759_v57 = vrot.slane %v6475_v59, 9  ;;  %v6478_v47 = vld [vmem:[#allocation4 + $0x48] sm:$0xe] }
 0x414   : > { %v6506_v16 = vsel %vm11322_vm14, %v9757_v38, %v6505_v52  ;;  %v6376_v58 = vrot.slane %v6374_v50, 4 }
 0x415   : > { %v6532_v29 = vunpack.c.l.b16 %v6506_v16  ;;  %v6477_v16 = vld [vmem:[#allocation4 + $0x40] sm:$0xe] }
 0x416   : > { %9721 = vmatmul.msk.bf16.gmra.mxu3 %vm5107_vm1, %v6129_v42  ;;  %v6302_v42 = vsel %vm11186_vm6, %v6297_v37, %v6301_v13  ;;  %v6363_v37 = vshll.u32 %v6283_v3, 16  ;;  %v6509_v13 = vrot.slane %v6280_v19, 5 }
 0x417   : > { %v6404_v9 = vunpack.c.l.b16 %v6302_v42 }
 0x418   : > { %v6510_v42 = vsel %vm11322_vm14, %v9758_v12, %v6509_v13  ;;  %v6286_v12 = vld [vmem:[#allocation4 + $0x44] sm:$0x1]  ;;  %v6288_v13 = vld [vmem:[#allocation4 + $0x4c] sm:$0x1] }
 0x419   : > { %v6412_v63 = vpack.c.b16 %v6405_v22, %v6404_v9  ;;  %v6533_v22 = vunpack.c.l.b16 %v6510_v42  ;;  %v6397_v38 = vshll.u32 %v6288_v13, 16  ;;  %v6521_v55 = vrot.slane %v6286_v12, 5 }
 0x41d   : > { %9697 = vmatmul.msk.bf16.gmra.mxu1 %vm5107_vm1, %v9686_v53  ;;  %v6320_v53 = vrot.slane %v6318_v40, 4  ;;  %v6348_v40 = vrot.slane %v6346_v8, 4  ;;  %v6514_v8 = vsel %vm11322_vm14, %v9759_v57, %v6513_v60 }
 0x41f   : > { %v6324_v27 = vor.u32 %v6323_v62, %v6320_v53  ;;  %v6352_v36 = vor.u32 %v6351_v25, %v6348_v40  ;;  %v6287_v53 = vld [vmem:[#allocation4 + $0x48] sm:$0xf]  ;;  %v6539_v62 = vpack.c.b16 %v6533_v22, %v6532_v29  ;;  %v6399_v40 = vrot.slane %v6397_v38, 5 }
 0x420   : > { %9706 = vmatmul.msk.bf16.gmra.mxu2 %vm5107_vm1, %v6004_v4  ;;  %v6339_v4 = vrot.slane %v6338_v24, 4  ;;  %v6476_v24 = vld [vmem:[#allocation4 + $0x38] sm:$0xe]  ;;  %v6388_v41 = vshrl.u32 %v6287_v53, 16  ;;  %v9761_v29 = vrot.slane %v6477_v16, 9 }
 0x421   : > { %v6325_v15 = vrot.slane %v6324_v27, 4  ;;  %v9760_v49 = vrot.slane %v6476_v24, 9 }
 0x422   : > { %v6344_v46 = vsel %vm11186_vm6, %v6339_v4, %v6343_v1  ;;  %v6391_v4 = vshll.u32 %v6287_v53, 16  ;;  %v6525_v53 = vrot.slane %v6288_v13, 5 }
 0x423   : > { %v5640_v11 = vpop.f32.mrf.mxu2  ;;  %v6330_v28 = vsel %vm11186_vm6, %v6325_v15, %v6329_v45  ;;  %v6407_v26 = vunpack.c.l.b16 %v6344_v46  ;;  %v6379_v46 = vrot.slane %v6377_v31, 5 }
 0x424   : > { %v6406_v20 = vunpack.c.l.b16 %v6330_v28 }
 0x425   : > { %v6380_v14 = vor.u32 %v6379_v46, %v6376_v58 }
 0x426   : > { %9722 = vmatmul.msk.bf16.gmra.mxu3 %vm5107_vm1, %v6130_v44  ;;  %v6360_v44 = vshrl.u32 %v6283_v3, 16 }
 0x429   : > { %v5758_v7 = vpop.f32.mrf.mxu3 }
 0x42a   : > { %v5573_v48 = vpop.f32.mrf.mxu1 }
 0x42b   : > { %v5641_v32 = vadd.f32 %v5640_v11, %v5573_v48  ;;  %v6362_v11 = vrot.slane %v6360_v44, 4  ;;  %v6365_v48 = vrot.slane %v6363_v37, 5  ;;  %v6390_v44 = vrot.slane %v6388_v41, 4 }
 0x42c   : > { %v6393_v37 = vrot.slane %v6391_v4, 5  ;;  %v9737_v4 = vld [vmem:[#allocation4 + $0x40] sm:$0xf] }
 0x42d   : > { %v13243_v35 = vadd.f32 %v5758_v7, %v5641_v32  ;;  %9698 = vmatmul.msk.bf16.gmra.mxu1 %vm5107_vm1, %v9690_v51  ;;  %v6413_v32 = vpack.c.b16 %v6407_v26, %v6406_v20  ;;  %v6284_v51 = vld [vmem:[#allocation4 + $0x3c] sm:$0x1]  ;;  %v6366_v7 = vor.u32 %v6365_v48, %v6362_v11  ;;  %v6383_v11 = vshll.u32 %v6286_v12, 16 }
 0x42e   : > { %v6369_v56 = vshll.u32 %v6284_v51, 16  ;;  %v6517_v1 = vrot.slane %v6284_v51, 5  ;;  %v6394_v26 = vor.u32 %v6393_v37, %v6390_v44  ;;  %v6534_v48 = vunpack.c.l.b16 %v6514_v8  ;;  %v10482_v8 = vld [vmem:[%s14143_s5 + $0x18] sm:$0xff] }
 0x42f   : > { %v6367_v9 = vrot.slane %v6366_v7, 4  ;;  %v6381_v20 = vrot.slane %v6380_v14, 4  ;;  %v6385_v51 = vrot.slane %v6383_v11, 5  ;;  %v9733_v7 = vld [vmem:[#allocation4 + $0x30] sm:$0xf]  ;;  %6960 = vmatpush.bf16.msrb.mxu1 %v10482_v8 }
 0x430   : > { %9751 = vmatmul.msk.bf16.vlgmr.msrb.gmra.mxu2 %vm5107_vm1, %v6412_v63  ;;  %v6353_v63 = vrot.slane %v6352_v36, 4  ;;  %v6371_v19 = vrot.slane %v6369_v56, 5  ;;  %v6518_v28 = vsel %vm11322_vm14, %v9760_v49, %v6517_v1  ;;  %v6395_v42 = vrot.slane %v6394_v26, 4 }
 0x431   : > { %v6535_v52 = vunpack.c.l.b16 %v6518_v28  ;;  %v6386_v22 = vsel %vm11186_vm6, %v6381_v20, %v6385_v51  ;;  %v13288_v59 = vpop.f32.mrf.mxu3  ;;  %v10489_v28 = vld [vmem:[%s14143_s5 + $0x30] sm:$0xff]  ;;  %v14273_v51 = vmov 0  }
 0x432   : > { %v6372_v27 = vsel %vm11186_vm6, %v6367_v9, %v6371_v19  ;;  %v6358_v3 = vsel %vm11186_vm6, %v6353_v63, %v6357_v6  ;;  %v6400_v36 = vsel %vm11186_vm6, %v6395_v42, %v6399_v40  ;;  %v9762_v9 = vrot.slane %v6478_v47, 9  ;;  %v13278_v63 = vpop.f32.mrf.mxu2  ;;  %v13285_v24 = vpop.f32.mrf.mxu1  ;;  %7254 = vmatpush.bf16.msrb.mxu0 %v10489_v28  ;;  %6621 = vst.msk [vmem:[#allocation5 + $0x8] sm:$0xf] %vm6617_vm7, %v14273_v51  ;;  %v10483_v28 = vld [vmem:[%s14143_s5 + $0x20] sm:$0xff] }
 0x433   : > { %v6409_v45 = vunpack.c.l.b16 %v6372_v27  ;;  %v6540_v25 = vpack.c.b16 %v6535_v52, %v6534_v48  ;;  %v6411_v30 = vunpack.c.l.b16 %v6400_v36  ;;  %v6522_v19 = vsel %vm11322_vm14, %v9761_v29, %v6521_v55  ;;  %6622 = vst.msk [vmem:[#allocation5 + $0xc] sm:$0x1] %vm6619_vm11, %v14273_v51 }
 0x434   : > { %v6536_v41 = vunpack.c.l.b16 %v6522_v19  ;;  %6618 = vst.msk [vmem:[#allocation5] sm:$0xf] %vm6617_vm7, %v14273_v51  ;;  %v5633_v29 = vadd.f32 %v13162_v2, %v13164_v34  ;;  %v10481_v2 = vld [vmem:[%s14143_s5 + $0x10] sm:$0xff]  ;;  %v10480_v19 = vld [vmem:[%s14143_s5 + $0x8] sm:$0xff] }
 0x435   : > { %6620 = vst.msk [vmem:[#allocation5 + $0x4] sm:$0x1] %vm6619_vm11, %v14273_v51  ;;  %6961 = vmatpush.bf16.msrb.mxu1 %v10481_v2  ;;  %7033 = vmatpush.bf16.msra.mxu2 %v10480_v19 }
 0x436   : > { %9767 = vmatmul.msk.bf16.vlgmr.msrb.gmra.mxu3 %vm5107_vm1, %v6538_v61  ;;  %v9729_v61 = vld [vmem:[#allocation4 + $0x20] sm:$0xf]  ;;  %6623 = vst.msk [vmem:[#allocation5 + $0x10] sm:$0xf] %vm6617_vm7, %v14273_v51 }
 0x437   : > { %v9730_v15 = vor.u32 %v10469_v18, %v9729_v61  ;;  %v6526_v18 = vsel %vm11322_vm14, %v9762_v9, %v6525_v53  ;;  %v10471_v61 = vld [vmem:[#allocation4 + $0x44] sm:$0xf0]  ;;  %6624 = vst.msk [vmem:[#allocation5 + $0x14] sm:$0x1] %vm6619_vm11, %v14273_v51  ;;  %v5769_v53 = vadd.f32 %v13171_v17, %v5633_v29 }
 0x438   : > { %v6537_v27 = vunpack.c.l.b16 %v6526_v18  ;;  %v9738_v1 = vor.u32 %v10471_v61, %v9737_v4  ;;  %6625 = vst.msk [vmem:[#allocation5 + $0x18] sm:$0xf] %vm6617_vm7, %v14273_v51  ;;  %v10484_v61 = vld [vmem:[%s14143_s5 + $0x28] sm:$0xff] }
 0x439   : > { %6626 = vst.msk [vmem:[#allocation5 + $0x1c] sm:$0x1] %vm6619_vm11, %v14273_v51  ;;  %7159 = vmatpush.bf16.msra.mxu3 %v10484_v61 }
 0x43a   : > { %v6541_v31 = vpack.c.b16 %v6537_v27, %v6536_v41  ;;  %6627 = vst.msk [vmem:[#allocation5 + $0x20] sm:$0xf] %vm6617_vm7, %v14273_v51  ;;  %v13395_v27 = vld [vmem:[%s14142_s4] ss:$0 sm:$0xff] }
 0x43b   : > { %6628 = vst.msk [vmem:[#allocation5 + $0x24] sm:$0x1] %vm6619_vm11, %v14273_v51 }
 0x43c   : > { %6629 = vst.msk [vmem:[#allocation5 + $0x28] sm:$0xf] %vm6617_vm7, %v14273_v51  ;;  %v13433_v61 = vld [vmem:[#allocation5 + $0x4] sm:$0x1] }
 0x43d   : > { %9743 = vmatmul.msk.bf16.vlgmr.msra.gmra.mxu1 %vm5107_vm1, %v9726_v23  ;;  %v6408_v23 = vunpack.c.l.b16 %v6358_v3  ;;  %6630 = vst.msk [vmem:[#allocation5 + $0x2c] sm:$0x1] %vm6619_vm11, %v14273_v51  ;;  %7160 = vmatpush.bf16.msra.mxu3 %v10483_v28 }
 0x43e   : > { %6631 = vst.msk [vmem:[#allocation5 + $0x30] sm:$0xf] %vm6617_vm7, %v14273_v51 }
 0x43f   : > { %v6414_v5 = vpack.c.b16 %v6409_v45, %v6408_v23  ;;  %6632 = vst.msk [vmem:[#allocation5 + $0x34] sm:$0x1] %vm6619_vm11, %v14273_v51 }
 0x440   : > { %9752 = vmatmul.msk.bf16.gmra.mxu2 %vm5107_vm1, %v6413_v32  ;;  %v10470_v32 = vld [vmem:[#allocation4 + $0x34] sm:$0xf0]  ;;  %6633 = vst.msk [vmem:[#allocation5 + $0x38] sm:$0xf] %vm6617_vm7, %v14273_v51 }
 0x441   : > { %v9734_v56 = vor.u32 %v10470_v32, %v9733_v7  ;;  %6634 = vst.msk [vmem:[#allocation5 + $0x3c] sm:$0x1] %vm6619_vm11, %v14273_v51 }
 0x442   : > { %6635 = vst.msk [vmem:[#allocation5 + $0x40] sm:$0xf] %vm6617_vm7, %v14273_v51 }
 0x443   : > { %6636 = vst.msk [vmem:[#allocation5 + $0x44] sm:$0x1] %vm6619_vm11, %v14273_v51 }
 0x444   : > { %6637 = vst.msk [vmem:[#allocation5 + $0x48] sm:$0xf] %vm6617_vm7, %v14273_v51 }
 0x445   : > { %6638 = vst.msk [vmem:[#allocation5 + $0x4c] sm:$0x1] %vm6619_vm11, %v14273_v51 }
 0x446   : > { %9768 = vmatmul.msk.bf16.gmra.mxu3 %vm5107_vm1, %v6539_v62  ;;  %v6410_v62 = vunpack.c.l.b16 %v6386_v22 }
 0x448   : > { %v6415_v6 = vpack.c.b16 %v6411_v30, %v6410_v62 }
 0x44d   : > { %9744 = vmatmul.msk.bf16.gmra.mxu1 %vm5107_vm1, %v9730_v15 }
 0x450   : > { %9753 = vmatmul.msk.bf16.gmra.mxu2 %vm5107_vm1, %v6414_v5 }
 0x456   : > { %9769 = vmatmul.msk.bf16.gmra.mxu3 %vm5107_vm1, %v6540_v25 }
 0x45d   : > { %9745 = vmatmul.msk.bf16.gmra.mxu1 %vm5107_vm1, %v9734_v56 }
 0x460   : > { %9754 = vmatmul.msk.bf16.gmra.mxu2 %vm5107_vm1, %v6415_v6 }
 0x463   : > { %v5645_v50 = vpop.f32.mrf.mxu2 }
 0x466   : > { %9770 = vmatmul.msk.bf16.gmra.mxu3 %vm5107_vm1, %v6541_v31  ;;  %v10479_v31 = vld [vmem:[%s14143_s5] sm:$0xff] }
 0x467   : > { %7034 = vmatpush.bf16.msra.mxu2 %v10479_v31 }
 0x469   : > { %v5763_v49 = vpop.f32.mrf.mxu3 }
 0x46a   : > { %v5578_v15 = vpop.f32.mrf.mxu1 }
 0x46b   : > { %v5646_v3 = vadd.f32 %v5645_v50, %v5578_v15  ;;  %v13293_v57 = vpop.f32.mrf.mxu2 }
 0x46d   : > { %v13291_v45 = vadd.f32 %v5763_v49, %v5646_v3  ;;  %9746 = vmatmul.msk.bf16.gmra.mxu1 %vm5107_vm1, %v9738_v1  ;;  %v5638_v1 = vadd.f32 %v13231_v43, %v13233_v54 }
 0x471   : > { %v13298_v58 = vpop.f32.mrf.mxu3 }
 0x472   : > { %v13296_v60 = vpop.f32.mrf.mxu1 }
 0x473   : > { %v6032_v46 = vpop.f32.mrf.mxu2 }
 0x479   : > { %v6158_v37 = vpop.f32.mrf.mxu3 }
 0x47a   : > { %v5834_v44 = vpop.f32.mrf.mxu1 }
 0x47b   : > { %v6034_v23 = vpop.f32.mrf.mxu2  ;;  %v5854_v36 = vadd.f32 %v5834_v44, %v13109_v33 }
 0x47d   : > { %v6052_v33 = vadd.f32 %v6032_v46, %v5854_v36 }
 0x47f   : > { %v6178_v34 = vadd.f32 %v6158_v37, %v6052_v33 }
 0x481   : > { %v13303_v12 = vpop.f32.mrf.mxu3 }
 0x482   : > { %v5836_v5 = vpop.f32.mrf.mxu1 }
 0x483   : > { %v13305_v13 = vpop.f32.mrf.mxu2  ;;  %v5855_v62 = vadd.f32 %v5836_v5, %v5769_v53  ;;  %v6730_v53 = vld [vmem:[#allocation5 + $0x8] sm:$0xf] }
 0x485   : > { %v6053_v41 = vadd.f32 %v6034_v23, %v5855_v62 }
 0x487   : > { %v6179_v15 = vadd.f32 %v13303_v12, %v6053_v41 }
 0x489   : > { %v13310_v26 = vpop.f32.mrf.mxu3 }
 0x48a   : > { %v5839_v14 = vpop.f32.mrf.mxu1 }
 0x48b   : > { %v13312_v38 = vpop.f32.mrf.mxu2  ;;  %v5856_v3 = vadd.f32 %v5839_v14, %v13184_v0  ;;  %v5771_v0 = vadd.f32 %v13236_v39, %v5638_v1 }
 0x48d   : > { %v6054_v5 = vadd.f32 %v13305_v13, %v5856_v3  ;;  %v5643_v3 = vadd.f32 %v13278_v63, %v13285_v24 }
 0x48f   : > { %v6180_v54 = vadd.f32 %v13310_v26, %v6054_v5  ;;  %v5773_v63 = vadd.f32 %v13288_v59, %v5643_v3 }
 0x491   : > { %v13316_v11 = vpop.f32.mrf.mxu3 }
 0x492   : > { %v13314_v52 = vpop.f32.mrf.mxu1 }
 0x493   : > { %v13318_v48 = vpop.f32.mrf.mxu2  ;;  %v5857_v43 = vadd.f32 %v13314_v52, %v5771_v0  ;;  %v6735_v52 = vld [vmem:[#allocation5 + $0xc] sm:$0x1] }
 0x499   : > { %v13322_v42 = vpop.f32.mrf.mxu3 }
 0x49a   : > { %v13320_v20 = vpop.f32.mrf.mxu1 }
 0x49b   : > { %v13324_v40 = vpop.f32.mrf.mxu2 }
 0x4a1   : > { %v13328_v32 = vpop.f32.mrf.mxu3 }
 0x4a2   : > { %v13326_v25 = vpop.f32.mrf.mxu1 }
 0x4a3   : > { %v13332_v16 = vpop.f32.mrf.mxu2 }
 0x4a9   : > { %v13348_v7 = vpop.f32.mrf.mxu3 }
 0x4aa   : > { %v13344_v47 = vpop.f32.mrf.mxu1 }
 0x4ab   : > { %v13354_v22 = vpop.f32.mrf.mxu2 }
 0x4b1   : > { %v13373_v55 = vpop.f32.mrf.mxu3 }
 0x4b2   : > { %v13367_v56 = vpop.f32.mrf.mxu1 }
 0x4b3   : > { %v6443_v9 = vpop.f32.mrf.mxu2 }
 0x4b9   : > { %v6569_v6 = vpop.f32.mrf.mxu3 }
 0x4ba   : > { %v6245_v30 = vpop.f32.mrf.mxu1 }
 0x4bb   : > { %v6265_v18 = vadd.f32 %v6245_v30, %v6178_v34  ;;  %v6445_v50 = vpop.f32.mrf.mxu2 }
 0x4bd   : > { %v6463_v17 = vadd.f32 %v6443_v9, %v6265_v18  ;;  %v6780_v18 = vld [vmem:[#allocation5] sm:$0xf] }
 0x4be   : > { %v6804_v1 = vshll.u32 %v6780_v18, 16 }
 0x4bf   : > { %v6589_v4 = vadd.f32 %v6569_v6, %v6463_v17  ;;  %v6055_v6 = vadd.f32 %v13312_v38, %v5857_v43  ;;  %v6801_v38 = vshrl.u32 %v6780_v18, 16  ;;  %v6810_v18 = vshll.u32 %v13433_v61, 16 }
 0x4c1   : > { %v6600_v49 = vadd.f32 %v13395_v27, %v6589_v4  ;;  %v6571_v23 = vpop.f32.mrf.mxu3  ;;  %v6181_v28 = vadd.f32 %v13316_v11, %v6055_v6  ;;  %v6803_v0 = vrot.slane %v6801_v38, 4  ;;  %v5648_v11 = vadd.f32 %v13293_v57, %v13296_v60 }
 0x4c2   : > { %v6247_v46 = vpop.f32.mrf.mxu1 }
 0x4c3   : > { %v6608_v44 = vmax.f32 %v6600_v49, 0.0  ;;  %v6266_v37 = vadd.f32 %v6247_v46, %v6179_v15  ;;  %v6448_v51 = vpop.f32.mrf.mxu2  ;;  %v7056_v15 = vld [vmem:[#allocation5] sm:$0xe]  ;;  %v5858_v49 = vadd.f32 %v13320_v20, %v13243_v35  ;;  %v6738_v35 = vld [vmem:[#allocation5 + $0x10] sm:$0xf] }
 0x4c4   : > { %v6741_v20 = vld [vmem:[#allocation5 + $0x14] sm:$0x1] }
 0x4c5   : > { %v6639_v8 = vpack.c.bf16 %v6608_v44, %v6608_v44  ;;  %v6464_v12 = vadd.f32 %v6445_v50, %v6266_v37  ;;  %v9815_v37 = vrot.slane %v7056_v15, 9  ;;  %v6056_v24 = vadd.f32 %v13318_v48, %v5858_v49 }
 0x4c6   : > { %v5860_v15 = vadd.f32 %v13344_v47, %v13291_v45 }
 0x4c7   : > { %v6648_v14 = vshrl.u32 %v6639_v8, 16  ;;  %v6590_v36 = vadd.f32 %v6571_v23, %v6464_v12  ;;  %v6651_v33 = vshll.u32 %v6639_v8, 16  ;;  %v7082_v23 = vrot.slane %v13433_v61, 5 }
 0x4c8   : > { %v6182_v6 = vadd.f32 %v13322_v42, %v6056_v24  ;;  %v6744_v42 = vld [vmem:[#allocation5 + $0x18] sm:$0xf] }
 0x4c9   : > { %v6650_v29 = vrot.slane %v6648_v14, 7  ;;  %v6601_v13 = vadd.f32 %v13395_v27, %v6590_v36  ;;  %v6574_v19 = vpop.f32.mrf.mxu3  ;;  %v6806_v14 = vrot.slane %v6804_v1, 5  ;;  %v7083_v59 = vsel %vm11322_vm14, %v9815_v37, %v7082_v23  ;;  %v6747_v37 = vld [vmem:[#allocation5 + $0x1c] sm:$0x1] }
 0x4ca   : > { %v6250_v2 = vpop.f32.mrf.mxu1  ;;  %v7117_v49 = vunpack.c.l.b16 %v7083_v59 }
 0x4cb   : > { %v6653_v26 = vor.u32 %v6651_v33, %v6650_v29  ;;  %v6654_v34 = vrot.slane %v6650_v29, 4  ;;  %v6609_v62 = vmax.f32 %v6601_v13, 0.0  ;;  %v6267_v30 = vadd.f32 %v6250_v2, %v6180_v54  ;;  %v6450_v4 = vpop.f32.mrf.mxu2  ;;  %v9789_v13 = vld [vmem:[#allocation5] sm:$0xf] }
 0x4cd   : > { %v6731_v41 = vsel %vm13417_vm12, %v6653_v26, %v6730_v53  ;;  %v6736_v17 = vsel %vm13424_vm13, %v6654_v34, %v6735_v52  ;;  %v6640_v50 = vpack.c.bf16 %v6609_v62, %v6609_v62  ;;  %v6465_v31 = vadd.f32 %v6448_v51, %v6267_v30 }
 0x4ce   : > { %6732 = vst [vmem:[#allocation5 + $0x8] sm:$0xf] %v6731_v41  ;;  %v5859_v53 = vadd.f32 %v13326_v25, %v5773_v63  ;;  %v6807_v25 = vor.u32 %v6806_v14, %v6803_v0 }
 0x4cf   : > { %6737 = vst [vmem:[#allocation5 + $0xc] sm:$0x1] %v6736_v17  ;;  %v6656_v46 = vshrl.u32 %v6640_v50, 16  ;;  %v6591_v44 = vadd.f32 %v6574_v19, %v6465_v31  ;;  %v6659_v8 = vshll.u32 %v6640_v50, 16  ;;  %v10492_v31 = vld [vmem:[%s14143_s5 + $0x48] sm:$0xff] }
 0x4d0   : > { %7459 = vmatpush.bf16.msra.mxu1 %v10492_v31 }
 0x4d1   : > { %v6658_v5 = vrot.slane %v6656_v46, 7  ;;  %v6602_v12 = vadd.f32 %v13395_v27, %v6591_v44  ;;  %v6576_v33 = vpop.f32.mrf.mxu3 }
 0x4d2   : > { %v6252_v51 = vpop.f32.mrf.mxu1 }
 0x4d3   : > { %v6661_v36 = vor.u32 %v6659_v8, %v6658_v5  ;;  %v6662_v43 = vrot.slane %v6658_v5, 4  ;;  %v6610_v54 = vmax.f32 %v6602_v12, 0.0  ;;  %v6268_v29 = vadd.f32 %v6252_v51, %v6181_v28  ;;  %v6453_v30 = vpop.f32.mrf.mxu2 }
 0x4d4   : > { %v6808_v28 = vrot.slane %v6807_v25, 4  ;;  %v6812_v5 = vrot.slane %v6810_v18, 5 }
 0x4d5   : > { %v6739_v48 = vsel %vm13417_vm12, %v6661_v36, %v6738_v35  ;;  %v6742_v52 = vsel %vm13424_vm13, %v6662_v43, %v6741_v20  ;;  %v6641_v2 = vpack.c.bf16 %v6610_v54, %v6610_v54  ;;  %v6466_v26 = vadd.f32 %v6450_v4, %v6268_v29  ;;  %v10475_v34 = vld [vmem:[#allocation5 + $0x4] sm:$0xf0] }
 0x4d6   : > { %v7057_v62 = vld [vmem:[#allocation5 + $0x8] sm:$0xe]  ;;  %6740 = vst [vmem:[#allocation5 + $0x10] sm:$0xf] %v6739_v48  ;;  %v9790_v19 = vor.u32 %v10475_v34, %v9789_v13  ;;  %v6793_v57 = vld [vmem:[#allocation5 + $0xc] sm:$0x1]  ;;  %v6057_v4 = vadd.f32 %v13324_v40, %v5859_v53  ;;  %v5775_v13 = vadd.f32 %v13298_v58, %v5648_v11  ;;  %v6813_v34 = vsel %vm11186_vm6, %v6808_v28, %v6812_v5 }
 0x4d7   : > { %v9816_v60 = vrot.slane %v7057_v62, 9  ;;  %6743 = vst [vmem:[#allocation5 + $0x14] sm:$0x1] %v6742_v52  ;;  %v6664_v41 = vshrl.u32 %v6641_v2, 16  ;;  %v6592_v17 = vadd.f32 %v6576_v33, %v6466_v26  ;;  %v7086_v50 = vrot.slane %v6793_v57, 5 }
 0x4d8   : > { %v6667_v3 = vshll.u32 %v6641_v2, 16  ;;  %9811 = vmatmul.msk.bf16.vlgmr.msra.gmra.mxu2 %vm6941_vm8, %v9790_v19  ;;  %v6781_v61 = vld [vmem:[#allocation5 + $0x8] sm:$0xf]  ;;  %v6824_v0 = vshll.u32 %v6793_v57, 16  ;;  %v6183_v52 = vadd.f32 %v13328_v32, %v6057_v4  ;;  %v6917_v4 = vunpack.c.l.b16 %v6813_v34 }
 0x4d9   : > { %v6666_v38 = vrot.slane %v6664_v41, 7  ;;  %v6603_v1 = vadd.f32 %v13395_v27, %v6592_v17  ;;  %v7087_v46 = vsel %vm11322_vm14, %v9816_v60, %v7086_v50  ;;  %v6815_v44 = vshrl.u32 %v6781_v61, 16  ;;  %v6579_v24 = vpop.f32.mrf.mxu3  ;;  %v9845_v29 = vld [vmem:[#allocation5 + $0x8] sm:$0xf]  ;;  %v6750_v41 = vld [vmem:[#allocation5 + $0x20] sm:$0xf] }
 0x4da   : > { %v6255_v23 = vpop.f32.mrf.mxu1  ;;  %v7118_v40 = vunpack.c.l.b16 %v7087_v46  ;;  %v6818_v45 = vshll.u32 %v6781_v61, 16  ;;  %v6826_v57 = vrot.slane %v6824_v0, 5  ;;  %v6753_v17 = vld [vmem:[#allocation5 + $0x24] sm:$0x1] }
 0x4db   : > { %v6669_v47 = vor.u32 %v6667_v3, %v6666_v38  ;;  %v6670_v8 = vrot.slane %v6666_v38, 4  ;;  %v6611_v12 = vmax.f32 %v6603_v1, 0.0  ;;  %v6269_v63 = vadd.f32 %v6255_v23, %v6182_v6  ;;  %v6455_v58 = vpop.f32.mrf.mxu2 }
 0x4dc   : > { %v7125_v35 = vpack.c.b16 %v7118_v40, %v7117_v49  ;;  %v6817_v20 = vrot.slane %v6815_v44, 4  ;;  %v6820_v51 = vrot.slane %v6818_v45, 5  ;;  %v5861_v1 = vadd.f32 %v13367_v56, %v5775_v13 }
 0x4dd   : > { %v6745_v14 = vsel %vm13417_vm12, %v6669_v47, %v6744_v42  ;;  %v6748_v36 = vsel %vm13424_vm13, %v6670_v8, %v6747_v37  ;;  %v6642_v43 = vpack.c.bf16 %v6611_v12, %v6611_v12  ;;  %v6467_v54 = vadd.f32 %v6453_v30, %v6269_v63  ;;  %v10485_v33 = vld [vmem:[#allocation5 + $0xc] sm:$0xf0] }
 0x4de   : > { %6746 = vst [vmem:[#allocation5 + $0x18] sm:$0xf] %v6745_v14  ;;  %9835 = vmatmul.msk.bf16.vlgmr.msra.gmra.mxu3 %vm6941_vm8, %v7125_v35  ;;  %v9846_v53 = vor.u32 %v10485_v33, %v9845_v29  ;;  %v6821_v59 = vor.u32 %v6820_v51, %v6817_v20  ;;  %v7058_v48 = vld [vmem:[#allocation5 + $0x10] sm:$0xe]  ;;  %v13474_v62 = vld [vmem:[#allocation5 + $0x14] sm:$0x1]  ;;  %v6058_v30 = vadd.f32 %v13332_v16, %v5860_v15 }
 0x4df   : > { %6749 = vst [vmem:[#allocation5 + $0x1c] sm:$0x1] %v6748_v36  ;;  %v6672_v2 = vshrl.u32 %v6642_v43, 16  ;;  %v6593_v26 = vadd.f32 %v6579_v24, %v6467_v54  ;;  %v6675_v19 = vshll.u32 %v6642_v43, 16  ;;  %v6782_v60 = vld [vmem:[#allocation5 + $0x10] sm:$0xf]  ;;  %v6059_v43 = vadd.f32 %v13354_v22, %v5861_v1 }
 0x4e0   : > { %9867 = vmatmul.msk.bf16.vlgmr.msrb.gmra.mxu0 %vm6941_vm8, %v9846_v53  ;;  %v6822_v11 = vrot.slane %v6821_v59, 4  ;;  %v6829_v18 = vshrl.u32 %v6782_v60, 16  ;;  %v6832_v6 = vshll.u32 %v6782_v60, 16  ;;  %v9817_v16 = vrot.slane %v7058_v48, 9  ;;  %v9793_v45 = vld [vmem:[#allocation5 + $0x10] sm:$0xf] }
 0x4e1   : > { %v6674_v25 = vrot.slane %v6672_v2, 7  ;;  %v6604_v32 = vadd.f32 %v13395_v27, %v6593_v26  ;;  %v7090_v15 = vrot.slane %v13474_v62, 5  ;;  %v6581_v42 = vpop.f32.mrf.mxu3  ;;  %v6184_v36 = vadd.f32 %v13348_v7, %v6058_v30  ;;  %v10491_v7 = vld [vmem:[%s14143_s5 + $0x40] sm:$0xff]  ;;  %v6756_v22 = vld [vmem:[#allocation5 + $0x28] sm:$0xf] }
 0x4e2   : > { %v6257_v50 = vpop.f32.mrf.mxu1  ;;  %v6827_v31 = vsel %vm11186_vm6, %v6822_v11, %v6826_v57  ;;  %v6831_v44 = vrot.slane %v6829_v18, 4  ;;  %v6834_v37 = vrot.slane %v6832_v6, 5  ;;  %v6838_v33 = vshll.u32 %v13474_v62, 16  ;;  %7460 = vmatpush.bf16.msra.mxu1 %v10491_v7 }
 0x4e3   : > { %v6677_v3 = vor.u32 %v6675_v19, %v6674_v25  ;;  %v6678_v49 = vrot.slane %v6674_v25, 4  ;;  %v6612_v61 = vmax.f32 %v6604_v32, 0.0  ;;  %v6270_v38 = vadd.f32 %v6257_v50, %v6183_v52  ;;  %v6759_v52 = vld [vmem:[#allocation5 + $0x2c] sm:$0x1]  ;;  %v6458_v2 = vpop.f32.mrf.mxu2 }
 0x4e4   : > { %v6918_v46 = vunpack.c.l.b16 %v6827_v31  ;;  %v6835_v56 = vor.u32 %v6834_v37, %v6831_v44  ;;  %v7091_v0 = vsel %vm11322_vm14, %v9817_v16, %v7090_v15  ;;  %v6185_v44 = vadd.f32 %v13373_v55, %v6059_v43 }
 0x4e5   : > { %v6751_v23 = vsel %vm13417_vm12, %v6677_v3, %v6750_v41  ;;  %v6754_v40 = vsel %vm13424_vm13, %v6678_v49, %v6753_v17  ;;  %v6643_v28 = vpack.c.bf16 %v6612_v61, %v6612_v61  ;;  %v6468_v5 = vadd.f32 %v6455_v58, %v6270_v38  ;;  %v10476_v47 = vld [vmem:[#allocation5 + $0x14] sm:$0xf0] }
 0x4e6   : > { %v7059_v8 = vld [vmem:[#allocation5 + $0x18] sm:$0xe]  ;;  %6752 = vst [vmem:[#allocation5 + $0x20] sm:$0xf] %v6751_v23  ;;  %v6925_v12 = vpack.c.b16 %v6918_v46, %v6917_v4  ;;  %v9794_v63 = vor.u32 %v10476_v47, %v9793_v45  ;;  %v6795_v24 = vld [vmem:[#allocation5 + $0x1c] sm:$0x1]  ;;  %v7119_v34 = vunpack.c.l.b16 %v7091_v0 }
 0x4e7   : > { %v9818_v35 = vrot.slane %v7059_v8, 9  ;;  %6755 = vst [vmem:[#allocation5 + $0x24] sm:$0x1] %v6754_v40  ;;  %v6680_v20 = vshrl.u32 %v6643_v28, 16  ;;  %v6594_v51 = vadd.f32 %v6581_v42, %v6468_v5  ;;  %v7094_v14 = vrot.slane %v6795_v24, 5  ;;  %v10494_v5 = vld [vmem:[%s14143_s5 + $0x58] sm:$0xff] }
 0x4e8   : > { %v6683_v54 = vshll.u32 %v6643_v28, 16  ;;  %9783 = vmatmul.msk.bf16.vlgmr.msrb.gmra.mxu1 %vm6941_vm8, %v6925_v12  ;;  %9812 = vmatmul.msk.bf16.gmra.mxu2 %vm6941_vm8, %v9794_v63  ;;  %v6783_v29 = vld [vmem:[#allocation5 + $0x18] sm:$0xf]  ;;  %v6836_v19 = vrot.slane %v6835_v56, 4  ;;  %v6852_v41 = vshll.u32 %v6795_v24, 16  ;;  %v6840_v49 = vrot.slane %v6838_v33, 5 }
 0x4e9   : > { %v6682_v13 = vrot.slane %v6680_v20, 7  ;;  %v6605_v53 = vadd.f32 %v13395_v27, %v6594_v51  ;;  %v7095_v59 = vsel %vm11322_vm14, %v9818_v35, %v7094_v14  ;;  %v6843_v48 = vshrl.u32 %v6783_v29, 16  ;;  %v6584_v25 = vpop.f32.mrf.mxu3  ;;  %v9849_v16 = vld [vmem:[#allocation5 + $0x18] sm:$0xf]  ;;  %v6762_v8 = vld [vmem:[#allocation5 + $0x30] sm:$0xf]  ;;  %7593 = vmatpush.bf16.msrb.mxu2 %v10494_v5 }
 0x4ea   : > { %v6260_v26 = vpop.f32.mrf.mxu1  ;;  %v7120_v30 = vunpack.c.l.b16 %v7095_v59  ;;  %v6846_v58 = vshll.u32 %v6783_v29, 16  ;;  %v6841_v37 = vsel %vm11186_vm6, %v6836_v19, %v6840_v49  ;;  %v6854_v40 = vrot.slane %v6852_v41, 5  ;;  %v6765_v24 = vld [vmem:[#allocation5 + $0x34] sm:$0x1]  ;;  %v6768_v49 = vld [vmem:[#allocation5 + $0x38] sm:$0xf] }
 0x4eb   : > { %v6685_v62 = vor.u32 %v6683_v54, %v6682_v13  ;;  %v6686_v11 = vrot.slane %v6682_v13, 4  ;;  %v6613_v57 = vmax.f32 %v6605_v53, 0.0  ;;  %v6271_v60 = vadd.f32 %v6260_v26, %v6184_v36  ;;  %v6460_v54 = vpop.f32.mrf.mxu2 }
 0x4ec   : > { %v7126_v32 = vpack.c.b16 %v7120_v30, %v7119_v34  ;;  %v6845_v18 = vrot.slane %v6843_v48, 4  ;;  %v6848_v6 = vrot.slane %v6846_v58, 5  ;;  %v6919_v29 = vunpack.c.l.b16 %v6841_v37 }
 0x4ed   : > { %v6757_v17 = vsel %vm13417_vm12, %v6685_v62, %v6756_v22  ;;  %v6760_v50 = vsel %vm13424_vm13, %v6686_v11, %v6759_v52  ;;  %v6644_v31 = vpack.c.bf16 %v6613_v57, %v6613_v57  ;;  %v6469_v4 = vadd.f32 %v6458_v2, %v6271_v60  ;;  %v10486_v15 = vld [vmem:[#allocation5 + $0x1c] sm:$0xf0] }
 0x4ee   : > { %6758 = vst [vmem:[#allocation5 + $0x28] sm:$0xf] %v6757_v17  ;;  %9836 = vmatmul.msk.bf16.gmra.mxu3 %vm6941_vm8, %v7126_v32  ;;  %v9850_v3 = vor.u32 %v10486_v15, %v9849_v16  ;;  %v6849_v61 = vor.u32 %v6848_v6, %v6845_v18  ;;  %v7060_v38 = vld [vmem:[#allocation5 + $0x20] sm:$0xe]  ;;  %v13505_v46 = vld [vmem:[#allocation5 + $0x24] sm:$0x1] }
 0x4ef   : > { %6761 = vst [vmem:[#allocation5 + $0x2c] sm:$0x1] %v6760_v50  ;;  %v6688_v42 = vshrl.u32 %v6644_v31, 16  ;;  %v6595_v1 = vadd.f32 %v6584_v25, %v6469_v4  ;;  %v6784_v28 = vld [vmem:[#allocation5 + $0x20] sm:$0xf]  ;;  %v6691_v47 = vshll.u32 %v6644_v31, 16 }
 0x4f0   : > { %9868 = vmatmul.msk.bf16.gmra.mxu0 %vm6941_vm8, %v9850_v3  ;;  %v6850_v23 = vrot.slane %v6849_v61, 4  ;;  %v6857_v63 = vshrl.u32 %v6784_v28, 16  ;;  %v9819_v56 = vrot.slane %v7060_v38, 9  ;;  %v7098_v20 = vrot.slane %v13505_v46, 5  ;;  %v9797_v52 = vld [vmem:[#allocation5 + $0x20] sm:$0xf] }
 0x4f1   : > { %v6690_v45 = vrot.slane %v6688_v42, 7  ;;  %v6606_v12 = vadd.f32 %v13395_v27, %v6595_v1  ;;  %v6860_v51 = vshll.u32 %v6784_v28, 16  ;;  %v6586_v34 = vpop.f32.mrf.mxu3  ;;  %v6866_v41 = vshll.u32 %v13505_v46, 16  ;;  %v10493_v17 = vld [vmem:[%s14143_s5 + $0x50] sm:$0xff]  ;;  %v10500_v50 = vld [vmem:[%s14143_s5 + $0x68] sm:$0xff]  ;;  %v10502_v3 = vld [vmem:[%s14143_s5 + $0x78] sm:$0xff] }
 0x4f2   : > { %v6262_v55 = vpop.f32.mrf.mxu1  ;;  %v6855_v35 = vsel %vm11186_vm6, %v6850_v23, %v6854_v40  ;;  %v6859_v13 = vrot.slane %v6857_v63, 4  ;;  %v7099_v25 = vsel %vm11322_vm14, %v9819_v56, %v7098_v20  ;;  %v6771_v61 = vld [vmem:[#allocation5 + $0x3c] sm:$0x1]  ;;  %7594 = vmatpush.bf16.msrb.mxu2 %v10493_v17  ;;  %7688 = vmatpush.bf16.msrb.mxu3 %v10500_v50  ;;  %v13546_v56 = vld [vmem:[#allocation5 + $0x14] sm:$0x1] }
 0x4f3   : > { %v6693_v0 = vor.u32 %v6691_v47, %v6690_v45  ;;  %v6694_v14 = vrot.slane %v6690_v45, 4  ;;  %v6614_v36 = vmax.f32 %v6606_v12, 0.0  ;;  %v6272_v43 = vadd.f32 %v6262_v55, %v6185_v44  ;;  %7894 = vmatpush.bf16.msra.mxu0 %v10502_v3  ;;  %v10499_v40 = vld [vmem:[%s14143_s5 + $0x60] sm:$0xff] }
 0x4f4   : > { %v6920_v33 = vunpack.c.l.b16 %v6855_v35  ;;  %v6862_v53 = vrot.slane %v6860_v51, 5  ;;  %v7121_v38 = vunpack.c.l.b16 %v7099_v25  ;;  %v6868_v5 = vrot.slane %v6866_v41, 5 }
 0x4f5   : > { %v6763_v59 = vsel %vm13417_vm12, %v6693_v0, %v6762_v8  ;;  %v6766_v48 = vsel %vm13424_vm13, %v6694_v14, %v6765_v24  ;;  %v6645_v7 = vpack.c.bf16 %v6614_v36, %v6614_v36  ;;  %v6470_v22 = vadd.f32 %v6460_v54, %v6272_v43  ;;  %v10477_v2 = vld [vmem:[#allocation5 + $0x24] sm:$0xf0]  ;;  %v7719_v54 = vld [vmem:[#allocation5 + $0x10] sm:$0xf] }
 0x4f6   : > { %v7061_v26 = vld [vmem:[#allocation5 + $0x28] sm:$0xe]  ;;  %6764 = vst [vmem:[#allocation5 + $0x30] sm:$0xf] %v6763_v59  ;;  %v6926_v30 = vpack.c.b16 %v6920_v33, %v6919_v29  ;;  %v9798_v19 = vor.u32 %v10477_v2, %v9797_v52  ;;  %v6797_v58 = vld [vmem:[#allocation5 + $0x2c] sm:$0x1]  ;;  %v6863_v11 = vor.u32 %v6862_v53, %v6859_v13  ;;  %7689 = vmatpush.bf16.msrb.mxu3 %v10499_v40 }
 0x4f7   : > { %v9820_v62 = vrot.slane %v7061_v26, 9  ;;  %6767 = vst [vmem:[#allocation5 + $0x34] sm:$0x1] %v6766_v48  ;;  %v6696_v57 = vshrl.u32 %v6645_v7, 16  ;;  %v6596_v60 = vadd.f32 %v6586_v34, %v6470_v22  ;;  %v7102_v32 = vrot.slane %v6797_v58, 5  ;;  %v10501_v14 = vld [vmem:[%s14143_s5 + $0x70] sm:$0xff] }
 0x4f8   : > { %v6699_v18 = vshll.u32 %v6645_v7, 16  ;;  %9784 = vmatmul.msk.bf16.gmra.mxu1 %vm6941_vm8, %v6926_v30  ;;  %9813 = vmatmul.msk.bf16.gmra.mxu2 %vm6941_vm8, %v9798_v19  ;;  %v6785_v6 = vld [vmem:[#allocation5 + $0x28] sm:$0xf]  ;;  %v6864_v1 = vrot.slane %v6863_v11, 4  ;;  %v6880_v47 = vshll.u32 %v6797_v58, 16  ;;  %v7520_v58 = vrot.slane %v13546_v56, 5 }
 0x4f9   : > { %v6698_v31 = vrot.slane %v6696_v57, 7  ;;  %v6607_v4 = vadd.f32 %v13395_v27, %v6596_v60  ;;  %v7103_v16 = vsel %vm11322_vm14, %v9820_v62, %v7102_v32  ;;  %v6871_v15 = vshrl.u32 %v6785_v6, 16  ;;  %v9853_v24 = vld [vmem:[#allocation5 + $0x28] sm:$0xf]  ;;  %v13558_v2 = vld [vmem:[#allocation5 + $0x10] sm:$0xe]  ;;  %7895 = vmatpush.bf16.msra.mxu0 %v10501_v14 }
 0x4fa   : > { %v7122_v42 = vunpack.c.l.b16 %v7103_v16  ;;  %v6874_v46 = vshll.u32 %v6785_v6, 16  ;;  %v6869_v43 = vsel %vm11186_vm6, %v6864_v1, %v6868_v5  ;;  %v6882_v13 = vrot.slane %v6880_v47, 5  ;;  %v6774_v26 = vld [vmem:[#allocation5 + $0x40] sm:$0xf]  ;;  %v6777_v34 = vld [vmem:[#allocation5 + $0x44] sm:$0x1] }
 0x4fb   : > { %v6701_v44 = vor.u32 %v6699_v18, %v6698_v31  ;;  %v6702_v37 = vrot.slane %v6698_v31, 4  ;;  %v6615_v23 = vmax.f32 %v6607_v4, 0.0  ;;  %v6873_v27 = vrot.slane %v6871_v15, 4  ;;  %v7721_v32 = vld [vmem:[#allocation5 + $0x18] sm:$0xf] }
 0x4fc   : > { %v7127_v28 = vpack.c.b16 %v7122_v42, %v7121_v38  ;;  %v6876_v45 = vrot.slane %v6874_v46, 5  ;;  %v6921_v19 = vunpack.c.l.b16 %v6869_v43  ;;  %v7736_v62 = vshrl.u32 %v7719_v54, 16  ;;  %v13571_v46 = vld [vmem:[#allocation5 + $0xc] sm:$0x1] }
 0x4fd   : > { %v6769_v8 = vsel %vm13417_vm12, %v6701_v44, %v6768_v49  ;;  %v6772_v12 = vsel %vm13424_vm13, %v6702_v37, %v6771_v61  ;;  %v6646_v63 = vpack.c.bf16 %v6615_v23, %v6615_v23  ;;  %v10487_v55 = vld [vmem:[#allocation5 + $0x2c] sm:$0xf0]  ;;  %v9888_v41 = vrot.slane %v13558_v2, 9 }
 0x4fe   : > { %v7062_v35 = vld [vmem:[#allocation5 + $0x30] sm:$0xe]  ;;  %6770 = vst [vmem:[#allocation5 + $0x38] sm:$0xf] %v6769_v8  ;;  %9837 = vmatmul.msk.bf16.gmra.mxu3 %vm6941_vm8, %v7127_v28  ;;  %v9854_v20 = vor.u32 %v10487_v55, %v9853_v24  ;;  %v6877_v51 = vor.u32 %v6876_v45, %v6873_v27  ;;  %v13549_v0 = vld [vmem:[#allocation5 + $0x34] sm:$0x1] }
 0x4ff   : > { %6773 = vst [vmem:[#allocation5 + $0x3c] sm:$0x1] %v6772_v12  ;;  %v6704_v36 = vshrl.u32 %v6646_v63, 16  ;;  %v6707_v29 = vshll.u32 %v6646_v63, 16  ;;  %v9821_v53 = vrot.slane %v7062_v35, 9  ;;  %v7106_v7 = vrot.slane %v13549_v0, 5 }
 0x500   : > { %9869 = vmatmul.msk.bf16.gmra.mxu0 %vm6941_vm8, %v9854_v20  ;;  %v6878_v33 = vrot.slane %v6877_v51, 4  ;;  %v6786_v59 = vld [vmem:[#allocation5 + $0x30] sm:$0xf]  ;;  %v6894_v6 = vshll.u32 %v13549_v0, 16  ;;  %v7739_v17 = vshll.u32 %v7719_v54, 16  ;;  %v7750_v44 = vshrl.u32 %v7721_v32, 16 }
 0x501   : > { %v6706_v48 = vrot.slane %v6704_v36, 7  ;;  %v6885_v22 = vshrl.u32 %v6786_v59, 16  ;;  %v6888_v52 = vshll.u32 %v6786_v59, 16  ;;  %v9801_v16 = vld [vmem:[#allocation5 + $0x30] sm:$0xf]  ;;  %v7107_v49 = vsel %vm11322_vm14, %v9821_v53, %v7106_v7  ;;  %v10504_v45 = vld [vmem:[%s14143_s5 + $0x88] sm:$0xff] }
 0x502   : > { %v6883_v30 = vsel %vm11186_vm6, %v6878_v33, %v6882_v13  ;;  %v7738_v39 = vrot.slane %v7736_v62, 4  ;;  %v7123_v23 = vunpack.c.l.b16 %v7107_v49  ;;  %v7490_v28 = vld [vmem:[#allocation5 + $0x8] sm:$0xe]  ;;  %v7741_v5 = vrot.slane %v7739_v17, 5  ;;  %8028 = vmatpush.bf16.msrb.mxu1 %v10504_v45  ;;  %v7286_v54 = vld [vmem:[#allocation5 + $0x10] sm:$0xf] }
 0x503   : > { %v6709_v11 = vor.u32 %v6707_v29, %v6706_v48  ;;  %v6710_v57 = vrot.slane %v6706_v48, 4  ;;  %v6922_v60 = vunpack.c.l.b16 %v6883_v30  ;;  %v6887_v25 = vrot.slane %v6885_v22, 4  ;;  %v7284_v51 = vld [vmem:[#allocation5 + $0x8] sm:$0xf]  ;;  %v13583_v59 = vld [vmem:[#allocation5 + $0x14] sm:$0x1] }
 0x504   : > { %v6890_v18 = vrot.slane %v6888_v52, 5  ;;  %v7753_v63 = vshll.u32 %v7721_v32, 16  ;;  %v7752_v20 = vrot.slane %v7750_v44, 4  ;;  %v6896_v0 = vrot.slane %v6894_v6, 5  ;;  %v13585_v48 = vld [vmem:[#allocation5 + $0x1c] sm:$0x1] }
 0x505   : > { %v6775_v50 = vsel %vm13417_vm12, %v6709_v11, %v6774_v26  ;;  %v6778_v31 = vsel %vm13424_vm13, %v6710_v57, %v6777_v34  ;;  %v6927_v4 = vpack.c.b16 %v6922_v60, %v6921_v19  ;;  %v10478_v15 = vld [vmem:[#allocation5 + $0x34] sm:$0xf0]  ;;  %v9887_v14 = vrot.slane %v7490_v28, 9  ;;  %v13597_v44 = vld [vmem:[#allocation5 + $0x24] sm:$0x1] }
 0x506   : > { %v7063_v3 = vld [vmem:[#allocation5 + $0x38] sm:$0xe]  ;;  %6776 = vst [vmem:[#allocation5 + $0x40] sm:$0xf] %v6775_v50  ;;  %v9802_v61 = vor.u32 %v10478_v15, %v9801_v16  ;;  %v6799_v38 = vld [vmem:[#allocation5 + $0x3c] sm:$0x1]  ;;  %v6891_v1 = vor.u32 %v6890_v18, %v6887_v25  ;;  %v7521_v53 = vsel %vm11322_vm14, %v9888_v41, %v7520_v58  ;;  %v7742_v7 = vor.u32 %v7741_v5, %v7738_v39 }
 0x507   : > { %v9822_v42 = vrot.slane %v7063_v3, 9  ;;  %6779 = vst [vmem:[#allocation5 + $0x44] sm:$0x1] %v6778_v31  ;;  %v7110_v9 = vrot.slane %v6799_v38, 5  ;;  %v6787_v37 = vld [vmem:[#allocation5 + $0x38] sm:$0xf]  ;;  %v7552_v25 = vunpack.c.l.b16 %v7521_v53 }
 0x508   : > { %9785 = vmatmul.msk.bf16.gmra.mxu1 %vm6941_vm8, %v6927_v4  ;;  %9814 = vmatmul.msk.bf16.gmra.mxu2 %vm6941_vm8, %v9802_v61  ;;  %v6899_v27 = vshrl.u32 %v6787_v37, 16  ;;  %v6902_v40 = vshll.u32 %v6787_v37, 16  ;;  %v6892_v8 = vrot.slane %v6891_v1, 4  ;;  %v6908_v12 = vshll.u32 %v6799_v38, 16  ;;  %v9857_v33 = vld [vmem:[#allocation5 + $0x38] sm:$0xf] }
 0x509   : > { %v7111_v47 = vsel %vm11322_vm14, %v9822_v42, %v7110_v9  ;;  %v7516_v36 = vrot.slane %v13571_v46, 5  ;;  %v7755_v43 = vrot.slane %v7753_v63, 5  ;;  %v7301_v26 = vshrl.u32 %v7284_v51, 16  ;;  %v7725_v42 = vld [vmem:[#allocation5 + $0x28] sm:$0xf] }
 0x50a   : > { %v7124_v24 = vunpack.c.l.b16 %v7111_v47  ;;  %v6901_v55 = vrot.slane %v6899_v27, 4  ;;  %v6904_v35 = vrot.slane %v6902_v40, 5  ;;  %v6897_v52 = vsel %vm11186_vm6, %v6892_v8, %v6896_v0  ;;  %v7493_v9 = vld [vmem:[#allocation5 + $0x20] sm:$0xe]  ;;  %v13603_v28 = vld [vmem:[#allocation5 + $0x1c] sm:$0x1] }
 0x50b   : > { %v6910_v2 = vrot.slane %v6908_v12, 5  ;;  %v7304_v34 = vshll.u32 %v7284_v51, 16  ;;  %v7756_v62 = vor.u32 %v7755_v43, %v7752_v20  ;;  %v7315_v11 = vshrl.u32 %v7286_v54, 16  ;;  %v7723_v37 = vld [vmem:[#allocation5 + $0x20] sm:$0xf] }
 0x50c   : > { %v7128_v29 = vpack.c.b16 %v7124_v24, %v7123_v23  ;;  %v6905_v13 = vor.u32 %v6904_v35, %v6901_v55  ;;  %v7517_v58 = vsel %vm11322_vm14, %v9887_v14, %v7516_v36  ;;  %v7318_v57 = vshll.u32 %v7286_v54, 16  ;;  %v7492_v5 = vld [vmem:[#allocation5 + $0x18] sm:$0xe]  ;;  %v9917_v51 = vld [vmem:[#allocation5 + $0x10] sm:$0xf] }
 0x50d   : > { %v10488_v22 = vld [vmem:[#allocation5 + $0x3c] sm:$0xf0]  ;;  %v7745_v32 = vshll.u32 %v13583_v59, 16  ;;  %v7759_v18 = vshll.u32 %v13585_v48, 16  ;;  %v6923_v6 = vunpack.c.l.b16 %v6897_v52  ;;  %v7743_v17 = vrot.slane %v7742_v7, 4 }
 0x50e   : > { %9838 = vmatmul.msk.bf16.gmra.mxu3 %vm6941_vm8, %v7128_v29  ;;  %v9858_v30 = vor.u32 %v10488_v22, %v9857_v33  ;;  %v6906_v19 = vrot.slane %v6905_v13, 4  ;;  %v7303_v50 = vrot.slane %v7301_v26, 4  ;;  %v7757_v31 = vrot.slane %v7756_v62, 4  ;;  %v10495_v45 = vld [vmem:[#allocation5 + $0x14] sm:$0xf0] }
 0x50f   : > { %v7306_v4 = vrot.slane %v7304_v34, 5  ;;  %v7317_v16 = vrot.slane %v7315_v11, 4  ;;  %v7320_v15 = vrot.slane %v7318_v57, 5  ;;  %v7551_v3 = vunpack.c.l.b16 %v7517_v58  ;;  %v7288_v53 = vld [vmem:[#allocation5 + $0x18] sm:$0xf] }
 0x510   : > { %9870 = vmatmul.msk.bf16.gmra.mxu0 %vm6941_vm8, %v9858_v30  ;;  %v6911_v60 = vsel %vm11186_vm6, %v6906_v19, %v6910_v2  ;;  %v7747_v61 = vrot.slane %v7745_v32, 5  ;;  %v7761_v38 = vrot.slane %v7759_v18, 5  ;;  %v7310_v47 = vshll.u32 %v13571_v46, 16  ;;  %v7290_v26 = vld [vmem:[#allocation5 + $0x20] sm:$0xf] }
 0x511   : > { %v6924_v41 = vunpack.c.l.b16 %v6911_v60  ;;  %v7559_v1 = vpack.c.b16 %v7552_v25, %v7551_v3  ;;  %v7307_v27 = vor.u32 %v7306_v4, %v7303_v50  ;;  %v7321_v40 = vor.u32 %v7320_v15, %v7317_v16  ;;  %v13615_v19 = vld [vmem:[#allocation5 + $0x24] sm:$0x1]  ;;  %v13617_v62 = vld [vmem:[#allocation5 + $0x2c] sm:$0x1]  ;;  %v7729_v16 = vld [vmem:[#allocation5 + $0x38] sm:$0xf] }
 0x512   : > { %v7748_v39 = vsel %vm11186_vm6, %v7743_v17, %v7747_v61  ;;  %v7762_v23 = vsel %vm11186_vm6, %v7757_v31, %v7761_v38  ;;  %v7324_v8 = vshll.u32 %v13546_v56, 16  ;;  %v7778_v12 = vshrl.u32 %v7725_v42, 16  ;;  %v7727_v61 = vld [vmem:[#allocation5 + $0x30] sm:$0xf] }
 0x513   : > { %v6928_v49 = vpack.c.b16 %v6924_v41, %v6923_v6  ;;  %v7781_v63 = vshll.u32 %v7725_v42, 16  ;;  %v9890_v24 = vrot.slane %v7493_v9, 9  ;;  %v7528_v55 = vrot.slane %v13597_v44, 5 }
 0x514   : > { %v7764_v35 = vshrl.u32 %v7723_v37, 16  ;;  %v7767_v20 = vshll.u32 %v7723_v37, 16  ;;  %v7853_v0 = vunpack.c.l.b16 %v7762_v23  ;;  %v9889_v14 = vrot.slane %v7492_v5, 9  ;;  %v13627_v37 = vld [vmem:[#allocation5 + $0x2c] sm:$0x1] }
 0x515   : > { %v7524_v36 = vrot.slane %v13603_v28, 5  ;;  %v9918_v43 = vor.u32 %v10495_v45, %v9917_v51  ;;  %v7308_v46 = vrot.slane %v7307_v27, 4  ;;  %v7322_v54 = vrot.slane %v7321_v40, 4  ;;  %v13629_v5 = vld [vmem:[#allocation5 + $0x34] sm:$0x1] }
 0x516   : > { %v7852_v56 = vunpack.c.l.b16 %v7748_v39  ;;  %v7312_v29 = vrot.slane %v7310_v47, 5  ;;  %v7780_v33 = vrot.slane %v7778_v12, 4  ;;  %v7783_v13 = vrot.slane %v7781_v63, 5  ;;  %v7494_v39 = vld [vmem:[#allocation5 + $0x28] sm:$0xe] }
 0x517   : > { %v7326_v7 = vrot.slane %v7324_v8, 5  ;;  %v7529_v22 = vsel %vm11322_vm14, %v9890_v24, %v7528_v55  ;;  %v7766_v52 = vrot.slane %v7764_v35, 4  ;;  %v7769_v2 = vrot.slane %v7767_v20, 5  ;;  %v7495_v8 = vld [vmem:[#allocation5 + $0x30] sm:$0xe] }
 0x518   : > { %9786 = vmatmul.msk.bf16.gmra.mxu1 %vm6941_vm8, %v6928_v49  ;;  %9907 = vmatmul.msk.bf16.vlgmr.msrb.gmra.mxu2 %vm6941_vm8, %v7559_v1  ;;  %v7860_v34 = vpack.c.b16 %v7853_v0, %v7852_v56  ;;  %v7525_v30 = vsel %vm11322_vm14, %v9889_v14, %v7524_v36  ;;  %v7313_v11 = vsel %vm11186_vm6, %v7308_v46, %v7312_v29  ;;  %v7329_v57 = vshrl.u32 %v7288_v53, 16  ;;  %v7292_v0 = vld [vmem:[#allocation5 + $0x28] sm:$0xf] }
 0x519   : > { %v7327_v58 = vsel %vm11186_vm6, %v7322_v54, %v7326_v7  ;;  %v7332_v60 = vshll.u32 %v7288_v53, 16  ;;  %v7554_v25 = vunpack.c.l.b16 %v7529_v22  ;;  %v7784_v32 = vor.u32 %v7783_v13, %v7780_v33  ;;  %v10496_v14 = vld [vmem:[#allocation5 + $0x24] sm:$0xf0]  ;;  %v7294_v33 = vld [vmem:[#allocation5 + $0x30] sm:$0xf]  ;;  %v10503_v13 = vld [vmem:[%s14143_s5 + $0x80] sm:$0xff] }
 0x51a   : > { %v7343_v18 = vshrl.u32 %v7290_v26, 16  ;;  %v7346_v6 = vshll.u32 %v7290_v26, 16  ;;  %v7770_v41 = vor.u32 %v7769_v2, %v7766_v52  ;;  %v7773_v17 = vshll.u32 %v13615_v19, 16  ;;  %v9921_v53 = vld [vmem:[#allocation5 + $0x20] sm:$0xf]  ;;  %8029 = vmatpush.bf16.msrb.mxu1 %v10503_v13 }
 0x51b   : > { %v7787_v50 = vshll.u32 %v13617_v62, 16  ;;  %v7418_v31 = vunpack.c.l.b16 %v7327_v58  ;;  %v7553_v4 = vunpack.c.l.b16 %v7525_v30  ;;  %v7417_v15 = vunpack.c.l.b16 %v7313_v11  ;;  %v13644_v58 = vld [vmem:[#allocation5 + $0x3c] sm:$0x1] }
 0x51c   : > { %v7331_v3 = vrot.slane %v7329_v57, 4  ;;  %v7334_v49 = vrot.slane %v7332_v60, 5  ;;  %v7785_v42 = vrot.slane %v7784_v32, 4  ;;  %v7345_v1 = vrot.slane %v7343_v18, 4  ;;  %v13646_v60 = vld [vmem:[#allocation5 + $0x34] sm:$0x1] }
 0x51d   : > { %v7560_v38 = vpack.c.b16 %v7554_v25, %v7553_v4  ;;  %v7348_v9 = vrot.slane %v7346_v6, 5  ;;  %v7771_v23 = vrot.slane %v7770_v41, 4  ;;  %v7775_v27 = vrot.slane %v7773_v17, 5 }
 0x51e   : > { %9939 = vmatmul.msk.bf16.vlgmr.msrb.gmra.mxu3 %vm6941_vm8, %v9918_v43  ;;  %v7789_v40 = vrot.slane %v7787_v50, 5  ;;  %v7806_v45 = vshrl.u32 %v7729_v16, 16  ;;  %v7425_v47 = vpack.c.b16 %v7418_v31, %v7417_v15  ;;  %v7792_v12 = vshrl.u32 %v7727_v61, 16 }
 0x51f   : > { %v7795_v63 = vshll.u32 %v7727_v61, 16  ;;  %v7809_v24 = vshll.u32 %v7729_v16, 16  ;;  %v7335_v55 = vor.u32 %v7334_v49, %v7331_v3  ;;  %v7338_v35 = vshll.u32 %v13603_v28, 16  ;;  %v13656_v61 = vld [vmem:[#allocation5 + $0x34] sm:$0xf0] }
 0x520   : > { %9955 = vmatmul.msk.bf16.vlgmr.msra.gmra.mxu0 %vm6941_vm8, %v7860_v34  ;;  %v7352_v20 = vshll.u32 %v13597_v44, 16  ;;  %v9891_v51 = vrot.slane %v7494_v39, 9  ;;  %v7790_v36 = vsel %vm11186_vm6, %v7785_v42, %v7789_v40  ;;  %v7349_v43 = vor.u32 %v7348_v9, %v7345_v1  ;;  %v13662_v40 = vld [vmem:[#allocation5 + $0x30] sm:$0xf] }
 0x521   : > { %v7808_v46 = vrot.slane %v7806_v45, 4  ;;  %v7811_v54 = vrot.slane %v7809_v24, 5  ;;  %v7776_v56 = vsel %vm11186_vm6, %v7771_v23, %v7775_v27  ;;  %v7532_v28 = vrot.slane %v13627_v37, 5  ;;  %v13664_v45 = vld [vmem:[#allocation5 + $0x44] sm:$0x1] }
 0x522   : > { %v9892_v29 = vrot.slane %v7495_v8, 9  ;;  %v7536_v44 = vrot.slane %v13629_v5, 5  ;;  %v7794_v7 = vrot.slane %v7792_v12, 4  ;;  %v7797_v22 = vrot.slane %v7795_v63, 5 }
 0x523   : > { %v7357_v52 = vshrl.u32 %v7292_v0, 16  ;;  %v7360_v2 = vshll.u32 %v7292_v0, 16  ;;  %v9922_v26 = vor.u32 %v10496_v14, %v9921_v53  ;;  %v7855_v34 = vunpack.c.l.b16 %v7790_v36  ;;  %v7731_v36 = vld [vmem:[#allocation5 + $0x40] sm:$0xf]  ;;  %v7733_v53 = vld [vmem:[#allocation5 + $0x48] sm:$0xf] }
 0x524   : > { %v7336_v30 = vrot.slane %v7335_v55, 4  ;;  %v7340_v11 = vrot.slane %v7338_v35, 5  ;;  %v7350_v57 = vrot.slane %v7349_v43, 4  ;;  %v7812_v25 = vor.u32 %v7811_v54, %v7808_v46  ;;  %v13668_v55 = vld [vmem:[#allocation5 + $0x3c] sm:$0x1] }
 0x525   : > { %v7371_v32 = vshrl.u32 %v7294_v33, 16  ;;  %v7374_v18 = vshll.u32 %v7294_v33, 16  ;;  %v7854_v6 = vunpack.c.l.b16 %v7776_v56  ;;  %v7354_v41 = vrot.slane %v7352_v20, 5  ;;  %v7496_v35 = vld [vmem:[#allocation5 + $0x38] sm:$0xe] }
 0x526   : > { %v7533_v17 = vsel %vm11322_vm14, %v9891_v51, %v7532_v28  ;;  %v7537_v50 = vsel %vm11322_vm14, %v9892_v29, %v7536_v44  ;;  %v7798_v31 = vor.u32 %v7797_v22, %v7794_v7  ;;  %v7815_v4 = vshll.u32 %v13644_v58, 16  ;;  %v7925_v28 = vld [vmem:[#allocation5 + $0x10] sm:$0xe] }
 0x527   : > { %v7359_v16 = vrot.slane %v7357_v52, 4  ;;  %v7362_v15 = vrot.slane %v7360_v2, 5  ;;  %v7861_v3 = vpack.c.b16 %v7855_v34, %v7854_v6  ;;  %v7341_v49 = vsel %vm11186_vm6, %v7336_v30, %v7340_v11  ;;  %v7926_v30 = vld [vmem:[#allocation5 + $0x18] sm:$0xe] }
 0x528   : > { %9883 = vmatmul.msk.bf16.vlgmr.msra.gmra.mxu1 %vm6941_vm8, %v7425_v47  ;;  %9908 = vmatmul.msk.bf16.gmra.mxu2 %vm6941_vm8, %v7560_v38  ;;  %v7801_v38 = vshll.u32 %v13646_v60, 16  ;;  %v7355_v42 = vsel %vm11186_vm6, %v7350_v57, %v7354_v41  ;;  %v7813_v1 = vrot.slane %v7812_v25, 4  ;;  %v7373_v9 = vrot.slane %v7371_v32, 4  ;;  %v7497_v47 = vld [vmem:[#allocation5 + $0x40] sm:$0xe] }
 0x529   : > { %v7376_v39 = vrot.slane %v7374_v18, 5  ;;  %v7555_v23 = vunpack.c.l.b16 %v7533_v17  ;;  %v7556_v27 = vunpack.c.l.b16 %v7537_v50  ;;  %v9926_v8 = vor.u32 %v13656_v61, %v13662_v40  ;;  %v7927_v18 = vld [vmem:[#allocation5 + $0x20] sm:$0xe] }
 0x52a   : > { %v7799_v12 = vrot.slane %v7798_v31, 4  ;;  %v7817_v63 = vrot.slane %v7815_v4, 5  ;;  %v7363_v24 = vor.u32 %v7362_v15, %v7359_v16  ;;  %v7419_v20 = vunpack.c.l.b16 %v7341_v49 }
 0x52b   : > { %v7420_v51 = vunpack.c.l.b16 %v7355_v42  ;;  %v7803_v0 = vrot.slane %v7801_v38, 5  ;;  %v7366_v14 = vshll.u32 %v13627_v37, 16  ;;  %v7377_v46 = vor.u32 %v7376_v39, %v7373_v9  ;;  %v13698_v38 = vld [vmem:[#allocation5 + $0x4c] sm:$0x1] }
 0x52c   : > { %v7818_v43 = vsel %vm11186_vm6, %v7813_v1, %v7817_v63  ;;  %v9894_v54 = vrot.slane %v7497_v47, 9  ;;  %v7544_v56 = vrot.slane %v13664_v45, 5  ;;  %v7561_v29 = vpack.c.b16 %v7556_v27, %v7555_v23  ;;  %v7298_v47 = vld [vmem:[#allocation5 + $0x40] sm:$0xf] }
 0x52d   : > { %v7380_v44 = vshll.u32 %v13629_v5, 16  ;;  %v9893_v33 = vrot.slane %v7496_v35, 9  ;;  %v7540_v13 = vrot.slane %v13668_v55, 5  ;;  %v7804_v7 = vsel %vm11186_vm6, %v7799_v12, %v7803_v0  ;;  %v7929_v12 = vld [vmem:[#allocation5 + $0x30] sm:$0xe] }
 0x52e   : > { %9940 = vmatmul.msk.bf16.gmra.mxu3 %vm6941_vm8, %v9922_v26  ;;  %v13678_v37 = vrot.slane %v7363_v24, 4  ;;  %v7820_v22 = vshrl.u32 %v7731_v36, 16  ;;  %v7823_v52 = vshll.u32 %v7731_v36, 16  ;;  %v7426_v2 = vpack.c.b16 %v7420_v51, %v7419_v20  ;;  %v7732_v51 = vld [vmem:[#allocation5 + $0x44] sm:$0x1] }
 0x52f   : > { %v7857_v26 = vunpack.c.l.b16 %v7818_v43  ;;  %v13680_v34 = vrot.slane %v7366_v14, 5  ;;  %v9959_v11 = vrot.slane %v7925_v28, 9  ;;  %v7378_v57 = vrot.slane %v7377_v46, 4  ;;  %v7296_v43 = vld [vmem:[#allocation5 + $0x38] sm:$0xf] }
 0x530   : > { %9956 = vmatmul.msk.bf16.gmra.mxu0 %vm6941_vm8, %v7861_v3  ;;  %v13684_v5 = vsel %vm11322_vm14, %v9894_v54, %v7544_v56  ;;  %v7834_v25 = vshrl.u32 %v7733_v53, 16  ;;  %v7837_v32 = vshll.u32 %v7733_v53, 16  ;;  %v7856_v6 = vunpack.c.l.b16 %v7804_v7  ;;  %v7928_v3 = vld [vmem:[#allocation5 + $0x28] sm:$0xe] }
 0x531   : > { %v7382_v41 = vrot.slane %v7380_v44, 5  ;;  %v13690_v17 = vsel %vm11322_vm14, %v9893_v33, %v7540_v13  ;;  %v7951_v50 = vrot.slane %v13583_v59, 5  ;;  %v7369_v31 = vsel %vm11186_vm6, %v13678_v37, %v13680_v34  ;;  %v7930_v33 = vld [vmem:[#allocation5 + $0x38] sm:$0xe] }
 0x532   : > { %v7822_v4 = vrot.slane %v7820_v22, 4  ;;  %v7825_v16 = vrot.slane %v7823_v52, 5  ;;  %v9960_v15 = vrot.slane %v7926_v30, 9  ;;  %v7558_v49 = vunpack.c.l.b16 %v13684_v5 }
 0x533   : > { %v7952_v42 = vsel %vm11322_vm14, %v9959_v11, %v7951_v50  ;;  %v7955_v1 = vrot.slane %v13585_v48, 5  ;;  %v9961_v9 = vrot.slane %v7927_v18, 9  ;;  %v7862_v59 = vpack.c.b16 %v7857_v26, %v7856_v6 }
 0x534   : > { %v7383_v39 = vsel %vm11186_vm6, %v7378_v57, %v7382_v41  ;;  %v7836_v23 = vrot.slane %v7834_v25, 4  ;;  %v7839_v27 = vrot.slane %v7837_v32, 5  ;;  %v7843_v63 = vshll.u32 %v13698_v38, 16 }
 0x535   : > { %v7956_v24 = vsel %vm11322_vm14, %v9960_v15, %v7955_v1  ;;  %v7959_v35 = vrot.slane %v13615_v19, 5  ;;  %v9962_v20 = vrot.slane %v7928_v3, 9  ;;  %v7826_v0 = vor.u32 %v7825_v16, %v7822_v4  ;;  %v7931_v1 = vld [vmem:[#allocation5 + $0x40] sm:$0xe] }
 0x536   : > { %v7986_v48 = vunpack.c.l.b16 %v7952_v42  ;;  %v7987_v14 = vunpack.c.l.b16 %v7956_v24  ;;  %v7963_v36 = vrot.slane %v13617_v62, 5  ;;  %v7399_v46 = vshrl.u32 %v7298_v47, 16 }
 0x537   : > { %v7960_v54 = vsel %vm11322_vm14, %v9961_v9, %v7959_v35  ;;  %v9963_v56 = vrot.slane %v7929_v12, 9  ;;  %v7967_v19 = vrot.slane %v13646_v60, 5  ;;  %v7840_v28 = vor.u32 %v7839_v27, %v7836_v23  ;;  %v7932_v9 = vld [vmem:[#allocation5 + $0x48] sm:$0xe] }
 0x538   : > { %9884 = vmatmul.msk.bf16.gmra.mxu1 %vm6941_vm8, %v7426_v2  ;;  %9909 = vmatmul.msk.bf16.gmra.mxu2 %vm6941_vm8, %v7561_v29  ;;  %v7402_v29 = vshll.u32 %v7298_v47, 16  ;;  %v13717_v44 = vpack.c.b16 %v7987_v14, %v7986_v48  ;;  %v7964_v62 = vsel %vm11322_vm14, %v9962_v20, %v7963_v36  ;;  %v7829_v61 = vshll.u32 %v7732_v51, 16  ;;  %v10498_v23 = vld [vmem:[#allocation5 + $0x44] sm:$0xf0] }
 0x539   : > { %v7988_v40 = vunpack.c.l.b16 %v7960_v54  ;;  %v9964_v13 = vrot.slane %v7930_v33, 9  ;;  %v7385_v53 = vshrl.u32 %v7296_v43, 16  ;;  %v7388_v7 = vshll.u32 %v7296_v43, 16 }
 0x53a   : > { %v7968_v37 = vsel %vm11322_vm14, %v9963_v56, %v7967_v19  ;;  %v7971_v60 = vrot.slane %v13644_v58, 5  ;;  %v7422_v22 = vunpack.c.l.b16 %v7383_v39  ;;  %v7827_v52 = vrot.slane %v7826_v0, 4 }
 0x53b   : > { %v7845_v2 = vrot.slane %v7843_v63, 5  ;;  %v7841_v34 = vrot.slane %v7840_v28, 4  ;;  %v7401_v30 = vrot.slane %v7399_v46, 4  ;;  %v7404_v11 = vrot.slane %v7402_v29, 5 }
 0x53c   : > { %v7972_v57 = vsel %vm11322_vm14, %v9964_v13, %v7971_v60  ;;  %v7421_v5 = vunpack.c.l.b16 %v7369_v31  ;;  %v7557_v25 = vunpack.c.l.b16 %v13690_v17  ;;  %v7990_v32 = vunpack.c.l.b16 %v7968_v37 }
 0x53d   : > { %v7991_v18 = vunpack.c.l.b16 %v7972_v57  ;;  %v7831_v6 = vrot.slane %v7829_v61, 5  ;;  %v7387_v41 = vrot.slane %v7385_v53, 4  ;;  %v7390_v50 = vrot.slane %v7388_v7, 5 }
 0x53e   : > { %9941 = vmatmul.msk.bf16.gmra.mxu3 %vm6941_vm8, %v9926_v8  ;;  %v7989_v8 = vunpack.c.l.b16 %v7964_v62  ;;  %v7427_v58 = vpack.c.b16 %v7422_v22, %v7421_v5  ;;  %v7562_v4 = vpack.c.b16 %v7558_v49, %v7557_v25  ;;  %v7846_v3 = vsel %vm11186_vm6, %v7841_v34, %v7845_v2  ;;  %v9929_v49 = vld [vmem:[#allocation5 + $0x40] sm:$0xf] }
 0x53f   : > { %v7996_v16 = vpack.c.b16 %v7991_v18, %v7990_v32  ;;  %v7832_v15 = vsel %vm11186_vm6, %v7827_v52, %v7831_v6  ;;  %v7405_v42 = vor.u32 %v7404_v11, %v7401_v30  ;;  %v9965_v17 = vrot.slane %v7931_v1, 9 }
 0x540   : > { %9957 = vmatmul.msk.bf16.gmra.mxu0 %vm6941_vm8, %v7862_v59  ;;  %v13725_v26 = vpack.c.b16 %v7989_v8, %v7988_v40  ;;  %v7975_v31 = vrot.slane %v7732_v51, 5  ;;  %v9966_v59 = vrot.slane %v7932_v9, 9  ;;  %v7979_v39 = vrot.slane %v13698_v38, 5 }
 0x541   : > { %v7391_v27 = vor.u32 %v7390_v50, %v7387_v41  ;;  %v7408_v47 = vshll.u32 %v13664_v45, 16  ;;  %v7858_v12 = vunpack.c.l.b16 %v7832_v15  ;;  %v7859_v63 = vunpack.c.l.b16 %v7846_v3 }
 0x542   : > { %v7976_v24 = vsel %vm11322_vm14, %v9965_v17, %v7975_v31  ;;  %v7980_v35 = vsel %vm11322_vm14, %v9966_v59, %v7979_v39  ;;  %v7394_v20 = vshll.u32 %v13668_v55, 16  ;;  %v7406_v0 = vrot.slane %v7405_v42, 4 }
 0x543   : > { %v7992_v51 = vunpack.c.l.b16 %v7976_v24  ;;  %v7993_v48 = vunpack.c.l.b16 %v7980_v35  ;;  %v9930_v14 = vor.u32 %v10498_v23, %v9929_v49  ;;  %v7392_v38 = vrot.slane %v7391_v27, 4 }
 0x544   : > { %v7410_v36 = vrot.slane %v7408_v47, 5  ;;  %v7863_v45 = vpack.c.b16 %v7859_v63, %v7858_v12  ;;  %v7396_v46 = vrot.slane %v7394_v20, 5  ;;  %v10026_v47 = vld [vmem:[%s14147_s9 + $0x30] sm:$0xf]  ;;  %v10516_v12 = vld [vmem:[%s14147_s9 + $0x34] sm:$0xf0] }
 0x545   : > { %v7997_v43 = vpack.c.b16 %v7993_v48, %v7992_v51  ;;  %v10508_v63 = vld [vmem:[#allocation9 + $0x18] sm:$0xff]  ;;  %v10027_v24 = vor.u32 %v10516_v12, %v10026_v47 }
 0x546   : > { %v7411_v54 = vsel %vm11186_vm6, %v7406_v0, %v7410_v36  ;;  %v7397_v10 = vsel %vm11186_vm6, %v7392_v38, %v7396_v46  ;;  %8162 = vmatpush.bf16.msra.mxu2 %v10508_v63  ;;  %v10018_v36 = vld [vmem:[%s14147_s9 + $0x20] sm:$0xf]  ;;  %vm8084_vm6 = vcmask 519168  }
 0x547   : > { %v7424_v55 = vunpack.c.l.b16 %v7411_v54  ;;  %v7423_v56 = vunpack.c.l.b16 %v7397_v10  ;;  %8224 = vmatpush.bf16.msra.mxu3 %v10027_v24 }
 0x548   : > { %9885 = vmatmul.msk.bf16.gmra.mxu1 %vm6941_vm8, %v7427_v58  ;;  %9910 = vmatmul.msk.bf16.gmra.mxu2 %vm6941_vm8, %v7562_v4 }
 0x549   : > { %v7428_v19 = vpack.c.b16 %v7424_v55, %v7423_v56 }
 0x54e   : > { %9942 = vmatmul.msk.bf16.gmra.mxu3 %vm6941_vm8, %v9930_v14 }
 0x550   : > { %9958 = vmatmul.msk.bf16.gmra.mxu0 %vm6941_vm8, %v7863_v45  ;;  %v10507_v45 = vld [vmem:[#allocation9 + $0x10] sm:$0xff] }
 0x551   : > { %8163 = vmatpush.bf16.msra.mxu2 %v10507_v45  ;;  %v10505_v45 = vld [vmem:[#allocation9] sm:$0xff] }
 0x558   : > { %9886 = vmatmul.msk.bf16.gmra.mxu1 %vm6941_vm8, %v7428_v19 }
 0x55b   : > { %v7036_v28 = vpop.f32.mrf.mxu2 }
 0x55d   : > { %v7256_v37 = vpop.f32.mrf.mxu0 }
 0x561   : > { %v7162_v29 = vpop.f32.mrf.mxu3 }
 0x563   : > { %v7038_v33 = vpop.f32.mrf.mxu2 }
 0x565   : > { %v6963_v62 = vpop.f32.mrf.mxu1 }
 0x566   : > { %v7037_v61 = vadd.f32 %v7036_v28, %v6963_v62 }
 0x568   : > { %v7182_v40 = vadd.f32 %v7162_v29, %v7037_v61  ;;  %9979 = vmatmul.msk.bf16.vlgmr.msrb.gmra.mxu1 %vm6941_vm8, %v13717_v44  ;;  %v7258_v44 = vpop.f32.mrf.mxu0  ;;  %v10010_v61 = vld [vmem:[%s14147_s9 + $0x10] sm:$0xf] }
 0x569   : > { %v7164_v8 = vpop.f32.mrf.mxu3 }
 0x56a   : > { %v7276_v2 = vadd.f32 %v7256_v37, %v7182_v40  ;;  %v10512_v40 = vld [vmem:[%s14147_s9 + $0x14] sm:$0xf0] }
 0x56b   : > { %v13752_v53 = vpop.f32.mrf.mxu2  ;;  %v10011_v37 = vor.u32 %v10512_v40, %v10010_v61  ;;  %v10520_v61 = vld [vmem:[#allocation9 + $0x38] sm:$0xff]  ;;  %v10515_v40 = vld [vmem:[%s14147_s9 + $0x34] sm:$0xf] }
 0x56d   : > { %v6965_v13 = vpop.f32.mrf.mxu1 }
 0x56e   : > { %v7039_v42 = vadd.f32 %v7038_v33, %v6965_v13 }
 0x570   : > { %v13767_v25 = vpop.f32.mrf.mxu0  ;;  %v7183_v9 = vadd.f32 %v7164_v8, %v7039_v42  ;;  %v10506_v8 = vld [vmem:[#allocation9 + $0x8] sm:$0xff] }
 0x571   : > { %v13754_v21 = vpop.f32.mrf.mxu3  ;;  %8164 = vmatpush.bf16.msra.mxu2 %v10506_v8  ;;  %v10028_v8 = vld [vmem:[%s14147_s9 + $0x38] sm:$0xf0] }
 0x572   : > { %v7277_v59 = vadd.f32 %v7258_v44, %v7183_v9 }
 0x573   : > { %v13760_v60 = vpop.f32.mrf.mxu2 }
 0x575   : > { %v13756_v7 = vpop.f32.mrf.mxu1  ;;  %8165 = vmatpush.bf16.msra.mxu2 %v10505_v45 }
 0x578   : > { %9980 = vmatmul.msk.bf16.gmra.mxu1 %vm6941_vm8, %v13725_v26  ;;  %v13769_v50 = vpop.f32.mrf.mxu0 }
 0x579   : > { %v13762_v22 = vpop.f32.mrf.mxu3 }
 0x57b   : > { %v7046_v34 = vpop.f32.mrf.mxu2 }
 0x57d   : > { %v13764_v52 = vpop.f32.mrf.mxu1 }
 0x580   : > { %v7266_v15 = vpop.f32.mrf.mxu0 }
 0x581   : > { %v7172_v11 = vpop.f32.mrf.mxu3 }
 0x583   : > { %v7048_v32 = vpop.f32.mrf.mxu2 }
 0x585   : > { %v6973_v30 = vpop.f32.mrf.mxu1 }
 0x586   : > { %v7047_v57 = vadd.f32 %v7046_v34, %v6973_v30 }
 0x588   : > { %v7186_v5 = vadd.f32 %v7172_v11, %v7047_v57  ;;  %9981 = vmatmul.msk.bf16.gmra.mxu1 %vm6941_vm8, %v7996_v16  ;;  %v7268_v17 = vpop.f32.mrf.mxu0 }
 0x589   : > { %v7174_v6 = vpop.f32.mrf.mxu3 }
 0x58a   : > { %v7280_v3 = vadd.f32 %v7266_v15, %v7186_v5 }
 0x58b   : > { %v13776_v27 = vpop.f32.mrf.mxu2 }
 0x58d   : > { %v6975_v18 = vpop.f32.mrf.mxu1 }
 0x58e   : > { %v7049_v26 = vadd.f32 %v7048_v32, %v6975_v18 }
 0x590   : > { %v7187_v41 = vadd.f32 %v7174_v6, %v7049_v26  ;;  %v13786_v0 = vpop.f32.mrf.mxu0  ;;  %v7044_v26 = vadd.f32 %v13760_v60, %v13764_v52 }
 0x591   : > { %v13784_v35 = vpop.f32.mrf.mxu3 }
 0x592   : > { %v7281_v31 = vadd.f32 %v7268_v17, %v7187_v41 }
 0x593   : > { %v13788_v51 = vpop.f32.mrf.mxu2 }
 0x595   : > { %v13771_v58 = vpop.f32.mrf.mxu1 }
 0x598   : > { %9982 = vmatmul.msk.bf16.gmra.mxu1 %vm6941_vm8, %v7997_v43  ;;  %v10514_v43 = vld [vmem:[%s14147_s9 + $0x24] sm:$0xf0]  ;;  %v13800_v46 = vpop.f32.mrf.mxu0 }
 0x599   : > { %v13792_v38 = vpop.f32.mrf.mxu3  ;;  %v10019_v54 = vor.u32 %v10514_v43, %v10018_v36  ;;  %v10510_v43 = vld [vmem:[%s14147_s9 + $0x4] sm:$0xf0] }
 0x59b   : > { %v7596_v10 = vpop.f32.mrf.mxu2  ;;  %8225 = vmatpush.bf16.msra.mxu3 %v10019_v54 }
 0x59d   : > { %v13774_v4 = vpop.f32.mrf.mxu1 }
 0x59f   : > { %8226 = vmatpush.bf16.msra.mxu3 %v10011_v37 }
 0x5a0   : > { %v7897_v28 = vpop.f32.mrf.mxu0 }
 0x5a1   : > { %v7691_v19 = vpop.f32.mrf.mxu3 }
 0x5a3   : > { %v7598_v62 = vpop.f32.mrf.mxu2 }
 0x5a5   : > { %v7462_v1 = vpop.f32.mrf.mxu1 }
 0x5a6   : > { %v7482_v16 = vadd.f32 %v7462_v1, %v7276_v2  ;;  %v7042_v2 = vadd.f32 %v13752_v53, %v13756_v7  ;;  %v7185_v7 = vadd.f32 %v13762_v22, %v7044_v26  ;;  %v10020_v26 = vld [vmem:[%s14147_s9 + $0x28] sm:$0xf0] }
 0x5a8   : > { %v7899_v44 = vpop.f32.mrf.mxu0  ;;  %v7616_v34 = vadd.f32 %v7596_v10, %v7482_v16  ;;  %v7184_v11 = vadd.f32 %v13754_v21, %v7042_v2  ;;  %v13824_v21 = vld [vmem:[%s14144_s6] ss:$0 sm:$0xff]  ;;  %v7279_v60 = vadd.f32 %v13769_v50, %v7185_v7 }
 0x5a9   : > { %v7693_v33 = vpop.f32.mrf.mxu3  ;;  %v10002_v50 = vld [vmem:[%s14147_s9] sm:$0xf] }
 0x5aa   : > { %v7711_v57 = vadd.f32 %v7691_v19, %v7616_v34  ;;  %v7278_v6 = vadd.f32 %v13767_v25, %v7184_v11  ;;  %v10003_v54 = vor.u32 %v10510_v43, %v10002_v50  ;;  %v10539_v34 = vld [vmem:[%s14147_s9 + $0xb4] sm:$0xf]  ;;  %v7052_v11 = vadd.f32 %v13776_v27, %v13771_v58 }
 0x5ab   : > { %v7601_v30 = vpop.f32.mrf.mxu2 }
 0x5ac   : > { %8227 = vmatpush.bf16.msra.mxu3 %v10003_v54  ;;  %v7188_v58 = vadd.f32 %v13784_v35, %v7052_v11  ;;  %v10509_v11 = vld [vmem:[%s14147_s9 + $0x4] sm:$0xf] }
 0x5ad   : > { %v7464_v39 = vpop.f32.mrf.mxu1 }
 0x5ae   : > { %v7483_v49 = vadd.f32 %v7464_v39, %v7277_v59 }
 0x5b0   : > { %v7617_v5 = vadd.f32 %v7598_v62, %v7483_v49  ;;  %v7902_v53 = vpop.f32.mrf.mxu0  ;;  %8293 = vmatpush.bf16.msrb.mxu3 %v10520_v61 }
 0x5b1   : > { %v7696_v32 = vpop.f32.mrf.mxu3 }
 0x5b2   : > { %v7712_v41 = vadd.f32 %v7693_v33, %v7617_v5  ;;  %v10519_v5 = vld [vmem:[#allocation9 + $0x30] sm:$0xff] }
 0x5b3   : > { %v7603_v1 = vpop.f32.mrf.mxu2 }
 0x5b4   : > { %v7918_v9 = vadd.f32 %v7899_v44, %v7712_v41  ;;  %v10031_v44 = vor.u32 %v10515_v40, %v10028_v8  ;;  %8294 = vmatpush.bf16.msrb.mxu3 %v10519_v5 }
 0x5b5   : > { %v7467_v23 = vpop.f32.mrf.mxu1 }
 0x5b6   : > { %v7484_v15 = vadd.f32 %v7467_v23, %v7278_v6  ;;  %8237 = vmatpush.bf16.msrb.mxu2 %v10031_v44 }
 0x5b8   : > { %v7618_v16 = vadd.f32 %v7601_v30, %v7484_v15  ;;  %v7904_v47 = vpop.f32.mrf.mxu0  ;;  %v10146_v30 = vld [vmem:[%s14147_s9 + $0xb8] sm:$0xf0] }
 0x5ba   : > { %v7713_v59 = vadd.f32 %v7696_v32, %v7618_v16  ;;  %v10149_v32 = vor.u32 %v10539_v34, %v10146_v30  ;;  %v10517_v30 = vld [vmem:[#allocation9 + $0x20] sm:$0xff] }
 0x5bc   : > { %v7919_v24 = vadd.f32 %v7902_v53, %v7713_v59  ;;  %8501 = vmatpush.bf16.msrb.mxu0 %v10149_v32 }
 0x5bd   : > { %v7469_v20 = vpop.f32.mrf.mxu1 }
 0x5be   : > { %v7485_v39 = vadd.f32 %v7469_v20, %v7279_v60 }
 0x5c0   : > { %v7619_v12 = vadd.f32 %v7603_v1, %v7485_v39  ;;  %v7907_v37 = vpop.f32.mrf.mxu0 }
 0x5c5   : > { %v7472_v48 = vpop.f32.mrf.mxu1 }
 0x5c6   : > { %v13790_v14 = vadd.f32 %v7472_v48, %v7280_v3  ;;  %v7917_v3 = vadd.f32 %v7897_v28, %v7711_v57  ;;  %v7606_v48 = vpop.f32.mrf.mxu2 }
 0x5c8   : > { %v7620_v15 = vadd.f32 %v7606_v48, %v13790_v14  ;;  %v7282_v14 = vadd.f32 %v13786_v0, %v7188_v58 }
 0x5cd   : > { %v7474_v55 = vpop.f32.mrf.mxu1 }
 0x5ce   : > { %v13802_v56 = vadd.f32 %v7474_v55, %v7281_v31  ;;  %v7698_v31 = vpop.f32.mrf.mxu3  ;;  %v7608_v6 = vpop.f32.mrf.mxu2 }
 0x5cf   : > { %v7714_v10 = vadd.f32 %v7698_v31, %v7619_v12 }
 0x5d1   : > { %v7920_v33 = vadd.f32 %v7904_v47, %v7714_v10 }
 0x5d5   : > { %v13804_v29 = vpop.f32.mrf.mxu1 }
 0x5d6   : > { %v7701_v19 = vpop.f32.mrf.mxu3  ;;  %v7488_v31 = vadd.f32 %v13804_v29, %v7282_v14 }
 0x5d7   : > { %v7715_v7 = vadd.f32 %v7701_v19, %v7620_v15 }
 0x5d9   : > { %v7921_v39 = vadd.f32 %v7907_v37, %v7715_v7  ;;  %v10511_v37 = vld [vmem:[%s14147_s9 + $0x14] sm:$0xf]  ;;  %v10525_v7 = vld [vmem:[%s14147_s9 + $0x64] sm:$0xf] }
 0x5dd   : > { %v13812_v13 = vpop.f32.mrf.mxu1 }
 0x5de   : > { %v7703_v53 = vpop.f32.mrf.mxu3 }
 0x5e5   : > { %v8031_v18 = vpop.f32.mrf.mxu1 }
 0x5e6   : > { %v8051_v42 = vadd.f32 %v8031_v18, %v7917_v3  ;;  %v10513_v18 = vld [vmem:[%s14147_s9 + $0x24] sm:$0xf]  ;;  %v7706_v12 = vpop.f32.mrf.mxu3 }
 0x5e7   : > { %v10023_v41 = vor.u32 %v10513_v18, %v10020_v26  ;;  %v10527_v18 = vld [vmem:[%s14147_s9 + $0x74] sm:$0xf]  ;;  %v10087_v26 = vld [vmem:[%s14147_s9 + $0x78] sm:$0xf0] }
 0x5e8   : > { %v8062_v52 = vadd.f32 %v13824_v21, %v8051_v42  ;;  %v7621_v42 = vadd.f32 %v7608_v6, %v13802_v56  ;;  %v10085_v6 = vld [vmem:[%s14147_s9 + $0x70] sm:$0xf]  ;;  %v10090_v58 = vor.u32 %v10527_v18, %v10087_v26 }
 0x5e9   : > { %8238 = vmatpush.bf16.msrb.mxu2 %v10023_v41  ;;  %v10128_v26 = vld [vmem:[%s14147_s9 + $0x90] sm:$0xf] }
 0x5ea   : > { %v8070_v49 = vmax.f32 %v8062_v52, 0.0  ;;  %v7909_v52 = vpop.f32.mrf.mxu0 }
 0x5ed   : > { %v8033_v17 = vpop.f32.mrf.mxu1 }
 0x5ee   : > { %v8052_v25 = vadd.f32 %v8033_v17, %v7918_v9  ;;  %v7054_v9 = vadd.f32 %v13788_v51, %v13774_v4  ;;  %v7708_v5 = vpop.f32.mrf.mxu3 }
 0x5f0   : > { %v8063_v22 = vadd.f32 %v13824_v21, %v8052_v25  ;;  %v7716_v25 = vadd.f32 %v7703_v53, %v7621_v42  ;;  %v10544_v53 = vld [vmem:[#allocation9 + $0x78] sm:$0xff] }
 0x5f1   : > { %8557 = vmatpush.bf16.msra.mxu1 %v10544_v53 }
 0x5f2   : > { %v8071_v23 = vmax.f32 %v8063_v22, 0.0  ;;  %v7611_v22 = vpop.f32.mrf.mxu2  ;;  %v7922_v0 = vadd.f32 %v7909_v52, %v7716_v25  ;;  %v7912_v54 = vpop.f32.mrf.mxu0  ;;  %v10526_v52 = vld [vmem:[%s14147_s9 + $0x64] sm:$0xf0] }
 0x5f3   : > { %v7622_v51 = vadd.f32 %v7611_v22, %v7488_v31 }
 0x5f4   : > { %v8078_v63 = vadd.f32 %v8071_v23, %v8070_v49  ;;  %v7189_v49 = vadd.f32 %v13792_v38, %v7054_v9  ;;  %v10138_v9 = vld [vmem:[%s14147_s9 + $0xa8] sm:$0xf0] }
 0x5f5   : > { %v8036_v36 = vpop.f32.mrf.mxu1  ;;  %v7717_v45 = vadd.f32 %v7706_v12, %v7622_v51  ;;  %v10071_v51 = vld [vmem:[%s14147_s9 + $0x58] sm:$0xf0] }
 0x5f6   : > { %v8053_v20 = vadd.f32 %v8036_v36, %v7919_v24  ;;  %v7283_v48 = vadd.f32 %v13800_v46, %v7189_v49  ;;  %v10130_v49 = vld [vmem:[%s14147_s9 + $0x98] sm:$0xf0] }
 0x5f7   : > { %v7923_v40 = vadd.f32 %v7912_v54, %v7717_v45 }
 0x5f8   : > { %v8064_v55 = vadd.f32 %v13824_v21, %v8053_v20  ;;  %v7489_v20 = vadd.f32 %v13812_v13, %v7283_v48  ;;  %v10518_v13 = vld [vmem:[#allocation9 + $0x28] sm:$0xff] }
 0x5f9   : > { %8295 = vmatpush.bf16.msrb.mxu3 %v10518_v13 }
 0x5fa   : > { %v8072_v28 = vmax.f32 %v8064_v55, 0.0  ;;  %v7914_v25 = vpop.f32.mrf.mxu0 }
 0x5fc   : > { %v8079_v62 = vadd.f32 %v8078_v63, %v8072_v28  ;;  %v7613_v28 = vpop.f32.mrf.mxu2 }
 0x5fd   : > { %v8038_v2 = vpop.f32.mrf.mxu1  ;;  %v7623_v46 = vadd.f32 %v7613_v28, %v7489_v20  ;;  %8296 = vmatpush.bf16.msrb.mxu3 %v10517_v30  ;;  %v10521_v20 = vld [vmem:[%s14147_s9 + $0x44] sm:$0xf]  ;;  %v10538_v30 = vld [vmem:[%s14147_s9 + $0xa4] sm:$0xf0] }
 0x5fe   : > { %v8054_v57 = vadd.f32 %v8038_v2, %v7920_v33  ;;  %v10012_v2 = vld [vmem:[%s14147_s9 + $0x18] sm:$0xf0] }
 0x5ff   : > { %v10015_v34 = vor.u32 %v10511_v37, %v10012_v2  ;;  %v7718_v41 = vadd.f32 %v7708_v5, %v7623_v46  ;;  %v10522_v46 = vld [vmem:[%s14147_s9 + $0x44] sm:$0xf0] }
 0x600   : > { %v8065_v3 = vadd.f32 %v13824_v21, %v8054_v57  ;;  %v10004_v57 = vld [vmem:[%s14147_s9 + $0x8] sm:$0xf0] }
 0x601   : > { %8239 = vmatpush.bf16.msrb.mxu2 %v10015_v34  ;;  %v10136_v34 = vld [vmem:[%s14147_s9 + $0xa0] sm:$0xf] }
 0x602   : > { %v8073_v27 = vmax.f32 %v8065_v3, 0.0  ;;  %v10007_v3 = vor.u32 %v10509_v11, %v10004_v57  ;;  %v10137_v18 = vor.u32 %v10538_v30, %v10136_v34  ;;  %v10583_v30 = vld [vmem:[#allocation11 + $0xf4] sm:$0xf] }
 0x604   : > { %v8080_v1 = vadd.f32 %v8079_v62, %v8073_v27  ;;  %v10528_v27 = vld [vmem:[%s14147_s9 + $0x74] sm:$0xf0] }
 0x605   : > { %v8041_v16 = vpop.f32.mrf.mxu1  ;;  %v10086_v42 = vor.u32 %v10528_v27, %v10085_v6  ;;  %8240 = vmatpush.bf16.msrb.mxu2 %v10007_v3  ;;  %v10536_v6 = vld [vmem:[%s14147_s9 + $0x94] sm:$0xf0]  ;;  %v10531_v3 = vld [vmem:[#allocation9 + $0x50] sm:$0xff] }
 0x606   : > { %v8085_v17 = vsel %vm8084_vm6, %v8080_v1, 0.0  ;;  %v8093_v60 = vrot.slane %v8080_v1, 4  ;;  %v8055_v23 = vadd.f32 %v8041_v16, %v7921_v39  ;;  %v10079_v1 = vld [vmem:[%s14147_s9 + $0x68] sm:$0xf0]  ;;  %v10537_v16 = vld [vmem:[%s14147_s9 + $0xa4] sm:$0xf]  ;;  %v7924_v39 = vadd.f32 %v7914_v25, %v7718_v41 }
 0x607   : > { %v8086_v35 = vrot.slane %v8085_v17, 4  ;;  %v10082_v22 = vor.u32 %v10525_v7, %v10079_v1  ;;  %v10129_v53 = vor.u32 %v10536_v6, %v10128_v26  ;;  %v10530_v1 = vld [vmem:[#allocation9 + $0x48] sm:$0xff]  ;;  %v10552_v25 = vld [vmem:[%s14147_s9 + $0xf4] sm:$0xf0]  ;;  %v10325_v26 = vld [vmem:[#allocation11 + $0xe0] sm:$0xf] }
 0x608   : > { %v8095_v59 = vsel %vm8084_vm6, %v8093_v60, 0.0  ;;  %v8066_v36 = vadd.f32 %v13824_v21, %v8055_v23  ;;  %v10077_v60 = vld [vmem:[%s14147_s9 + $0x60] sm:$0xf] }
 0x609   : > { %v8087_v56 = vadd.f32 %v8086_v35, %v8085_v17  ;;  %v8096_v4 = vrot.slane %v8095_v59, 4  ;;  %v10141_v17 = vor.u32 %v10537_v16, %v10138_v9  ;;  %v10543_v35 = vld [vmem:[#allocation9 + $0x70] sm:$0xff]  ;;  %v10120_v16 = vld [vmem:[%s14147_s9 + $0x80] sm:$0xf]  ;;  %v10534_v9 = vld [vmem:[%s14147_s9 + $0x84] sm:$0xf0] }
 0x60a   : > { %v8074_v55 = vmax.f32 %v8066_v36, 0.0  ;;  %8558 = vmatpush.bf16.msra.mxu1 %v10543_v35  ;;  %v10524_v36 = vld [vmem:[%s14147_s9 + $0x54] sm:$0xf0]  ;;  %v10203_v35 = vld [vmem:[%s14147_s9 + $0xf0] sm:$0xf] }
 0x60b   : > { %v8088_v47 = vrot.slane %v8087_v56, 2  ;;  %v8097_v43 = vadd.f32 %v8096_v4, %v8095_v59  ;;  %8502 = vmatpush.bf16.msrb.mxu0 %v10141_v17  ;;  %v10523_v4 = vld [vmem:[%s14147_s9 + $0x54] sm:$0xf]  ;;  %v10205_v17 = vld [vmem:[%s14147_s9 + $0xf8] sm:$0xf0] }
 0x60c   : > { %v10074_v45 = vor.u32 %v10523_v4, %v10071_v51  ;;  %v10197_v4 = vld [vmem:[%s14147_s9 + $0xe8] sm:$0xf0]  ;;  %v10195_v51 = vld [vmem:[%s14147_s9 + $0xe0] sm:$0xf] }
 0x60d   : > { %v8089_v63 = vadd.f32 %v8088_v47, %v8087_v56  ;;  %v8043_v24 = vpop.f32.mrf.mxu1  ;;  %v8098_v62 = vrot.slane %v8097_v43, 2  ;;  %v10535_v56 = vld [vmem:[%s14147_s9 + $0x94] sm:$0xf]  ;;  %v10078_v47 = vor.u32 %v10526_v52, %v10077_v60 }
 0x60e   : > { %v8056_v29 = vadd.f32 %v8043_v24, %v7922_v0  ;;  %v10133_v0 = vor.u32 %v10535_v56, %v10130_v49  ;;  %v10542_v24 = vld [vmem:[#allocation9 + $0x68] sm:$0xff]  ;;  %v10204_v49 = vor.u32 %v10552_v25, %v10203_v35  ;;  %v10255_v35 = vld [vmem:[#allocation11 + $0x58] sm:$0xf0]  ;;  %v10579_v25 = vld [vmem:[#allocation11 + $0xd4] sm:$0xf] }
 0x60f   : > { %v8090_v50 = vrot.slane %v8089_v63, 1  ;;  %v8099_v32 = vadd.f32 %v8098_v62, %v8097_v43  ;;  %8559 = vmatpush.bf16.msra.mxu1 %v10542_v24  ;;  %v10061_v62 = vld [vmem:[%s14147_s9 + $0x40] sm:$0xf]  ;;  %v10547_v24 = vld [vmem:[%s14147_s9 + $0xd4] sm:$0xf] }
 0x610   : > { %v8067_v38 = vadd.f32 %v13824_v21, %v8056_v29  ;;  %v10533_v29 = vld [vmem:[%s14147_s9 + $0x84] sm:$0xf]  ;;  %8503 = vmatpush.bf16.msrb.mxu0 %v10133_v0  ;;  %v10550_v0 = vld [vmem:[%s14147_s9 + $0xe4] sm:$0xf0] }
 0x611   : > { %v8091_v10 = vadd.f32 %v8090_v50, %v8089_v63  ;;  %v8100_v31 = vrot.slane %v8099_v32, 1  ;;  %v10069_v63 = vld [vmem:[%s14147_s9 + $0x50] sm:$0xf]  ;;  %v10122_v50 = vld [vmem:[%s14147_s9 + $0x88] sm:$0xf0] }
 0x612   : > { %v8075_v19 = vmax.f32 %v8067_v38, 0.0  ;;  %v10063_v38 = vld [vmem:[%s14147_s9 + $0x48] sm:$0xf0] }
 0x613   : > { %v13871_v33 = vpack.c.bf16 %v8091_v10, %v8091_v10  ;;  %v8101_v48 = vadd.f32 %v8100_v31, %v8099_v32  ;;  %v10070_v10 = vor.u32 %v10524_v36, %v10069_v63  ;;  %v10121_v31 = vor.u32 %v10534_v9, %v10120_v16  ;;  %v10187_v36 = vld [vmem:[%s14147_s9 + $0xd0] sm:$0xf]  ;;  %v10564_v16 = vld [vmem:[#allocation11 + $0x54] sm:$0xf0] }
 0x614   : > { %v8081_v61 = vadd.f32 %v8075_v19, %v8074_v55  ;;  %v10125_v55 = vor.u32 %v10533_v29, %v10122_v50  ;;  %v10540_v19 = vld [vmem:[%s14147_s9 + $0xb4] sm:$0xf0]  ;;  %v10196_v63 = vor.u32 %v10550_v0, %v10195_v51  ;;  %v10317_v9 = vld [vmem:[#allocation11 + $0xd0] sm:$0xf]  ;;  %v10561_v51 = vld [vmem:[#allocation11 + $0x44] sm:$0xf] }
 0x615   : > { %v8046_v8 = vpop.f32.mrf.mxu1  ;;  %9999 = vmatmul.msk.bf16.vlgmr.msra.gmra.mxu2 %vm8154_vm10, %v13871_v33  ;;  %10032 = vmatmul.msk.bf16.vlgmr.msra.gmra.mxu3 %vm8154_vm10, %v13871_v33  ;;  %v8252_v28 = vpack.c.bf16 %v8101_v48, %v8101_v48  ;;  %v10189_v48 = vld [vmem:[%s14147_s9 + $0xd8] sm:$0xf0]  ;;  %v10548_v29 = vld [vmem:[%s14147_s9 + $0xd4] sm:$0xf0] }
 0x616   : > { %v8057_v44 = vadd.f32 %v8046_v8, %v7923_v40  ;;  %8369 = vmatpush.bf16.msra.mxu3 %v10090_v58  ;;  %8356 = vmatpush.bf16.msra.mxu2 %v10086_v42  ;;  %v10066_v8 = vor.u32 %v10521_v20, %v10063_v38  ;;  %v10192_v50 = vor.u32 %v10547_v24, %v10189_v48  ;;  %v10181_v20 = vld [vmem:[%s14147_s9 + $0xc8] sm:$0xf0]  ;;  %v10179_v38 = vld [vmem:[%s14147_s9 + $0xc0] sm:$0xf] }
 0x617   : > { %8504 = vmatpush.bf16.msrb.mxu0 %v10125_v55  ;;  %v10311_v24 = vld [vmem:[#allocation11 + $0xc8] sm:$0xf0] }
 0x618   : > { %v8068_v15 = vadd.f32 %v13824_v21, %v8057_v44  ;;  %v10062_v44 = vor.u32 %v10522_v46, %v10061_v62  ;;  %v10269_v46 = vld [vmem:[#allocation11 + $0x70] sm:$0xf] }
 0x61a   : > { %v8076_v14 = vmax.f32 %v8068_v15, 0.0  ;;  %8370 = vmatpush.bf16.msra.mxu3 %v10082_v22  ;;  %8357 = vmatpush.bf16.msra.mxu2 %v10078_v47  ;;  %v10529_v22 = vld [vmem:[#allocation9 + $0x40] sm:$0xff] }
 0x61c   : > { %v8082_v59 = vadd.f32 %v8081_v61, %v8076_v14  ;;  %v10541_v61 = vld [vmem:[#allocation9 + $0x60] sm:$0xff]  ;;  %v10551_v14 = vld [vmem:[%s14147_s9 + $0xf4] sm:$0xf] }
 0x61d   : > { %v8048_v23 = vpop.f32.mrf.mxu1  ;;  %8560 = vmatpush.bf16.msra.mxu1 %v10541_v61  ;;  %v10208_v56 = vor.u32 %v10551_v14, %v10205_v17  ;;  %v10568_v61 = vld [vmem:[#allocation11 + $0x74] sm:$0xf0] }
 0x61e   : > { %v8058_v12 = vadd.f32 %v8048_v23, %v7924_v39  ;;  %8371 = vmatpush.bf16.msra.mxu3 %v10074_v45  ;;  %8358 = vmatpush.bf16.msra.mxu2 %v10070_v10  ;;  %v10549_v23 = vld [vmem:[%s14147_s9 + $0xe4] sm:$0xf]  ;;  %v10580_v14 = vld [vmem:[#allocation11 + $0xd4] sm:$0xf0] }
 0x61f   : > { %v10545_v45 = vld [vmem:[%s14147_s9 + $0xc4] sm:$0xf] }
 0x620   : > { %v8069_v43 = vadd.f32 %v13824_v21, %v8058_v12  ;;  %v10144_v21 = vld [vmem:[%s14147_s9 + $0xb0] sm:$0xf]  ;;  %v10200_v12 = vor.u32 %v10549_v23, %v10197_v4  ;;  %v10184_v10 = vor.u32 %v10545_v45, %v10181_v20  ;;  %v10578_v4 = vld [vmem:[#allocation11 + $0xc4] sm:$0xf0] }
 0x621   : > { %v10145_v13 = vor.u32 %v10540_v19, %v10144_v21 }
 0x622   : > { %v8077_v54 = vmax.f32 %v8069_v43, 0.0  ;;  %8372 = vmatpush.bf16.msra.mxu3 %v10066_v8  ;;  %8359 = vmatpush.bf16.msra.mxu2 %v10062_v44  ;;  %v10188_v43 = vor.u32 %v10548_v29, %v10187_v36  ;;  %v10270_v8 = vor.u32 %v10568_v61, %v10269_v46 }
 0x624   : > { %v8083_v40 = vadd.f32 %v8082_v59, %v8077_v54  ;;  %v10546_v54 = vld [vmem:[%s14147_s9 + $0xc4] sm:$0xf0]  ;;  %8855 = vmatpush.bf16.msra.mxu0 %v10270_v8 }
 0x625   : > { %10033 = vmatmul.msk.bf16.vlgmr.msrb.gmra.mxu2 %vm8154_vm10, %v13871_v33  ;;  %10050 = vmatmul.msk.bf16.vlgmr.msrb.gmra.mxu3 %vm8154_vm10, %v8252_v28  ;;  %v10532_v33 = vld [vmem:[#allocation9 + $0x58] sm:$0xff]  ;;  %v10180_v55 = vor.u32 %v10546_v54, %v10179_v38  ;;  %v10301_v38 = vld [vmem:[#allocation11 + $0xb0] sm:$0xf] }
 0x626   : > { %v8102_v37 = vsel %vm8084_vm6, %v8083_v40, 0.0  ;;  %v8110_v2 = vrot.slane %v8083_v40, 4  ;;  %8488 = vmatpush.bf16.msrb.mxu3 %v10145_v13  ;;  %8425 = vmatpush.bf16.msrb.mxu2 %v10532_v33  ;;  %v10333_v40 = vld [vmem:[#allocation11 + $0xf0] sm:$0xf]  ;;  %v10584_v13 = vld [vmem:[#allocation11 + $0xf4] sm:$0xf0] }
 0x627   : > { %v8103_v11 = vrot.slane %v8102_v37, 4  ;;  %v10334_v44 = vor.u32 %v10584_v13, %v10333_v40  ;;  %v10576_v54 = vld [vmem:[#allocation11 + $0xb4] sm:$0xf0] }
 0x628   : > { %v8112_v57 = vsel %vm8084_vm6, %v8110_v2, 0.0  ;;  %v10271_v2 = vld [vmem:[#allocation11 + $0x78] sm:$0xf0]  ;;  %v10302_v61 = vor.u32 %v10576_v54, %v10301_v38 }
 0x629   : > { %v8104_v5 = vadd.f32 %v8103_v11, %v8102_v37  ;;  %v8113_v32 = vrot.slane %v8112_v57, 4  ;;  %v10567_v37 = vld [vmem:[#allocation11 + $0x74] sm:$0xf]  ;;  %v10335_v11 = vld [vmem:[#allocation11 + $0xf8] sm:$0xf0]  ;;  %8868 = vmatpush.bf16.msrb.mxu1 %v10334_v44 }
 0x62a   : > { %8489 = vmatpush.bf16.msrb.mxu3 %v10137_v18  ;;  %8426 = vmatpush.bf16.msrb.mxu2 %v10531_v3  ;;  %v10274_v34 = vor.u32 %v10567_v37, %v10271_v2  ;;  %v10338_v33 = vor.u32 %v10583_v30, %v10335_v11  ;;  %v10566_v18 = vld [vmem:[#allocation11 + $0x64] sm:$0xf0]  ;;  %v10263_v3 = vld [vmem:[#allocation11 + $0x68] sm:$0xf0]  ;;  %v8119_v11 = vld [vmem:[%s14146_s8] sm:$0x1] }
 0x62b   : > { %v8105_v41 = vrot.slane %v8104_v5, 2  ;;  %v8114_v15 = vadd.f32 %v8113_v32, %v8112_v57  ;;  %v10261_v32 = vld [vmem:[#allocation11 + $0x60] sm:$0xf]  ;;  %v10600_v38 = vld [vmem:[#allocation12 + $0x78] sm:$0xff] }
 0x62c   : > { %v10262_v6 = vor.u32 %v10566_v18, %v10261_v32  ;;  %v10558_v32 = vld [vmem:[#allocation11 + $0x24] sm:$0xf0]  ;;  %v10293_v18 = vld [vmem:[#allocation11 + $0xa0] sm:$0xf] }
 0x62d   : > { %v8106_v58 = vadd.f32 %v8105_v41, %v8104_v5  ;;  %v8115_v27 = vrot.slane %v8114_v15, 2  ;;  %v10582_v41 = vld [vmem:[#allocation11 + $0xe4] sm:$0xf0] }
 0x62e   : > { %8490 = vmatpush.bf16.msrb.mxu3 %v10129_v53  ;;  %8427 = vmatpush.bf16.msrb.mxu2 %v10530_v1  ;;  %v10581_v53 = vld [vmem:[#allocation11 + $0xe4] sm:$0xf] }
 0x62f   : > { %v8107_v7 = vrot.slane %v8106_v58, 1  ;;  %v8116_v42 = vadd.f32 %v8115_v27, %v8114_v15  ;;  %v10565_v15 = vld [vmem:[#allocation11 + $0x64] sm:$0xf]  ;;  %8856 = vmatpush.bf16.msra.mxu0 %v10262_v6  ;;  %v10574_v6 = vld [vmem:[#allocation11 + $0xa4] sm:$0xf0] }
 0x630   : > { %v10266_v27 = vor.u32 %v10565_v15, %v10263_v3  ;;  %v10231_v15 = vld [vmem:[#allocation11 + $0x28] sm:$0xf0]  ;;  %v10294_v3 = vor.u32 %v10574_v6, %v10293_v18  ;;  %v10588_v6 = vld [vmem:[#allocation12 + $0x18] sm:$0xff] }
 0x631   : > { %v8108_v60 = vadd.f32 %v8107_v7, %v8106_v58  ;;  %v8117_v52 = vrot.slane %v8116_v42, 1  ;;  %v10326_v58 = vor.u32 %v10582_v41, %v10325_v26  ;;  %v10327_v7 = vld [vmem:[#allocation11 + $0xe8] sm:$0xf0]  ;;  %v10557_v41 = vld [vmem:[#allocation11 + $0x24] sm:$0xf] }
 0x632   : > { %8491 = vmatpush.bf16.msrb.mxu3 %v10121_v31  ;;  %8428 = vmatpush.bf16.msrb.mxu2 %v10529_v22  ;;  %v10330_v1 = vor.u32 %v10581_v53, %v10327_v7  ;;  %v10319_v22 = vld [vmem:[#allocation11 + $0xd8] sm:$0xf0]  ;;  %v10295_v53 = vld [vmem:[#allocation11 + $0xa8] sm:$0xf0]  ;;  %v10221_v7 = vld [vmem:[#allocation11 + $0x10] sm:$0xf] }
 0x633   : > { %v8118_v59 = vadd.f32 %v8117_v52, %v8116_v42  ;;  %v8384_v39 = vpack.c.bf16 %v8108_v60, %v8108_v60  ;;  %v10253_v42 = vld [vmem:[#allocation11 + $0x50] sm:$0xf]  ;;  %8869 = vmatpush.bf16.msrb.mxu1 %v10326_v58  ;;  %v10318_v60 = vor.u32 %v10580_v14, %v10317_v9  ;;  %v10563_v52 = vld [vmem:[#allocation11 + $0x54] sm:$0xf]  ;;  %v10322_v23 = vor.u32 %v10579_v25, %v10319_v22  ;;  %v10572_v14 = vld [vmem:[#allocation11 + $0x94] sm:$0xf0] }
 0x634   : > { %v10254_v17 = vor.u32 %v10564_v16, %v10253_v42  ;;  %v10234_v58 = vor.u32 %v10557_v41, %v10231_v15  ;;  %v10556_v16 = vld [vmem:[#allocation11 + $0x14] sm:$0xf0]  ;;  %v10285_v9 = vld [vmem:[#allocation11 + $0x90] sm:$0xf]  ;;  %v10571_v25 = vld [vmem:[#allocation11 + $0x94] sm:$0xf] }
 0x635   : > { %v8516_v47 = vpack.c.bf16 %v8118_v59, %v8118_v59  ;;  %10091 = vmatmul.msk.bf16.vlgmr.msra.gmra.mxu2 %vm8154_vm10, %v8252_v28  ;;  %10092 = vmatmul.msk.bf16.vlgmr.msra.gmra.mxu3 %vm8154_vm10, %v8252_v28  ;;  %v10213_v22 = vld [vmem:[#allocation11] sm:$0xf] }
 0x636   : > { %10151 = vmatmul.msk.bf16.vlgmr.msrb.gmra.mxu0 %vm8154_vm10, %v8384_v39  ;;  %8633 = vmatpush.bf16.msra.mxu3 %v10208_v56  ;;  %v10245_v56 = vld [vmem:[#allocation11 + $0x40] sm:$0xf] }
 0x637   : > { %10168 = vmatmul.msk.bf16.vlgmr.msra.gmra.mxu1 %vm8154_vm10, %v8516_v47  ;;  %8620 = vmatpush.bf16.msra.mxu2 %v10204_v49  ;;  %v10562_v49 = vld [vmem:[#allocation11 + $0x44] sm:$0xf0] }
 0x638   : > { %8857 = vmatpush.bf16.msra.mxu0 %v10254_v17  ;;  %v10246_v0 = vor.u32 %v10562_v49, %v10245_v56  ;;  %8870 = vmatpush.bf16.msrb.mxu1 %v10318_v60  ;;  %v10222_v17 = vor.u32 %v10556_v16, %v10221_v7  ;;  %v10286_v60 = vor.u32 %v10572_v14, %v10285_v9  ;;  %v10554_v56 = vld [vmem:[#allocation11 + $0x4] sm:$0xf0]  ;;  %v10595_v16 = vld [vmem:[#allocation12 + $0x50] sm:$0xff]  ;;  %v10585_v9 = vld [vmem:[#allocation12] sm:$0xff] }
 0x639   : > { %v10594_v14 = vld [vmem:[#allocation12 + $0x48] sm:$0xff] }
 0x63a   : > { %8634 = vmatpush.bf16.msra.mxu3 %v10200_v12  ;;  %v10247_v12 = vld [vmem:[#allocation11 + $0x48] sm:$0xf0] }
 0x63b   : > { %8621 = vmatpush.bf16.msra.mxu2 %v10196_v63  ;;  %v10577_v63 = vld [vmem:[#allocation11 + $0xc4] sm:$0xf]  ;;  %v10250_v29 = vor.u32 %v10561_v51, %v10247_v12  ;;  %v10214_v12 = vor.u32 %v10554_v56, %v10213_v22 }
 0x63c   : > { %v10314_v20 = vor.u32 %v10577_v63, %v10311_v24  ;;  %8858 = vmatpush.bf16.msra.mxu0 %v10246_v0  ;;  %v10553_v51 = vld [vmem:[#allocation11 + $0x4] sm:$0xf]  ;;  %v10215_v63 = vld [vmem:[#allocation11 + $0x8] sm:$0xf0] }
 0x63d   : > { %v10569_v24 = vld [vmem:[#allocation11 + $0x84] sm:$0xf] }
 0x63e   : > { %8635 = vmatpush.bf16.msra.mxu3 %v10192_v50  ;;  %v10237_v50 = vld [vmem:[#allocation11 + $0x30] sm:$0xf] }
 0x63f   : > { %8622 = vmatpush.bf16.msra.mxu2 %v10188_v43  ;;  %v10560_v43 = vld [vmem:[#allocation11 + $0x34] sm:$0xf0] }
 0x640   : > { %v10238_v46 = vor.u32 %v10560_v43, %v10237_v50 }
 0x642   : > { %8636 = vmatpush.bf16.msra.mxu3 %v10184_v10  ;;  %v10559_v10 = vld [vmem:[#allocation11 + $0x34] sm:$0xf]  ;;  %8859 = vmatpush.bf16.msra.mxu0 %v10238_v46  ;;  %v8120_v46 = vld [vmem:[%s14148_s10] sm:$0x3] }
 0x643   : > { %8623 = vmatpush.bf16.msra.mxu2 %v10180_v55  ;;  %v10239_v55 = vld [vmem:[#allocation11 + $0x38] sm:$0xf0] }
 0x644   : > { %v10242_v40 = vor.u32 %v10559_v10, %v10239_v55  ;;  %v10591_v10 = vld [vmem:[#allocation12 + $0x30] sm:$0xff] }
 0x645   : > { %10109 = vmatmul.msk.bf16.vlgmr.msrb.gmra.mxu2 %vm8154_vm10, %v8384_v39  ;;  %10150 = vmatmul.msk.bf16.vlgmr.msrb.gmra.mxu3 %vm8154_vm10, %v8384_v39  ;;  %v10258_v39 = vor.u32 %v10563_v52, %v10255_v35  ;;  %v10555_v52 = vld [vmem:[#allocation11 + $0x14] sm:$0xf]  ;;  %v10223_v35 = vld [vmem:[#allocation11 + $0x18] sm:$0xf0] }
 0x646   : > { %8894 = vmatpush.bf16.msrb.mxu3 %v10338_v33  ;;  %v10229_v33 = vld [vmem:[#allocation11 + $0x20] sm:$0xf] }
 0x647   : > { %8881 = vmatpush.bf16.msrb.mxu2 %v10274_v34  ;;  %v10230_v26 = vor.u32 %v10558_v32, %v10229_v33  ;;  %v10597_v32 = vld [vmem:[#allocation12 + $0x60] sm:$0xff] }
 0x649   : > { %8860 = vmatpush.bf16.msra.mxu0 %v10230_v26 }
 0x64a   : > { %8895 = vmatpush.bf16.msrb.mxu3 %v10330_v1 }
 0x64b   : > { %8882 = vmatpush.bf16.msrb.mxu2 %v10266_v27  ;;  %v10573_v27 = vld [vmem:[#allocation11 + $0xa4] sm:$0xf] }
 0x64c   : > { %v10298_v1 = vor.u32 %v10573_v27, %v10295_v53 }
 0x64d   : > { %8861 = vmatpush.bf16.msra.mxu0 %v10222_v17  ;;  %v10593_v17 = vld [vmem:[#allocation12 + $0x40] sm:$0xff] }
 0x64e   : > { %8896 = vmatpush.bf16.msrb.mxu3 %v10322_v23 }
 0x64f   : > { %8883 = vmatpush.bf16.msrb.mxu2 %v10258_v39  ;;  %v10287_v39 = vld [vmem:[#allocation11 + $0x98] sm:$0xf0] }
 0x650   : > { %v10290_v23 = vor.u32 %v10571_v25, %v10287_v39 }
 0x651   : > { %8862 = vmatpush.bf16.msra.mxu0 %v10214_v12 }
 0x652   : > { %8897 = vmatpush.bf16.msrb.mxu3 %v10314_v20  ;;  %v10592_v20 = vld [vmem:[#allocation12 + $0x38] sm:$0xff] }
 0x653   : > { %8884 = vmatpush.bf16.msrb.mxu2 %v10250_v29  ;;  %v10218_v29 = vor.u32 %v10553_v51, %v10215_v63 }
 0x655   : > { %10209 = vmatmul.msk.bf16.vlgmr.msra.gmra.mxu2 %vm8154_vm10, %v8516_v47  ;;  %10210 = vmatmul.msk.bf16.vlgmr.msra.gmra.mxu3 %vm8154_vm10, %v8516_v47  ;;  %v10309_v47 = vld [vmem:[#allocation11 + $0xc0] sm:$0xf] }
 0x656   : > { %v10310_v36 = vor.u32 %v10578_v4, %v10309_v47  ;;  %v10277_v47 = vld [vmem:[#allocation11 + $0x80] sm:$0xf]  ;;  %v10570_v4 = vld [vmem:[#allocation11 + $0x84] sm:$0xf0]  ;;  %9040 = vmatpush.bf16.msrb.mxu0 %v10592_v20 }
 0x657   : > { %8885 = vmatpush.bf16.msrb.mxu2 %v10242_v40  ;;  %v10590_v40 = vld [vmem:[#allocation12 + $0x28] sm:$0xff] }
 0x658   : > { %8871 = vmatpush.bf16.msrb.mxu1 %v10310_v36  ;;  %v10279_v36 = vld [vmem:[#allocation11 + $0x88] sm:$0xf0] }
 0x659   : > { %v10282_v43 = vor.u32 %v10569_v24, %v10279_v36 }
 0x65a   : > { %9041 = vmatpush.bf16.msrb.mxu0 %v10591_v10 }
 0x65b   : > { %8886 = vmatpush.bf16.msrb.mxu2 %v10234_v58 }
 0x65c   : > { %8872 = vmatpush.bf16.msrb.mxu1 %v10302_v61 }
 0x65e   : > { %9042 = vmatpush.bf16.msrb.mxu0 %v10590_v40 }
 0x660   : > { %8873 = vmatpush.bf16.msrb.mxu1 %v10294_v3 }
 0x664   : > { %8874 = vmatpush.bf16.msrb.mxu1 %v10286_v60  ;;  %v8689_v60 = vld [vmem:[%s14150_s12] sm:$0x3] }
 0x665   : > { %v8852_v39 = vperm.slane %v8689_v60, 1 }
 0x698   : > { %v14042_v21 = vpop.f32.mrf.mxu2  ;;  %v14044_v19 = vpop.f32.mrf.mxu3 }
 0x699   : > { %v8171_v42 = vadd.f32 %v14042_v21, %v8119_v11 }
 0x6a0   : > { %v8169_v28 = vpop.f32.mrf.mxu2  ;;  %v8231_v62 = vpop.f32.mrf.mxu3 }
 0x6a1   : > { %v10575_v28 = vld [vmem:[#allocation11 + $0xb4] sm:$0xf]  ;;  %v10303_v62 = vld [vmem:[#allocation11 + $0xb8] sm:$0xf0] }
 0x6a2   : > { %v10306_v37 = vor.u32 %v10575_v28, %v10303_v62  ;;  %v10599_v62 = vld [vmem:[#allocation12 + $0x70] sm:$0xff] }
 0x6a4   : > { %8898 = vmatpush.bf16.msrb.mxu3 %v10306_v37 }
 0x6a8   : > { %v14046_v57 = vpop.f32.mrf.mxu2  ;;  %v14048_v5 = vpop.f32.mrf.mxu3  ;;  %8899 = vmatpush.bf16.msrb.mxu3 %v10298_v1  ;;  %v10586_v1 = vld [vmem:[#allocation12 + $0x8] sm:$0xff] }
 0x6a9   : > { %v8248_v54 = vrot.slane %v14046_v57, 7  ;;  %v10598_v57 = vld [vmem:[#allocation12 + $0x68] sm:$0xff] }
 0x6ab   : > { %v8249_v61 = vsel %vm1662_vm0, %v14044_v19, %v8248_v54 }
 0x6ac   : > { %8900 = vmatpush.bf16.msrb.mxu3 %v10290_v23 }
 0x6b0   : > { %v8244_v31 = vpop.f32.mrf.mxu2  ;;  %v8300_v59 = vpop.f32.mrf.mxu3  ;;  %8901 = vmatpush.bf16.msrb.mxu3 %v10282_v43 }
 0x6b1   : > { %v8302_v31 = vadd.f32 %v14048_v5, %v8171_v42  ;;  %v10226_v59 = vor.u32 %v10555_v52, %v10223_v35  ;;  %v10278_v5 = vor.u32 %v10570_v4, %v10277_v47  ;;  %v10596_v42 = vld [vmem:[#allocation12 + $0x58] sm:$0xff]  ;;  %v8851_v52 = vperm.slane %v8689_v60, 0 }
 0x6b3   : > { %v14050_v48 = vpop.f32.mrf.mxu0  ;;  %8887 = vmatpush.bf16.msrb.mxu2 %v10226_v59  ;;  %8875 = vmatpush.bf16.msrb.mxu1 %v10278_v5 }
 0x6b4   : > { %v14052_v45 = vpop.f32.mrf.mxu1  ;;  %v8512_v37 = vrot.slane %v14050_v48, 7 }
 0x6b7   : > { %8888 = vmatpush.bf16.msrb.mxu2 %v10218_v29  ;;  %9053 = vmatpush.bf16.msra.mxu1 %v10600_v38 }
 0x6b8   : > { %v14054_v8 = vpop.f32.mrf.mxu2  ;;  %v14056_v13 = vpop.f32.mrf.mxu3 }
 0x6bb   : > { %v8508_v2 = vpop.f32.mrf.mxu0  ;;  %9054 = vmatpush.bf16.msra.mxu1 %v10599_v62 }
 0x6bc   : > { %v8564_v44 = vpop.f32.mrf.mxu1 }
 0x6bd   : > { %v8251_v44 = vadd.f32 %v8249_v61, %v8120_v46 }
 0x6bf   : > { %9055 = vmatpush.bf16.msra.mxu1 %v10598_v57 }
 0x6c0   : > { %v8363_v34 = vpop.f32.mrf.mxu2  ;;  %v8376_v30 = vpop.f32.mrf.mxu3 }
 0x6c3   : > { %9056 = vmatpush.bf16.msra.mxu1 %v10597_v32 }
 0x6c7   : > { %9057 = vmatpush.bf16.msra.mxu1 %v10596_v42 }
 0x6c8   : > { %v8430_v21 = vpop.f32.mrf.mxu2  ;;  %v8493_v49 = vpop.f32.mrf.mxu3 }
 0x6c9   : > { %v8434_v0 = vadd.f32 %v8430_v21, %v8302_v31  ;;  %v8513_v34 = vsel %vm1662_vm0, %v8493_v49, %v8512_v37 }
 0x6cb   : > { %v8566_v50 = vadd.f32 %v14052_v45, %v8434_v0  ;;  %v8380_v45 = vrot.slane %v14056_v13, 7  ;;  %v10589_v13 = vld [vmem:[#allocation12 + $0x20] sm:$0xff]  ;;  %9058 = vmatpush.bf16.msra.mxu1 %v10595_v16 }
 0x6cc   : > { %9043 = vmatpush.bf16.msrb.mxu0 %v10589_v13 }
 0x6cd   : > { %8648 = vst [vmem:[%s584_s14] sm:$0x1] %v8566_v50  ;;  %v8381_v2 = vsel %vm1662_vm0, %v14054_v8, %v8380_v45  ;;  %v10587_v8 = vld [vmem:[#allocation12 + $0x10] sm:$0xff] }
 0x6ce   : > { %v8383_v30 = vadd.f32 %v8381_v2, %v8251_v44 }
 0x6cf   : > { %9059 = vmatpush.bf16.msra.mxu1 %v10594_v14 }
 0x6d0   : > { %v8432_v55 = vpop.f32.mrf.mxu2  ;;  %v8495_v28 = vpop.f32.mrf.mxu3  ;;  %v8515_v18 = vadd.f32 %v8513_v34, %v8383_v30  ;;  %9044 = vmatpush.bf16.msrb.mxu0 %v10588_v6 }
 0x6d3   : > { %9060 = vmatpush.bf16.msra.mxu1 %v10593_v17 }
 0x6d4   : > { %9045 = vmatpush.bf16.msrb.mxu0 %v10587_v8 }
 0x6d8   : > { %v8625_v11 = vpop.f32.mrf.mxu2  ;;  %v8638_v33 = vpop.f32.mrf.mxu3  ;;  %9046 = vmatpush.bf16.msrb.mxu0 %v10586_v1 }
 0x6d9   : > { %v8644_v19 = vrot.slane %v8638_v33, 7 }
 0x6db   : > { %v8645_v26 = vsel %vm1662_vm0, %v8625_v11, %v8644_v19 }
 0x6dc   : > { %v8647_v48 = vadd.f32 %v8645_v26, %v8515_v18  ;;  %9047 = vmatpush.bf16.msrb.mxu0 %v10585_v9 }
 0x6de   : > { %v8649_v41 = vmax.f32 %v8647_v48, 0.0 }
 0x6e0   : > { %v8651_v15 = vperm.slane %v8649_v41, 0  ;;  %v8652_v3 = vperm.slane %v8649_v41, 1  ;;  %v8627_v58 = vpop.f32.mrf.mxu2  ;;  %v8640_v27 = vpop.f32.mrf.mxu3 }
 0x6e2   : > { %v8655_v53 = vpack.c.bf16 %v8651_v15, %v8651_v15  ;;  %v8656_v7 = vpack.c.bf16 %v8652_v3, %v8652_v3 }
 0x6e4   : > { %8863 = vmatmul.bf16.vlgmr.msra.gmra.mxu0 %v8655_v53  ;;  %8876 = vmatmul.bf16.vlgmr.msrb.gmra.mxu1 %v8656_v7 }
 0x6e5   : > { %8889 = vmatmul.bf16.vlgmr.msrb.gmra.mxu2 %v8655_v53  ;;  %8902 = vmatmul.bf16.vlgmr.msrb.gmra.mxu3 %v8656_v7 }
 0x761   : > { %v8864_v35 = vpop.f32.mrf.mxu0  ;;  %v8877_v25 = vpop.f32.mrf.mxu1 }
 0x762   : > { %v8865_v31 = vadd.f32 %v8864_v35, %v8851_v52 }
 0x764   : > { %v8878_v59 = vadd.f32 %v8877_v25, %v8865_v31 }
 0x766   : > { %v8907_v22 = vmax.f32 %v8878_v59, 0.0 }
 0x768   : > { %v8909_v56 = vpack.c.bf16 %v8907_v22, %v8907_v22  ;;  %v8890_v21 = vpop.f32.mrf.mxu2  ;;  %v8903_v49 = vpop.f32.mrf.mxu3 }
 0x769   : > { %v8891_v23 = vadd.f32 %v8890_v21, %v8852_v39  ;;  %v8866_v47 = vpop.f32.mrf.mxu0  ;;  %v8879_v4 = vpop.f32.mrf.mxu1 }
 0x76a   : > { %9048 = vmatmul.bf16.vlgmr.msrb.gmra.mxu0 %v8909_v56 }
 0x76b   : > { %v8904_v51 = vadd.f32 %v8903_v49, %v8891_v23 }
 0x76d   : > { %v8908_v0 = vmax.f32 %v8904_v51, 0.0 }
 0x76f   : > { %v8910_v12 = vpack.c.bf16 %v8908_v0, %v8908_v0 }
 0x770   : > { %v8892_v63 = vpop.f32.mrf.mxu2  ;;  %v8905_v24 = vpop.f32.mrf.mxu3 }
 0x771   : > { %9061 = vmatmul.bf16.vlgmr.msra.gmra.mxu1 %v8910_v12 }
 0x772   : > { %10869 = shalt.err (!%p10866_p8)
}
 0x773   : > { %10619 = dma.vmem_to_hbm [thread:$0]  (%p11083_p5), %s9083_s20, 16, %s9085_s28, %s9068_s29  }
 0x774   : > { %s14280_s30 = sld [smem:[#allocation60_spill]]  ;;  %s590_s27 = scalar_lea.vmem [#allocation15], %s14062_s3 }
 0x775   : > { %s14281_s26 = sld [smem:[#allocation58_spill]]  ;;  %s9095_s17 = sshll.u32 %s590_s27, 4  ;;  %s9096_s17 = int_to_ptr.vmem [resolvable:$true] %s9095_s17 }
 0x776   : > { %s9072_s20 = scalar_lea.sflag [#allocation16], %s14062_s3 }
 0x77a   : > { %s9093_s0 = scalar_lea.hbm %s14280_s30, %s11066_s25  ;;  %s10890_s21 = scalar_lea.hbm %s14280_s30, 2 }
 0x77b   : > { %v8943_v5 = vld [vmem:[%s14281_s26] sm:$0x1]  ;;  %s9097_s15 = sshll.u32 %s9093_s0, 4  ;;  %s9098_s15 = int_to_ptr.hbm [resolvable:$true] %s9097_s15 }
 0x77c   : > { %s10884_s28 = sshra.s32 %s9098_s15, 4  ;;  %s10885_s28 = int_to_ptr.hbm [resolvable:$true] %s10884_s28 }
 0x77d   : > { %s10886_s29 = scalar_lea.hbm %s10885_s28, 1  ;;  %p10891_p12 = scmp.lt.s32.totalorder %s10885_s28, %s14280_s30 }
 0x77e   : > { %p10887_p9 = scmp.ne.s32.totalorder %s10885_s28, %s10886_s29  ;;  %p10892_p13 = scmp.lt.s32.totalorder %s10890_s21, %s10886_s29 }
 0x780   : > { %p10888_p10 = pnand %p10887_p9, %p11083_p5  ;;  %p10893_p0 = por %p10892_p13, %p10891_p12 }
 0x782   : > { %p10889_p11 = pneg %p10888_p10 }
 0x784   : > { %p10894_p1 = pnand %p10893_p0, %p10889_p11 }
 0x7e7   : > { %v9049_v36 = vpop.f32.mrf.mxu0 }
 0x7e8   : > { %v9050_v29 = vadd.f32 %v9049_v36, %v8943_v5 }
 0x7ee   : > { %v9062_v50 = vpop.f32.mrf.mxu1 }
 0x7ef   : > { %v9063_v43 = vadd.f32 %v9062_v50, %v9050_v29  ;;  %v9051_v20 = vpop.f32.mrf.mxu0 }
 0x7f1   : > { %9066 = vst [vmem:[%s590_s27] sm:$0x1] %v9063_v43 }
 0x7f2   : > { %10897 = shalt.err (!%p10894_p1)
}
 0x7f3   : > { %10620 = dma.vmem_to_hbm [thread:$0]  (%p11083_p5), %s9096_s17, 16, %s9098_s15, %s9072_s20  }
 0x7f6   : > { %v9064_v38 = vpop.f32.mrf.mxu1 }
 0x7f7 PF: > { %s14282_s3 = sld [smem:[#allocation24_spill]] }
 0x7f8   : > { %s14283_s0 = sld [smem:[#allocation22_spill]] }
 0x7fd   : > { %p10651_p2 = scmp.ge.s32.totalorder %s14282_s3, 2 }
 0x7fe   : > { %s9109_s7 = sand.u32 1, %s14283_s0  }
 0x7ff   : > { %p10637_p3 = pnand %p10651_p2, %p11087_p6  ;;  %s9110_s26 = scalar_lea.sflag [#allocation8], %s9109_s7 }
 0x801   : > { %p10638_p4 = pneg %p10637_p3 }
 0x803   : > { %10927 = dma.done.wait (%p10638_p4), %s9110_s26, 16  }
 0x804   : > { %10929 = vsyncadd (%p10638_p4), %s9110_s26, 4294967280  ;;  %s9119_s27 = scalar_lea.sflag [#allocation16], %s9109_s7 }
 0x805   : > { %10931 = dma.done.wait (%p10638_p4), %s9119_s27, 16  }
 0x806   : > { %10933 = vsyncadd (%p10638_p4), %s9119_s27, 4294967280  ;;  %s14285_s24 = sld [smem:[#allocation25_spill]]  ;;  %s14288_s21 = smov %s10940_s22 }
 0x807   : > { %s14286_s28 = sld [smem:[#allocation23_spill]] }
 0x808   : > { %s14287_s23 = sld [smem:[#allocation26_spill]] }
 0x80c   : > { %p33_p5 = scmp.ge.s32.totalorder %s14285_s24, 4  }
 0x80d   : > { %s14289_s22 = smov %s14286_s28 }
 0x80e   :  { %35 = sbr.rel (!%p33_p5) target bundleno = 15 (0xf), region = 216 }
 0x813   :  { %9124 = vsyncpa [#allocation7], 1 }
 0x814   :  { %9126 = vsyncpa [#allocation7 + $0x1], 1 }
 0x815   :  { %9127 = vsyncpa [#allocation10], 1 }
 0x816   :  { %9128 = vsyncpa [#allocation13], 1 }
 0x817   :  { %9129 = vsyncpa [#allocation8], 1 }
 0x818   :  { %9131 = vsyncpa [#allocation8 + $0x1], 1 }
 0x819   :  { %9132 = vsyncpa [#allocation16], 1 }
 0x81a   :  { %9134 = vsyncpa [#allocation16 + $0x1], 1 }

</bundles_post_ra>
